<compile_context>
chip_gen: v5e
topology: v5e:2x2
jax: 0.10.0
libtpu: 0.0.40
codegen_flags: <defaults>
</compile_context>

<pallas_src>
import functools

import jax
import jax.numpy as jnp
import numpy as np
from jax import lax
from jax.experimental import pallas as pl
from jax.experimental.pallas import tpu as pltpu

BN_EPS = 1e-5
NPAD = 128          # lane-dense width of the logits slab (>= 10 classes)


# ---------------------------------------------------------------------------
# Fused Pallas kernel: conv1+BN1+ReLU+maxpool -> conv2+BN2+ReLU -> avgpool -> fc
# ---------------------------------------------------------------------------
def _fused_net_kernel(x1_ref, w1_ref, s1_ref, t1_ref, w2_ref, s2_ref, t2_ref,
                      wfc_ref, bfc_ref, out_ref, *, BR, H2, W2, C2, G, KH):
    bf16 = jnp.bfloat16

    # --- conv1 (+ 2x2-pool-member expansion): ONE banded bf16 MXU matmul -----
    # x1 rows = (ph, b), lanes = (pw, tap); w1 is pw-block-diagonal, member-major.
    h1 = jnp.dot(x1_ref[...].astype(bf16), w1_ref[...],
                 preferred_element_type=jnp.float32)              # (Hp*BR, 4*G)
    h1 = jnp.maximum(h1 * s1_ref[...] + t1_ref[...], 0.0)         # BN1 + ReLU

    # --- 2x2 max pool: members live in vreg-aligned G(=512)-lane groups ------
    pooled = jnp.maximum(
        jnp.maximum(h1[:, 0 * G:1 * G], h1[:, 1 * G:2 * G]),
        jnp.maximum(h1[:, 2 * G:3 * G], h1[:, 3 * G:4 * G]))      # (Hp*BR, G) f32

    # --- conv2: KH banded bf16 matmuls accumulated in f32 --------------------
    # Row slices start at kh*BR (multiple of 8) -> tile-aligned, no relayout;
    # lanes of the result are (w2, c2), already 128-aligned per w2 group.
    h2 = None
    for kh in range(KH):
        part = jnp.dot(pooled[kh * BR:(kh + H2) * BR].astype(bf16), w2_ref[kh],
                       preferred_element_type=jnp.float32)        # (H2*BR, W2*C2)
        h2 = part if h2 is None else h2 + part
    h2 = jnp.maximum(h2 * s2_ref[...] + t2_ref[...], 0.0)         # BN2 + ReLU

    # --- global average pool: pairwise tree over aligned lane/row groups -----
    # (the 1/(H2*W2) factor is folded into the fc weight in the wrapper)
    def _tree(parts):
        while len(parts) > 1:
            nxt = [parts[i] + parts[i + 1] for i in range(0, len(parts) - 1, 2)]
            if len(parts) % 2:
                nxt.append(parts[-1])
            parts = nxt
        return parts[0]

    sw = _tree([h2[:, j * C2:(j + 1) * C2] for j in range(W2)])   # (H2*BR, C2)
    sb = _tree([sw[i * BR:(i + 1) * BR] for i in range(H2)])      # (BR, C2)

    # --- fc into a lane-dense (BR, 128) slab ----------------------------------
    out_ref[...] = (jnp.dot(sb.astype(bf16), wfc_ref[...],
                            preferred_element_type=jnp.float32) + bfc_ref[...])


# ---------------------------------------------------------------------------
# Wrapper: layout / weight banding / BN folding in plain JAX, one pallas_call
# ---------------------------------------------------------------------------
def net_forward(x_nchw, params):
    (w1, b1, g1, be1, rm1, rv1,
     w2, b2, g2, be2, rm2, rv2, wfc, bfc) = params

    B, Cin, H, W = x_nchw.shape
    assert Cin == 1
    H1, W1 = H - 2, W - 2            # after conv1 (3x3, valid)
    assert H1 % 2 == 0 and W1 % 2 == 0, "layout assumes even conv1 output dims"
    Hp, Wp = H1 // 2, W1 // 2        # after 2x2 max pool
    H2, W2 = Hp - 2, Wp - 2          # after conv2 (3x3, valid)
    C1, C2 = w1.shape[0], w2.shape[0]
    KH = w2.shape[2]
    NCLS = wfc.shape[0]
    f32, bf16 = jnp.float32, jnp.bfloat16

    # Per-member lane group, padded so it is a multiple of 128 (vreg-aligned).
    G = -(-(Wp * C1) // 128) * 128
    assert G % C1 == 0
    PWP = G // C1                    # padded pw groups (7 real + 1 pad)

    # Batch rows per grid step: big enough to amortize per-step overhead, a
    # multiple of 8, >=2 steps for mid-size batches (v7x megacore sharding),
    # and small enough to stay well under the v7x 64 MiB VMEM ceiling.
    Bp8 = -(-B // 8) * 8
    if Bp8 >= 128:
        BR = 64
    elif Bp8 >= 16:
        BR = max(8, (Bp8 // 16) * 8)
    else:
        BR = 8
    Bp = -(-B // BR) * BR
    nb = Bp // BR

    # ---- input: pooled-window im2col, rows (blk, ph, b), lanes (pw, tap) ----
    xs = jnp.zeros((Bp, H, W), f32).at[:B].set(x_nchw[:, 0].astype(f32))
    cols = [xs[:, wy:wy + 2 * Hp:2, wx:wx + 2 * Wp:2]
            for wy in range(4) for wx in range(4)]         # 16 x (Bp, Hp, Wp)
    x1 = jnp.stack(cols, axis=-1)                          # (Bp, Hp, Wp, 16)
    x1 = x1.reshape(nb, BR, Hp, Wp, 16).transpose(0, 2, 1, 3, 4)
    x1 = x1.reshape(nb * Hp * BR, Wp * 16)                 # (nb*Hp*BR, 112)

    # ---- conv1 weight: pw-block-diagonal, member-major lanes (112, 4*G) -----
    w1_k = jnp.transpose(w1[:, 0], (1, 2, 0)).astype(f32)  # (3, 3, C1)
    eye = jnp.eye(Wp, PWP, dtype=f32)
    mem_blocks = []
    for py in range(2):
        for px in range(2):
            wz = jnp.zeros((4, 4, C1), f32).at[py:py + 3, px:px + 3, :].set(w1_k)
            blk = jnp.einsum('ij,tc->itjc', eye, wz.reshape(16, C1))
            mem_blocks.append(blk.reshape(Wp * 16, G))
    w1big = jnp.concatenate(mem_blocks, axis=1).astype(bf16)       # (112, 4*G)

    # ---- BN (eval mode) folded into per-channel scale/shift -----------------
    s1 = g1 / jnp.sqrt(rv1 + BN_EPS)
    t1 = b1 * s1 + (be1 - rm1 * s1)

    def per_member(v):                                    # (C1,) -> (1, 4*G)
        vp = jnp.zeros((PWP, C1), f32).at[:Wp].set(jnp.broadcast_to(v, (Wp, C1)))
        return jnp.tile(vp.reshape(1, G), (1, 4))

    s1big, t1big = per_member(s1), per_member(t1)

    s2v = g2 / jnp.sqrt(rv2 + BN_EPS)
    t2v = b2 * s2v + (be2 - rm2 * s2v)
    s2big = jnp.tile(s2v.reshape(1, C2), (1, W2))
    t2big = jnp.tile(t2v.reshape(1, C2), (1, W2))

    # ---- conv2 weight: KH banded (G, W2*C2) blocks, one per kernel row ------
    band = np.zeros((3, PWP, W2), np.float32)
    for kw in range(3):
        for j in range(W2):
            band[kw, j + kw, j] = 1.0
    w2big = jnp.einsum('kpw,dchk->hpcwd', jnp.asarray(band), w2.astype(f32))
    w2big = w2big.reshape(KH, G, W2 * C2).astype(bf16)             # (3, 512, 640)

    # ---- fc: fold 1/(H2*W2) avg-pool scale, pad to a lane-dense slab --------
    wfc_pad = jnp.zeros((C2, NPAD), f32).at[:, :NCLS].set(wfc.T / float(H2 * W2))
    wfc_pad = wfc_pad.astype(bf16)
    bfc_pad = jnp.zeros((1, NPAD), f32).at[:, :NCLS].set(bfc)

    kernel = functools.partial(_fused_net_kernel, BR=BR, H2=H2, W2=W2,
                               C2=C2, G=G, KH=KH)
    out = pl.pallas_call(
        kernel,
        grid=(nb,),
        out_shape=jax.ShapeDtypeStruct((Bp, NPAD), f32),
        in_specs=[
            pl.BlockSpec((Hp * BR, Wp * 16), lambda i: (i, 0)),    # x1 (per step)
            pl.BlockSpec((Wp * 16, 4 * G), lambda i: (0, 0)),      # w1big
            pl.BlockSpec((1, 4 * G), lambda i: (0, 0)),            # s1big
            pl.BlockSpec((1, 4 * G), lambda i: (0, 0)),            # t1big
            pl.BlockSpec((KH, G, W2 * C2), lambda i: (0, 0, 0)),   # w2big
            pl.BlockSpec((1, W2 * C2), lambda i: (0, 0)),          # s2big
            pl.BlockSpec((1, W2 * C2), lambda i: (0, 0)),          # t2big
            pl.BlockSpec((C2, NPAD), lambda i: (0, 0)),            # wfc
            pl.BlockSpec((1, NPAD), lambda i: (0, 0)),             # bfc
        ],
        out_specs=pl.BlockSpec((BR, NPAD), lambda i: (i, 0)),
        compiler_params=pltpu.CompilerParams(
            dimension_semantics=("parallel",),
            vmem_limit_bytes=32 * 1024 * 1024),
    )(x1, w1big, s1big, t1big, w2big, s2big, t2big, wfc_pad, bfc_pad)

    return out[:B, :NCLS]


# ---------------------------------------------------------------------------
# Pure-JAX reference (same eval-mode BN semantics), for correctness checking
# ---------------------------------------------------------------------------
def reference_forward(x_nchw, params):
    (w1, b1, g1, be1, rm1, rv1,
     w2, b2, g2, be2, rm2, rv2, wfc, bfc) = params

    def bn(y, g, be, rm, rv):
        return ((y - rm[None, :, None, None])
                / jnp.sqrt(rv[None, :, None, None] + BN_EPS)
                * g[None, :, None, None] + be[None, :, None, None])

    dn = ('NCHW', 'OIHW', 'NCHW')
    hp = lax.Precision.HIGHEST
    y = lax.conv_general_dilated(x_nchw, w1, (1, 1), 'VALID',
                                 dimension_numbers=dn, precision=hp)
    y = jnp.maximum(bn(y + b1[None, :, None, None], g1, be1, rm1, rv1), 0.0)
    B, C, Hh, Ww = y.shape
    y = y.reshape(B, C, Hh // 2, 2, Ww // 2, 2).max(axis=(3, 5))
    y = lax.conv_general_dilated(y, w2, (1, 1), 'VALID',
                                 dimension_numbers=dn, precision=hp)
    y = jnp.maximum(bn(y + b2[None, :, None, None], g2, be2, rm2, rv2), 0.0)
    y = y.mean(axis=(2, 3))
    return jnp.dot(y, wfc.T, precision=hp) + bfc[None, :]


if __name__ == "__main__":
    key = jax.random.PRNGKey(0)
    keys = jax.random.split(key, 16)
    f32 = jnp.float32
    C1, C2, NCLS = 64, 128, 10      # cfg = [64, 128], 10 classes

    w1 = 0.2 * jax.random.normal(keys[0], (C1, 1, 3, 3), f32)
    b1 = 0.1 * jax.random.normal(keys[1], (C1,), f32)
    g1 = 1.0 + 0.1 * jax.random.normal(keys[2], (C1,), f32)
    be1 = 0.1 * jax.random.normal(keys[3], (C1,), f32)
    rm1 = 0.1 * jax.random.normal(keys[4], (C1,), f32)
    rv1 = jax.random.uniform(keys[5], (C1,), f32, 0.5, 1.5)

    w2 = 0.05 * jax.random.normal(keys[6], (C2, C1, 3, 3), f32)
    b2 = 0.1 * jax.random.normal(keys[7], (C2,), f32)
    g2 = 1.0 + 0.1 * jax.random.normal(keys[8], (C2,), f32)
    be2 = 0.1 * jax.random.normal(keys[9], (C2,), f32)
    rm2 = 0.1 * jax.random.normal(keys[10], (C2,), f32)
    rv2 = jax.random.uniform(keys[11], (C2,), f32, 0.5, 1.5)

    wfc = 0.1 * jax.random.normal(keys[12], (NCLS, C2), f32)
    bfc = 0.1 * jax.random.normal(keys[13], (NCLS,), f32)

    params = (w1, b1, g1, be1, rm1, rv1, w2, b2, g2, be2, rm2, rv2, wfc, bfc)

    # NCHW input like PyTorch (16x16 -> 14 -> 7 -> 5 -> 1)
    x = jax.random.normal(keys[14], (2, 1, 16, 16), f32)

    out = jax.jit(net_forward)(x, params)
    out = jax.block_until_ready(out)

    ref = reference_forward(x, params)
    # bf16 MXU operands (f32 accumulation) -> slightly looser tolerance than
    # the all-f32 HIGHEST-precision reference.
    np.testing.assert_allclose(np.asarray(out), np.asarray(ref),
                               rtol=3e-2, atol=2e-2)
    print("KERNEL_OK")
</pallas_src>

<mosaic_0001>
module attributes {stable_mosaic.version = 11 : i64} {
  func.func @_fused_net_kernel(%arg0: i32, %arg1: memref<56x112xf32, #tpu.memory_space<vmem>>, %arg2: memref<112x2048xbf16, #tpu.memory_space<vmem>>, %arg3: memref<1x2048xf32, #tpu.memory_space<vmem>>, %arg4: memref<1x2048xf32, #tpu.memory_space<vmem>>, %arg5: memref<3x512x640xbf16, #tpu.memory_space<vmem>>, %arg6: memref<1x640xf32, #tpu.memory_space<vmem>>, %arg7: memref<1x640xf32, #tpu.memory_space<vmem>>, %arg8: memref<128x128xbf16, #tpu.memory_space<vmem>>, %arg9: memref<1x128xf32, #tpu.memory_space<vmem>>, %arg10: memref<8x128xf32, #tpu.memory_space<vmem>>) attributes {dimension_semantics = [#tpu.dimension_semantics<parallel>], iteration_bounds = array<i64: 1>, scalar_prefetch = 0 : i64, scratch_operands = 0 : i64, tpu.core_type = #tpu.core_type<tc>, window_params = [{transform_indices = @transform_0, window_bounds = array<i64: 56, 112>}, {pipeline_mode = #tpu.pipeline_mode<synchronous>, transform_indices = @transform_1, window_bounds = array<i64: 112, 2048>}, {pipeline_mode = #tpu.pipeline_mode<synchronous>, transform_indices = @transform_2, window_bounds = array<i64: 1, 2048>}, {pipeline_mode = #tpu.pipeline_mode<synchronous>, transform_indices = @transform_3, window_bounds = array<i64: 1, 2048>}, {pipeline_mode = #tpu.pipeline_mode<synchronous>, transform_indices = @transform_4, window_bounds = array<i64: 3, 512, 640>}, {pipeline_mode = #tpu.pipeline_mode<synchronous>, transform_indices = @transform_5, window_bounds = array<i64: 1, 640>}, {pipeline_mode = #tpu.pipeline_mode<synchronous>, transform_indices = @transform_6, window_bounds = array<i64: 1, 640>}, {pipeline_mode = #tpu.pipeline_mode<synchronous>, transform_indices = @transform_7, window_bounds = array<i64: 128, 128>}, {pipeline_mode = #tpu.pipeline_mode<synchronous>, transform_indices = @transform_8, window_bounds = array<i64: 1, 128>}, {transform_indices = @transform_9, window_bounds = array<i64: 8, 128>}]} {
    %c0 = arith.constant 0 : index
    %c0_0 = arith.constant 0 : index
    %0 = vector.load %arg1[%c0, %c0_0] : memref<56x112xf32, #tpu.memory_space<vmem>>, vector<56x112xf32>
    %1 = arith.truncf %0 : vector<56x112xf32> to vector<56x112xbf16>
    %c0_1 = arith.constant 0 : index
    %c0_2 = arith.constant 0 : index
    %2 = vector.load %arg2[%c0_1, %c0_2] : memref<112x2048xbf16, #tpu.memory_space<vmem>>, vector<112x2048xbf16>
    %cst = arith.constant dense<0.000000e+00> : vector<56x2048xf32>
    %3 = tpu.matmul %1, %2, %cst {dimension_numbers = #tpu.dot_dimension_numbers<[1], [0], [0], [1], [0, 0, 1, 1], [], []>} : vector<56x112xbf16>, vector<112x2048xbf16>, vector<56x2048xf32> -> vector<56x2048xf32>
    %c0_3 = arith.constant 0 : index
    %c0_4 = arith.constant 0 : index
    %4 = vector.load %arg3[%c0_3, %c0_4] : memref<1x2048xf32, #tpu.memory_space<vmem>>, vector<1x2048xf32>
    %5 = vector.broadcast %4 : vector<1x2048xf32> to vector<56x2048xf32>
    %6 = arith.mulf %3, %5 : vector<56x2048xf32>
    %c0_5 = arith.constant 0 : index
    %c0_6 = arith.constant 0 : index
    %7 = vector.load %arg4[%c0_5, %c0_6] : memref<1x2048xf32, #tpu.memory_space<vmem>>, vector<1x2048xf32>
    %8 = vector.broadcast %7 : vector<1x2048xf32> to vector<56x2048xf32>
    %9 = arith.addf %6, %8 : vector<56x2048xf32>
    %cst_7 = arith.constant 0.000000e+00 : f32
    %10 = vector.broadcast %cst_7 : f32 to vector<56x2048xf32>
    %11 = arith.maximumf %9, %10 : vector<56x2048xf32>
    %12 = vector.extract_strided_slice %11 {offsets = [0, 0], sizes = [56, 512], strides = [1, 1]} : vector<56x2048xf32> to vector<56x512xf32>
    %13 = vector.extract_strided_slice %11 {offsets = [0, 512], sizes = [56, 512], strides = [1, 1]} : vector<56x2048xf32> to vector<56x512xf32>
    %14 = arith.maximumf %12, %13 : vector<56x512xf32>
    %15 = vector.extract_strided_slice %11 {offsets = [0, 1024], sizes = [56, 512], strides = [1, 1]} : vector<56x2048xf32> to vector<56x512xf32>
    %16 = vector.extract_strided_slice %11 {offsets = [0, 1536], sizes = [56, 512], strides = [1, 1]} : vector<56x2048xf32> to vector<56x512xf32>
    %17 = arith.maximumf %15, %16 : vector<56x512xf32>
    %18 = arith.maximumf %14, %17 : vector<56x512xf32>
    %19 = vector.extract_strided_slice %18 {offsets = [0, 0], sizes = [40, 512], strides = [1, 1]} : vector<56x512xf32> to vector<40x512xf32>
    %20 = arith.truncf %19 : vector<40x512xf32> to vector<40x512xbf16>
    %c0_8 = arith.constant 0 : index
    %c0_9 = arith.constant 0 : index
    %c0_10 = arith.constant 0 : index
    %21 = vector.load %arg5[%c0_8, %c0_9, %c0_10] : memref<3x512x640xbf16, #tpu.memory_space<vmem>>, vector<1x512x640xbf16>
    %22 = vector.shape_cast %21 : vector<1x512x640xbf16> to vector<512x640xbf16>
    %cst_11 = arith.constant dense<0.000000e+00> : vector<40x640xf32>
    %23 = tpu.matmul %20, %22, %cst_11 {dimension_numbers = #tpu.dot_dimension_numbers<[1], [0], [0], [1], [0, 0, 1, 1], [], []>} : vector<40x512xbf16>, vector<512x640xbf16>, vector<40x640xf32> -> vector<40x640xf32>
    %24 = vector.extract_strided_slice %18 {offsets = [8, 0], sizes = [40, 512], strides = [1, 1]} : vector<56x512xf32> to vector<40x512xf32>
    %25 = arith.truncf %24 : vector<40x512xf32> to vector<40x512xbf16>
    %c1 = arith.constant 1 : index
    %c0_12 = arith.constant 0 : index
    %c0_13 = arith.constant 0 : index
    %26 = vector.load %arg5[%c1, %c0_12, %c0_13] : memref<3x512x640xbf16, #tpu.memory_space<vmem>>, vector<1x512x640xbf16>
    %27 = vector.shape_cast %26 : vector<1x512x640xbf16> to vector<512x640xbf16>
    %cst_14 = arith.constant dense<0.000000e+00> : vector<40x640xf32>
    %28 = tpu.matmul %25, %27, %cst_14 {dimension_numbers = #tpu.dot_dimension_numbers<[1], [0], [0], [1], [0, 0, 1, 1], [], []>} : vector<40x512xbf16>, vector<512x640xbf16>, vector<40x640xf32> -> vector<40x640xf32>
    %29 = arith.addf %23, %28 : vector<40x640xf32>
    %30 = vector.extract_strided_slice %18 {offsets = [16, 0], sizes = [40, 512], strides = [1, 1]} : vector<56x512xf32> to vector<40x512xf32>
    %31 = arith.truncf %30 : vector<40x512xf32> to vector<40x512xbf16>
    %c2 = arith.constant 2 : index
    %c0_15 = arith.constant 0 : index
    %c0_16 = arith.constant 0 : index
    %32 = vector.load %arg5[%c2, %c0_15, %c0_16] : memref<3x512x640xbf16, #tpu.memory_space<vmem>>, vector<1x512x640xbf16>
    %33 = vector.shape_cast %32 : vector<1x512x640xbf16> to vector<512x640xbf16>
    %cst_17 = arith.constant dense<0.000000e+00> : vector<40x640xf32>
    %34 = tpu.matmul %31, %33, %cst_17 {dimension_numbers = #tpu.dot_dimension_numbers<[1], [0], [0], [1], [0, 0, 1, 1], [], []>} : vector<40x512xbf16>, vector<512x640xbf16>, vector<40x640xf32> -> vector<40x640xf32>
    %35 = arith.addf %29, %34 : vector<40x640xf32>
    %c0_18 = arith.constant 0 : index
    %c0_19 = arith.constant 0 : index
    %36 = vector.load %arg6[%c0_18, %c0_19] : memref<1x640xf32, #tpu.memory_space<vmem>>, vector<1x640xf32>
    %37 = vector.broadcast %36 : vector<1x640xf32> to vector<40x640xf32>
    %38 = arith.mulf %35, %37 : vector<40x640xf32>
    %c0_20 = arith.constant 0 : index
    %c0_21 = arith.constant 0 : index
    %39 = vector.load %arg7[%c0_20, %c0_21] : memref<1x640xf32, #tpu.memory_space<vmem>>, vector<1x640xf32>
    %40 = vector.broadcast %39 : vector<1x640xf32> to vector<40x640xf32>
    %41 = arith.addf %38, %40 : vector<40x640xf32>
    %cst_22 = arith.constant 0.000000e+00 : f32
    %42 = vector.broadcast %cst_22 : f32 to vector<40x640xf32>
    %43 = arith.maximumf %41, %42 : vector<40x640xf32>
    %44 = vector.extract_strided_slice %43 {offsets = [0, 0], sizes = [40, 128], strides = [1, 1]} : vector<40x640xf32> to vector<40x128xf32>
    %45 = vector.extract_strided_slice %43 {offsets = [0, 128], sizes = [40, 128], strides = [1, 1]} : vector<40x640xf32> to vector<40x128xf32>
    %46 = vector.extract_strided_slice %43 {offsets = [0, 256], sizes = [40, 128], strides = [1, 1]} : vector<40x640xf32> to vector<40x128xf32>
    %47 = vector.extract_strided_slice %43 {offsets = [0, 384], sizes = [40, 128], strides = [1, 1]} : vector<40x640xf32> to vector<40x128xf32>
    %48 = vector.extract_strided_slice %43 {offsets = [0, 512], sizes = [40, 128], strides = [1, 1]} : vector<40x640xf32> to vector<40x128xf32>
    %49 = arith.addf %44, %45 : vector<40x128xf32>
    %50 = arith.addf %46, %47 : vector<40x128xf32>
    %51 = arith.addf %49, %50 : vector<40x128xf32>
    %52 = arith.addf %51, %48 : vector<40x128xf32>
    %53 = vector.extract_strided_slice %52 {offsets = [0, 0], sizes = [8, 128], strides = [1, 1]} : vector<40x128xf32> to vector<8x128xf32>
    %54 = vector.extract_strided_slice %52 {offsets = [8, 0], sizes = [8, 128], strides = [1, 1]} : vector<40x128xf32> to vector<8x128xf32>
    %55 = vector.extract_strided_slice %52 {offsets = [16, 0], sizes = [8, 128], strides = [1, 1]} : vector<40x128xf32> to vector<8x128xf32>
    %56 = vector.extract_strided_slice %52 {offsets = [24, 0], sizes = [8, 128], strides = [1, 1]} : vector<40x128xf32> to vector<8x128xf32>
    %57 = vector.extract_strided_slice %52 {offsets = [32, 0], sizes = [8, 128], strides = [1, 1]} : vector<40x128xf32> to vector<8x128xf32>
    %58 = arith.addf %53, %54 : vector<8x128xf32>
    %59 = arith.addf %55, %56 : vector<8x128xf32>
    %60 = arith.addf %58, %59 : vector<8x128xf32>
    %61 = arith.addf %60, %57 : vector<8x128xf32>
    %62 = arith.truncf %61 : vector<8x128xf32> to vector<8x128xbf16>
    %c0_23 = arith.constant 0 : index
    %c0_24 = arith.constant 0 : index
    %63 = vector.load %arg8[%c0_23, %c0_24] : memref<128x128xbf16, #tpu.memory_space<vmem>>, vector<128x128xbf16>
    %cst_25 = arith.constant dense<0.000000e+00> : vector<8x128xf32>
    %64 = tpu.matmul %62, %63, %cst_25 {dimension_numbers = #tpu.dot_dimension_numbers<[1], [0], [0], [1], [0, 0, 1, 1], [], []>} : vector<8x128xbf16>, vector<128x128xbf16>, vector<8x128xf32> -> vector<8x128xf32>
    %c0_26 = arith.constant 0 : index
    %c0_27 = arith.constant 0 : index
    %65 = vector.load %arg9[%c0_26, %c0_27] : memref<1x128xf32, #tpu.memory_space<vmem>>, vector<1x128xf32>
    %66 = vector.broadcast %65 : vector<1x128xf32> to vector<8x128xf32>
    %67 = arith.addf %64, %66 : vector<8x128xf32>
    %c0_28 = arith.constant 0 : index
    %c0_29 = arith.constant 0 : index
    %68 = vector.load %arg10[%c0_28, %c0_29] : memref<8x128xf32, #tpu.memory_space<vmem>>, vector<8x128xf32>
    tpu.vector_store %arg10[%c0_28, %c0_29], %67 {strides = array<i32>} : memref<8x128xf32, #tpu.memory_space<vmem>>, vector<8x128xf32>,
    return
  }
  func.func @transform_0(%arg0: i32) -> (i32, i32) {
    %c0_i32 = arith.constant 0 : i32
    %c0_i32_0 = arith.constant 0 : i32
    return %arg0, %c0_i32 : i32, i32
  }
  func.func @transform_1(%arg0: i32) -> (i32, i32) {
    %c0_i32 = arith.constant 0 : i32
    %c0_i32_0 = arith.constant 0 : i32
    %c0_i32_1 = arith.constant 0 : i32
    return %c0_i32, %c0_i32_0 : i32, i32
  }
  func.func @transform_2(%arg0: i32) -> (i32, i32) {
    %c0_i32 = arith.constant 0 : i32
    %c0_i32_0 = arith.constant 0 : i32
    %c0_i32_1 = arith.constant 0 : i32
    return %c0_i32, %c0_i32_0 : i32, i32
  }
  func.func @transform_3(%arg0: i32) -> (i32, i32) {
    %c0_i32 = arith.constant 0 : i32
    %c0_i32_0 = arith.constant 0 : i32
    %c0_i32_1 = arith.constant 0 : i32
    return %c0_i32, %c0_i32_0 : i32, i32
  }
  func.func @transform_4(%arg0: i32) -> (i32, i32, i32) {
    %c0_i32 = arith.constant 0 : i32
    %c0_i32_0 = arith.constant 0 : i32
    %c0_i32_1 = arith.constant 0 : i32
    %c0_i32_2 = arith.constant 0 : i32
    return %c0_i32, %c0_i32_0, %c0_i32_1 : i32, i32, i32
  }
  func.func @transform_5(%arg0: i32) -> (i32, i32) {
    %c0_i32 = arith.constant 0 : i32
    %c0_i32_0 = arith.constant 0 : i32
    %c0_i32_1 = arith.constant 0 : i32
    return %c0_i32, %c0_i32_0 : i32, i32
  }
  func.func @transform_6(%arg0: i32) -> (i32, i32) {
    %c0_i32 = arith.constant 0 : i32
    %c0_i32_0 = arith.constant 0 : i32
    %c0_i32_1 = arith.constant 0 : i32
    return %c0_i32, %c0_i32_0 : i32, i32
  }
  func.func @transform_7(%arg0: i32) -> (i32, i32) {
    %c0_i32 = arith.constant 0 : i32
    %c0_i32_0 = arith.constant 0 : i32
    %c0_i32_1 = arith.constant 0 : i32
    return %c0_i32, %c0_i32_0 : i32, i32
  }
  func.func @transform_8(%arg0: i32) -> (i32, i32) {
    %c0_i32 = arith.constant 0 : i32
    %c0_i32_0 = arith.constant 0 : i32
    %c0_i32_1 = arith.constant 0 : i32
    return %c0_i32, %c0_i32_0 : i32, i32
  }
  func.func @transform_9(%arg0: i32) -> (i32, i32) {
    %c0_i32 = arith.constant 0 : i32
    %c0_i32_0 = arith.constant 0 : i32
    return %arg0, %c0_i32 : i32, i32
  }
}

</mosaic_0001>

<bundles_post_ra>
// kernel: net_forward.1
= control target key start
LH: loop header
LB: loop body
LE: loop exit
PB: predicated region body
PF: predicated region fallthrough
CT: control target
= control target key end

     0   :  { %vm716_vm0 = vcmask 916480   ;;  %s15112_s1 = inlined_call_operand.vmem [shape: bf16[112,2048], index: 1, kind: input, shape index: {}]   ;;  %s15113_s0 = inlined_call_operand.vmem [shape: f32[56,112], index: 0, kind: input, shape index: {}]   ;;  %s15114_s2 = inlined_call_operand.vmem [shape: f32[1,2048], index: 2, kind: input, shape index: {}]   ;;  %s15115_s3 = inlined_call_operand.vmem [shape: f32[1,2048], index: 3, kind: input, shape index: {}]   ;;  %s15116_s4 = inlined_call_operand.vmem [shape: bf16[3,512,640], index: 4, kind: input, shape index: {}]   ;;  %s15117_s5 = inlined_call_operand.vmem [shape: f32[1,640], index: 5, kind: input, shape index: {}]   ;;  %s15118_s6 = inlined_call_operand.vmem [shape: f32[1,640], index: 6, kind: input, shape index: {}]   ;;  %s15119_s8 = inlined_call_operand.vmem [shape: f32[1,128], index: 8, kind: input, shape index: {}]   ;;  %s15120_s7 = inlined_call_operand.vmem [shape: bf16[128,128], index: 7, kind: input, shape index: {}]   ;;  %s15121_s9 = inlined_call_operand.vmem [shape: f32[8,128], index: 9, kind: output, shape index: {}]  }
   0x1   :  { %v6776_v0 = vld [vmem:[%s15112_s1 + $0x300] sm:$0xf]  ;;  %v9334_v2 = vld [vmem:[%s15112_s1 + $0x304] sm:$0xf]  ;;  %v6784_v5 = vld [vmem:[%s15112_s1 + $0x308] sm:$0xf] }
   0x2   :  { %v9342_v1 = vld [vmem:[%s15112_s1 + $0x33c] sm:$0xf0]  ;;  %v6778_v4 = vld [vmem:[%s15112_s1 + $0x340] sm:$0xf0]  ;;  %v9343_v6 = vld [vmem:[%s15112_s1 + $0x344] sm:$0xf0] }
   0x3   :  { %v6777_v3 = vor.u32 %v9342_v1, %v6776_v0  ;;  %v6781_v7 = vor.u32 %v9334_v2, %v6778_v4  ;;  %v6785_v8 = vor.u32 %v9343_v6, %v6784_v5  ;;  %v9335_v9 = vld [vmem:[%s15112_s1 + $0x30c] sm:$0xf]  ;;  %v6712_v11 = vld [vmem:[%s15112_s1 + $0x280] sm:$0xf]  ;;  %v9318_v14 = vld [vmem:[%s15112_s1 + $0x284] sm:$0xf] }
   0x4   :  { %v6786_v10 = vld [vmem:[%s15112_s1 + $0x348] sm:$0xf0]  ;;  %v9326_v13 = vld [vmem:[%s15112_s1 + $0x2bc] sm:$0xf0]  ;;  %v6714_v15 = vld [vmem:[%s15112_s1 + $0x2c0] sm:$0xf0] }
   0x5   :  { %730 = vmatpush.bf16.msra.mxu0 %v6777_v3  ;;  %v6789_v12 = vor.u32 %v9335_v9, %v6786_v10  ;;  %758 = vmatpush.bf16.msra.mxu1 %v6781_v7  ;;  %v6713_v16 = vor.u32 %v9326_v13, %v6712_v11  ;;  %v6717_v17 = vor.u32 %v9318_v14, %v6714_v15  ;;  %v6720_v18 = vld [vmem:[%s15112_s1 + $0x288] sm:$0xf]  ;;  %v9319_v20 = vld [vmem:[%s15112_s1 + $0x28c] sm:$0xf]  ;;  %v6648_v23 = vld [vmem:[%s15112_s1 + $0x200] sm:$0xf] }
   0x6   :  { %786 = vmatpush.bf16.msra.mxu2 %v6785_v8  ;;  %v9327_v19 = vld [vmem:[%s15112_s1 + $0x2c4] sm:$0xf0]  ;;  %v6722_v22 = vld [vmem:[%s15112_s1 + $0x2c8] sm:$0xf0]  ;;  %v9310_v24 = vld [vmem:[%s15112_s1 + $0x23c] sm:$0xf0] }
   0x7   :  { %814 = vmatpush.bf16.msra.mxu3 %v6789_v12  ;;  %v6721_v21 = vor.u32 %v9327_v19, %v6720_v18  ;;  %v6725_v25 = vor.u32 %v9319_v20, %v6722_v22  ;;  %v9302_v26 = vld [vmem:[%s15112_s1 + $0x204] sm:$0xf]  ;;  %v6656_v28 = vld [vmem:[%s15112_s1 + $0x208] sm:$0xf]  ;;  %v6649_v29 = vor.u32 %v9310_v24, %v6648_v23  ;;  %v9303_v31 = vld [vmem:[%s15112_s1 + $0x20c] sm:$0xf] }
   0x8   :  { %v6650_v27 = vld [vmem:[%s15112_s1 + $0x240] sm:$0xf0]  ;;  %v9311_v30 = vld [vmem:[%s15112_s1 + $0x244] sm:$0xf0]  ;;  %v6658_v32 = vld [vmem:[%s15112_s1 + $0x248] sm:$0xf0] }
   0x9   :  { %731 = vmatpush.bf16.msra.mxu0 %v6713_v16  ;;  %759 = vmatpush.bf16.msra.mxu1 %v6717_v17  ;;  %v6653_v33 = vor.u32 %v9302_v26, %v6650_v27  ;;  %v6657_v34 = vor.u32 %v9311_v30, %v6656_v28  ;;  %v6584_v35 = vld [vmem:[%s15112_s1 + $0x180] sm:$0xf]  ;;  %v9286_v37 = vld [vmem:[%s15112_s1 + $0x184] sm:$0xf]  ;;  %v6661_v38 = vor.u32 %v9303_v31, %v6658_v32  ;;  %v6592_v40 = vld [vmem:[%s15112_s1 + $0x188] sm:$0xf] }
   0xa   :  { %787 = vmatpush.bf16.msra.mxu2 %v6721_v21  ;;  %v9294_v36 = vld [vmem:[%s15112_s1 + $0x1bc] sm:$0xf0]  ;;  %v6586_v39 = vld [vmem:[%s15112_s1 + $0x1c0] sm:$0xf0]  ;;  %v9295_v41 = vld [vmem:[%s15112_s1 + $0x1c4] sm:$0xf0] }
   0xb   :  { %815 = vmatpush.bf16.msra.mxu3 %v6725_v25  ;;  %v9287_v42 = vld [vmem:[%s15112_s1 + $0x18c] sm:$0xf]  ;;  %v6585_v44 = vor.u32 %v9294_v36, %v6584_v35  ;;  %v6589_v45 = vor.u32 %v9286_v37, %v6586_v39  ;;  %v6593_v46 = vor.u32 %v9295_v41, %v6592_v40  ;;  %v6520_v47 = vld [vmem:[%s15112_s1 + $0x100] sm:$0xf]  ;;  %v9270_v49 = vld [vmem:[%s15112_s1 + $0x104] sm:$0xf] }
   0xc   :  { %v6594_v43 = vld [vmem:[%s15112_s1 + $0x1c8] sm:$0xf0]  ;;  %v9278_v48 = vld [vmem:[%s15112_s1 + $0x13c] sm:$0xf0]  ;;  %v6522_v51 = vld [vmem:[%s15112_s1 + $0x140] sm:$0xf0] }
   0xd   :  { %732 = vmatpush.bf16.msra.mxu0 %v6649_v29  ;;  %760 = vmatpush.bf16.msra.mxu1 %v6653_v33  ;;  %v6597_v50 = vor.u32 %v9287_v42, %v6594_v43  ;;  %v6528_v52 = vld [vmem:[%s15112_s1 + $0x108] sm:$0xf]  ;;  %v9271_v54 = vld [vmem:[%s15112_s1 + $0x10c] sm:$0xf]  ;;  %v6521_v56 = vor.u32 %v9278_v48, %v6520_v47  ;;  %v6525_v57 = vor.u32 %v9270_v49, %v6522_v51  ;;  %v6456_v59 = vld [vmem:[%s15112_s1 + $0x80] sm:$0xf] }
   0xe   :  { %788 = vmatpush.bf16.msra.mxu2 %v6657_v34  ;;  %v9279_v53 = vld [vmem:[%s15112_s1 + $0x144] sm:$0xf0]  ;;  %v6530_v55 = vld [vmem:[%s15112_s1 + $0x148] sm:$0xf0]  ;;  %v9262_v60 = vld [vmem:[%s15112_s1 + $0xbc] sm:$0xf0] }
   0xf   :  { %816 = vmatpush.bf16.msra.mxu3 %v6661_v38  ;;  %v6529_v58 = vor.u32 %v9279_v53, %v6528_v52  ;;  %v9254_v61 = vld [vmem:[%s15112_s1 + $0x84] sm:$0xf]  ;;  %v6533_v62 = vor.u32 %v9271_v54, %v6530_v55  ;;  %v6464_v0 = vld [vmem:[%s15112_s1 + $0x88] sm:$0xf]  ;;  %v9255_v2 = vld [vmem:[%s15112_s1 + $0x8c] sm:$0xf]  ;;  %v6457_v4 = vor.u32 %v9262_v60, %v6456_v59 }
  0x10   :  { %v6458_v63 = vld [vmem:[%s15112_s1 + $0xc0] sm:$0xf0]  ;;  %v9263_v1 = vld [vmem:[%s15112_s1 + $0xc4] sm:$0xf0]  ;;  %v6466_v3 = vld [vmem:[%s15112_s1 + $0xc8] sm:$0xf0] }
  0x11   :  { %733 = vmatpush.bf16.msra.mxu0 %v6585_v44  ;;  %761 = vmatpush.bf16.msra.mxu1 %v6589_v45  ;;  %v6392_v5 = vld [vmem:[%s15112_s1] sm:$0xf]  ;;  %v6461_v7 = vor.u32 %v9254_v61, %v6458_v63  ;;  %v6465_v8 = vor.u32 %v9263_v1, %v6464_v0  ;;  %v9238_v9 = vld [vmem:[%s15112_s1 + $0x4] sm:$0xf]  ;;  %v6400_v11 = vld [vmem:[%s15112_s1 + $0x8] sm:$0xf]  ;;  %v6469_v12 = vor.u32 %v9255_v2, %v6466_v3 }
  0x12   :  { %789 = vmatpush.bf16.msra.mxu2 %v6593_v46  ;;  %v9246_v6 = vld [vmem:[%s15112_s1 + $0x3c] sm:$0xf0]  ;;  %v6394_v10 = vld [vmem:[%s15112_s1 + $0x40] sm:$0xf0]  ;;  %v9247_v13 = vld [vmem:[%s15112_s1 + $0x44] sm:$0xf0] }
  0x13   :  { %817 = vmatpush.bf16.msra.mxu3 %v6597_v50  ;;  %v9239_v14 = vld [vmem:[%s15112_s1 + $0xc] sm:$0xf]  ;;  %v33_v16 = vld [vmem:[%s15113_s0] sm:$0xff]  ;;  %v6800_v17 = vld [vmem:[%s15112_s1 + $0x318] sm:$0xf]  ;;  %v6393_v19 = vor.u32 %v9246_v6, %v6392_v5  ;;  %v6397_v23 = vor.u32 %v9238_v9, %v6394_v10  ;;  %v6401_v24 = vor.u32 %v9247_v13, %v6400_v11 }
  0x14   :  { %v6402_v15 = vld [vmem:[%s15112_s1 + $0x48] sm:$0xf0]  ;;  %v9345_v18 = vld [vmem:[%s15112_s1 + $0x354] sm:$0xf0]  ;;  %v9337_v21 = vld [vmem:[%s15112_s1 + $0x31c] sm:$0xf] }
  0x15   :  { %734 = vmatpush.bf16.msra.mxu0 %v6521_v56  ;;  %762 = vmatpush.bf16.msra.mxu1 %v6525_v57  ;;  %v34_v20 = vld [vmem:[%s15113_s0 + $0x8] sm:$0xff]  ;;  %v6802_v22 = vld [vmem:[%s15112_s1 + $0x358] sm:$0xf0]  ;;  %v6405_v25 = vor.u32 %v9239_v14, %v6402_v15  ;;  %v6801_v26 = vor.u32 %v9345_v18, %v6800_v17  ;;  %v6792_v27 = vld [vmem:[%s15112_s1 + $0x310] sm:$0xf] }
  0x16   :  { %790 = vmatpush.bf16.msra.mxu2 %v6529_v58  ;;  %v9344_v28 = vld [vmem:[%s15112_s1 + $0x34c] sm:$0xf0]  ;;  %v9336_v29 = vld [vmem:[%s15112_s1 + $0x314] sm:$0xf]  ;;  %v10084_v30 = vpack.c.bf16 %v34_v20, %v33_v16  ;;  %v6805_v31 = vor.u32 %v9337_v21, %v6802_v22  ;;  %v6736_v33 = vld [vmem:[%s15112_s1 + $0x298] sm:$0xf] }
  0x17   :  { %818 = vmatpush.bf16.msra.mxu3 %v6533_v62  ;;  %v6794_v32 = vld [vmem:[%s15112_s1 + $0x350] sm:$0xf0]  ;;  %v9329_v34 = vld [vmem:[%s15112_s1 + $0x2d4] sm:$0xf0]  ;;  %v9321_v35 = vld [vmem:[%s15112_s1 + $0x29c] sm:$0xf]  ;;  %v6793_v37 = vor.u32 %v9344_v28, %v6792_v27 }
  0x18   :  { %v6738_v36 = vld [vmem:[%s15112_s1 + $0x2d8] sm:$0xf0]  ;;  %v6797_v38 = vor.u32 %v9336_v29, %v6794_v32  ;;  %v6737_v39 = vor.u32 %v9329_v34, %v6736_v33  ;;  %v6672_v40 = vld [vmem:[%s15112_s1 + $0x218] sm:$0xf]  ;;  %v6728_v41 = vld [vmem:[%s15112_s1 + $0x290] sm:$0xf] }
  0x19   :  { %735 = vmatpush.bf16.msra.mxu0 %v6457_v4  ;;  %763 = vmatpush.bf16.msra.mxu1 %v6461_v7  ;;  %v9328_v42 = vld [vmem:[%s15112_s1 + $0x2cc] sm:$0xf0]  ;;  %v6741_v43 = vor.u32 %v9321_v35, %v6738_v36  ;;  %v9313_v44 = vld [vmem:[%s15112_s1 + $0x254] sm:$0xf0]  ;;  %v9320_v45 = vld [vmem:[%s15112_s1 + $0x294] sm:$0xf] }
  0x1a   :  { %791 = vmatpush.bf16.msra.mxu2 %v6465_v8  ;;  %v6730_v46 = vld [vmem:[%s15112_s1 + $0x2d0] sm:$0xf0]  ;;  %v9305_v47 = vld [vmem:[%s15112_s1 + $0x21c] sm:$0xf]  ;;  %v6729_v49 = vor.u32 %v9328_v42, %v6728_v41  ;;  %v6673_v50 = vor.u32 %v9313_v44, %v6672_v40  ;;  %v6608_v52 = vld [vmem:[%s15112_s1 + $0x198] sm:$0xf] }
  0x1b   :  { %819 = vmatpush.bf16.msra.mxu3 %v6469_v12  ;;  %v6674_v48 = vld [vmem:[%s15112_s1 + $0x258] sm:$0xf0]  ;;  %v6733_v51 = vor.u32 %v9320_v45, %v6730_v46  ;;  %v6664_v53 = vld [vmem:[%s15112_s1 + $0x210] sm:$0xf]  ;;  %v9297_v56 = vld [vmem:[%s15112_s1 + $0x1d4] sm:$0xf0] }
  0x1c   :  { %v9312_v54 = vld [vmem:[%s15112_s1 + $0x24c] sm:$0xf0]  ;;  %v6677_v55 = vor.u32 %v9305_v47, %v6674_v48  ;;  %v9304_v57 = vld [vmem:[%s15112_s1 + $0x214] sm:$0xf]  ;;  %v9289_v59 = vld [vmem:[%s15112_s1 + $0x19c] sm:$0xf]  ;;  %v6609_v63 = vor.u32 %v9297_v56, %v6608_v52 }
  0x1d   :  { %736 = vmatpush.bf16.msra.mxu0 %v6393_v19  ;;  %764 = vmatpush.bf16.msra.mxu1 %v6397_v23  ;;  %v6666_v58 = vld [vmem:[%s15112_s1 + $0x250] sm:$0xf0]  ;;  %v6610_v60 = vld [vmem:[%s15112_s1 + $0x1d8] sm:$0xf0]  ;;  %v6665_v61 = vor.u32 %v9312_v54, %v6664_v53  ;;  %v6544_v1 = vld [vmem:[%s15112_s1 + $0x118] sm:$0xf] }
  0x1e   :  { %792 = vmatpush.bf16.msra.mxu2 %v6401_v24  ;;  %v35_v62 = vld [vmem:[%s15113_s0 + $0x10] sm:$0xff]  ;;  %v6669_v0 = vor.u32 %v9304_v57, %v6666_v58  ;;  %v6613_v4 = vor.u32 %v9289_v59, %v6610_v60  ;;  %v9281_v5 = vld [vmem:[%s15112_s1 + $0x154] sm:$0xf0]  ;;  %v9273_v9 = vld [vmem:[%s15112_s1 + $0x11c] sm:$0xf] }
  0x1f   :  { %820 = vmatpush.bf16.msra.mxu3 %v6405_v25  ;;  %v6600_v2 = vld [vmem:[%s15112_s1 + $0x190] sm:$0xf]  ;;  %v9288_v6 = vld [vmem:[%s15112_s1 + $0x194] sm:$0xf]  ;;  %v36_v8 = vld [vmem:[%s15113_s0 + $0x18] sm:$0xff]  ;;  %v6545_v12 = vor.u32 %v9281_v5, %v6544_v1 }
  0x20   :  { %6838 = vmatmul.msk.bf16.vlgmr.msra.gmra.mxu0 %vm716_vm0, %v10084_v30  ;;  %6842 = vmatmul.msk.bf16.vlgmr.msra.gmra.mxu1 %vm716_vm0, %v10084_v30  ;;  %v9296_v3 = vld [vmem:[%s15112_s1 + $0x1cc] sm:$0xf0]  ;;  %v6602_v7 = vld [vmem:[%s15112_s1 + $0x1d0] sm:$0xf0]  ;;  %v6546_v10 = vld [vmem:[%s15112_s1 + $0x158] sm:$0xf0]  ;;  %v10196_v17 = vpack.c.bf16 %v36_v8, %v35_v62 }
  0x21   :  { %6846 = vmatmul.msk.bf16.vlgmr.msra.gmra.mxu2 %vm716_vm0, %v10084_v30  ;;  %842 = vmatpush.bf16.msrb.mxu0 %v6793_v37  ;;  %v6601_v11 = vor.u32 %v9296_v3, %v6600_v2  ;;  %v6605_v13 = vor.u32 %v9288_v6, %v6602_v7  ;;  %v6480_v14 = vld [vmem:[%s15112_s1 + $0x98] sm:$0xf]  ;;  %v6536_v15 = vld [vmem:[%s15112_s1 + $0x110] sm:$0xf]  ;;  %v6549_v18 = vor.u32 %v9273_v9, %v6546_v10  ;;  %v9272_v20 = vld [vmem:[%s15112_s1 + $0x114] sm:$0xf] }
  0x22   :  { %898 = vmatpush.bf16.msrb.mxu2 %v6801_v26  ;;  %6850 = vmatmul.msk.bf16.vlgmr.msra.gmra.mxu3 %vm716_vm0, %v10084_v30  ;;  %v9280_v16 = vld [vmem:[%s15112_s1 + $0x14c] sm:$0xf0]  ;;  %v9265_v19 = vld [vmem:[%s15112_s1 + $0xd4] sm:$0xf0]  ;;  %v6538_v21 = vld [vmem:[%s15112_s1 + $0x150] sm:$0xf0] }
  0x23   :  { %926 = vmatpush.bf16.msrb.mxu3 %v6805_v31  ;;  %870 = vmatpush.bf16.msrb.mxu1 %v6797_v38  ;;  %v6537_v22 = vor.u32 %v9280_v16, %v6536_v15  ;;  %v6481_v23 = vor.u32 %v9265_v19, %v6480_v14  ;;  %v6541_v24 = vor.u32 %v9272_v20, %v6538_v21  ;;  %v9257_v25 = vld [vmem:[%s15112_s1 + $0x9c] sm:$0xf]  ;;  %v6416_v27 = vld [vmem:[%s15112_s1 + $0x18] sm:$0xf]  ;;  %v6472_v31 = vld [vmem:[%s15112_s1 + $0x90] sm:$0xf] }
  0x24   :  { %v6482_v26 = vld [vmem:[%s15112_s1 + $0xd8] sm:$0xf0]  ;;  %v9249_v29 = vld [vmem:[%s15112_s1 + $0x54] sm:$0xf0]  ;;  %v9264_v32 = vld [vmem:[%s15112_s1 + $0xcc] sm:$0xf0] }
  0x25   :  { %843 = vmatpush.bf16.msrb.mxu0 %v6729_v49  ;;  %v6485_v28 = vor.u32 %v9257_v25, %v6482_v26  ;;  %v6417_v33 = vor.u32 %v9249_v29, %v6416_v27  ;;  %v6473_v34 = vor.u32 %v9264_v32, %v6472_v31  ;;  %v9256_v35 = vld [vmem:[%s15112_s1 + $0x94] sm:$0xf]  ;;  %v9241_v37 = vld [vmem:[%s15112_s1 + $0x1c] sm:$0xf]  ;;  %v6408_v40 = vld [vmem:[%s15112_s1 + $0x10] sm:$0xf] }
  0x26   :  { %899 = vmatpush.bf16.msrb.mxu2 %v6737_v39  ;;  %v6474_v36 = vld [vmem:[%s15112_s1 + $0xd0] sm:$0xf0]  ;;  %v6418_v39 = vld [vmem:[%s15112_s1 + $0x58] sm:$0xf0]  ;;  %v9248_v41 = vld [vmem:[%s15112_s1 + $0x4c] sm:$0xf0] }
  0x27   :  { %927 = vmatpush.bf16.msrb.mxu3 %v6741_v43  ;;  %871 = vmatpush.bf16.msrb.mxu1 %v6733_v51  ;;  %v6477_v38 = vor.u32 %v9256_v35, %v6474_v36  ;;  %v6421_v42 = vor.u32 %v9241_v37, %v6418_v39  ;;  %v6409_v43 = vor.u32 %v9248_v41, %v6408_v40  ;;  %v9240_v44 = vld [vmem:[%s15112_s1 + $0x14] sm:$0xf]  ;;  %v37_v47 = vld [vmem:[%s15113_s0 + $0x20] sm:$0xff]  ;;  %v38_v48 = vld [vmem:[%s15113_s0 + $0x28] sm:$0xff] }
  0x28   :  { %v6410_v45 = vld [vmem:[%s15112_s1 + $0x50] sm:$0xf0]  ;;  %v10263_v49 = vpack.c.bf16 %v38_v48, %v37_v47  ;;  %v9347_v51 = vld [vmem:[%s15112_s1 + $0x364] sm:$0xf0]  ;;  %v9339_v52 = vld [vmem:[%s15112_s1 + $0x32c] sm:$0xf] }
  0x29   :  { %844 = vmatpush.bf16.msrb.mxu0 %v6665_v61  ;;  %v6413_v46 = vor.u32 %v9240_v44, %v6410_v45  ;;  %v6818_v54 = vld [vmem:[%s15112_s1 + $0x368] sm:$0xf0]  ;;  %v9346_v56 = vld [vmem:[%s15112_s1 + $0x35c] sm:$0xf0]  ;;  %v9338_v59 = vld [vmem:[%s15112_s1 + $0x324] sm:$0xf] }
  0x2a   :  { %900 = vmatpush.bf16.msrb.mxu2 %v6673_v50  ;;  %v6816_v50 = vld [vmem:[%s15112_s1 + $0x328] sm:$0xf]  ;;  %v6821_v57 = vor.u32 %v9339_v52, %v6818_v54  ;;  %v6810_v60 = vld [vmem:[%s15112_s1 + $0x360] sm:$0xf0]  ;;  %v6754_v1 = vld [vmem:[%s15112_s1 + $0x2e8] sm:$0xf0] }
  0x2b   :  { %928 = vmatpush.bf16.msrb.mxu3 %v6677_v55  ;;  %872 = vmatpush.bf16.msrb.mxu1 %v6669_v0  ;;  %v6817_v53 = vor.u32 %v9347_v51, %v6816_v50  ;;  %v6808_v55 = vld [vmem:[%s15112_s1 + $0x320] sm:$0xf]  ;;  %v6752_v61 = vld [vmem:[%s15112_s1 + $0x2a8] sm:$0xf]  ;;  %v6813_v62 = vor.u32 %v9338_v59, %v6810_v60  ;;  %v9323_v0 = vld [vmem:[%s15112_s1 + $0x2ac] sm:$0xf] }
  0x2c   :  { %v6809_v58 = vor.u32 %v9346_v56, %v6808_v55  ;;  %v6757_v3 = vor.u32 %v9323_v0, %v6754_v1  ;;  %v6688_v6 = vld [vmem:[%s15112_s1 + $0x228] sm:$0xf]  ;;  %v6744_v8 = vld [vmem:[%s15112_s1 + $0x2a0] sm:$0xf]  ;;  %v9307_v15 = vld [vmem:[%s15112_s1 + $0x22c] sm:$0xf] }
  0x2d   :  { %845 = vmatpush.bf16.msrb.mxu0 %v6601_v11  ;;  %v9315_v7 = vld [vmem:[%s15112_s1 + $0x264] sm:$0xf0]  ;;  %v9330_v10 = vld [vmem:[%s15112_s1 + $0x2dc] sm:$0xf0]  ;;  %v9322_v11 = vld [vmem:[%s15112_s1 + $0x2a4] sm:$0xf] }
  0x2e   :  { %901 = vmatpush.bf16.msrb.mxu2 %v6609_v63  ;;  %v9331_v63 = vld [vmem:[%s15112_s1 + $0x2e4] sm:$0xf0]  ;;  %v6689_v9 = vor.u32 %v9315_v7, %v6688_v6  ;;  %v6690_v16 = vld [vmem:[%s15112_s1 + $0x268] sm:$0xf0]  ;;  %v6680_v21 = vld [vmem:[%s15112_s1 + $0x220] sm:$0xf] }
  0x2f   :  { %929 = vmatpush.bf16.msrb.mxu3 %v6613_v4  ;;  %873 = vmatpush.bf16.msrb.mxu1 %v6605_v13  ;;  %v6753_v2 = vor.u32 %v9331_v63, %v6752_v61  ;;  %v39_v4 = vld [vmem:[%s15113_s0 + $0x30] sm:$0xff]  ;;  %v6745_v13 = vor.u32 %v9330_v10, %v6744_v8  ;;  %v6693_v19 = vor.u32 %v9307_v15, %v6690_v16  ;;  %v9299_v20 = vld [vmem:[%s15112_s1 + $0x1e4] sm:$0xf0]  ;;  %v9306_v25 = vld [vmem:[%s15112_s1 + $0x224] sm:$0xf] }
  0x30   :  { %6839 = vmatmul.msk.bf16.gmra.mxu0 %vm716_vm0, %v10196_v17  ;;  %6843 = vmatmul.msk.bf16.gmra.mxu1 %vm716_vm0, %v10196_v17  ;;  %v10312_v5 = vpack.c.bf16 %v39_v4, %v39_v4  ;;  %v6682_v26 = vld [vmem:[%s15112_s1 + $0x260] sm:$0xf0]  ;;  %v9291_v27 = vld [vmem:[%s15112_s1 + $0x1ac] sm:$0xf]  ;;  %v6560_v32 = vld [vmem:[%s15112_s1 + $0x128] sm:$0xf] }
  0x31   :  { %6847 = vmatmul.msk.bf16.gmra.mxu2 %vm716_vm0, %v10196_v17  ;;  %846 = vmatpush.bf16.msrb.mxu0 %v6537_v22  ;;  %v9314_v22 = vld [vmem:[%s15112_s1 + $0x25c] sm:$0xf0]  ;;  %v6626_v29 = vld [vmem:[%s15112_s1 + $0x1e8] sm:$0xf0]  ;;  %v9290_v37 = vld [vmem:[%s15112_s1 + $0x1a4] sm:$0xf] }
  0x32   :  { %902 = vmatpush.bf16.msrb.mxu2 %v6545_v12  ;;  %6851 = vmatmul.msk.bf16.gmra.mxu3 %vm716_vm0, %v10196_v17  ;;  %v6746_v12 = vld [vmem:[%s15112_s1 + $0x2e0] sm:$0xf0]  ;;  %v6629_v31 = vor.u32 %v9291_v27, %v6626_v29  ;;  %v9298_v36 = vld [vmem:[%s15112_s1 + $0x1dc] sm:$0xf0]  ;;  %v9275_v41 = vld [vmem:[%s15112_s1 + $0x12c] sm:$0xf] }
  0x33   :  { %930 = vmatpush.bf16.msrb.mxu3 %v6549_v18  ;;  %874 = vmatpush.bf16.msrb.mxu1 %v6541_v24  ;;  %v6749_v14 = vor.u32 %v9322_v11, %v6746_v12  ;;  %v6624_v18 = vld [vmem:[%s15112_s1 + $0x1a8] sm:$0xf]  ;;  %v6681_v24 = vor.u32 %v9314_v22, %v6680_v21  ;;  %v9282_v47 = vld [vmem:[%s15112_s1 + $0x15c] sm:$0xf0]  ;;  %v9274_v51 = vld [vmem:[%s15112_s1 + $0x124] sm:$0xf] }
  0x34   :  { %v9267_v45 = vld [vmem:[%s15112_s1 + $0xe4] sm:$0xf0]  ;;  %v6554_v52 = vld [vmem:[%s15112_s1 + $0x160] sm:$0xf0]  ;;  %v9259_v54 = vld [vmem:[%s15112_s1 + $0xac] sm:$0xf] }
  0x35   :  { %847 = vmatpush.bf16.msrb.mxu0 %v6473_v34  ;;  %v6616_v34 = vld [vmem:[%s15112_s1 + $0x1a0] sm:$0xf]  ;;  %v6498_v55 = vld [vmem:[%s15112_s1 + $0xe8] sm:$0xf0]  ;;  %v6432_v56 = vld [vmem:[%s15112_s1 + $0x28] sm:$0xf] }
  0x36   :  { %903 = vmatpush.bf16.msrb.mxu2 %v6481_v23  ;;  %v6625_v23 = vor.u32 %v9299_v20, %v6624_v18  ;;  %v6617_v39 = vor.u32 %v9298_v36, %v6616_v34  ;;  %v6488_v59 = vld [vmem:[%s15112_s1 + $0xa0] sm:$0xf]  ;;  %v9258_v63 = vld [vmem:[%s15112_s1 + $0xa4] sm:$0xf]  ;;  %v9243_v1 = vld [vmem:[%s15112_s1 + $0x2c] sm:$0xf] }
  0x37   :  { %931 = vmatpush.bf16.msrb.mxu3 %v6485_v28  ;;  %875 = vmatpush.bf16.msrb.mxu1 %v6477_v38  ;;  %v6685_v28 = vor.u32 %v9306_v25, %v6682_v26  ;;  %v6618_v38 = vld [vmem:[%s15112_s1 + $0x1e0] sm:$0xf0]  ;;  %v9266_v60 = vld [vmem:[%s15112_s1 + $0xdc] sm:$0xf0]  ;;  %v6832_v12 = vld [vmem:[%s15112_s1 + $0x338] sm:$0xf] }
  0x38   :  { %v6621_v40 = vor.u32 %v9290_v37, %v6618_v38  ;;  %v6490_v0 = vld [vmem:[%s15112_s1 + $0xe0] sm:$0xf0]  ;;  %v6424_v6 = vld [vmem:[%s15112_s1 + $0x20] sm:$0xf]  ;;  %v6834_v16 = vld [vmem:[%s15112_s1 + $0x378] sm:$0xf0] }
  0x39   :  { %848 = vmatpush.bf16.msrb.mxu0 %v6409_v43  ;;  %v6496_v43 = vld [vmem:[%s15112_s1 + $0xa8] sm:$0xf]  ;;  %v9250_v7 = vld [vmem:[%s15112_s1 + $0x5c] sm:$0xf0]  ;;  %v9242_v8 = vld [vmem:[%s15112_s1 + $0x24] sm:$0xf] }
  0x3a   :  { %904 = vmatpush.bf16.msrb.mxu2 %v6417_v33  ;;  %v9283_v33 = vld [vmem:[%s15112_s1 + $0x164] sm:$0xf0]  ;;  %v6497_v48 = vor.u32 %v9267_v45, %v6496_v43  ;;  %v6426_v10 = vld [vmem:[%s15112_s1 + $0x60] sm:$0xf0]  ;;  %v9348_v20 = vld [vmem:[%s15112_s1 + $0x36c] sm:$0xf0] }
  0x3b   :  { %932 = vmatpush.bf16.msrb.mxu3 %v6421_v42  ;;  %876 = vmatpush.bf16.msrb.mxu1 %v6413_v46  ;;  %v6561_v35 = vor.u32 %v9283_v33, %v6560_v32  ;;  %v6562_v42 = vld [vmem:[%s15112_s1 + $0x168] sm:$0xf0]  ;;  %v6552_v46 = vld [vmem:[%s15112_s1 + $0x120] sm:$0xf]  ;;  %v6429_v11 = vor.u32 %v9242_v8, %v6426_v10  ;;  %v9340_v21 = vld [vmem:[%s15112_s1 + $0x334] sm:$0xf] }
  0x3c   :  { %v6565_v44 = vor.u32 %v9275_v41, %v6562_v42  ;;  %v6553_v50 = vor.u32 %v9282_v47, %v6552_v46  ;;  %v9333_v25 = vld [vmem:[%s15112_s1 + $0x2f4] sm:$0xf0]  ;;  %v6770_v29 = vld [vmem:[%s15112_s1 + $0x2f8] sm:$0xf0]  ;;  %v10525_v32 = vld [vmem:[%s15114_s2] sm:$0xff] }
  0x3d   :  { %954 = vmatpush.bf16.msra.mxu0 %v6809_v58  ;;  %v9251_v58 = vld [vmem:[%s15112_s1 + $0x64] sm:$0xf0]  ;;  %v10528_v33 = vperm.slane %v10525_v32, 0  ;;  %v10533_v34 = vld [vmem:[%s15115_s3] sm:$0xff]  ;;  %v6704_v36 = vld [vmem:[%s15112_s1 + $0x238] sm:$0xf] }
  0x3e   :  { %1010 = vmatpush.bf16.msra.mxu2 %v6817_v53  ;;  %v6557_v53 = vor.u32 %v9274_v51, %v6554_v52  ;;  %v6433_v61 = vor.u32 %v9251_v58, %v6432_v56  ;;  %v9317_v37 = vld [vmem:[%s15112_s1 + $0x274] sm:$0xf0]  ;;  %v6760_v38 = vld [vmem:[%s15112_s1 + $0x2b0] sm:$0xf]  ;;  %v9324_v41 = vld [vmem:[%s15112_s1 + $0x2b4] sm:$0xf] }
  0x3f   :  { %1038 = vmatpush.bf16.msra.mxu3 %v6821_v57  ;;  %982 = vmatpush.bf16.msra.mxu1 %v6813_v62  ;;  %v6501_v57 = vor.u32 %v9259_v54, %v6498_v55  ;;  %v6489_v62 = vor.u32 %v9266_v60, %v6488_v59  ;;  %v6762_v42 = vld [vmem:[%s15112_s1 + $0x2f0] sm:$0xf0]  ;;  %v10557_v43 = vperm.slane %v10533_v34, 0  ;;  %v9309_v46 = vld [vmem:[%s15112_s1 + $0x23c] sm:$0xf]  ;;  %v10588_v58 = vperm.slane %v10525_v32, 3 }
  0x40   :  { %6840 = vmatmul.msk.bf16.gmra.mxu0 %vm716_vm0, %v10263_v49  ;;  %6844 = vmatmul.msk.bf16.gmra.mxu1 %vm716_vm0, %v10263_v49  ;;  %v6765_v45 = vor.u32 %v9324_v41, %v6762_v42  ;;  %v6706_v47 = vld [vmem:[%s15112_s1 + $0x278] sm:$0xf0]  ;;  %v6640_v59 = vld [vmem:[%s15112_s1 + $0x1b8] sm:$0xf] }
  0x41   :  { %6848 = vmatmul.msk.bf16.gmra.mxu2 %vm716_vm0, %v10263_v49  ;;  %955 = vmatpush.bf16.msra.mxu0 %v6745_v13  ;;  %v9349_v13 = vld [vmem:[%s15112_s1 + $0x374] sm:$0xf0]  ;;  %v6709_v51 = vor.u32 %v9309_v46, %v6706_v47  ;;  %v9284_v46 = vld [vmem:[%s15112_s1 + $0x16c] sm:$0xf0]  ;;  %v9276_v47 = vld [vmem:[%s15112_s1 + $0x134] sm:$0xf] }
  0x42   :  { %6852 = vmatmul.msk.bf16.gmra.mxu3 %vm716_vm0, %v10263_v49  ;;  %1011 = vmatpush.bf16.msra.mxu2 %v6753_v2  ;;  %v6493_v2 = vor.u32 %v9258_v63, %v6490_v0  ;;  %v6833_v15 = vor.u32 %v9349_v13, %v6832_v12  ;;  %v9301_v60 = vld [vmem:[%s15112_s1 + $0x1f4] sm:$0xf0]  ;;  %v6696_v0 = vld [vmem:[%s15112_s1 + $0x230] sm:$0xf]  ;;  %v6642_v12 = vld [vmem:[%s15112_s1 + $0x1f8] sm:$0xf0] }
  0x43   :  { %1039 = vmatpush.bf16.msra.mxu3 %v6757_v3  ;;  %983 = vmatpush.bf16.msra.mxu1 %v6749_v14  ;;  %v6434_v3 = vld [vmem:[%s15112_s1 + $0x68] sm:$0xf0]  ;;  %v9341_v14 = vld [vmem:[%s15112_s1 + $0x33c] sm:$0xf]  ;;  %v6641_v63 = vor.u32 %v9301_v60, %v6640_v59  ;;  %v9269_v41 = vld [vmem:[%s15112_s1 + $0xf4] sm:$0xf0] }
  0x44   :  { %v6437_v4 = vor.u32 %v9243_v1, %v6434_v3  ;;  %v6837_v18 = vor.u32 %v9341_v14, %v6834_v16  ;;  %v9316_v1 = vld [vmem:[%s15112_s1 + $0x26c] sm:$0xf0]  ;;  %v6514_v59 = vld [vmem:[%s15112_s1 + $0xf8] sm:$0xf0] }
  0x45   :  { %956 = vmatpush.bf16.msra.mxu0 %v6681_v24  ;;  %v6768_v24 = vld [vmem:[%s15112_s1 + $0x2b8] sm:$0xf]  ;;  %v6697_v3 = vor.u32 %v9316_v1, %v6696_v0  ;;  %v6504_v1 = vld [vmem:[%s15112_s1 + $0xb0] sm:$0xf] }
  0x46   :  { %1012 = vmatpush.bf16.msra.mxu2 %v6689_v9  ;;  %v6425_v9 = vor.u32 %v9250_v7, %v6424_v6  ;;  %v6769_v27 = vor.u32 %v9333_v25, %v6768_v24  ;;  %v6698_v6 = vld [vmem:[%s15112_s1 + $0x270] sm:$0xf0]  ;;  %v9293_v7 = vld [vmem:[%s15112_s1 + $0x1bc] sm:$0xf]  ;;  %v9300_v24 = vld [vmem:[%s15112_s1 + $0x1ec] sm:$0xf0] }
  0x47   :  { %1040 = vmatpush.bf16.msra.mxu3 %v6693_v19  ;;  %984 = vmatpush.bf16.msra.mxu1 %v6685_v28  ;;  %v6824_v19 = vld [vmem:[%s15112_s1 + $0x330] sm:$0xf]  ;;  %v9325_v28 = vld [vmem:[%s15112_s1 + $0x2bc] sm:$0xf]  ;;  %v9292_v25 = vld [vmem:[%s15112_s1 + $0x1b4] sm:$0xf] }
  0x48   :  { %v6825_v22 = vor.u32 %v9348_v20, %v6824_v19  ;;  %v6576_v19 = vld [vmem:[%s15112_s1 + $0x138] sm:$0xf] }
  0x49   :  { %957 = vmatpush.bf16.msra.mxu0 %v6617_v39  ;;  %v6705_v39 = vor.u32 %v9317_v37, %v6704_v36  ;;  %v9285_v20 = vld [vmem:[%s15112_s1 + $0x174] sm:$0xf0]  ;;  %v6578_v36 = vld [vmem:[%s15112_s1 + $0x178] sm:$0xf0] }
  0x4a   :  { %1013 = vmatpush.bf16.msra.mxu2 %v6625_v23  ;;  %v6826_v23 = vld [vmem:[%s15112_s1 + $0x370] sm:$0xf0] }
  0x4b   :  { %1041 = vmatpush.bf16.msra.mxu3 %v6629_v31  ;;  %985 = vmatpush.bf16.msra.mxu1 %v6621_v40  ;;  %v6829_v26 = vor.u32 %v9340_v21, %v6826_v23  ;;  %v6773_v31 = vor.u32 %v9325_v28, %v6770_v29  ;;  %v9332_v40 = vld [vmem:[%s15112_s1 + $0x2ec] sm:$0xf0]  ;;  %v6634_v29 = vld [vmem:[%s15112_s1 + $0x1f0] sm:$0xf0] }
  0x4c   :  { %v6632_v23 = vld [vmem:[%s15112_s1 + $0x1b0] sm:$0xf] }
  0x4d   :  { %958 = vmatpush.bf16.msra.mxu0 %v6553_v50  ;;  %v10566_v50 = vperm.slane %v10533_v34, 1  ;;  %v6633_v28 = vor.u32 %v9300_v24, %v6632_v23  ;;  %v9244_v23 = vld [vmem:[%s15112_s1 + $0x34] sm:$0xf] }
  0x4e   :  { %1014 = vmatpush.bf16.msra.mxu2 %v6561_v35  ;;  %v10536_v35 = vperm.slane %v10525_v32, 1 }
  0x4f   :  { %1042 = vmatpush.bf16.msra.mxu3 %v6565_v44  ;;  %986 = vmatpush.bf16.msra.mxu1 %v6557_v53  ;;  %v6761_v44 = vor.u32 %v9332_v40, %v6760_v38  ;;  %v6637_v38 = vor.u32 %v9292_v25, %v6634_v29  ;;  %v6512_v40 = vld [vmem:[%s15112_s1 + $0xb8] sm:$0xf]  ;;  %v6442_v29 = vld [vmem:[%s15112_s1 + $0x70] sm:$0xf0] }
  0x50   :  { %6841 = vmatmul.msk.bf16.gmra.mxu0 %vm716_vm0, %v10312_v5  ;;  %6845 = vmatmul.msk.bf16.gmra.mxu1 %vm716_vm0, %v10312_v5 }
  0x51   :  { %6849 = vmatmul.msk.bf16.gmra.mxu2 %vm716_vm0, %v10312_v5  ;;  %959 = vmatpush.bf16.msra.mxu0 %v6489_v62  ;;  %v10600_v62 = vperm.slane %v10533_v34, 3 }
  0x52   :  { %6853 = vmatmul.msk.bf16.gmra.mxu3 %vm716_vm0, %v10312_v5  ;;  %1015 = vmatpush.bf16.msra.mxu2 %v6497_v48 }
  0x53   :  { %1043 = vmatpush.bf16.msra.mxu3 %v6501_v57  ;;  %987 = vmatpush.bf16.msra.mxu1 %v6493_v2  ;;  %v10583_v57 = vperm.slane %v10525_v32, 2 }
  0x55   :  { %960 = vmatpush.bf16.msra.mxu0 %v6425_v9 }
  0x56   :  { %1016 = vmatpush.bf16.msra.mxu2 %v6433_v61  ;;  %v10597_v61 = vperm.slane %v10533_v34, 2 }
  0x57   :  { %1044 = vmatpush.bf16.msra.mxu3 %v6437_v4  ;;  %988 = vmatpush.bf16.msra.mxu1 %v6429_v11  ;;  %v9308_v4 = vld [vmem:[%s15112_s1 + $0x234] sm:$0xf] }
  0x58   :  { %v6701_v11 = vor.u32 %v9308_v4, %v6698_v6  ;;  %v6506_v6 = vld [vmem:[%s15112_s1 + $0xf0] sm:$0xf0] }
  0x60   :  { %6854 = vmatmul.msk.bf16.vlgmr.msrb.gmra.mxu0 %vm716_vm0, %v10084_v30  ;;  %6858 = vmatmul.msk.bf16.vlgmr.msrb.gmra.mxu1 %vm716_vm0, %v10084_v30 }
  0x61   :  { %6862 = vmatmul.msk.bf16.vlgmr.msrb.gmra.mxu2 %vm716_vm0, %v10084_v30  ;;  %1066 = vmatpush.bf16.msrb.mxu0 %v6825_v22  ;;  %v6577_v22 = vor.u32 %v9285_v20, %v6576_v19  ;;  %v6440_v20 = vld [vmem:[%s15112_s1 + $0x30] sm:$0xf] }
  0x62   :  { %6866 = vmatmul.msk.bf16.vlgmr.msrb.gmra.mxu3 %vm716_vm0, %v10084_v30  ;;  %1122 = vmatpush.bf16.msrb.mxu2 %v6833_v15  ;;  %v6645_v15 = vor.u32 %v9293_v7, %v6642_v12  ;;  %v6448_v7 = vld [vmem:[%s15112_s1 + $0x38] sm:$0xf]  ;;  %v9245_v12 = vld [vmem:[%s15112_s1 + $0x3c] sm:$0xf] }
  0x63   :  { %1150 = vmatpush.bf16.msrb.mxu3 %v6837_v18  ;;  %1094 = vmatpush.bf16.msrb.mxu1 %v6829_v26 }
  0x65   :  { %1067 = vmatpush.bf16.msrb.mxu0 %v6761_v44  ;;  %v6513_v44 = vor.u32 %v9269_v41, %v6512_v40 }
  0x66   :  { %1123 = vmatpush.bf16.msrb.mxu2 %v6769_v27 }
  0x67   :  { %1151 = vmatpush.bf16.msrb.mxu3 %v6773_v31  ;;  %1095 = vmatpush.bf16.msrb.mxu1 %v6765_v45  ;;  %v9277_v31 = vld [vmem:[%s15112_s1 + $0x13c] sm:$0xf]  ;;  %v6568_v45 = vld [vmem:[%s15112_s1 + $0x130] sm:$0xf] }
  0x69   :  { %1068 = vmatpush.bf16.msrb.mxu0 %v6697_v3  ;;  %v9260_v3 = vld [vmem:[%s15112_s1 + $0xb4] sm:$0xf] }
  0x6a   :  { %1124 = vmatpush.bf16.msrb.mxu2 %v6705_v39  ;;  %v6581_v39 = vor.u32 %v9277_v31, %v6578_v36  ;;  %v6445_v36 = vor.u32 %v9244_v23, %v6442_v29 }
  0x6b   :  { %1152 = vmatpush.bf16.msrb.mxu3 %v6709_v51  ;;  %1096 = vmatpush.bf16.msrb.mxu1 %v6701_v11 }
  0x6d   :  { %1069 = vmatpush.bf16.msrb.mxu0 %v6633_v28 }
  0x6e   :  { %1125 = vmatpush.bf16.msrb.mxu2 %v6641_v63 }
  0x6f   :  { %1153 = vmatpush.bf16.msrb.mxu3 %v6645_v15  ;;  %1097 = vmatpush.bf16.msrb.mxu1 %v6637_v38 }
  0x70   :  { %6855 = vmatmul.msk.bf16.gmra.mxu0 %vm716_vm0, %v10196_v17  ;;  %6859 = vmatmul.msk.bf16.gmra.mxu1 %vm716_vm0, %v10196_v17 }
  0x71   :  { %6863 = vmatmul.msk.bf16.gmra.mxu2 %vm716_vm0, %v10196_v17 }
  0x72   :  { %6867 = vmatmul.msk.bf16.gmra.mxu3 %vm716_vm0, %v10196_v17  ;;  %1126 = vmatpush.bf16.msrb.mxu2 %v6577_v22  ;;  %v9252_v22 = vld [vmem:[%s15112_s1 + $0x6c] sm:$0xf0] }
  0x73   :  { %1154 = vmatpush.bf16.msrb.mxu3 %v6581_v39  ;;  %v6441_v28 = vor.u32 %v9252_v22, %v6440_v20  ;;  %v10802_v20 = vperm.slane %v10533_v34, 5 }
  0x76   :  { %1127 = vmatpush.bf16.msrb.mxu2 %v6513_v44 }
  0x80   :  { %6856 = vmatmul.msk.bf16.gmra.mxu0 %vm716_vm0, %v10263_v49  ;;  %6860 = vmatmul.msk.bf16.gmra.mxu1 %vm716_vm0, %v10263_v49 }
  0x81   :  { %6864 = vmatmul.msk.bf16.gmra.mxu2 %vm716_vm0, %v10263_v49 }
  0x82   :  { %6868 = vmatmul.msk.bf16.gmra.mxu3 %vm716_vm0, %v10263_v49 }
  0x90   :  { %6857 = vmatmul.msk.bf16.gmra.mxu0 %vm716_vm0, %v10312_v5  ;;  %6861 = vmatmul.msk.bf16.gmra.mxu1 %vm716_vm0, %v10312_v5 }
  0x91   :  { %6865 = vmatmul.msk.bf16.gmra.mxu2 %vm716_vm0, %v10312_v5 }
  0x92   :  { %6869 = vmatmul.msk.bf16.gmra.mxu3 %vm716_vm0, %v10312_v5 }
  0x9d   :  { %v738_v48 = vpop.f32.mrf.mxu0  ;;  %v766_v53 = vpop.f32.mrf.mxu1 }
  0x9e   :  { %v1213_v52 = vmul.f32 %v10528_v33, %v738_v48  ;;  %v1214_v54 = vmul.f32 %v10536_v35, %v766_v53  ;;  %v6570_v53 = vld [vmem:[%s15112_s1 + $0x170] sm:$0xf0] }
  0x9f   :  { %v6573_v63 = vor.u32 %v9276_v47, %v6570_v53 }
  0xa0   :  { %v10571_v55 = vadd.f32 %v10557_v43, %v1213_v52  ;;  %6870 = vmatmul.msk.bf16.vlgmr.msra.gmra.mxu0 %vm716_vm0, %v10084_v30  ;;  %v10576_v56 = vadd.f32 %v10566_v50, %v1214_v54  ;;  %6874 = vmatmul.msk.bf16.vlgmr.msra.gmra.mxu1 %vm716_vm0, %v10084_v30  ;;  %v6569_v52 = vor.u32 %v9284_v46, %v6568_v45  ;;  %v9261_v54 = vld [vmem:[%s15112_s1 + $0xbc] sm:$0xf] }
  0xa1   :  { %6878 = vmatmul.msk.bf16.vlgmr.msra.gmra.mxu2 %vm716_vm0, %v10084_v30  ;;  %v6517_v0 = vor.u32 %v9261_v54, %v6514_v59  ;;  %1098 = vmatpush.bf16.msrb.mxu1 %v6573_v63 }
  0xa2   :  { %6882 = vmatmul.msk.bf16.vlgmr.msra.gmra.mxu3 %vm716_vm0, %v10084_v30  ;;  %1070 = vmatpush.bf16.msrb.mxu0 %v6569_v52 }
  0xa3   :  { %1155 = vmatpush.bf16.msrb.mxu3 %v6517_v0 }
  0xa4   :  { %v794_v2 = vpop.f32.mrf.mxu2 }
  0xa5   :  { %v1215_v8 = vmul.f32 %v10583_v57, %v794_v2  ;;  %v822_v9 = vpop.f32.mrf.mxu3  ;;  %v10618_v10 = vpop.f32.mrf.mxu0  ;;  %v9268_v2 = vld [vmem:[%s15112_s1 + $0xec] sm:$0xf0] }
  0xa6   :  { %v1216_v13 = vmul.f32 %v10588_v58, %v822_v9  ;;  %v10624_v14 = vpop.f32.mrf.mxu1  ;;  %v6505_v4 = vor.u32 %v9268_v2, %v6504_v1  ;;  %v6509_v9 = vor.u32 %v9260_v3, %v6506_v6 }
  0xa7   :  { %v10627_v16 = vadd.f32 %v10597_v61, %v1215_v8  ;;  %v9253_v8 = vld [vmem:[%s15112_s1 + $0x74] sm:$0xf0] }
  0xa8   :  { %v10630_v18 = vadd.f32 %v10600_v62, %v1216_v13  ;;  %v6449_v11 = vor.u32 %v9253_v8, %v6448_v7  ;;  %1071 = vmatpush.bf16.msrb.mxu0 %v6505_v4  ;;  %v6450_v13 = vld [vmem:[%s15112_s1 + $0x78] sm:$0xf0]  ;;  %1099 = vmatpush.bf16.msrb.mxu1 %v6509_v9  ;;  %v10793_v8 = vperm.slane %v10525_v32, 4  ;;  %v10796_v9 = vperm.slane %v10525_v32, 5 }
  0xa9   :  { %v6453_v19 = vor.u32 %v9245_v12, %v6450_v13  ;;  %v10799_v12 = vperm.slane %v10533_v34, 4 }
  0xaa   :  { %1128 = vmatpush.bf16.msrb.mxu2 %v6449_v11 }
  0xab   :  { %1156 = vmatpush.bf16.msrb.mxu3 %v6453_v19 }
  0xac   :  { %v10638_v21 = vpop.f32.mrf.mxu2  ;;  %1072 = vmatpush.bf16.msrb.mxu0 %v6441_v28  ;;  %1100 = vmatpush.bf16.msrb.mxu1 %v6445_v36 }
  0xad   :  { %v10649_v26 = vpop.f32.mrf.mxu3  ;;  %v10651_v27 = vpop.f32.mrf.mxu0 }
  0xae   :  { %v10662_v37 = vpop.f32.mrf.mxu1 }
  0xb0   :  { %6871 = vmatmul.msk.bf16.gmra.mxu0 %vm716_vm0, %v10196_v17  ;;  %6875 = vmatmul.msk.bf16.gmra.mxu1 %vm716_vm0, %v10196_v17 }
  0xb1   :  { %6879 = vmatmul.msk.bf16.gmra.mxu2 %vm716_vm0, %v10196_v17 }
  0xb2   :  { %6883 = vmatmul.msk.bf16.gmra.mxu3 %vm716_vm0, %v10196_v17 }
  0xb4   :  { %v10678_v42 = vpop.f32.mrf.mxu2 }
  0xb5   :  { %v10689_v48 = vpop.f32.mrf.mxu3  ;;  %v10691_v51 = vpop.f32.mrf.mxu0 }
  0xb6   :  { %v10702_v60 = vpop.f32.mrf.mxu1 }
  0xbc   :  { %v10728_v15 = vpop.f32.mrf.mxu2 }
  0xbd   :  { %v10739_v24 = vpop.f32.mrf.mxu3  ;;  %v10741_v25 = vpop.f32.mrf.mxu0 }
  0xbe   :  { %v10746_v31 = vpop.f32.mrf.mxu1 }
  0xc0   :  { %6872 = vmatmul.msk.bf16.gmra.mxu0 %vm716_vm0, %v10263_v49  ;;  %6876 = vmatmul.msk.bf16.gmra.mxu1 %vm716_vm0, %v10263_v49 }
  0xc1   :  { %6880 = vmatmul.msk.bf16.gmra.mxu2 %vm716_vm0, %v10263_v49 }
  0xc2   :  { %6884 = vmatmul.msk.bf16.gmra.mxu3 %vm716_vm0, %v10263_v49 }
  0xc4   :  { %v10756_v38 = vpop.f32.mrf.mxu2 }
  0xc5   :  { %v10758_v39 = vpop.f32.mrf.mxu3  ;;  %v10760_v40 = vpop.f32.mrf.mxu0 }
  0xc6   :  { %v10762_v41 = vpop.f32.mrf.mxu1 }
  0xcc   :  { %v10764_v44 = vpop.f32.mrf.mxu2 }
  0xcd   :  { %v10766_v45 = vpop.f32.mrf.mxu3  ;;  %v753_v46 = vpop.f32.mrf.mxu0 }
  0xce   :  { %v1309_v47 = vmul.f32 %v10528_v33, %v753_v46  ;;  %v781_v52 = vpop.f32.mrf.mxu1  ;;  %v10815_v46 = vperm.slane %v10525_v32, 6 }
  0xcf   :  { %v1310_v53 = vmul.f32 %v10536_v35, %v781_v52 }
  0xd0   :  { %v10771_v54 = vadd.f32 %v10557_v43, %v1309_v47  ;;  %6873 = vmatmul.msk.bf16.gmra.mxu0 %vm716_vm0, %v10312_v5  ;;  %6877 = vmatmul.msk.bf16.gmra.mxu1 %vm716_vm0, %v10312_v5  ;;  %v1473_v47 = vmax.f32 %v10571_v55, 0.0 }
  0xd1   :  { %v10776_v59 = vadd.f32 %v10566_v50, %v1310_v53  ;;  %6881 = vmatmul.msk.bf16.gmra.mxu2 %vm716_vm0, %v10312_v5  ;;  %v10821_v53 = vperm.slane %v10525_v32, 7 }
  0xd2   :  { %6885 = vmatmul.msk.bf16.gmra.mxu3 %vm716_vm0, %v10312_v5 }
  0xd4   :  { %v809_v63 = vpop.f32.mrf.mxu2 }
  0xd5   :  { %v1311_v0 = vmul.f32 %v10583_v57, %v809_v63  ;;  %v837_v1 = vpop.f32.mrf.mxu3  ;;  %v755_v2 = vpop.f32.mrf.mxu0  ;;  %v1474_v63 = vmax.f32 %v10576_v56, 0.0 }
  0xd6   :  { %v1312_v3 = vmul.f32 %v10588_v58, %v837_v1  ;;  %v783_v4 = vpop.f32.mrf.mxu1  ;;  %v10825_v1 = vperm.slane %v10533_v34, 6 }
  0xd7   :  { %v10787_v6 = vadd.f32 %v10597_v61, %v1311_v0  ;;  %v10830_v4 = vperm.slane %v10533_v34, 7  ;;  %v1476_v34 = vmax.f32 %v10630_v18, 0.0 }
  0xd8   :  { %v10790_v7 = vadd.f32 %v10600_v62, %v1312_v3 }
  0xdc   :  { %v811_v11 = vpop.f32.mrf.mxu2 }
  0xdd   :  { %v839_v13 = vpop.f32.mrf.mxu3  ;;  %v850_v19 = vpop.f32.mrf.mxu0 }
  0xde   :  { %v1217_v22 = vmul.f32 %v10793_v8, %v850_v19  ;;  %v878_v23 = vpop.f32.mrf.mxu1 }
  0xdf   :  { %v1218_v28 = vmul.f32 %v10796_v9, %v878_v23  ;;  %v1475_v23 = vmax.f32 %v10627_v16, 0.0 }
  0xe0   :  { %v1365_v29 = vadd.f32 %v10799_v12, %v1217_v22  ;;  %6886 = vmatmul.msk.bf16.vlgmr.msrb.gmra.mxu0 %vm716_vm0, %v10084_v30  ;;  %6890 = vmatmul.msk.bf16.vlgmr.msrb.gmra.mxu1 %vm716_vm0, %v10084_v30 }
  0xe1   :  { %v1366_v36 = vadd.f32 %v10802_v20, %v1218_v28  ;;  %6894 = vmatmul.msk.bf16.vlgmr.msrb.gmra.mxu2 %vm716_vm0, %v10084_v30 }
  0xe2   :  { %v1477_v52 = vmax.f32 %v1365_v29, 0.0  ;;  %6898 = vmatmul.msk.bf16.vlgmr.msrb.gmra.mxu3 %vm716_vm0, %v10084_v30  ;;  %v1245_v29 = vmul.f32 %v10528_v33, %v10651_v27 }
  0xe3   :  { %v1478_v0 = vmax.f32 %v1366_v36, 0.0 }
  0xe4   :  { %v10827_v2 = vmax.f32 %v1473_v47, %v1477_v52  ;;  %v906_v3 = vpop.f32.mrf.mxu2  ;;  %v1246_v47 = vmul.f32 %v10536_v35, %v10662_v37  ;;  %v1393_v16 = vadd.f32 %v10557_v43, %v1245_v29 }
  0xe5   :  { %v10832_v55 = vmax.f32 %v1474_v63, %v1478_v0  ;;  %v1219_v11 = vmul.f32 %v10815_v46, %v906_v3  ;;  %v934_v30 = vpop.f32.mrf.mxu3  ;;  %v10835_v13 = vpop.f32.mrf.mxu0 }
  0xe6   :  { %15145 = vst [vmem:[#allocation2_spill] sm:$0xff] %v10827_v2  ;;  %v1220_v32 = vmul.f32 %v10821_v53, %v934_v30  ;;  %v10838_v56 = vpop.f32.mrf.mxu1  ;;  %v1394_v27 = vadd.f32 %v10566_v50, %v1246_v47 }
  0xe7   :  { %15146 = vst [vmem:[#allocation3_spill] sm:$0xff] %v10832_v55  ;;  %v1367_v19 = vadd.f32 %v10825_v1, %v1219_v11 }
  0xe8   :  { %v1368_v22 = vadd.f32 %v10830_v4, %v1220_v32  ;;  %v1506_v29 = vmax.f32 %v1394_v27, 0.0 }
  0xe9   :  { %v1479_v28 = vmax.f32 %v1367_v19, 0.0  ;;  %v1247_v19 = vmul.f32 %v10583_v57, %v10678_v42 }
  0xea   :  { %v1480_v36 = vmax.f32 %v1368_v22, 0.0 }
  0xeb   :  { %v10848_v52 = vmax.f32 %v1475_v23, %v1479_v28  ;;  %v1505_v23 = vmax.f32 %v1393_v16, 0.0  ;;  %v1248_v28 = vmul.f32 %v10588_v58, %v10689_v48 }
  0xec   :  { %v10850_v63 = vmax.f32 %v1476_v34, %v1480_v36  ;;  %v10852_v0 = vpop.f32.mrf.mxu2 }
  0xed   :  { %15147 = vst [vmem:[#allocation4_spill] sm:$0xff] %v10848_v52  ;;  %v10854_v3 = vpop.f32.mrf.mxu3  ;;  %v855_v11 = vpop.f32.mrf.mxu0  ;;  %v1396_v48 = vadd.f32 %v10600_v62, %v1248_v28 }
  0xee   :  { %15148 = vst [vmem:[#allocation5_spill] sm:$0xff] %v10850_v63  ;;  %v1249_v18 = vmul.f32 %v10793_v8, %v855_v11  ;;  %v883_v30 = vpop.f32.mrf.mxu1  ;;  %v1395_v11 = vadd.f32 %v10597_v61, %v1247_v19 }
  0xef   :  { %v1250_v32 = vmul.f32 %v10796_v9, %v883_v30  ;;  %v1508_v19 = vmax.f32 %v1396_v48, 0.0 }
  0xf0   :  { %v1397_v37 = vadd.f32 %v10799_v12, %v1249_v18  ;;  %6887 = vmatmul.msk.bf16.gmra.mxu0 %vm716_vm0, %v10196_v17  ;;  %6891 = vmatmul.msk.bf16.gmra.mxu1 %vm716_vm0, %v10196_v17 }
  0xf1   :  { %v1398_v22 = vadd.f32 %v10802_v20, %v1250_v32  ;;  %6895 = vmatmul.msk.bf16.gmra.mxu2 %vm716_vm0, %v10196_v17 }
  0xf2   :  { %v1509_v34 = vmax.f32 %v1397_v37, 0.0  ;;  %6899 = vmatmul.msk.bf16.gmra.mxu3 %vm716_vm0, %v10196_v17 }
  0xf3   :  { %v1510_v36 = vmax.f32 %v1398_v22, 0.0  ;;  %v1507_v22 = vmax.f32 %v1395_v11, 0.0 }
  0xf4   :  { %v10874_v47 = vmax.f32 %v1505_v23, %v1509_v34  ;;  %v911_v42 = vpop.f32.mrf.mxu2  ;;  %v1277_v34 = vmul.f32 %v10528_v33, %v10741_v25 }
  0xf5   :  { %v10877_v18 = vmax.f32 %v1506_v29, %v1510_v36  ;;  %v1251_v30 = vmul.f32 %v10815_v46, %v911_v42  ;;  %v939_v32 = vpop.f32.mrf.mxu3  ;;  %v10880_v16 = vpop.f32.mrf.mxu0  ;;  %v1278_v36 = vmul.f32 %v10536_v35, %v10746_v31 }
  0xf6   :  { %15149 = vst [vmem:[#allocation6_spill] sm:$0xff] %v10874_v47  ;;  %v1252_v37 = vmul.f32 %v10821_v53, %v939_v32  ;;  %v10884_v63 = vpop.f32.mrf.mxu1  ;;  %v1425_v11 = vadd.f32 %v10557_v43, %v1277_v34 }
  0xf7   :  { %15150 = vst [vmem:[#allocation7_spill] sm:$0xff] %v10877_v18  ;;  %v1399_v17 = vadd.f32 %v10825_v1, %v1251_v30  ;;  %v1426_v25 = vadd.f32 %v10566_v50, %v1278_v36 }
  0xf8   :  { %v1400_v27 = vadd.f32 %v10830_v4, %v1252_v37 }
  0xf9   :  { %v1511_v23 = vmax.f32 %v1399_v17, 0.0 }
  0xfa   :  { %v1512_v29 = vmax.f32 %v1400_v27, 0.0  ;;  %v1279_v27 = vmul.f32 %v10583_v57, %v10756_v38 }
  0xfb   :  { %v10892_v42 = vmax.f32 %v1507_v22, %v1511_v23  ;;  %v1537_v23 = vmax.f32 %v1425_v11, 0.0 }
  0xfc   :  { %v10894_v28 = vmax.f32 %v1508_v19, %v1512_v29  ;;  %v10896_v32 = vpop.f32.mrf.mxu2  ;;  %v1280_v19 = vmul.f32 %v10588_v58, %v10758_v39  ;;  %v1538_v29 = vmax.f32 %v1426_v25, 0.0 }
  0xfd   :  { %15151 = vst [vmem:[#allocation8_spill] sm:$0xff] %v10892_v42  ;;  %v10898_v18 = vpop.f32.mrf.mxu3  ;;  %v860_v30 = vpop.f32.mrf.mxu0 }
  0xfe   :  { %15152 = vst [vmem:[#allocation9_spill] sm:$0xff] %v10894_v28  ;;  %v1281_v48 = vmul.f32 %v10793_v8, %v860_v30  ;;  %v888_v37 = vpop.f32.mrf.mxu1  ;;  %v1428_v39 = vadd.f32 %v10600_v62, %v1280_v19 }
  0xff   :  { %v1282_v17 = vmul.f32 %v10796_v9, %v888_v37 }
 0x100   :  { %v1429_v31 = vadd.f32 %v10799_v12, %v1281_v48  ;;  %6888 = vmatmul.msk.bf16.gmra.mxu0 %vm716_vm0, %v10263_v49  ;;  %6892 = vmatmul.msk.bf16.gmra.mxu1 %vm716_vm0, %v10263_v49  ;;  %v1427_v48 = vadd.f32 %v10597_v61, %v1279_v27  ;;  %v1540_v27 = vmax.f32 %v1428_v39, 0.0  ;;  %v1569_v39 = vmax.f32 %v10771_v54, 0.0 }
 0x101   :  { %v1430_v22 = vadd.f32 %v10802_v20, %v1282_v17  ;;  %6896 = vmatmul.msk.bf16.gmra.mxu2 %vm716_vm0, %v10263_v49 }
 0x102   :  { %v1541_v34 = vmax.f32 %v1429_v31, 0.0  ;;  %6900 = vmatmul.msk.bf16.gmra.mxu3 %vm716_vm0, %v10263_v49 }
 0x103   :  { %v1542_v36 = vmax.f32 %v1430_v22, 0.0  ;;  %v1539_v22 = vmax.f32 %v1427_v48, 0.0 }
 0x104   :  { %v10918_v30 = vmax.f32 %v1537_v23, %v1541_v34  ;;  %v916_v38 = vpop.f32.mrf.mxu2 }
 0x105   :  { %v10921_v37 = vmax.f32 %v1538_v29, %v1542_v36  ;;  %v1283_v17 = vmul.f32 %v10815_v46, %v916_v38  ;;  %v944_v28 = vpop.f32.mrf.mxu3  ;;  %v10924_v11 = vpop.f32.mrf.mxu0 }
 0x106   :  { %15153 = vst [vmem:[#allocation10_spill] sm:$0xff] %v10918_v30  ;;  %v1284_v31 = vmul.f32 %v10821_v53, %v944_v28  ;;  %v10928_v42 = vpop.f32.mrf.mxu1 }
 0x107   :  { %15154 = vst [vmem:[#allocation11_spill] sm:$0xff] %v10921_v37  ;;  %v1431_v49 = vadd.f32 %v10825_v1, %v1283_v17 }
 0x108   :  { %v1432_v25 = vadd.f32 %v10830_v4, %v1284_v31 }
 0x109   :  { %v1543_v23 = vmax.f32 %v1431_v49, 0.0 }
 0x10a   :  { %v1544_v34 = vmax.f32 %v1432_v25, 0.0 }
 0x10b   :  { %v10932_v29 = vmax.f32 %v1539_v22, %v1543_v23 }
 0x10c   :  { %v10934_v36 = vmax.f32 %v1540_v27, %v1544_v34  ;;  %v10936_v38 = vpop.f32.mrf.mxu2 }
 0x10d   :  { %15155 = vst [vmem:[#allocation12_spill] sm:$0xff] %v10932_v29  ;;  %v10938_v37 = vpop.f32.mrf.mxu3  ;;  %v865_v19 = vpop.f32.mrf.mxu0 }
 0x10e   :  { %15156 = vst [vmem:[#allocation13_spill] sm:$0xff] %v10934_v36  ;;  %v1313_v28 = vmul.f32 %v10793_v8, %v865_v19  ;;  %v893_v30 = vpop.f32.mrf.mxu1 }
 0x10f   :  { %v1314_v17 = vmul.f32 %v10796_v9, %v893_v30  ;;  %v1570_v30 = vmax.f32 %v10776_v59, 0.0 }
 0x110   :  { %v1461_v31 = vadd.f32 %v10799_v12, %v1313_v28  ;;  %6889 = vmatmul.msk.bf16.gmra.mxu0 %vm716_vm0, %v10312_v5  ;;  %6893 = vmatmul.msk.bf16.gmra.mxu1 %vm716_vm0, %v10312_v5 }
 0x111   :  { %v1462_v48 = vadd.f32 %v10802_v20, %v1314_v17  ;;  %6897 = vmatmul.msk.bf16.gmra.mxu2 %vm716_vm0, %v10312_v5 }
 0x112   :  { %v1573_v49 = vmax.f32 %v1461_v31, 0.0  ;;  %6901 = vmatmul.msk.bf16.gmra.mxu3 %vm716_vm0, %v10312_v5  ;;  %v1571_v5 = vmax.f32 %v10787_v6, 0.0 }
 0x113   :  { %v1574_v25 = vmax.f32 %v1462_v48, 0.0  ;;  %v10966_v48 = vld [vmem:[%s15114_s2 + $0x8] sm:$0xff] }
 0x114   :  { %v10954_v22 = vmax.f32 %v1569_v39, %v1573_v49  ;;  %v921_v23 = vpop.f32.mrf.mxu2  ;;  %15159 = vst [vmem:[#allocation16_spill] sm:$0xff] %v10966_v48  ;;  %v1572_v39 = vmax.f32 %v10790_v7, 0.0  ;;  %v10980_v6 = vperm.slane %v10966_v48, 1 }
 0x115   :  { %v10956_v27 = vmax.f32 %v1570_v30, %v1574_v25  ;;  %v1315_v34 = vmul.f32 %v10815_v46, %v921_v23  ;;  %v949_v19 = vpop.f32.mrf.mxu3  ;;  %v867_v28 = vpop.f32.mrf.mxu0  ;;  %v10970_v30 = vperm.slane %v10966_v48, 0 }
 0x116   :  { %15157 = vst [vmem:[#allocation14_spill] sm:$0xff] %v10954_v22  ;;  %v1316_v17 = vmul.f32 %v10821_v53, %v949_v19  ;;  %v895_v36 = vpop.f32.mrf.mxu1 }
 0x117   :  { %15158 = vst [vmem:[#allocation15_spill] sm:$0xff] %v10956_v27  ;;  %v1463_v54 = vadd.f32 %v10825_v1, %v1315_v34  ;;  %v10977_v36 = vld [vmem:[%s15115_s3 + $0x8] sm:$0xff] }
 0x118   :  { %v1464_v31 = vadd.f32 %v10830_v4, %v1316_v17  ;;  %15161 = vst [vmem:[#allocation18_spill] sm:$0xff] %v10977_v36  ;;  %v10985_v19 = vperm.slane %v10977_v36, 0  ;;  %v10988_v17 = vperm.slane %v10977_v36, 1  ;;  %v9667_v27 = vld [vmem:[%s15116_s4 + $0x9e8] sm:$0xf0] }
 0x119   :  { %v1575_v59 = vmax.f32 %v1463_v54, 0.0 }
 0x11a   :  { %v1576_v49 = vmax.f32 %v1464_v31, 0.0 }
 0x11b   :  { %v10972_v25 = vmax.f32 %v1571_v5, %v1575_v59 }
 0x11c   :  { %v10982_v23 = vmax.f32 %v1572_v39, %v1576_v49  ;;  %v923_v34 = vpop.f32.mrf.mxu2  ;;  %v10999_v49 = vperm.slane %v10966_v48, 2 }
 0x11d   :  { %15160 = vst [vmem:[#allocation17_spill] sm:$0xff] %v10972_v25  ;;  %v951_v7 = vpop.f32.mrf.mxu3  ;;  %v962_v28 = vpop.f32.mrf.mxu0  ;;  %v11002_v34 = vperm.slane %v10966_v48, 3  ;;  %v7716_v25 = vld [vmem:[%s15116_s4 + $0x9d8] sm:$0xf] }
 0x11e   :  { %15162 = vst [vmem:[#allocation19_spill] sm:$0xff] %v10982_v23  ;;  %v1221_v54 = vmul.f32 %v10970_v30, %v962_v28  ;;  %v990_v31 = vpop.f32.mrf.mxu1  ;;  %v11005_v7 = vperm.slane %v10977_v36, 2  ;;  %v7556_v28 = vld [vmem:[%s15116_s4 + $0x898] sm:$0xf]  ;;  %v7717_v52 = vor.u32 %v9667_v27, %v7716_v25  ;;  %v9547_v27 = vld [vmem:[%s15116_s4 + $0x628] sm:$0xf0] }
 0x11f   :  { %v1222_v5 = vmul.f32 %v10980_v6, %v990_v31 }
 0x120   :  { %v10993_v59 = vadd.f32 %v10985_v19, %v1221_v54  ;;  %15164 = vst [vmem:[#allocation21_spill] sm:$0xff] %v11005_v7  ;;  %v9627_v54 = vld [vmem:[%s15116_s4 + $0x8a8] sm:$0xf0]  ;;  %2979 = vmatpush.bf16.msra.mxu3 %v7717_v52 }
 0x121   :  { %v10996_v39 = vadd.f32 %v10988_v17, %v1222_v5  ;;  %v11014_v5 = vperm.slane %v10977_v36, 3  ;;  %v7557_v23 = vor.u32 %v9627_v54, %v7556_v28  ;;  %v9587_v52 = vld [vmem:[%s15116_s4 + $0x768] sm:$0xf0]  ;;  %v9622_v36 = vld [vmem:[%s15116_s4 + $0x880] sm:$0xf0] }
 0x123   :  { %15163 = vst [vmem:[#allocation20_spill] sm:$0xff] %v10996_v39  ;;  %2956 = vmatpush.bf16.msra.mxu2 %v7557_v23  ;;  %v7536_v23 = vld [vmem:[%s15116_s4 + $0x870] sm:$0xf]  ;;  %v1230_v39 = vmul.f32 %v10536_v35, %v10624_v14 }
 0x124   :  { %v1018_v31 = vpop.f32.mrf.mxu2  ;;  %15165 = vst [vmem:[#allocation22_spill] sm:$0xff] %v11014_v5 }
 0x125   :  { %v1223_v22 = vmul.f32 %v10999_v49, %v1018_v31  ;;  %v1046_v29 = vpop.f32.mrf.mxu3  ;;  %v11023_v47 = vpop.f32.mrf.mxu0  ;;  %v7236_v31 = vld [vmem:[%s15116_s4 + $0x618] sm:$0xf] }
 0x126   :  { %v1224_v55 = vmul.f32 %v11002_v34, %v1046_v29  ;;  %v11026_v2 = vpop.f32.mrf.mxu1  ;;  %v7237_v25 = vor.u32 %v9547_v27, %v7236_v31  ;;  %v7396_v29 = vld [vmem:[%s15116_s4 + $0x758] sm:$0xf]  ;;  %v7696_v31 = vld [vmem:[%s15116_s4 + $0x9b0] sm:$0xf] }
 0x127   :  { %v11029_v28 = vadd.f32 %v11005_v7, %v1223_v22 }
 0x128   :  { %v11032_v54 = vadd.f32 %v11014_v5, %v1224_v55  ;;  %v7397_v55 = vor.u32 %v9587_v52, %v7396_v29  ;;  %2910 = vmatpush.bf16.msra.mxu0 %v7237_v25  ;;  %v7537_v5 = vor.u32 %v9622_v36, %v7536_v23  ;;  %v9662_v29 = vld [vmem:[%s15116_s4 + $0x9c0] sm:$0xf0]  ;;  %v7216_v36 = vld [vmem:[%s15116_s4 + $0x5f0] sm:$0xf] }
 0x129   :  { %15166 = vst [vmem:[#allocation23_spill] sm:$0xff] %v11029_v28  ;;  %v1229_v28 = vmul.f32 %v10528_v33, %v10618_v10  ;;  %v9542_v25 = vld [vmem:[%s15116_s4 + $0x600] sm:$0xf0] }
 0x12a   :  { %15167 = vst [vmem:[#allocation24_spill] sm:$0xff] %v11032_v54  ;;  %2933 = vmatpush.bf16.msra.mxu1 %v7397_v55  ;;  %v7697_v54 = vor.u32 %v9662_v29, %v7696_v31  ;;  %2957 = vmatpush.bf16.msra.mxu2 %v7537_v5  ;;  %v7217_v23 = vor.u32 %v9542_v25, %v7216_v36  ;;  %v7376_v5 = vld [vmem:[%s15116_s4 + $0x730] sm:$0xf]  ;;  %v9582_v10 = vld [vmem:[%s15116_s4 + $0x740] sm:$0xf0] }
 0x12b   :  { %v7377_v14 = vor.u32 %v9582_v10, %v7376_v5  ;;  %v7516_v55 = vld [vmem:[%s15116_s4 + $0x848] sm:$0xf]  ;;  %v9617_v31 = vld [vmem:[%s15116_s4 + $0x858] sm:$0xf0]  ;;  %v11101_v10 = vadd.f32 %v10557_v43, %v1229_v28  ;;  %v1262_v28 = vmul.f32 %v10536_v35, %v10702_v60  ;;  %v1264_v60 = vmul.f32 %v10588_v58, %v10739_v24 }
 0x12c   :  { %v11046_v22 = vpop.f32.mrf.mxu2  ;;  %2980 = vmatpush.bf16.msra.mxu3 %v7697_v54  ;;  %v7676_v29 = vld [vmem:[%s15116_s4 + $0x988] sm:$0xf]  ;;  %2911 = vmatpush.bf16.msra.mxu0 %v7217_v23  ;;  %v9657_v5 = vld [vmem:[%s15116_s4 + $0x998] sm:$0xf0]  ;;  %v1232_v23 = vmul.f32 %v10588_v58, %v10649_v26 }
 0x12d   :  { %v11057_v27 = vpop.f32.mrf.mxu3  ;;  %v11059_v48 = vpop.f32.mrf.mxu0  ;;  %v7196_v26 = vld [vmem:[%s15116_s4 + $0x5c8] sm:$0xf] }
 0x12e   :  { %15168 = vst [vmem:[#allocation25_spill] sm:$0xff] %v11059_v48  ;;  %v11064_v52 = vpop.f32.mrf.mxu1  ;;  %v1231_v48 = vmul.f32 %v10583_v57, %v10638_v21  ;;  %2934 = vmatpush.bf16.msra.mxu1 %v7377_v14  ;;  %v7336_v21 = vld [vmem:[%s15116_s4 + $0x6e0] sm:$0xf] }
 0x12f   :  { %15169 = vst [vmem:[#allocation26_spill] sm:$0xff] %v11064_v52  ;;  %v7517_v52 = vor.u32 %v9617_v31, %v7516_v55  ;;  %v1261_v55 = vmul.f32 %v10528_v33, %v10691_v51  ;;  %v9537_v51 = vld [vmem:[%s15116_s4 + $0x5d8] sm:$0xf0]  ;;  %v9652_v31 = vld [vmem:[%s15116_s4 + $0x970] sm:$0xf0] }
 0x130   :  { %v11121_v14 = vadd.f32 %v10597_v61, %v1231_v48  ;;  %v7356_v48 = vld [vmem:[%s15116_s4 + $0x708] sm:$0xf] }
 0x131   :  { %2958 = vmatpush.bf16.msra.mxu2 %v7517_v52  ;;  %v1294_v52 = vmul.f32 %v10536_v35, %v10762_v41  ;;  %v11145_v24 = vadd.f32 %v10557_v43, %v1261_v55  ;;  %v7496_v41 = vld [vmem:[%s15116_s4 + $0x820] sm:$0xf]  ;;  %v11161_v55 = vadd.f32 %v10566_v50, %v1262_v28 }
 0x132   :  { %v7176_v28 = vld [vmem:[%s15116_s4 + $0x5a0] sm:$0xf] }
 0x134   :  { %v11082_v54 = vpop.f32.mrf.mxu2 }
 0x135   :  { %15170 = vst [vmem:[#allocation27_spill] sm:$0xff] %v11082_v54  ;;  %v11093_v36 = vpop.f32.mrf.mxu3  ;;  %v11095_v25 = vpop.f32.mrf.mxu0  ;;  %v11104_v54 = vadd.f32 %v10566_v50, %v1230_v39  ;;  %v1263_v39 = vmul.f32 %v10583_v57, %v10728_v15  ;;  %v1293_v15 = vmul.f32 %v10528_v33, %v10760_v40  ;;  %v1295_v33 = vmul.f32 %v10583_v57, %v10764_v44 }
 0x136   :  { %15171 = vst [vmem:[#allocation28_spill] sm:$0xff] %v11093_v36  ;;  %v11108_v7 = vpop.f32.mrf.mxu1  ;;  %v7677_v36 = vor.u32 %v9657_v5, %v7676_v29  ;;  %v7197_v29 = vor.u32 %v9537_v51, %v7196_v26  ;;  %v11142_v5 = vadd.f32 %v10600_v62, %v1232_v23  ;;  %v9612_v26 = vld [vmem:[%s15116_s4 + $0x830] sm:$0xf0]  ;;  %v7656_v23 = vld [vmem:[%s15116_s4 + $0x960] sm:$0xf]  ;;  %v1296_v44 = vmul.f32 %v10588_v58, %v10766_v45 }
 0x137   :  { %v11164_v57 = vadd.f32 %v10597_v61, %v1263_v39  ;;  %v9532_v39 = vld [vmem:[%s15116_s4 + $0x5b0] sm:$0xf0]  ;;  %v1233_v58 = vmul.f32 %v10793_v8, %v10835_v13  ;;  %v1234_v45 = vmul.f32 %v10796_v9, %v10838_v56  ;;  %v11197_v13 = vadd.f32 %v10557_v43, %v1293_v15 }
 0x138   :  { %2981 = vmatpush.bf16.msra.mxu3 %v7677_v36  ;;  %v9577_v36 = vld [vmem:[%s15116_s4 + $0x718] sm:$0xf0]  ;;  %2912 = vmatpush.bf16.msra.mxu0 %v7197_v29  ;;  %v11200_v56 = vadd.f32 %v10566_v50, %v1294_v52  ;;  %v11213_v15 = vadd.f32 %v10600_v62, %v1296_v44  ;;  %v1265_v52 = vmul.f32 %v10793_v8, %v10880_v16 }
 0x139   :  { %v7357_v35 = vor.u32 %v9577_v36, %v7356_v48  ;;  %v7497_v36 = vor.u32 %v9612_v26, %v7496_v41  ;;  %v7657_v41 = vor.u32 %v9652_v31, %v7656_v23  ;;  %v7177_v26 = vor.u32 %v9532_v39, %v7176_v28  ;;  %v15179_v23 = vld [vmem:[#allocation21_spill] sm:$0xff] }
 0x13a   :  { %v11205_v28 = vadd.f32 %v10597_v61, %v1295_v33  ;;  %v1235_v39 = vmul.f32 %v10815_v46, %v10852_v0  ;;  %15175 = vst [vmem:[#allocation32_spill] sm:$0xff] %v11213_v15  ;;  %v11219_v61 = vadd.f32 %v10802_v20, %v1234_v45  ;;  %v1236_v0 = vmul.f32 %v10821_v53, %v10854_v3 }
 0x13b   :  { %2935 = vmatpush.bf16.msra.mxu1 %v7357_v35  ;;  %2959 = vmatpush.bf16.msra.mxu2 %v7497_v36  ;;  %v1266_v44 = vmul.f32 %v10796_v9, %v10884_v63  ;;  %v1267_v3 = vmul.f32 %v10815_v46, %v10896_v32  ;;  %v1268_v16 = vmul.f32 %v10821_v53, %v10898_v18  ;;  %v15184_v35 = vmax.f32 %v11101_v10, 0.0  ;;  %v9517_v18 = vld [vmem:[%s15116_s4 + $0x538] sm:$0xf0]  ;;  %v15187_v10 = vld [vmem:[#allocation26_spill] sm:$0xff] }
 0x13c   :  { %v11149_v40 = vpop.f32.mrf.mxu2  ;;  %15174 = vst [vmem:[#allocation31_spill] sm:$0xff] %v11205_v28  ;;  %2982 = vmatpush.bf16.msra.mxu3 %v7657_v41  ;;  %2913 = vmatpush.bf16.msra.mxu0 %v7177_v26  ;;  %v1297_v26 = vmul.f32 %v10793_v8, %v10924_v11  ;;  %v1298_v63 = vmul.f32 %v10796_v9, %v10928_v42  ;;  %v7476_v42 = vld [vmem:[%s15116_s4 + $0x7f8] sm:$0xf]  ;;  %v9607_v11 = vld [vmem:[%s15116_s4 + $0x808] sm:$0xf0]  ;;  %v15191_v28 = vmax.f32 %v11121_v14, 0.0 }
 0x13d   :  { %v11168_v51 = vpop.f32.mrf.mxu3  ;;  %v11170_v48 = vpop.f32.mrf.mxu0  ;;  %v11257_v41 = vadd.f32 %v10799_v12, %v1265_v52  ;;  %v11262_v9 = vadd.f32 %v10802_v20, %v1266_v44  ;;  %v11277_v52 = vadd.f32 %v10825_v1, %v1267_v3  ;;  %v11280_v44 = vadd.f32 %v10830_v4, %v1268_v16  ;;  %v9512_v14 = vld [vmem:[%s15116_s4 + $0x510] sm:$0xf0] }
 0x13e   :  { %15172 = vst [vmem:[#allocation29_spill] sm:$0xff] %v11168_v51  ;;  %v11185_v29 = vpop.f32.mrf.mxu1  ;;  %v11194_v51 = vadd.f32 %v10600_v62, %v1264_v60  ;;  %v11254_v62 = vadd.f32 %v10830_v4, %v1236_v0  ;;  %v11289_v33 = vadd.f32 %v10802_v20, %v1298_v63 }
 0x13f   :  { %15173 = vst [vmem:[#allocation30_spill] sm:$0xff] %v11170_v48  ;;  %v9572_v48 = vld [vmem:[%s15116_s4 + $0x6f0] sm:$0xf0] }
 0x140   :  { %v7337_v31 = vor.u32 %v9572_v48, %v7336_v21  ;;  %v11216_v21 = vadd.f32 %v10799_v12, %v1233_v58  ;;  %v11232_v58 = vadd.f32 %v10825_v1, %v1235_v39  ;;  %v11286_v48 = vadd.f32 %v10799_v12, %v1297_v26  ;;  %v9527_v12 = vld [vmem:[%s15116_s4 + $0x588] sm:$0xf0] }
 0x142   :  { %2936 = vmatpush.bf16.msra.mxu1 %v7337_v31  ;;  %v1299_v31 = vmul.f32 %v10815_v46, %v10936_v38  ;;  %v1493_v32 = vmax.f32 %v11216_v21, 0.0  ;;  %v1300_v46 = vmul.f32 %v10821_v53, %v10938_v37  ;;  %v7636_v38 = vld [vmem:[%s15116_s4 + $0x938] sm:$0xf]  ;;  %v7477_v53 = vor.u32 %v9607_v11, %v7476_v42  ;;  %v9647_v37 = vld [vmem:[%s15116_s4 + $0x948] sm:$0xf0]  ;;  %v15186_v21 = vld [vmem:[#allocation22_spill] sm:$0xff] }
 0x143   :  { %v7637_v43 = vor.u32 %v9647_v37, %v7636_v38  ;;  %v7156_v42 = vld [vmem:[%s15116_s4 + $0x578] sm:$0xf]  ;;  %v9567_v11 = vld [vmem:[%s15116_s4 + $0x6c8] sm:$0xf0] }
 0x144   :  { %v11238_v45 = vpop.f32.mrf.mxu2  ;;  %v11292_v50 = vadd.f32 %v10825_v1, %v1299_v31  ;;  %2960 = vmatpush.bf16.msra.mxu2 %v7477_v53  ;;  %v11304_v26 = vadd.f32 %v10830_v4, %v1300_v46  ;;  %v1237_v1 = vmul.f32 %v10970_v30, %v11023_v47  ;;  %v7157_v63 = vor.u32 %v9527_v12, %v7156_v42  ;;  %v7316_v31 = vld [vmem:[%s15116_s4 + $0x6b8] sm:$0xf]  ;;  %v9562_v42 = vld [vmem:[%s15116_s4 + $0x6a0] sm:$0xf0] }
 0x145   :  { %v11247_v39 = vpop.f32.mrf.mxu3  ;;  %v11249_v36 = vpop.f32.mrf.mxu0  ;;  %2983 = vmatpush.bf16.msra.mxu3 %v7637_v43  ;;  %v1238_v4 = vmul.f32 %v10980_v6, %v11026_v2  ;;  %v7317_v47 = vor.u32 %v9567_v11, %v7316_v31  ;;  %v1239_v12 = vmul.f32 %v10999_v49, %v11046_v22  ;;  %v7136_v2 = vld [vmem:[%s15116_s4 + $0x550] sm:$0xf]  ;;  %v9522_v31 = vld [vmem:[%s15116_s4 + $0x560] sm:$0xf0]  ;;  %v1240_v43 = vmul.f32 %v11002_v34, %v11057_v27 }
 0x146   :  { %v11259_v8 = vpop.f32.mrf.mxu1  ;;  %15176 = vst [vmem:[#allocation33_spill] sm:$0xff] %v11292_v50  ;;  %2914 = vmatpush.bf16.msra.mxu0 %v7157_v63  ;;  %v7296_v22 = vld [vmem:[%s15116_s4 + $0x690] sm:$0xf]  ;;  %v11339_v63 = vadd.f32 %v10985_v19, %v1237_v1  ;;  %v9602_v27 = vld [vmem:[%s15116_s4 + $0x7e0] sm:$0xf0]  ;;  %v11380_v0 = vmax.f32 %v15184_v35, %v1493_v32  ;;  %v1254_v35 = vmul.f32 %v10980_v6, %v15187_v10 }
 0x147   :  { %15177 = vst [vmem:[#allocation34_spill] sm:$0xff] %v11304_v26  ;;  %2937 = vmatpush.bf16.msra.mxu1 %v7317_v47  ;;  %v7137_v47 = vor.u32 %v9522_v31, %v7136_v2  ;;  %v11346_v37 = vadd.f32 %v10988_v17, %v1238_v4  ;;  %v7297_v11 = vor.u32 %v9562_v42, %v7296_v22  ;;  %v7456_v4 = vld [vmem:[%s15116_s4 + $0x7d0] sm:$0xf]  ;;  %v15183_v22 = vld [vmem:[#allocation23_spill] sm:$0xff] }
 0x148   :  { %v11355_v3 = vadd.f32 %v15179_v23, %v1239_v12  ;;  %v7457_v1 = vor.u32 %v9602_v27, %v7456_v4  ;;  %v7116_v27 = vld [vmem:[%s15116_s4 + $0x528] sm:$0xf]  ;;  %v11392_v15 = vadd.f32 %v15186_v21, %v1240_v43 }
 0x149   :  { %v7117_v12 = vor.u32 %v9517_v18, %v7116_v27  ;;  %v15188_v18 = vmax.f32 %v11219_v61, 0.0  ;;  %v15189_v27 = vmax.f32 %v11104_v54, 0.0  ;;  %v7096_v54 = vld [vmem:[%s15116_s4 + $0x500] sm:$0xf]  ;;  %v15194_v61 = vld [vmem:[#allocation27_spill] sm:$0xff] }
 0x14a   :  { %2915 = vmatpush.bf16.msra.mxu0 %v7137_v47  ;;  %v15185_v47 = vld [vmem:[#allocation24_spill] sm:$0xff]  ;;  %2961 = vmatpush.bf16.msra.mxu2 %v7457_v1 }
 0x14b   :  { %2938 = vmatpush.bf16.msra.mxu1 %v7297_v11 }
 0x14c   :  { %v11318_v46 = vpop.f32.mrf.mxu2 }
 0x14d   :  { %v11325_v20 = vpop.f32.mrf.mxu3  ;;  %v977_v38 = vpop.f32.mrf.mxu0 }
 0x14e   :  { %v1317_v53 = vmul.f32 %v10970_v30, %v977_v38  ;;  %v1005_v60 = vpop.f32.mrf.mxu1  ;;  %2916 = vmatpush.bf16.msra.mxu0 %v7117_v12  ;;  %v9552_v12 = vld [vmem:[%s15116_s4 + $0x650] sm:$0xf0] }
 0x14f   :  { %v1318_v38 = vmul.f32 %v10980_v6, %v1005_v60  ;;  %v15180_v60 = vld [vmem:[#allocation25_spill] sm:$0xff] }
 0x150   :  { %v11351_v16 = vadd.f32 %v10985_v19, %v1317_v53  ;;  %v1253_v2 = vmul.f32 %v10970_v30, %v15180_v60  ;;  %v15182_v53 = vld [vmem:[#allocation20_spill] sm:$0xff] }
 0x151   :  { %v11360_v31 = vadd.f32 %v10988_v17, %v1318_v38  ;;  %v7616_v60 = vld [vmem:[%s15116_s4 + $0x910] sm:$0xf]  ;;  %v9642_v38 = vld [vmem:[%s15116_s4 + $0x920] sm:$0xf0] }
 0x152   :  { %15178 = vst [vmem:[#allocation35_spill] sm:$0xff] %v11351_v16  ;;  %v7617_v4 = vor.u32 %v9642_v38, %v7616_v60  ;;  %v7276_v60 = vld [vmem:[%s15116_s4 + $0x668] sm:$0xf]  ;;  %v9557_v38 = vld [vmem:[%s15116_s4 + $0x678] sm:$0xf0]  ;;  %v11404_v11 = vadd.f32 %v10985_v19, %v1253_v2  ;;  %v15190_v16 = vmax.f32 %v11232_v58, 0.0 }
 0x153   :  { %15181 = vst [vmem:[#allocation21_spill] sm:$0xff] %v11360_v31  ;;  %v7277_v1 = vor.u32 %v9557_v38, %v7276_v60  ;;  %v11411_v31 = vmax.f32 %v15189_v27, %v15188_v18  ;;  %v15192_v2 = vmax.f32 %v11254_v62, 0.0  ;;  %v15195_v62 = vld [vmem:[#allocation28_spill] sm:$0xff]  ;;  %v15197_v38 = vmax.f32 %v11257_v41, 0.0 }
 0x154   :  { %v1033_v32 = vpop.f32.mrf.mxu2  ;;  %2984 = vmatpush.bf16.msra.mxu3 %v7617_v4  ;;  %v11417_v42 = vmax.f32 %v15191_v28, %v15190_v16  ;;  %v7256_v28 = vld [vmem:[%s15116_s4 + $0x640] sm:$0xf]  ;;  %v1256_v58 = vmul.f32 %v11002_v34, %v15195_v62  ;;  %v1269_v27 = vmul.f32 %v10970_v30, %v11095_v25  ;;  %v15200_v62 = vld [vmem:[#allocation16_spill] sm:$0xff]  ;;  %v15207_v25 = vld [vmem:[#allocation29_spill] sm:$0xff] }
 0x155   :  { %v1319_v43 = vmul.f32 %v10999_v49, %v1033_v32  ;;  %v1061_v26 = vpop.f32.mrf.mxu3  ;;  %v979_v10 = vpop.f32.mrf.mxu0  ;;  %v15193_v32 = vmax.f32 %v11142_v5, 0.0  ;;  %v1255_v5 = vmul.f32 %v10999_v49, %v15194_v61  ;;  %2939 = vmatpush.bf16.msra.mxu1 %v7277_v1  ;;  %v9597_v1 = vld [vmem:[%s15116_s4 + $0x7b8] sm:$0xf0]  ;;  %v7257_v41 = vor.u32 %v9552_v12, %v7256_v28 }
 0x156   :  { %v1320_v4 = vmul.f32 %v11002_v34, %v1061_v26  ;;  %v1007_v60 = vpop.f32.mrf.mxu1  ;;  %v7097_v26 = vor.u32 %v9512_v14, %v7096_v54  ;;  %v15198_v10 = vmax.f32 %v11145_v24, 0.0  ;;  %v7596_v24 = vld [vmem:[%s15116_s4 + $0x8e8] sm:$0xf]  ;;  %v9637_v54 = vld [vmem:[%s15116_s4 + $0x8f8] sm:$0xf0]  ;;  %v1270_v14 = vmul.f32 %v10980_v6, %v11108_v7 }
 0x157   :  { %v11423_v50 = vmax.f32 %v15193_v32, %v15192_v2  ;;  %v11440_v16 = vadd.f32 %v15179_v23, %v1319_v43  ;;  %v7436_v43 = vld [vmem:[%s15116_s4 + $0x7a8] sm:$0xf]  ;;  %v1271_v61 = vmul.f32 %v10999_v49, %v11149_v40  ;;  %v11478_v28 = vperm.slane %v15200_v62, 4 }
 0x158   :  { %v11449_v18 = vmax.f32 %v15198_v10, %v15197_v38  ;;  %v11454_v2 = vadd.f32 %v15186_v21, %v1320_v4  ;;  %v11468_v4 = vadd.f32 %v10988_v17, %v1254_v35  ;;  %v7437_v60 = vor.u32 %v9597_v1, %v7436_v43  ;;  %2917 = vmatpush.bf16.msra.mxu0 %v7097_v26  ;;  %v15201_v10 = vld [vmem:[#allocation18_spill] sm:$0xff] }
 0x159   :  { %15196 = vst [vmem:[#allocation25_spill] sm:$0xff] %v11440_v16  ;;  %v7597_v12 = vor.u32 %v9637_v54, %v7596_v24  ;;  %v11481_v38 = vadd.f32 %v15179_v23, %v1255_v5  ;;  %v11484_v35 = vadd.f32 %v15186_v21, %v1256_v58  ;;  %v11487_v43 = vperm.slane %v15201_v10, 4  ;;  %2940 = vmatpush.bf16.msra.mxu1 %v7257_v41 }
 0x15a   :  { %15199 = vst [vmem:[#allocation20_spill] sm:$0xff] %v11454_v2  ;;  %v11490_v1 = vperm.slane %v15200_v62, 5  ;;  %2962 = vmatpush.bf16.msra.mxu2 %v7437_v60  ;;  %v15202_v7 = vmax.f32 %v11262_v9, 0.0  ;;  %v15203_v40 = vmax.f32 %v11161_v55, 0.0  ;;  %v15204_v5 = vmax.f32 %v11277_v52, 0.0 }
 0x15b   :  { %v15205_v26 = vmax.f32 %v11164_v57, 0.0  ;;  %v11505_v54 = vadd.f32 %v10985_v19, %v1269_v27  ;;  %v1272_v32 = vmul.f32 %v11002_v34, %v15207_v25  ;;  %2985 = vmatpush.bf16.msra.mxu3 %v7597_v12  ;;  %v7416_v55 = vld [vmem:[%s15116_s4 + $0x780] sm:$0xf]  ;;  %v9592_v9 = vld [vmem:[%s15116_s4 + $0x790] sm:$0xf0]  ;;  %v11522_v12 = vperm.slane %v15201_v10, 5 }
 0x15c   :  { %v11496_v24 = vmax.f32 %v15203_v40, %v15202_v7  ;;  %v1035_v60 = vpop.f32.mrf.mxu2  ;;  %v7576_v57 = vld [vmem:[%s15116_s4 + $0x8c0] sm:$0xf]  ;;  %v7417_v40 = vor.u32 %v9592_v9, %v7416_v55  ;;  %v1286_v55 = vmul.f32 %v10980_v6, %v11185_v29  ;;  %v1288_v29 = vmul.f32 %v11002_v34, %v11247_v39 }
 0x15d   :  { %v11502_v58 = vmax.f32 %v15205_v26, %v15204_v5  ;;  %v15208_v27 = vld [vmem:[#allocation30_spill] sm:$0xff]  ;;  %v1063_v25 = vpop.f32.mrf.mxu3  ;;  %v1074_v7 = vpop.f32.mrf.mxu0  ;;  %v9632_v5 = vld [vmem:[%s15116_s4 + $0x8d0] sm:$0xf0]  ;;  %v11528_v26 = vadd.f32 %v10988_v17, %v1270_v14  ;;  %v11531_v60 = vadd.f32 %v15179_v23, %v1271_v61  ;;  %v1287_v61 = vmul.f32 %v10999_v49, %v11238_v45 }
 0x15e   :  { %v1285_v41 = vmul.f32 %v10970_v30, %v15208_v27  ;;  %v1225_v52 = vmul.f32 %v11478_v28, %v1074_v7  ;;  %v1102_v2 = vpop.f32.mrf.mxu1  ;;  %v7577_v27 = vor.u32 %v9632_v5, %v7576_v57  ;;  %2963 = vmatpush.bf16.msra.mxu2 %v7417_v40  ;;  %v11553_v40 = vperm.slane %v15200_v62, 6 }
 0x15f   :  { %15206 = vst [vmem:[#allocation23_spill] sm:$0xff] %v11502_v58  ;;  %v1226_v9 = vmul.f32 %v11490_v1, %v1102_v2  ;;  %v11541_v58 = vadd.f32 %v15186_v21, %v1272_v32  ;;  %v11558_v45 = vperm.slane %v15200_v62, 7  ;;  %v11570_v32 = vadd.f32 %v15179_v23, %v1287_v61 }
 0x160   :  { %v1373_v57 = vadd.f32 %v11487_v43, %v1225_v52  ;;  %2986 = vmatpush.bf16.msra.mxu3 %v7577_v27  ;;  %v11547_v7 = vadd.f32 %v10985_v19, %v1285_v41  ;;  %v11561_v52 = vadd.f32 %v10988_v17, %v1286_v55  ;;  %v1301_v41 = vmul.f32 %v10970_v30, %v11249_v36 }
 0x161   :  { %v1374_v2 = vadd.f32 %v11522_v12, %v1226_v9  ;;  %v11566_v27 = vperm.slane %v15201_v10, 6  ;;  %v11577_v55 = vperm.slane %v15201_v10, 7  ;;  %v11581_v30 = vadd.f32 %v15186_v21, %v1288_v29 }
 0x162   :  { %15209 = vst [vmem:[#allocation24_spill] sm:$0xff] %v11547_v7  ;;  %v1485_v14 = vmax.f32 %v1373_v57, 0.0  ;;  %v15210_v57 = vmax.f32 %v10993_v59, 0.0  ;;  %v15211_v36 = vmax.f32 %v15182_v53, 0.0  ;;  %v1302_v59 = vmul.f32 %v10980_v6, %v11259_v8  ;;  %v15213_v53 = vld [vmem:[#allocation3_spill] sm:$0xff] }
 0x163   :  { %v1486_v39 = vmax.f32 %v1374_v2, 0.0  ;;  %v11595_v7 = vadd.f32 %v10985_v19, %v1301_v41  ;;  %v15215_v19 = vmax.f32 %v11194_v51, 0.0 }
 0x164   :  { %v11574_v5 = vmax.f32 %v15210_v57, %v1485_v14  ;;  %v1130_v62 = vpop.f32.mrf.mxu2  ;;  %v15212_v14 = vld [vmem:[#allocation2_spill] sm:$0xff] }
 0x165   :  { %v11585_v2 = vmax.f32 %v15211_v36, %v1486_v39  ;;  %v1227_v61 = vmul.f32 %v11553_v40, %v1130_v62  ;;  %v1158_v9 = vpop.f32.mrf.mxu3  ;;  %v1076_v25 = vpop.f32.mrf.mxu0 }
 0x166   :  { %v1641_v10 = vmax.f32 %v15212_v14, %v11574_v5  ;;  %v1228_v57 = vmul.f32 %v11558_v45, %v1158_v9  ;;  %v1241_v16 = vmul.f32 %v11478_v28, %v1076_v25  ;;  %v1104_v29 = vpop.f32.mrf.mxu1  ;;  %v15214_v25 = vmax.f32 %v11280_v44, 0.0 }
 0x167   :  { %v1642_v39 = vmax.f32 %v15213_v53, %v11585_v2  ;;  %v1375_v62 = vadd.f32 %v11566_v27, %v1227_v61  ;;  %v1242_v36 = vmul.f32 %v11490_v1, %v1104_v29  ;;  %v9625_v29 = vld [vmem:[%s15116_s4 + $0x89c] sm:$0xf] }
 0x168   :  { %v1376_v5 = vadd.f32 %v11577_v55, %v1228_v57  ;;  %v1389_v9 = vadd.f32 %v11487_v43, %v1241_v16  ;;  %v11609_v41 = vmax.f32 %v15215_v19, %v15214_v25  ;;  %v7558_v57 = vld [vmem:[%s15116_s4 + $0x8ac] sm:$0xf0]  ;;  %v11620_v16 = vadd.f32 %v10988_v17, %v1302_v59  ;;  %v9545_v59 = vld [vmem:[%s15116_s4 + $0x61c] sm:$0xf] }
 0x169   :  { %v1487_v14 = vmax.f32 %v1375_v62, 0.0  ;;  %v1390_v61 = vadd.f32 %v11522_v12, %v1242_v36  ;;  %v7561_v53 = vor.u32 %v9625_v29, %v7558_v57  ;;  %v9665_v62 = vld [vmem:[%s15116_s4 + $0x9dc] sm:$0xf]  ;;  %v7718_v36 = vld [vmem:[%s15116_s4 + $0x9ec] sm:$0xf0]  ;;  %v15216_v19 = vmax.f32 %v15183_v22, 0.0 }
 0x16a   :  { %v1488_v44 = vmax.f32 %v1376_v5, 0.0  ;;  %v1501_v51 = vmax.f32 %v1389_v9, 0.0  ;;  %v7721_v17 = vor.u32 %v9665_v62, %v7718_v36  ;;  %v7238_v5 = vld [vmem:[%s15116_s4 + $0x62c] sm:$0xf0]  ;;  %v1303_v9 = vmul.f32 %v10999_v49, %v11318_v46  ;;  %v9585_v36 = vld [vmem:[%s15116_s4 + $0x75c] sm:$0xf] }
 0x16b   :  { %v11631_v2 = vmax.f32 %v15216_v19, %v1487_v14  ;;  %v1502_v8 = vmax.f32 %v1390_v61, 0.0  ;;  %v15217_v29 = vmax.f32 %v15185_v47, 0.0  ;;  %v15218_v22 = vmax.f32 %v11339_v63, 0.0  ;;  %3048 = vmatpush.bf16.msrb.mxu2 %v7561_v53  ;;  %v7398_v19 = vld [vmem:[%s15116_s4 + $0x76c] sm:$0xf0] }
 0x16c   :  { %v1132_v61 = vpop.f32.mrf.mxu2  ;;  %v7241_v62 = vor.u32 %v9545_v59, %v7238_v5  ;;  %v15219_v49 = vld [vmem:[#allocation4_spill] sm:$0xff]  ;;  %v15220_v47 = vmax.f32 %v11346_v37, 0.0  ;;  %3071 = vmatpush.bf16.msrb.mxu3 %v7721_v17  ;;  %v7401_v53 = vor.u32 %v9585_v36, %v7398_v19  ;;  %v15221_v59 = vld [vmem:[#allocation5_spill] sm:$0xff]  ;;  %v7378_v36 = vld [vmem:[%s15116_s4 + $0x744] sm:$0xf0] }
 0x16d   :  { %v11643_v57 = vmax.f32 %v15217_v29, %v1488_v44  ;;  %v1617_v14 = vmax.f32 %v15218_v22, %v1501_v51  ;;  %v1243_v63 = vmul.f32 %v11553_v40, %v1132_v61  ;;  %v1160_v51 = vpop.f32.mrf.mxu3  ;;  %v1079_v29 = vpop.f32.mrf.mxu0  ;;  %v9540_v37 = vld [vmem:[%s15116_s4 + $0x5f4] sm:$0xf] }
 0x16e   :  { %v1618_v44 = vmax.f32 %v15220_v47, %v1502_v8  ;;  %v1244_v25 = vmul.f32 %v11558_v45, %v1160_v51  ;;  %v1257_v6 = vmul.f32 %v11478_v28, %v1079_v29  ;;  %v1107_v46 = vpop.f32.mrf.mxu1  ;;  %3002 = vmatpush.bf16.msrb.mxu0 %v7241_v62  ;;  %v7218_v8 = vld [vmem:[%s15116_s4 + $0x604] sm:$0xf0]  ;;  %v9580_v17 = vld [vmem:[%s15116_s4 + $0x734] sm:$0xf]  ;;  %3025 = vmatpush.bf16.msrb.mxu1 %v7401_v53  ;;  %v15222_v53 = vmax.f32 %v11286_v48, 0.0 }
 0x16f   :  { %v11661_v22 = vmax.f32 %v11380_v0, %v1617_v14  ;;  %v1391_v14 = vadd.f32 %v11566_v27, %v1243_v63  ;;  %v1258_v61 = vmul.f32 %v11490_v1, %v1107_v46  ;;  %v7221_v62 = vor.u32 %v9540_v37, %v7218_v8  ;;  %v7538_v48 = vld [vmem:[%s15116_s4 + $0x884] sm:$0xf0] }
 0x170   :  { %v1646_v0 = vmax.f32 %v11411_v31, %v1618_v44  ;;  %v1392_v47 = vadd.f32 %v11577_v55, %v1244_v25  ;;  %v1405_v51 = vadd.f32 %v11487_v43, %v1257_v6  ;;  %v7381_v29 = vor.u32 %v9580_v17, %v7378_v36  ;;  %v9660_v36 = vld [vmem:[%s15116_s4 + $0x9b4] sm:$0xf] }
 0x171   :  { %v11681_v19 = vpack.c.bf16 %v11661_v22, %v1641_v10  ;;  %v1503_v63 = vmax.f32 %v1391_v14, 0.0  ;;  %v1406_v46 = vadd.f32 %v11522_v12, %v1258_v61  ;;  %v15223_v37 = vmax.f32 %v11197_v13, 0.0  ;;  %v15256_v31 = vld [vmem:[#allocation12_spill] sm:$0xff] }
 0x172   :  { %v11686_v44 = vpack.c.bf16 %v1646_v0, %v1642_v39  ;;  %v15224_v10 = vmax.f32 %v11289_v33, 0.0  ;;  %v15225_v25 = vmax.f32 %v11200_v56, 0.0  ;;  %v1504_v6 = vmax.f32 %v1392_v47, 0.0  ;;  %v9620_v39 = vld [vmem:[%s15116_s4 + $0x874] sm:$0xf]  ;;  %3003 = vmatpush.bf16.msrb.mxu0 %v7221_v62  ;;  %3026 = vmatpush.bf16.msrb.mxu1 %v7381_v29 }
 0x173   :  { %v11693_v8 = vmax.f32 %v15223_v37, %v15222_v53  ;;  %v1517_v17 = vmax.f32 %v1405_v51, 0.0  ;;  %v1304_v13 = vmul.f32 %v11002_v34, %v11325_v20  ;;  %v15226_v33 = vmax.f32 %v11355_v3, 0.0  ;;  %v7698_v47 = vld [vmem:[%s15116_s4 + $0x9c4] sm:$0xf0]  ;;  %v9535_v53 = vld [vmem:[%s15116_s4 + $0x5cc] sm:$0xf] }
 0x174   :  { %v11699_v5 = vmax.f32 %v15225_v25, %v15224_v10  ;;  %v1518_v56 = vmax.f32 %v1406_v46, 0.0  ;;  %v7541_v61 = vor.u32 %v9620_v39, %v7538_v48  ;;  %v11718_v51 = vadd.f32 %v15179_v23, %v1303_v9  ;;  %v7198_v37 = vld [vmem:[%s15116_s4 + $0x5dc] sm:$0xf0] }
 0x175   :  { %v1619_v14 = vmax.f32 %v15226_v33, %v1503_v63  ;;  %v15227_v62 = vmax.f32 %v11392_v15, 0.0  ;;  %v15228_v3 = vmax.f32 %v11404_v11, 0.0  ;;  %v1135_v63 = vpop.f32.mrf.mxu2  ;;  %v7701_v46 = vor.u32 %v9660_v36, %v7698_v47  ;;  %v1163_v11 = vpop.f32.mrf.mxu3  ;;  %v9575_v47 = vld [vmem:[%s15116_s4 + $0x70c] sm:$0xf] }
 0x176   :  { %v15229_v23 = vmax.f32 %v11468_v4, 0.0  ;;  %v1259_v9 = vmul.f32 %v11553_v40, %v1135_v63  ;;  %v1081_v10 = vpop.f32.mrf.mxu0  ;;  %3049 = vmatpush.bf16.msrb.mxu2 %v7541_v61  ;;  %v7201_v25 = vor.u32 %v9535_v53, %v7198_v37  ;;  %v1260_v48 = vmul.f32 %v11558_v45, %v1163_v11  ;;  %v1109_v33 = vpop.f32.mrf.mxu1  ;;  %v9615_v63 = vld [vmem:[%s15116_s4 + $0x84c] sm:$0xf] }
 0x177   :  { %v1620_v34 = vmax.f32 %v15227_v62, %v1504_v6  ;;  %v1621_v20 = vmax.f32 %v15228_v3, %v1517_v17  ;;  %v11731_v29 = vmax.f32 %v11417_v42, %v1619_v14  ;;  %v15230_v17 = vld [vmem:[#allocation6_spill] sm:$0xff]  ;;  %v1273_v42 = vmul.f32 %v11478_v28, %v1081_v10  ;;  %3072 = vmatpush.bf16.msrb.mxu3 %v7701_v46 }
 0x178   :  { %v1622_v15 = vmax.f32 %v15229_v23, %v1518_v56  ;;  %v15231_v4 = vmax.f32 %v15219_v49, %v11631_v2  ;;  %v15232_v56 = vld [vmem:[#allocation7_spill] sm:$0xff]  ;;  %v1274_v36 = vmul.f32 %v11490_v1, %v1109_v33  ;;  %3004 = vmatpush.bf16.msrb.mxu0 %v7201_v25  ;;  %v7358_v62 = vld [vmem:[%s15116_s4 + $0x71c] sm:$0xf0]  ;;  %v15233_v2 = vmax.f32 %v15221_v59, %v11643_v57  ;;  %v9530_v57 = vld [vmem:[%s15116_s4 + $0x5a4] sm:$0xf] }
 0x179   :  { %v11737_v6 = vmax.f32 %v11423_v50, %v1620_v34  ;;  %v11740_v39 = vmax.f32 %v15230_v17, %v1621_v20  ;;  %v1407_v50 = vadd.f32 %v11566_v27, %v1259_v9  ;;  %v1408_v3 = vadd.f32 %v11577_v55, %v1260_v48  ;;  %v7518_v46 = vld [vmem:[%s15116_s4 + $0x85c] sm:$0xf0]  ;;  %v7178_v23 = vld [vmem:[%s15116_s4 + $0x5b4] sm:$0xf0] }
 0x17a   :  { %v11748_v14 = vpack.c.bf16 %v11731_v29, %v15231_v4  ;;  %v11751_v61 = vmax.f32 %v15232_v56, %v1622_v15  ;;  %v1421_v20 = vadd.f32 %v11487_v43, %v1273_v42  ;;  %v1422_v53 = vadd.f32 %v11522_v12, %v1274_v36  ;;  %v9570_v15 = vld [vmem:[%s15116_s4 + $0x6e4] sm:$0xf]  ;;  %v7678_v10 = vld [vmem:[%s15116_s4 + $0x99c] sm:$0xf0] }
 0x17b   :  { %v11765_v49 = vpack.c.bf16 %v11737_v6, %v15233_v2  ;;  %v11769_v34 = vpack.c.bf16 %v11740_v39, %v11661_v22  ;;  %v1519_v22 = vmax.f32 %v1407_v50, 0.0  ;;  %v7521_v37 = vor.u32 %v9615_v63, %v7518_v46  ;;  %v7338_v50 = vld [vmem:[%s15116_s4 + $0x6f4] sm:$0xf0]  ;;  %v15237_v63 = vld [vmem:[#allocation8_spill] sm:$0xff] }
 0x17c   :  { %v11783_v59 = vpack.c.bf16 %v11751_v61, %v1646_v0  ;;  %v1520_v9 = vmax.f32 %v1408_v3, 0.0  ;;  %v1533_v11 = vmax.f32 %v1421_v20, 0.0  ;;  %v9655_v0 = vld [vmem:[%s15116_s4 + $0x98c] sm:$0xf]  ;;  %v7361_v25 = vor.u32 %v9575_v47, %v7358_v62  ;;  %v7498_v3 = vld [vmem:[%s15116_s4 + $0x834] sm:$0xf0] }
 0x17d   :  { %2918 = vmatmul.bf16.vlgmr.msra.gmra.mxu0 %v11769_v34  ;;  %v7181_v17 = vor.u32 %v9530_v57, %v7178_v23  ;;  %v11800_v48 = vadd.f32 %v15186_v21, %v1304_v13  ;;  %v15234_v42 = vmax.f32 %v11481_v38, 0.0  ;;  %v1534_v4 = vmax.f32 %v1422_v53, 0.0  ;;  %3050 = vmatpush.bf16.msrb.mxu2 %v7521_v37  ;;  %v1137_v2 = vpop.f32.mrf.mxu2  ;;  %v9610_v38 = vld [vmem:[%s15116_s4 + $0x824] sm:$0xf]  ;;  %v15239_v23 = vld [vmem:[#allocation9_spill] sm:$0xff] }
 0x17e   :  { %2941 = vmatmul.bf16.vlgmr.msra.gmra.mxu1 %v11783_v59  ;;  %v7681_v56 = vor.u32 %v9655_v0, %v7678_v10  ;;  %v15235_v47 = vmax.f32 %v11484_v35, 0.0  ;;  %v15236_v21 = vmax.f32 %v11505_v54, 0.0  ;;  %v7341_v20 = vor.u32 %v9570_v15, %v7338_v50  ;;  %v1084_v53 = vpop.f32.mrf.mxu0  ;;  %v1112_v10 = vpop.f32.mrf.mxu1  ;;  %v9565_v50 = vld [vmem:[%s15116_s4 + $0x6bc] sm:$0xf] }
 0x17f   :  { %v1623_v33 = vmax.f32 %v15234_v42, %v1519_v22  ;;  %3027 = vmatpush.bf16.msrb.mxu1 %v7361_v25  ;;  %3005 = vmatpush.bf16.msrb.mxu0 %v7181_v17  ;;  %v15238_v35 = vmax.f32 %v11528_v26, 0.0  ;;  %v1275_v54 = vmul.f32 %v11553_v40, %v1137_v2  ;;  %v1165_v22 = vpop.f32.mrf.mxu3  ;;  %v7501_v37 = vor.u32 %v9610_v38, %v7498_v3  ;;  %v9650_v26 = vld [vmem:[%s15116_s4 + $0x964] sm:$0xf]  ;;  %v7658_v25 = vld [vmem:[%s15116_s4 + $0x974] sm:$0xf0] }
 0x180   :  { %v1624_v62 = vmax.f32 %v15235_v47, %v1520_v9  ;;  %v1625_v13 = vmax.f32 %v15236_v21, %v1533_v11  ;;  %3073 = vmatpush.bf16.msrb.mxu3 %v7681_v56  ;;  %v1276_v15 = vmul.f32 %v11558_v45, %v1165_v22  ;;  %v1289_v0 = vmul.f32 %v11478_v28, %v1084_v53  ;;  %v9525_v17 = vld [vmem:[%s15116_s4 + $0x57c] sm:$0xf]  ;;  %v7158_v56 = vld [vmem:[%s15116_s4 + $0x58c] sm:$0xf0]  ;;  %v7458_v53 = vld [vmem:[%s15116_s4 + $0x7e4] sm:$0xf0] }
 0x181   :  { %v11820_v46 = vmax.f32 %v15237_v63, %v1623_v33  ;;  %v1626_v57 = vmax.f32 %v15238_v35, %v1534_v4  ;;  %v1423_v33 = vadd.f32 %v11566_v27, %v1275_v54  ;;  %v1290_v4 = vmul.f32 %v11490_v1, %v1112_v10  ;;  %3051 = vmatpush.bf16.msrb.mxu2 %v7501_v37  ;;  %v7478_v2 = vld [vmem:[%s15116_s4 + $0x80c] sm:$0xf0]  ;;  %v9600_v35 = vld [vmem:[%s15116_s4 + $0x7d4] sm:$0xf] }
 0x182   :  { %v11826_v9 = vmax.f32 %v15239_v23, %v1624_v62  ;;  %v11829_v11 = vmax.f32 %v11449_v18, %v1625_v13  ;;  %v1424_v62 = vadd.f32 %v11577_v55, %v1276_v15  ;;  %v1437_v21 = vadd.f32 %v11487_v43, %v1289_v0  ;;  %v9605_v13 = vld [vmem:[%s15116_s4 + $0x7fc] sm:$0xf]  ;;  %v7638_v63 = vld [vmem:[%s15116_s4 + $0x94c] sm:$0xf0]  ;;  %v9520_v37 = vld [vmem:[%s15116_s4 + $0x554] sm:$0xf] }
 0x183   :  { %v11844_v18 = vpack.c.bf16 %v11820_v46, %v11731_v29  ;;  %v11847_v42 = vmax.f32 %v11496_v24, %v1626_v57  ;;  %v7318_v29 = vld [vmem:[%s15116_s4 + $0x6cc] sm:$0xf0]  ;;  %3028 = vmatpush.bf16.msrb.mxu1 %v7341_v20  ;;  %v1535_v38 = vmax.f32 %v1423_v33, 0.0  ;;  %v1438_v3 = vadd.f32 %v11522_v12, %v1290_v4 }
 0x184   :  { %v11862_v24 = vpack.c.bf16 %v11826_v9, %v11737_v6  ;;  %v11866_v47 = vpack.c.bf16 %v11829_v11, %v11740_v39  ;;  %v9645_v6 = vld [vmem:[%s15116_s4 + $0x93c] sm:$0xf]  ;;  %v7661_v20 = vor.u32 %v9650_v26, %v7658_v25  ;;  %v1536_v57 = vmax.f32 %v1424_v62, 0.0  ;;  %v7138_v25 = vld [vmem:[%s15116_s4 + $0x564] sm:$0xf0]  ;;  %v15242_v62 = vld [vmem:[#allocation24_spill] sm:$0xff] }
 0x185   :  { %v11881_v39 = vpack.c.bf16 %v11847_v42, %v11751_v61  ;;  %2964 = vmatmul.bf16.vlgmr.msra.gmra.mxu2 %v11844_v18  ;;  %v1549_v54 = vmax.f32 %v1437_v21, 0.0  ;;  %v7481_v61 = vor.u32 %v9605_v13, %v7478_v2  ;;  %v7641_v22 = vor.u32 %v9645_v6, %v7638_v63  ;;  %v1140_v2 = vpop.f32.mrf.mxu2 }
 0x186   :  { %2987 = vmatmul.bf16.vlgmr.msra.gmra.mxu3 %v11862_v24  ;;  %v15240_v23 = vmax.f32 %v11531_v60, 0.0  ;;  %v1550_v0 = vmax.f32 %v1438_v3, 0.0  ;;  %v7161_v10 = vor.u32 %v9525_v17, %v7158_v56  ;;  %v7321_v26 = vor.u32 %v9565_v50, %v7318_v29 }
 0x187   :  { %3074 = vmatpush.bf16.msrb.mxu3 %v7661_v20  ;;  %v15241_v33 = vmax.f32 %v11541_v58, 0.0  ;;  %v15243_v21 = vmax.f32 %v15242_v62, 0.0  ;;  %3052 = vmatpush.bf16.msrb.mxu2 %v7481_v61  ;;  %v7461_v6 = vor.u32 %v9600_v35, %v7458_v53  ;;  %v7141_v63 = vor.u32 %v9520_v37, %v7138_v25  ;;  %v1168_v29 = vpop.f32.mrf.mxu3  ;;  %v1086_v58 = vpop.f32.mrf.mxu0  ;;  %v9560_v20 = vld [vmem:[%s15116_s4 + $0x694] sm:$0xf]  ;;  %v7298_v37 = vld [vmem:[%s15116_s4 + $0x6a4] sm:$0xf0] }
 0x188   :  { %v1627_v15 = vmax.f32 %v15240_v23, %v1535_v38  ;;  %v15244_v38 = vld [vmem:[#allocation23_spill] sm:$0xff]  ;;  %v15245_v17 = vmax.f32 %v11561_v52, 0.0  ;;  %v1291_v50 = vmul.f32 %v11553_v40, %v1140_v2  ;;  %3006 = vmatpush.bf16.msrb.mxu0 %v7161_v10  ;;  %3029 = vmatpush.bf16.msrb.mxu1 %v7321_v26  ;;  %v1292_v61 = vmul.f32 %v11558_v45, %v1168_v29  ;;  %v1114_v53 = vpop.f32.mrf.mxu1  ;;  %v9640_v23 = vld [vmem:[%s15116_s4 + $0x914] sm:$0xf]  ;;  %v15248_v62 = vld [vmem:[#allocation33_spill] sm:$0xff] }
 0x189   :  { %v1628_v4 = vmax.f32 %v15241_v33, %v1536_v57  ;;  %v1629_v13 = vmax.f32 %v15243_v21, %v1549_v54  ;;  %v15246_v57 = vld [vmem:[#allocation10_spill] sm:$0xff]  ;;  %v1305_v52 = vmul.f32 %v11478_v28, %v1086_v58  ;;  %v1306_v25 = vmul.f32 %v11490_v1, %v1114_v53  ;;  %v9515_v33 = vld [vmem:[%s15116_s4 + $0x52c] sm:$0xf] }
 0x18a   :  { %v11909_v3 = vmax.f32 %v15244_v38, %v1627_v15  ;;  %v1630_v56 = vmax.f32 %v15245_v17, %v1550_v0  ;;  %v15247_v0 = vld [vmem:[#allocation11_spill] sm:$0xff]  ;;  %v1439_v26 = vadd.f32 %v11566_v27, %v1291_v50  ;;  %v15249_v21 = vmax.f32 %v15248_v62, 0.0  ;;  %v7278_v50 = vld [vmem:[%s15116_s4 + $0x67c] sm:$0xf0] }
 0x18b   :  { %v11918_v35 = vmax.f32 %v11609_v41, %v1628_v4  ;;  %v11921_v54 = vmax.f32 %v15246_v57, %v1629_v13  ;;  %v7618_v41 = vld [vmem:[%s15116_s4 + $0x924] sm:$0xf0]  ;;  %3075 = vmatpush.bf16.msrb.mxu3 %v7641_v22  ;;  %v7118_v4 = vld [vmem:[%s15116_s4 + $0x53c] sm:$0xf0]  ;;  %3053 = vmatpush.bf16.msrb.mxu2 %v7461_v6  ;;  %v9595_v29 = vld [vmem:[%s15116_s4 + $0x7ac] sm:$0xf]  ;;  %v1453_v6 = vadd.f32 %v11487_v43, %v1305_v52 }
 0x18c   :  { %v11936_v15 = vpack.c.bf16 %v11909_v3, %v11820_v46  ;;  %v11939_v10 = vmax.f32 %v15247_v0, %v1630_v56  ;;  %v9555_v46 = vld [vmem:[%s15116_s4 + $0x66c] sm:$0xf]  ;;  %v1440_v56 = vadd.f32 %v11577_v55, %v1292_v61  ;;  %v1551_v61 = vmax.f32 %v1439_v26, 0.0  ;;  %3007 = vmatpush.bf16.msrb.mxu0 %v7141_v63  ;;  %v7598_v0 = vld [vmem:[%s15116_s4 + $0x8fc] sm:$0xf0] }
 0x18d   :  { %v15250_v13 = vld [vmem:[#allocation31_spill] sm:$0xff]  ;;  %v11960_v22 = vpack.c.bf16 %v11918_v35, %v11826_v9  ;;  %v11964_v17 = vpack.c.bf16 %v11921_v54, %v11829_v11  ;;  %v7438_v9 = vld [vmem:[%s15116_s4 + $0x7bc] sm:$0xf0]  ;;  %v9510_v52 = vld [vmem:[%s15116_s4 + $0x504] sm:$0xf]  ;;  %v15254_v26 = vmax.f32 %v11570_v32, 0.0 }
 0x18e   :  { %v15251_v2 = vmax.f32 %v15250_v13, 0.0  ;;  %v15253_v58 = vld [vmem:[#allocation35_spill] sm:$0xff]  ;;  %v11979_v11 = vpack.c.bf16 %v11939_v10, %v11847_v42  ;;  %v1552_v62 = vmax.f32 %v1440_v56, 0.0  ;;  %v7301_v13 = vor.u32 %v9560_v20, %v7298_v37  ;;  %v7098_v63 = vld [vmem:[%s15116_s4 + $0x514] sm:$0xf0] }
 0x18f   :  { %15252 = vst [vmem:[#allocation22_spill] sm:$0xff] %v11960_v22  ;;  %v9635_v53 = vld [vmem:[%s15116_s4 + $0x8ec] sm:$0xf]  ;;  %2923 = vmatmul.bf16.gmra.mxu0 %v11964_v17  ;;  %v7621_v42 = vor.u32 %v9640_v23, %v7618_v41  ;;  %v1565_v57 = vmax.f32 %v1453_v6, 0.0  ;;  %v7121_v56 = vor.u32 %v9515_v33, %v7118_v4  ;;  %v15255_v60 = vmax.f32 %v11581_v30, 0.0  ;;  %v1142_v23 = vpop.f32.mrf.mxu2  ;;  %v1089_v33 = vpop.f32.mrf.mxu0  ;;  %v15258_v30 = vld [vmem:[#allocation13_spill] sm:$0xff] }
 0x190   :  { %v11956_v38 = vmax.f32 %v15251_v2, %v15249_v21  ;;  %v1454_v21 = vadd.f32 %v11522_v12, %v1306_v25  ;;  %v1631_v2 = vmax.f32 %v15254_v26, %v1551_v61  ;;  %2946 = vmatmul.bf16.gmra.mxu1 %v11979_v11  ;;  %v7281_v25 = vor.u32 %v9555_v46, %v7278_v50  ;;  %v1170_v26 = vpop.f32.mrf.mxu3 }
 0x191   :  { %v1632_v20 = vmax.f32 %v15255_v60, %v1552_v62  ;;  %3030 = vmatpush.bf16.msrb.mxu1 %v7301_v13  ;;  %3076 = vmatpush.bf16.msrb.mxu3 %v7621_v42  ;;  %v7441_v41 = vor.u32 %v9595_v29, %v7438_v9  ;;  %v7601_v36 = vor.u32 %v9635_v53, %v7598_v0  ;;  %v15257_v32 = vmax.f32 %v11595_v7, 0.0  ;;  %v1117_v9 = vpop.f32.mrf.mxu1  ;;  %v15260_v7 = vld [vmem:[#allocation21_spill] sm:$0xff]  ;;  %v15263_v42 = vld [vmem:[#allocation32_spill] sm:$0xff] }
 0x192   :  { %v1566_v37 = vmax.f32 %v1454_v21, 0.0  ;;  %v12002_v22 = vmax.f32 %v15256_v31, %v1631_v2  ;;  %v1307_v6 = vmul.f32 %v11553_v40, %v1142_v23  ;;  %3008 = vmatpush.bf16.msrb.mxu0 %v7121_v56  ;;  %v7101_v4 = vor.u32 %v9510_v52, %v7098_v63  ;;  %v15261_v21 = vld [vmem:[#allocation34_spill] sm:$0xff] }
 0x193   :  { %v1633_v61 = vmax.f32 %v15257_v32, %v1565_v57  ;;  %v12008_v60 = vmax.f32 %v15258_v30, %v1632_v20  ;;  %v15259_v46 = vmax.f32 %v11620_v16, 0.0  ;;  %v1308_v29 = vmul.f32 %v11558_v45, %v1170_v26  ;;  %3054 = vmatpush.bf16.msrb.mxu2 %v7441_v41  ;;  %v9550_v16 = vld [vmem:[%s15116_s4 + $0x644] sm:$0xf]  ;;  %v7418_v20 = vld [vmem:[%s15116_s4 + $0x794] sm:$0xf0] }
 0x194   :  { %v1321_v31 = vmul.f32 %v11478_v28, %v1089_v33  ;;  %v1578_v57 = vmax.f32 %v15260_v7, 0.0  ;;  %v12017_v53 = vpack.c.bf16 %v12002_v22, %v11909_v3  ;;  %v1455_v62 = vadd.f32 %v11566_v27, %v1307_v6  ;;  %v9590_v56 = vld [vmem:[%s15116_s4 + $0x784] sm:$0xf]  ;;  %v7578_v32 = vld [vmem:[%s15116_s4 + $0x8d4] sm:$0xf0] }
 0x195   :  { %v1634_v50 = vmax.f32 %v15259_v46, %v1566_v37  ;;  %v1661_v0 = vmax.f32 %v11693_v8, %v1633_v61  ;;  %v15262_v13 = vmax.f32 %v15261_v21, 0.0  ;;  %v15264_v28 = vmax.f32 %v15263_v42, 0.0  ;;  %3031 = vmatpush.bf16.msrb.mxu1 %v7281_v25  ;;  %v7258_v8 = vld [vmem:[%s15116_s4 + $0x654] sm:$0xf0]  ;;  %3077 = vmatpush.bf16.msrb.mxu3 %v7601_v36  ;;  %v9630_v41 = vld [vmem:[%s15116_s4 + $0x8c4] sm:$0xf] }
 0x196   :  { %v12030_v63 = vpack.c.bf16 %v12008_v60, %v11918_v35  ;;  %v1456_v2 = vadd.f32 %v11577_v55, %v1308_v29  ;;  %v15265_v37 = vld [vmem:[#allocation25_spill] sm:$0xff]  ;;  %v1469_v25 = vadd.f32 %v11487_v43, %v1321_v31  ;;  %2969 = vmatmul.bf16.gmra.mxu2 %v12017_v53  ;;  %v15266_v61 = vld [vmem:[#allocation20_spill] sm:$0xff]  ;;  %v1322_v30 = vmul.f32 %v11490_v1, %v1117_v9  ;;  %v7564_v43 = vld [vmem:[%s15116_s4 + $0x8a0] sm:$0xf] }
 0x197   :  { %v1608_v52 = vmax.f32 %v15264_v28, %v15262_v13  ;;  %v1662_v3 = vmax.f32 %v11699_v5, %v1634_v50  ;;  %v1579_v35 = vmax.f32 %v15265_v37, 0.0  ;;  %v12045_v23 = vpack.c.bf16 %v1661_v0, %v11921_v54  ;;  %3009 = vmatpush.bf16.msrb.mxu0 %v7101_v4  ;;  %v9628_v36 = vld [vmem:[%s15116_s4 + $0x8b0] sm:$0xf0]  ;;  %v7724_v1 = vld [vmem:[%s15116_s4 + $0x9e0] sm:$0xf]  ;;  %v1145_v42 = vpop.f32.mrf.mxu2 }
 0x198   :  { %v1567_v5 = vmax.f32 %v1455_v62, 0.0  ;;  %v1580_v6 = vmax.f32 %v15266_v61, 0.0  ;;  %v1568_v33 = vmax.f32 %v1456_v2, 0.0  ;;  %2992 = vmatmul.bf16.gmra.mxu3 %v12030_v63  ;;  %v15267_v46 = vmax.f32 %v11718_v51, 0.0  ;;  %v9668_v4 = vld [vmem:[%s15116_s4 + $0x9f0] sm:$0xf0] }
 0x199   :  { %v12057_v26 = vpack.c.bf16 %v1662_v3, %v11939_v10  ;;  %v1581_v29 = vmax.f32 %v1469_v25, 0.0  ;;  %v7261_v31 = vor.u32 %v9550_v16, %v7258_v8  ;;  %v7421_v62 = vor.u32 %v9590_v56, %v7418_v20  ;;  %v1173_v20 = vpop.f32.mrf.mxu3 }
 0x19a   :  { %v1635_v50 = vmax.f32 %v15267_v46, %v1567_v5  ;;  %v15268_v9 = vmax.f32 %v11800_v48, 0.0  ;;  %v1470_v13 = vadd.f32 %v11522_v12, %v1322_v30  ;;  %v7581_v28 = vor.u32 %v9630_v41, %v7578_v32  ;;  %v7244_v48 = vld [vmem:[%s15116_s4 + $0x620] sm:$0xf]  ;;  %v9548_v12 = vld [vmem:[%s15116_s4 + $0x630] sm:$0xf0]  ;;  %v1091_v5 = vpop.f32.mrf.mxu0  ;;  %v1119_v30 = vpop.f32.mrf.mxu1 }
 0x19b   :  { %v7565_v51 = vor.u32 %v9628_v36, %v7564_v43  ;;  %v15269_v16 = vmax.f32 %v15253_v58, 0.0  ;;  %v1323_v56 = vmul.f32 %v11553_v40, %v1145_v42  ;;  %3032 = vmatpush.bf16.msrb.mxu1 %v7261_v31  ;;  %3055 = vmatpush.bf16.msrb.mxu2 %v7421_v62  ;;  %v1324_v40 = vmul.f32 %v11558_v45, %v1173_v20  ;;  %v9588_v32 = vld [vmem:[%s15116_s4 + $0x770] sm:$0xf0]  ;;  %v15270_v36 = vld [vmem:[#allocation14_spill] sm:$0xff]  ;;  %v9623_v46 = vld [vmem:[%s15116_s4 + $0x888] sm:$0xf0] }
 0x19c   :  { %v1636_v21 = vmax.f32 %v15268_v9, %v1568_v33  ;;  %v1663_v2 = vmax.f32 %v11956_v38, %v1635_v50  ;;  %v7404_v38 = vld [vmem:[%s15116_s4 + $0x760] sm:$0xf]  ;;  %v1582_v25 = vmax.f32 %v1470_v13, 0.0  ;;  %3078 = vmatpush.bf16.msrb.mxu3 %v7581_v28  ;;  %v7725_v41 = vor.u32 %v9668_v4, %v7724_v1  ;;  %v7544_v33 = vld [vmem:[%s15116_s4 + $0x878] sm:$0xf]  ;;  %v15271_v42 = vld [vmem:[#allocation15_spill] sm:$0xff] }
 0x19d   :  { %v1637_v8 = vmax.f32 %v15269_v16, %v1581_v29  ;;  %v1471_v45 = vadd.f32 %v11566_v27, %v1323_v56  ;;  %v7704_v50 = vld [vmem:[%s15116_s4 + $0x9b8] sm:$0xf]  ;;  %v9663_v29 = vld [vmem:[%s15116_s4 + $0x9c8] sm:$0xf0]  ;;  %v12114_v31 = vpack.c.bf16 %v1661_v0, %v1661_v0  ;;  %v1472_v1 = vadd.f32 %v11577_v55, %v1324_v40  ;;  %v7524_v56 = vld [vmem:[%s15116_s4 + $0x850] sm:$0xf] }
 0x19e   :  { %v1664_v58 = vmax.f32 %v1608_v52, %v1636_v21  ;;  %v12099_v43 = vpack.c.bf16 %v1663_v2, %v12002_v22  ;;  %v1638_v27 = vmax.f32 %v1578_v57, %v1582_v25  ;;  %v12122_v4 = vpack.c.bf16 %v1662_v3, %v1662_v3  ;;  %v7224_v55 = vld [vmem:[%s15116_s4 + $0x5f8] sm:$0xf]  ;;  %v9543_v57 = vld [vmem:[%s15116_s4 + $0x608] sm:$0xf0]  ;;  %v9618_v20 = vld [vmem:[%s15116_s4 + $0x860] sm:$0xf0] }
 0x19f   :  { %3140 = vmatpush.bf16.msra.mxu2 %v7565_v51  ;;  %v12102_v52 = vmax.f32 %v15270_v36, %v1637_v8  ;;  %v1583_v9 = vmax.f32 %v1471_v45, 0.0  ;;  %v7245_v21 = vor.u32 %v9548_v12, %v7244_v48  ;;  %v7405_v13 = vor.u32 %v9588_v32, %v7404_v38  ;;  %2928 = vmatmul.bf16.gmra.mxu0 %v12114_v31  ;;  %v7384_v3 = vld [vmem:[%s15116_s4 + $0x738] sm:$0xf]  ;;  %v1147_v48 = vpop.f32.mrf.mxu2  ;;  %v7684_v5 = vld [vmem:[%s15116_s4 + $0x990] sm:$0xf] }
 0x1a0   :  { %v12117_v62 = vpack.c.bf16 %v1664_v58, %v12008_v60  ;;  %3163 = vmatpush.bf16.msra.mxu3 %v7725_v41  ;;  %v12125_v28 = vmax.f32 %v15271_v42, %v1638_v27  ;;  %v1584_v51 = vmax.f32 %v1472_v1, 0.0  ;;  %v7545_v0 = vor.u32 %v9623_v46, %v7544_v33  ;;  %2951 = vmatmul.bf16.gmra.mxu1 %v12122_v4  ;;  %v15272_v12 = vld [vmem:[#allocation17_spill] sm:$0xff]  ;;  %v9658_v25 = vld [vmem:[%s15116_s4 + $0x9a0] sm:$0xf0]  ;;  %v15273_v41 = vld [vmem:[#allocation19_spill] sm:$0xff] }
 0x1a1   :  { %v7705_v16 = vor.u32 %v9663_v29, %v7704_v50  ;;  %v1639_v7 = vmax.f32 %v1579_v35, %v1583_v9  ;;  %3094 = vmatpush.bf16.msra.mxu0 %v7245_v21  ;;  %3117 = vmatpush.bf16.msra.mxu1 %v7405_v13  ;;  %v7225_v37 = vor.u32 %v9543_v57, %v7224_v55  ;;  %v9583_v35 = vld [vmem:[%s15116_s4 + $0x748] sm:$0xf0]  ;;  %v1175_v40 = vpop.f32.mrf.mxu3  ;;  %v7204_v45 = vld [vmem:[%s15116_s4 + $0x5d0] sm:$0xf]  ;;  %v9538_v46 = vld [vmem:[%s15116_s4 + $0x5e0] sm:$0xf0] }
 0x1a2   :  { %v1640_v8 = vmax.f32 %v1580_v6, %v1584_v51  ;;  %v7385_v61 = vor.u32 %v9583_v35, %v7384_v3  ;;  %v7525_v6 = vor.u32 %v9618_v20, %v7524_v56  ;;  %v7685_v33 = vor.u32 %v9658_v25, %v7684_v5  ;;  %v9578_v50 = vld [vmem:[%s15116_s4 + $0x720] sm:$0xf0]  ;;  %v7504_v29 = vld [vmem:[%s15116_s4 + $0x828] sm:$0xf]  ;;  %v9613_v27 = vld [vmem:[%s15116_s4 + $0x838] sm:$0xf0] }
 0x1a3   :  { %3141 = vmatpush.bf16.msra.mxu2 %v7545_v0  ;;  %v12152_v38 = vmax.f32 %v15272_v12, %v1639_v7  ;;  %v12163_v30 = vpack.c.bf16 %v1663_v2, %v1663_v2  ;;  %v12165_v36 = vpack.c.bf16 %v1664_v58, %v1664_v58  ;;  %v7364_v2 = vld [vmem:[%s15116_s4 + $0x710] sm:$0xf]  ;;  %v7205_v58 = vor.u32 %v9538_v46, %v7204_v45  ;;  %v7664_v21 = vld [vmem:[%s15116_s4 + $0x968] sm:$0xf]  ;;  %v9653_v13 = vld [vmem:[%s15116_s4 + $0x978] sm:$0xf0] }
 0x1a4   :  { %3164 = vmatpush.bf16.msra.mxu3 %v7705_v16  ;;  %v12161_v32 = vmax.f32 %v15273_v41, %v1640_v8  ;;  %v7365_v1 = vor.u32 %v9578_v50, %v7364_v2  ;;  %v7505_v9 = vor.u32 %v9613_v27, %v7504_v29  ;;  %v7184_v42 = vld [vmem:[%s15116_s4 + $0x5a8] sm:$0xf]  ;;  %v7665_v51 = vor.u32 %v9653_v13, %v7664_v21  ;;  %v9533_v0 = vld [vmem:[%s15116_s4 + $0x5b8] sm:$0xf0]  ;;  %v7484_v3 = vld [vmem:[%s15116_s4 + $0x800] sm:$0xf] }
 0x1a5   :  { %3095 = vmatpush.bf16.msra.mxu0 %v7225_v37  ;;  %3118 = vmatpush.bf16.msra.mxu1 %v7385_v61  ;;  %v7344_v16 = vld [vmem:[%s15116_s4 + $0x6e8] sm:$0xf]  ;;  %v9573_v7 = vld [vmem:[%s15116_s4 + $0x6f8] sm:$0xf0]  ;;  %v7185_v55 = vor.u32 %v9533_v0, %v7184_v42  ;;  %v9608_v8 = vld [vmem:[%s15116_s4 + $0x810] sm:$0xf0] }
 0x1a6   :  { %2974 = vmatmul.bf16.gmra.mxu2 %v12163_v30  ;;  %v7345_v57 = vor.u32 %v9573_v7, %v7344_v16  ;;  %v7485_v37 = vor.u32 %v9608_v8, %v7484_v3  ;;  %v7644_v35 = vld [vmem:[%s15116_s4 + $0x940] sm:$0xf]  ;;  %v9648_v56 = vld [vmem:[%s15116_s4 + $0x950] sm:$0xf0]  ;;  %v7464_v40 = vld [vmem:[%s15116_s4 + $0x7d8] sm:$0xf] }
 0x1a7   :  { %3142 = vmatpush.bf16.msra.mxu2 %v7525_v6  ;;  %v7164_v20 = vld [vmem:[%s15116_s4 + $0x580] sm:$0xf]  ;;  %v7645_v48 = vor.u32 %v9648_v56, %v7644_v35  ;;  %v9528_v12 = vld [vmem:[%s15116_s4 + $0x590] sm:$0xf0]  ;;  %v9603_v41 = vld [vmem:[%s15116_s4 + $0x7e8] sm:$0xf0] }
 0x1a8   :  { %3165 = vmatpush.bf16.msra.mxu3 %v7685_v33  ;;  %v7324_v61 = vld [vmem:[%s15116_s4 + $0x6c0] sm:$0xf]  ;;  %v9568_v6 = vld [vmem:[%s15116_s4 + $0x6d0] sm:$0xf0]  ;;  %v7165_v5 = vor.u32 %v9528_v12, %v7164_v20  ;;  %v7144_v33 = vld [vmem:[%s15116_s4 + $0x558] sm:$0xf]  ;;  %v7465_v45 = vor.u32 %v9603_v41, %v7464_v40 }
 0x1a9   :  { %2997 = vmatmul.bf16.gmra.mxu3 %v12165_v36  ;;  %3096 = vmatpush.bf16.msra.mxu0 %v7205_v58  ;;  %v7325_v25 = vor.u32 %v9568_v6, %v7324_v61  ;;  %v9523_v46 = vld [vmem:[%s15116_s4 + $0x568] sm:$0xf0]  ;;  %v7304_v2 = vld [vmem:[%s15116_s4 + $0x698] sm:$0xf]  ;;  %v9518_v13 = vld [vmem:[%s15116_s4 + $0x540] sm:$0xf0] }
 0x1aa   :  { %3119 = vmatpush.bf16.msra.mxu1 %v7365_v1  ;;  %v9563_v58 = vld [vmem:[%s15116_s4 + $0x6a8] sm:$0xf0]  ;;  %v7145_v50 = vor.u32 %v9523_v46, %v7144_v33  ;;  %v7624_v27 = vld [vmem:[%s15116_s4 + $0x918] sm:$0xf]  ;;  %v7284_v42 = vld [vmem:[%s15116_s4 + $0x670] sm:$0xf] }
 0x1ab   :  { %3143 = vmatpush.bf16.msra.mxu2 %v7505_v9  ;;  %v7305_v29 = vor.u32 %v9563_v58, %v7304_v2  ;;  %v9643_v1 = vld [vmem:[%s15116_s4 + $0x928] sm:$0xf0]  ;;  %v7124_v9 = vld [vmem:[%s15116_s4 + $0x530] sm:$0xf]  ;;  %v9638_v8 = vld [vmem:[%s15116_s4 + $0x900] sm:$0xf0] }
 0x1ac   :  { %3166 = vmatpush.bf16.msra.mxu3 %v7665_v51  ;;  %v7625_v21 = vor.u32 %v9643_v1, %v7624_v27  ;;  %v9558_v51 = vld [vmem:[%s15116_s4 + $0x680] sm:$0xf0]  ;;  %v7125_v0 = vor.u32 %v9518_v13, %v7124_v9  ;;  %v7444_v7 = vld [vmem:[%s15116_s4 + $0x7b0] sm:$0xf]  ;;  %v9513_v35 = vld [vmem:[%s15116_s4 + $0x518] sm:$0xf0] }
 0x1ad   :  { %3097 = vmatpush.bf16.msra.mxu0 %v7185_v55  ;;  %v7285_v16 = vor.u32 %v9558_v51, %v7284_v42  ;;  %v9598_v55 = vld [vmem:[%s15116_s4 + $0x7c0] sm:$0xf0]  ;;  %v7264_v20 = vld [vmem:[%s15116_s4 + $0x648] sm:$0xf]  ;;  %v9633_v41 = vld [vmem:[%s15116_s4 + $0x8d8] sm:$0xf0] }
 0x1ae   :  { %3120 = vmatpush.bf16.msra.mxu1 %v7345_v57  ;;  %v7604_v57 = vld [vmem:[%s15116_s4 + $0x8f0] sm:$0xf]  ;;  %v7445_v3 = vor.u32 %v9598_v55, %v7444_v7  ;;  %v7424_v6 = vld [vmem:[%s15116_s4 + $0x788] sm:$0xf]  ;;  %v7566_v46 = vld [vmem:[%s15116_s4 + $0x8b4] sm:$0xf0] }
 0x1af   :  { %3010 = vmatmul.bf16.vlgmr.msrb.gmra.mxu0 %v11769_v34  ;;  %3144 = vmatpush.bf16.msra.mxu2 %v7485_v37  ;;  %v7104_v37 = vld [vmem:[%s15116_s4 + $0x508] sm:$0xf]  ;;  %v7605_v56 = vor.u32 %v9638_v8, %v7604_v57  ;;  %v9666_v2 = vld [vmem:[%s15116_s4 + $0x9e4] sm:$0xf]  ;;  %v7246_v27 = vld [vmem:[%s15116_s4 + $0x634] sm:$0xf0] }
 0x1b0   :  { %3033 = vmatmul.bf16.vlgmr.msrb.gmra.mxu1 %v11783_v59  ;;  %3167 = vmatpush.bf16.msra.mxu3 %v7645_v48  ;;  %v9553_v48 = vld [vmem:[%s15116_s4 + $0x658] sm:$0xf0]  ;;  %v7105_v12 = vor.u32 %v9513_v35, %v7104_v37  ;;  %v7406_v13 = vld [vmem:[%s15116_s4 + $0x774] sm:$0xf0]  ;;  %v7706_v7 = vld [vmem:[%s15116_s4 + $0x9cc] sm:$0xf0] }
 0x1b1   :  { %3098 = vmatpush.bf16.msra.mxu0 %v7165_v5  ;;  %v7265_v61 = vor.u32 %v9553_v48, %v7264_v20  ;;  %v9593_v5 = vld [vmem:[%s15116_s4 + $0x798] sm:$0xf0]  ;;  %v7226_v8 = vld [vmem:[%s15116_s4 + $0x60c] sm:$0xf0]  ;;  %v9616_v20 = vld [vmem:[%s15116_s4 + $0x854] sm:$0xf] }
 0x1b2   :  { %3121 = vmatpush.bf16.msra.mxu1 %v7325_v25  ;;  %v7584_v25 = vld [vmem:[%s15116_s4 + $0x8c8] sm:$0xf]  ;;  %v7425_v40 = vor.u32 %v9593_v5, %v7424_v6  ;;  %v9621_v42 = vld [vmem:[%s15116_s4 + $0x87c] sm:$0xf]  ;;  %v9656_v6 = vld [vmem:[%s15116_s4 + $0x994] sm:$0xf] }
 0x1b3   :  { %3145 = vmatpush.bf16.msra.mxu2 %v7465_v45  ;;  %v7585_v33 = vor.u32 %v9633_v41, %v7584_v25  ;;  %v9626_v45 = vld [vmem:[%s15116_s4 + $0x8a4] sm:$0xf]  ;;  %v9581_v37 = vld [vmem:[%s15116_s4 + $0x73c] sm:$0xf]  ;;  %v7526_v48 = vld [vmem:[%s15116_s4 + $0x864] sm:$0xf0] }
 0x1b4   :  { %3168 = vmatpush.bf16.msra.mxu3 %v7625_v21  ;;  %v7569_v58 = vor.u32 %v9626_v45, %v7566_v46  ;;  %v9586_v21 = vld [vmem:[%s15116_s4 + $0x764] sm:$0xf]  ;;  %v7686_v5 = vld [vmem:[%s15116_s4 + $0x9a4] sm:$0xf0] }
 0x1b5   :  { %3099 = vmatpush.bf16.msra.mxu0 %v7145_v50  ;;  %v7726_v50 = vld [vmem:[%s15116_s4 + $0x9f4] sm:$0xf0]  ;;  %v7409_v51 = vor.u32 %v9586_v21, %v7406_v13  ;;  %v7689_v25 = vor.u32 %v9656_v6, %v7686_v5  ;;  %v7206_v41 = vld [vmem:[%s15116_s4 + $0x5e4] sm:$0xf0]  ;;  %v7186_v13 = vld [vmem:[%s15116_s4 + $0x5bc] sm:$0xf0] }
 0x1b6   :  { %3056 = vmatmul.bf16.vlgmr.msrb.gmra.mxu2 %v11844_v18  ;;  %3122 = vmatpush.bf16.msra.mxu1 %v7305_v29  ;;  %v9546_v29 = vld [vmem:[%s15116_s4 + $0x624] sm:$0xf]  ;;  %v7729_v1 = vor.u32 %v9666_v2, %v7726_v50  ;;  %v7366_v46 = vld [vmem:[%s15116_s4 + $0x724] sm:$0xf0]  ;;  %v9611_v2 = vld [vmem:[%s15116_s4 + $0x82c] sm:$0xf] }
 0x1b7   :  { %3146 = vmatpush.bf16.msra.mxu2 %v7445_v3  ;;  %v7249_v9 = vor.u32 %v9546_v29, %v7246_v27  ;;  %v9541_v3 = vld [vmem:[%s15116_s4 + $0x5fc] sm:$0xf]  ;;  %v9651_v27 = vld [vmem:[%s15116_s4 + $0x96c] sm:$0xf]  ;;  %v7466_v5 = vld [vmem:[%s15116_s4 + $0x7ec] sm:$0xf0] }
 0x1b8   :  { %3169 = vmatpush.bf16.msra.mxu3 %v7605_v56  ;;  %v7229_v35 = vor.u32 %v9541_v3, %v7226_v8  ;;  %v7386_v56 = vld [vmem:[%s15116_s4 + $0x74c] sm:$0xf0]  ;;  %v9646_v3 = vld [vmem:[%s15116_s4 + $0x944] sm:$0xf]  ;;  %v7646_v8 = vld [vmem:[%s15116_s4 + $0x954] sm:$0xf0] }
 0x1b9   :  { %3079 = vmatmul.bf16.vlgmr.msrb.gmra.mxu3 %v11862_v24  ;;  %3100 = vmatpush.bf16.msra.mxu0 %v7125_v0  ;;  %v7546_v0 = vld [vmem:[%s15116_s4 + $0x88c] sm:$0xf0]  ;;  %v9601_v6 = vld [vmem:[%s15116_s4 + $0x7dc] sm:$0xf] }
 0x1ba   :  { %3123 = vmatpush.bf16.msra.mxu1 %v7285_v16  ;;  %v9661_v16 = vld [vmem:[%s15116_s4 + $0x9bc] sm:$0xf]  ;;  %v7549_v55 = vor.u32 %v9621_v42, %v7546_v0  ;;  %v9571_v42 = vld [vmem:[%s15116_s4 + $0x6ec] sm:$0xf] }
 0x1bb   :  { %3147 = vmatpush.bf16.msra.mxu2 %v7425_v40  ;;  %v7709_v57 = vor.u32 %v9661_v16, %v7706_v7  ;;  %v9536_v40 = vld [vmem:[%s15116_s4 + $0x5d4] sm:$0xf]  ;;  %v9606_v7 = vld [vmem:[%s15116_s4 + $0x804] sm:$0xf] }
 0x1bc   :  { %3170 = vmatpush.bf16.msra.mxu3 %v7585_v33  ;;  %v9576_v33 = vld [vmem:[%s15116_s4 + $0x714] sm:$0xf]  ;;  %v7209_v45 = vor.u32 %v9536_v40, %v7206_v41  ;;  %v9521_v40 = vld [vmem:[%s15116_s4 + $0x55c] sm:$0xf]  ;;  %v7146_v41 = vld [vmem:[%s15116_s4 + $0x56c] sm:$0xf0] }
 0x1bd   :  { %3101 = vmatpush.bf16.msra.mxu0 %v7105_v12  ;;  %v7389_v12 = vor.u32 %v9581_v37, %v7386_v56  ;;  %v7369_v50 = vor.u32 %v9576_v33, %v7366_v46  ;;  %v9526_v37 = vld [vmem:[%s15116_s4 + $0x584] sm:$0xf]  ;;  %v7166_v56 = vld [vmem:[%s15116_s4 + $0x594] sm:$0xf0]  ;;  %v9561_v33 = vld [vmem:[%s15116_s4 + $0x69c] sm:$0xf] }
 0x1be   :  { %3124 = vmatpush.bf16.msra.mxu1 %v7265_v61  ;;  %v7529_v61 = vor.u32 %v9616_v20, %v7526_v48  ;;  %v9566_v20 = vld [vmem:[%s15116_s4 + $0x6c4] sm:$0xf]  ;;  %v7326_v48 = vld [vmem:[%s15116_s4 + $0x6d4] sm:$0xf0]  ;;  %v7306_v46 = vld [vmem:[%s15116_s4 + $0x6ac] sm:$0xf0] }
 0x1bf   :  { %3015 = vmatmul.bf16.gmra.mxu0 %v11964_v17  ;;  %3232 = vmatpush.bf16.msrb.mxu2 %v7569_v58  ;;  %v7506_v58 = vld [vmem:[%s15116_s4 + $0x83c] sm:$0xf0] }
 0x1c0   :  { %3038 = vmatmul.bf16.gmra.mxu1 %v11979_v11  ;;  %3255 = vmatpush.bf16.msrb.mxu3 %v7729_v1  ;;  %v7509_v29 = vor.u32 %v9611_v2, %v7506_v58  ;;  %v7666_v1 = vld [vmem:[%s15116_s4 + $0x97c] sm:$0xf0]  ;;  %v7309_v2 = vor.u32 %v9561_v33, %v7306_v46  ;;  %v9641_v58 = vld [vmem:[%s15116_s4 + $0x91c] sm:$0xf]  ;;  %v7732_v33 = vld [vmem:[%s15116_s4 + $0x9e8] sm:$0xf] }
 0x1c1   :  { %3186 = vmatpush.bf16.msrb.mxu0 %v7249_v9  ;;  %v9531_v9 = vld [vmem:[%s15116_s4 + $0x5ac] sm:$0xf]  ;;  %v7669_v21 = vor.u32 %v9651_v27, %v7666_v1  ;;  %v9516_v27 = vld [vmem:[%s15116_s4 + $0x534] sm:$0xf]  ;;  %v7126_v1 = vld [vmem:[%s15116_s4 + $0x544] sm:$0xf0] }
 0x1c2   :  { %3209 = vmatpush.bf16.msrb.mxu1 %v7409_v51  ;;  %v7346_v51 = vld [vmem:[%s15116_s4 + $0x6fc] sm:$0xf0]  ;;  %v7189_v0 = vor.u32 %v9531_v9, %v7186_v13  ;;  %v9556_v9 = vld [vmem:[%s15116_s4 + $0x674] sm:$0xf]  ;;  %v7286_v13 = vld [vmem:[%s15116_s4 + $0x684] sm:$0xf0] }
 0x1c3   :  { %3233 = vmatpush.bf16.msrb.mxu2 %v7549_v55  ;;  %v7349_v16 = vor.u32 %v9571_v42, %v7346_v51  ;;  %v7486_v55 = vld [vmem:[%s15116_s4 + $0x814] sm:$0xf0]  ;;  %v7289_v42 = vor.u32 %v9556_v9, %v7286_v13  ;;  %v9596_v51 = vld [vmem:[%s15116_s4 + $0x7b4] sm:$0xf]  ;;  %v9669_v46 = vld [vmem:[%s15116_s4 + $0x9f8] sm:$0xf0] }
 0x1c4   :  { %3256 = vmatpush.bf16.msrb.mxu3 %v7709_v57  ;;  %v7489_v57 = vor.u32 %v9606_v7, %v7486_v55  ;;  %v7606_v55 = vld [vmem:[%s15116_s4 + $0x904] sm:$0xf0]  ;;  %v7552_v13 = vld [vmem:[%s15116_s4 + $0x880] sm:$0xf] }
 0x1c5   :  { %3187 = vmatpush.bf16.msrb.mxu0 %v7229_v35  ;;  %v7649_v35 = vor.u32 %v9646_v3, %v7646_v8  ;;  %v7106_v3 = vld [vmem:[%s15116_s4 + $0x51c] sm:$0xf0] }
 0x1c6   :  { %3061 = vmatmul.bf16.gmra.mxu2 %v12017_v53  ;;  %3210 = vmatpush.bf16.msrb.mxu1 %v7389_v12  ;;  %v7169_v12 = vor.u32 %v9526_v37, %v7166_v56  ;;  %v7266_v56 = vld [vmem:[%s15116_s4 + $0x65c] sm:$0xf0] }
 0x1c7   :  { %3234 = vmatpush.bf16.msrb.mxu2 %v7529_v61  ;;  %v7329_v61 = vor.u32 %v9566_v20, %v7326_v48  ;;  %v9591_v48 = vld [vmem:[%s15116_s4 + $0x78c] sm:$0xf] }
 0x1c8   :  { %3257 = vmatpush.bf16.msrb.mxu3 %v7689_v25  ;;  %v7469_v25 = vor.u32 %v9601_v6, %v7466_v5  ;;  %v9631_v6 = vld [vmem:[%s15116_s4 + $0x8cc] sm:$0xf]  ;;  %v7586_v5 = vld [vmem:[%s15116_s4 + $0x8dc] sm:$0xf0] }
 0x1c9   :  { %3084 = vmatmul.bf16.gmra.mxu3 %v12030_v63  ;;  %3188 = vmatpush.bf16.msrb.mxu0 %v7209_v45  ;;  %v7149_v45 = vor.u32 %v9521_v40, %v7146_v41  ;;  %v7572_v40 = vld [vmem:[%s15116_s4 + $0x8a8] sm:$0xf]  ;;  %v9629_v41 = vld [vmem:[%s15116_s4 + $0x8b8] sm:$0xf0] }
 0x1ca   :  { %3211 = vmatpush.bf16.msrb.mxu1 %v7369_v50  ;;  %v7626_v50 = vld [vmem:[%s15116_s4 + $0x92c] sm:$0xf0] }
 0x1cb   :  { %3235 = vmatpush.bf16.msrb.mxu2 %v7509_v29  ;;  %v7629_v29 = vor.u32 %v9641_v58, %v7626_v50  ;;  %v7252_v50 = vld [vmem:[%s15116_s4 + $0x628] sm:$0xf] }
 0x1cc   :  { %3258 = vmatpush.bf16.msrb.mxu3 %v7669_v21  ;;  %v7129_v21 = vor.u32 %v9516_v27, %v7126_v1  ;;  %v7412_v27 = vld [vmem:[%s15116_s4 + $0x768] sm:$0xf] }
 0x1cd   :  { %3189 = vmatpush.bf16.msrb.mxu0 %v7189_v0  ;;  %v7446_v0 = vld [vmem:[%s15116_s4 + $0x7c4] sm:$0xf0] }
 0x1ce   :  { %3212 = vmatpush.bf16.msrb.mxu1 %v7349_v16  ;;  %v9636_v16 = vld [vmem:[%s15116_s4 + $0x8f4] sm:$0xf]  ;;  %v7449_v7 = vor.u32 %v9596_v51, %v7446_v0 }
 0x1cf   :  { %3020 = vmatmul.bf16.gmra.mxu0 %v12114_v31  ;;  %3236 = vmatpush.bf16.msrb.mxu2 %v7489_v57  ;;  %v9511_v57 = vld [vmem:[%s15116_s4 + $0x50c] sm:$0xf]  ;;  %v7609_v8 = vor.u32 %v9636_v16, %v7606_v55  ;;  %v9664_v55 = vld [vmem:[%s15116_s4 + $0x9d0] sm:$0xf0] }
 0x1d0   :  { %3043 = vmatmul.bf16.gmra.mxu1 %v12122_v4  ;;  %3259 = vmatpush.bf16.msrb.mxu3 %v7649_v35  ;;  %v7109_v37 = vor.u32 %v9511_v57, %v7106_v3  ;;  %v9551_v35 = vld [vmem:[%s15116_s4 + $0x64c] sm:$0xf]  ;;  %v7232_v3 = vld [vmem:[%s15116_s4 + $0x600] sm:$0xf] }
 0x1d1   :  { %3190 = vmatpush.bf16.msrb.mxu0 %v7169_v12  ;;  %v7269_v20 = vor.u32 %v9551_v35, %v7266_v56  ;;  %v7426_v12 = vld [vmem:[%s15116_s4 + $0x79c] sm:$0xf0]  ;;  %v9584_v56 = vld [vmem:[%s15116_s4 + $0x750] sm:$0xf0] }
 0x1d2   :  { %3213 = vmatpush.bf16.msrb.mxu1 %v7329_v61  ;;  %v7429_v61 = vor.u32 %v9591_v48, %v7426_v12  ;;  %v7532_v12 = vld [vmem:[%s15116_s4 + $0x858] sm:$0xf] }
 0x1d3   :  { %3237 = vmatpush.bf16.msrb.mxu2 %v7469_v25  ;;  %v7589_v25 = vor.u32 %v9631_v6, %v7586_v5  ;;  %v7692_v6 = vld [vmem:[%s15116_s4 + $0x998] sm:$0xf] }
 0x1d4   :  { %3260 = vmatpush.bf16.msrb.mxu3 %v7629_v29  ;;  %v9549_v29 = vld [vmem:[%s15116_s4 + $0x638] sm:$0xf0] }
 0x1d5   :  { %3191 = vmatpush.bf16.msrb.mxu0 %v7149_v45  ;;  %v7573_v45 = vor.u32 %v9629_v41, %v7572_v40  ;;  %v7253_v9 = vor.u32 %v9549_v29, %v7252_v50  ;;  %v9659_v40 = vld [vmem:[%s15116_s4 + $0x9a8] sm:$0xf0]  ;;  %v7512_v29 = vld [vmem:[%s15116_s4 + $0x830] sm:$0xf] }
 0x1d6   :  { %3066 = vmatmul.bf16.gmra.mxu2 %v12163_v30  ;;  %3214 = vmatpush.bf16.msrb.mxu1 %v7309_v2  ;;  %v7733_v2 = vor.u32 %v9669_v46, %v7732_v33  ;;  %v7693_v33 = vor.u32 %v9659_v40, %v7692_v6  ;;  %v9539_v46 = vld [vmem:[%s15116_s4 + $0x5e8] sm:$0xf0] }
 0x1d7   :  { %3238 = vmatpush.bf16.msrb.mxu2 %v7449_v7  ;;  %v7712_v7 = vld [vmem:[%s15116_s4 + $0x9c0] sm:$0xf]  ;;  %v9579_v50 = vld [vmem:[%s15116_s4 + $0x728] sm:$0xf0] }
 0x1d8   :  { %3261 = vmatpush.bf16.msrb.mxu3 %v7609_v8  ;;  %v7713_v57 = vor.u32 %v9664_v55, %v7712_v7  ;;  %v9544_v8 = vld [vmem:[%s15116_s4 + $0x610] sm:$0xf0]  ;;  %v7672_v7 = vld [vmem:[%s15116_s4 + $0x970] sm:$0xf]  ;;  %v9654_v55 = vld [vmem:[%s15116_s4 + $0x980] sm:$0xf0] }
 0x1d9   :  { %3089 = vmatmul.bf16.gmra.mxu3 %v12165_v36  ;;  %3192 = vmatpush.bf16.msrb.mxu0 %v7129_v21  ;;  %v9589_v21 = vld [vmem:[%s15116_s4 + $0x778] sm:$0xf0]  ;;  %v7233_v35 = vor.u32 %v9544_v8, %v7232_v3  ;;  %v7673_v3 = vor.u32 %v9654_v55, %v7672_v7  ;;  %v9534_v8 = vld [vmem:[%s15116_s4 + $0x5c0] sm:$0xf0]  ;;  %v7152_v7 = vld [vmem:[%s15116_s4 + $0x560] sm:$0xf] }
 0x1da   :  { %3215 = vmatpush.bf16.msrb.mxu1 %v7289_v42  ;;  %v9624_v42 = vld [vmem:[%s15116_s4 + $0x890] sm:$0xf0]  ;;  %v7413_v0 = vor.u32 %v9589_v21, %v7412_v27  ;;  %v9614_v27 = vld [vmem:[%s15116_s4 + $0x840] sm:$0xf0] }
 0x1db   :  { %3239 = vmatpush.bf16.msrb.mxu2 %v7429_v61  ;;  %v7553_v16 = vor.u32 %v9624_v42, %v7552_v13  ;;  %v9619_v61 = vld [vmem:[%s15116_s4 + $0x868] sm:$0xf0]  ;;  %v7513_v21 = vor.u32 %v9614_v27, %v7512_v29  ;;  %v9569_v27 = vld [vmem:[%s15116_s4 + $0x6d8] sm:$0xf0]  ;;  %v9524_v55 = vld [vmem:[%s15116_s4 + $0x570] sm:$0xf0] }
 0x1dc   :  { %3262 = vmatpush.bf16.msrb.mxu3 %v7589_v25  ;;  %v7533_v25 = vor.u32 %v9619_v61, %v7532_v12  ;;  %v7492_v12 = vld [vmem:[%s15116_s4 + $0x808] sm:$0xf]  ;;  %v9609_v61 = vld [vmem:[%s15116_s4 + $0x818] sm:$0xf0] }
 0x1dd   :  { %3193 = vmatpush.bf16.msrb.mxu0 %v7109_v37  ;;  %v7392_v37 = vld [vmem:[%s15116_s4 + $0x740] sm:$0xf]  ;;  %v7493_v6 = vor.u32 %v9609_v61, %v7492_v12  ;;  %v7132_v61 = vld [vmem:[%s15116_s4 + $0x538] sm:$0xf] }
 0x1de   :  { %3216 = vmatpush.bf16.msrb.mxu1 %v7269_v20  ;;  %v7393_v20 = vor.u32 %v9584_v56, %v7392_v37  ;;  %v7352_v37 = vld [vmem:[%s15116_s4 + $0x6f0] sm:$0xf] }
 0x1df   :  { %3102 = vmatmul.bf16.vlgmr.msra.gmra.mxu0 %v11769_v34 }
 0x1e0   :  { %3125 = vmatmul.bf16.vlgmr.msra.gmra.mxu1 %v11783_v59 }
 0x1e1   :  { %3278 = vmatpush.bf16.msra.mxu0 %v7253_v9 }
 0x1e2   :  { %3301 = vmatpush.bf16.msra.mxu1 %v7413_v0 }
 0x1e5   :  { %3279 = vmatpush.bf16.msra.mxu0 %v7233_v35  ;;  %v9574_v35 = vld [vmem:[%s15116_s4 + $0x700] sm:$0xf0] }
 0x1e6   :  { %3148 = vmatmul.bf16.vlgmr.msra.gmra.mxu2 %v11844_v18  ;;  %3302 = vmatpush.bf16.msra.mxu1 %v7393_v20 }
 0x1e7   :  { %3324 = vmatpush.bf16.msra.mxu2 %v7573_v45  ;;  %v7212_v45 = vld [vmem:[%s15116_s4 + $0x5d8] sm:$0xf] }
 0x1e9   :  { %3171 = vmatmul.bf16.vlgmr.msra.gmra.mxu3 %v11862_v24 }
 0x1ea   :  { %3347 = vmatpush.bf16.msra.mxu3 %v7733_v2  ;;  %v7372_v2 = vld [vmem:[%s15116_s4 + $0x718] sm:$0xf] }
 0x1eb   :  { %3325 = vmatpush.bf16.msra.mxu2 %v7553_v16  ;;  %v7373_v9 = vor.u32 %v9579_v50, %v7372_v2  ;;  %v7332_v2 = vld [vmem:[%s15116_s4 + $0x6c8] sm:$0xf] }
 0x1ed   :  { %3303 = vmatpush.bf16.msra.mxu1 %v7373_v9  ;;  %v9604_v9 = vld [vmem:[%s15116_s4 + $0x7f0] sm:$0xf0] }
 0x1ee   :  { %3348 = vmatpush.bf16.msra.mxu3 %v7713_v57  ;;  %v7192_v57 = vld [vmem:[%s15116_s4 + $0x5b0] sm:$0xf] }
 0x1ef   :  { %3107 = vmatmul.bf16.gmra.mxu0 %v11964_v17  ;;  %3326 = vmatpush.bf16.msra.mxu2 %v7533_v25  ;;  %v7193_v20 = vor.u32 %v9534_v8, %v7192_v57  ;;  %v9649_v25 = vld [vmem:[%s15116_s4 + $0x958] sm:$0xf0]  ;;  %v7312_v57 = vld [vmem:[%s15116_s4 + $0x6a0] sm:$0xf]  ;;  %v9564_v8 = vld [vmem:[%s15116_s4 + $0x6b0] sm:$0xf0] }
 0x1f0   :  { %3130 = vmatmul.bf16.gmra.mxu1 %v11979_v11 }
 0x1f2   :  { %3349 = vmatpush.bf16.msra.mxu3 %v7693_v33 }
 0x1f3   :  { %3327 = vmatpush.bf16.msra.mxu2 %v7513_v21  ;;  %v7333_v21 = vor.u32 %v9569_v27, %v7332_v2 }
 0x1f6   :  { %3153 = vmatmul.bf16.gmra.mxu2 %v12017_v53  ;;  %3350 = vmatpush.bf16.msra.mxu3 %v7673_v3  ;;  %v7153_v3 = vor.u32 %v9524_v55, %v7152_v7  ;;  %v7272_v55 = vld [vmem:[%s15116_s4 + $0x650] sm:$0xf] }
 0x1f7   :  { %3328 = vmatpush.bf16.msra.mxu2 %v7493_v6  ;;  %v9519_v6 = vld [vmem:[%s15116_s4 + $0x548] sm:$0xf0] }
 0x1f9   :  { %3176 = vmatmul.bf16.gmra.mxu3 %v12030_v63 }
 0x1fa   :  { %v2919_v58 = vpop.f32.mrf.mxu0 }
 0x1fb   :  { %v2942_v1 = vpop.f32.mrf.mxu1 }
 0x1fc   :  { %v2943_v51 = vadd.f32 %v2942_v1, %v2919_v58  ;;  %v7213_v58 = vor.u32 %v9539_v46, %v7212_v45  ;;  %v7172_v45 = vld [vmem:[%s15116_s4 + $0x588] sm:$0xf]  ;;  %v9529_v46 = vld [vmem:[%s15116_s4 + $0x598] sm:$0xf0] }
 0x1fd   :  { %v7173_v29 = vor.u32 %v9529_v46, %v7172_v45  ;;  %v9559_v45 = vld [vmem:[%s15116_s4 + $0x688] sm:$0xf0] }
 0x1fe   :  { %3280 = vmatpush.bf16.msra.mxu0 %v7213_v58 }
 0x1ff   :  { %3112 = vmatmul.bf16.gmra.mxu0 %v12114_v31 }
 0x200   :  { %3135 = vmatmul.bf16.gmra.mxu1 %v12122_v4 }
 0x202   :  { %v2921_v48 = vpop.f32.mrf.mxu0  ;;  %3281 = vmatpush.bf16.msra.mxu0 %v7193_v20  ;;  %v9644_v20 = vld [vmem:[%s15116_s4 + $0x930] sm:$0xf0] }
 0x203   :  { %v2944_v5 = vpop.f32.mrf.mxu1 }
 0x204   :  { %v2945_v41 = vadd.f32 %v2944_v5, %v2921_v48  ;;  %v7353_v48 = vor.u32 %v9574_v35, %v7352_v37  ;;  %v7652_v5 = vld [vmem:[%s15116_s4 + $0x948] sm:$0xf]  ;;  %v7313_v37 = vor.u32 %v9564_v8, %v7312_v57  ;;  %v7632_v35 = vld [vmem:[%s15116_s4 + $0x920] sm:$0xf]  ;;  %v9554_v57 = vld [vmem:[%s15116_s4 + $0x660] sm:$0xf0] }
 0x205   :  { %v7653_v33 = vor.u32 %v9649_v25, %v7652_v5  ;;  %v7292_v5 = vld [vmem:[%s15116_s4 + $0x678] sm:$0xf]  ;;  %v7432_v8 = vld [vmem:[%s15116_s4 + $0x790] sm:$0xf] }
 0x206   :  { %3158 = vmatmul.bf16.gmra.mxu2 %v12163_v30  ;;  %3304 = vmatpush.bf16.msra.mxu1 %v7353_v48  ;;  %v7633_v48 = vor.u32 %v9644_v20, %v7632_v35  ;;  %v7293_v46 = vor.u32 %v9559_v45, %v7292_v5  ;;  %v9467_v45 = vld [vmem:[%s15116_s4 + $0x3a8] sm:$0xf0] }
 0x207   :  { %3351 = vmatpush.bf16.msra.mxu3 %v7653_v33  ;;  %3282 = vmatpush.bf16.msra.mxu0 %v7173_v29  ;;  %v7133_v33 = vor.u32 %v9519_v6, %v7132_v61  ;;  %v7612_v29 = vld [vmem:[%s15116_s4 + $0x8f8] sm:$0xf]  ;;  %v7592_v61 = vld [vmem:[%s15116_s4 + $0x8d0] sm:$0xf]  ;;  %v9634_v6 = vld [vmem:[%s15116_s4 + $0x8e0] sm:$0xf0] }
 0x208   :  { %v2965_v1 = vpop.f32.mrf.mxu2 }
 0x209   :  { %3181 = vmatmul.bf16.gmra.mxu3 %v12165_v36  ;;  %v2966_v13 = vadd.f32 %v2965_v1, %v2943_v51  ;;  %v2988_v42 = vpop.f32.mrf.mxu3  ;;  %v7472_v1 = vld [vmem:[%s15116_s4 + $0x7e0] sm:$0xf] }
 0x20a   :  { %3305 = vmatpush.bf16.msra.mxu1 %v7333_v21  ;;  %v7112_v21 = vld [vmem:[%s15116_s4 + $0x510] sm:$0xf] }
 0x20b   :  { %v12595_v0 = vadd.f32 %v2988_v42, %v2966_v13  ;;  %v7473_v13 = vor.u32 %v9604_v9, %v7472_v1  ;;  %3283 = vmatpush.bf16.msra.mxu0 %v7153_v3  ;;  %3352 = vmatpush.bf16.msra.mxu3 %v7633_v48  ;;  %v9639_v9 = vld [vmem:[%s15116_s4 + $0x908] sm:$0xf0]  ;;  %v7273_v3 = vor.u32 %v9554_v57, %v7272_v55 }
 0x20c   :  { %v2924_v16 = vpop.f32.mrf.mxu0  ;;  %v9427_v57 = vld [vmem:[%s15116_s4 + $0x268] sm:$0xf0] }
 0x20d   :  { %v2947_v51 = vpop.f32.mrf.mxu1  ;;  %3329 = vmatpush.bf16.msra.mxu2 %v7473_v13  ;;  %v9514_v13 = vld [vmem:[%s15116_s4 + $0x520] sm:$0xf0] }
 0x20e   :  { %v2948_v56 = vadd.f32 %v2947_v51, %v2924_v16  ;;  %3306 = vmatpush.bf16.msra.mxu1 %v7313_v37  ;;  %v7113_v7 = vor.u32 %v9514_v13, %v7112_v21  ;;  %v9594_v37 = vld [vmem:[%s15116_s4 + $0x7a0] sm:$0xf0]  ;;  %v7876_v13 = vld [vmem:[%s15116_s4 + $0x118] sm:$0xf] }
 0x20f   :  { %3194 = vmatmul.bf16.vlgmr.msrb.gmra.mxu0 %v11769_v34  ;;  %v7433_v20 = vor.u32 %v9594_v37, %v7432_v8  ;;  %v9462_v8 = vld [vmem:[%s15116_s4 + $0x380] sm:$0xf0] }
 0x210   :  { %3217 = vmatmul.bf16.vlgmr.msrb.gmra.mxu1 %v11783_v59  ;;  %v2967_v40 = vpop.f32.mrf.mxu2  ;;  %3284 = vmatpush.bf16.msra.mxu0 %v7133_v33 }
 0x211   :  { %v2968_v58 = vadd.f32 %v2967_v40, %v2945_v41  ;;  %v2990_v50 = vpop.f32.mrf.mxu3 }
 0x212   :  { %3307 = vmatpush.bf16.msra.mxu1 %v7293_v46  ;;  %v8356_v46 = vld [vmem:[%s15116_s4 + $0x4d8] sm:$0xf] }
 0x213   :  { %v12647_v42 = vadd.f32 %v2990_v50, %v2968_v58  ;;  %v7452_v50 = vld [vmem:[%s15116_s4 + $0x7b8] sm:$0xf] }
 0x214   :  { %v2926_v41 = vpop.f32.mrf.mxu0  ;;  %3285 = vmatpush.bf16.msra.mxu0 %v7113_v7  ;;  %v8036_v7 = vld [vmem:[%s15116_s4 + $0x258] sm:$0xf] }
 0x215   :  { %v2949_v16 = vpop.f32.mrf.mxu1 }
 0x216   :  { %v2950_v51 = vadd.f32 %v2949_v16, %v2926_v41  ;;  %3240 = vmatmul.bf16.vlgmr.msrb.gmra.mxu2 %v11844_v18  ;;  %v7613_v16 = vor.u32 %v9639_v9, %v7612_v29  ;;  %3308 = vmatpush.bf16.msra.mxu1 %v7273_v3  ;;  %v8176_v3 = vld [vmem:[%s15116_s4 + $0x370] sm:$0xf] }
 0x218   :  { %3353 = vmatpush.bf16.msra.mxu3 %v7613_v16  ;;  %v9387_v16 = vld [vmem:[%s15116_s4 + $0x128] sm:$0xf0] }
 0x219   :  { %3263 = vmatmul.bf16.vlgmr.msrb.gmra.mxu3 %v11862_v24  ;;  %v2970_v12 = vpop.f32.mrf.mxu2 }
 0x21a   :  { %v2971_v25 = vadd.f32 %v2970_v12, %v2948_v56  ;;  %v9599_v56 = vld [vmem:[%s15116_s4 + $0x7c8] sm:$0xf0] }
 0x21b   :  { %v2993_v40 = vpop.f32.mrf.mxu3  ;;  %v7453_v1 = vor.u32 %v9599_v56, %v7452_v50  ;;  %v9507_v50 = vld [vmem:[%s15116_s4 + $0x4e8] sm:$0xf0] }
 0x21c   :  { %v12681_v2 = vadd.f32 %v2993_v40, %v2971_v25  ;;  %v2929_v58 = vpop.f32.mrf.mxu0  ;;  %v7593_v40 = vor.u32 %v9634_v6, %v7592_v61  ;;  %v8357_v29 = vor.u32 %v9507_v50, %v8356_v46  ;;  %v7856_v6 = vld [vmem:[%s15116_s4 + $0xf0] sm:$0xf] }
 0x21d   :  { %v2952_v27 = vpop.f32.mrf.mxu1  ;;  %3330 = vmatpush.bf16.msra.mxu2 %v7453_v1 }
 0x21e   :  { %v2953_v41 = vadd.f32 %v2952_v27, %v2929_v58  ;;  %3354 = vmatpush.bf16.msra.mxu3 %v7593_v40  ;;  %v8016_v40 = vld [vmem:[%s15116_s4 + $0x230] sm:$0xf] }
 0x21f   :  { %3199 = vmatmul.bf16.gmra.mxu0 %v11964_v17 }
 0x220   :  { %3222 = vmatmul.bf16.gmra.mxu1 %v11979_v11 }
 0x221   :  { %v2972_v35 = vpop.f32.mrf.mxu2  ;;  %3331 = vmatpush.bf16.msra.mxu2 %v7433_v20  ;;  %v8177_v20 = vor.u32 %v9462_v8, %v8176_v3  ;;  %v9417_v8 = vld [vmem:[%s15116_s4 + $0x218] sm:$0xf0] }
 0x222   :  { %v2973_v48 = vadd.f32 %v2972_v35, %v2950_v51  ;;  %v8196_v51 = vld [vmem:[%s15116_s4 + $0x398] sm:$0xf]  ;;  %4271 = vmatpush.bf16.msrb.mxu3 %v8357_v29  ;;  %v8037_v35 = vor.u32 %v9427_v57, %v8036_v7  ;;  %v9457_v29 = vld [vmem:[%s15116_s4 + $0x358] sm:$0xf0]  ;;  %v7996_v57 = vld [vmem:[%s15116_s4 + $0x208] sm:$0xf] }
 0x223   :  { %v2995_v12 = vpop.f32.mrf.mxu3  ;;  %v8197_v58 = vor.u32 %v9467_v45, %v8196_v51  ;;  %v9422_v45 = vld [vmem:[%s15116_s4 + $0x240] sm:$0xf0] }
 0x224   :  { %v12721_v5 = vadd.f32 %v2995_v12, %v2973_v48  ;;  %v2931_v25 = vpop.f32.mrf.mxu0  ;;  %v8336_v48 = vld [vmem:[%s15116_s4 + $0x4b0] sm:$0xf]  ;;  %v9502_v12 = vld [vmem:[%s15116_s4 + $0x4c0] sm:$0xf0]  ;;  %4225 = vmatpush.bf16.msrb.mxu1 %v8037_v35  ;;  %v8136_v35 = vld [vmem:[%s15116_s4 + $0x320] sm:$0xf] }
 0x225   :  { %v2954_v33 = vpop.f32.mrf.mxu1  ;;  %4248 = vmatpush.bf16.msrb.mxu2 %v8197_v58  ;;  %v8337_v61 = vor.u32 %v9502_v12, %v8336_v48  ;;  %v9382_v25 = vld [vmem:[%s15116_s4 + $0x100] sm:$0xf0]  ;;  %v8017_v58 = vor.u32 %v9422_v45, %v8016_v40  ;;  %v7997_v12 = vor.u32 %v9417_v8, %v7996_v57  ;;  %v9492_v45 = vld [vmem:[%s15116_s4 + $0x470] sm:$0xf0]  ;;  %v9487_v57 = vld [vmem:[%s15116_s4 + $0x448] sm:$0xf0] }
 0x226   :  { %3245 = vmatmul.bf16.gmra.mxu2 %v12017_v53  ;;  %v7857_v51 = vor.u32 %v9382_v25, %v7856_v6 }
 0x227   :  { %4272 = vmatpush.bf16.msrb.mxu3 %v8337_v61 }
 0x228   :  { %4226 = vmatpush.bf16.msrb.mxu1 %v8017_v58 }
 0x229   :  { %3268 = vmatmul.bf16.gmra.mxu3 %v12030_v63  ;;  %v2975_v56 = vpop.f32.mrf.mxu2  ;;  %4249 = vmatpush.bf16.msrb.mxu2 %v8177_v20  ;;  %v9452_v20 = vld [vmem:[%s15116_s4 + $0x330] sm:$0xf0] }
 0x22a   :  { %v2976_v27 = vadd.f32 %v2975_v56, %v2953_v41  ;;  %v7877_v41 = vor.u32 %v9387_v16, %v7876_v13  ;;  %v8156_v56 = vld [vmem:[%s15116_s4 + $0x348] sm:$0xf]  ;;  %v9497_v13 = vld [vmem:[%s15116_s4 + $0x498] sm:$0xf0]  ;;  %v8137_v61 = vor.u32 %v9452_v20, %v8136_v35  ;;  %v7956_v35 = vld [vmem:[%s15116_s4 + $0x1b8] sm:$0xf] }
 0x22c   :  { %v2998_v1 = vpop.f32.mrf.mxu3  ;;  %v3011_v21 = vpop.f32.mrf.mxu0  ;;  %4202 = vmatpush.bf16.msrb.mxu0 %v7877_v41  ;;  %v9377_v41 = vld [vmem:[%s15116_s4 + $0xd8] sm:$0xf0]  ;;  %4227 = vmatpush.bf16.msrb.mxu1 %v7997_v12 }
 0x22d   :  { %v12737_v9 = vadd.f32 %v2998_v1, %v2976_v27  ;;  %v3034_v55 = vpop.f32.mrf.mxu1  ;;  %v8316_v27 = vld [vmem:[%s15116_s4 + $0x488] sm:$0xf] }
 0x22e   :  { %v3035_v37 = vadd.f32 %v3034_v55, %v3011_v21  ;;  %v8157_v21 = vor.u32 %v9457_v29, %v8156_v56  ;;  %v8317_v7 = vor.u32 %v9497_v13, %v8316_v27  ;;  %v7836_v55 = vld [vmem:[%s15116_s4 + $0xc8] sm:$0xf]  ;;  %v7976_v56 = vld [vmem:[%s15116_s4 + $0x1e0] sm:$0xf]  ;;  %v9412_v29 = vld [vmem:[%s15116_s4 + $0x1f0] sm:$0xf0] }
 0x22f   :  { %3204 = vmatmul.bf16.gmra.mxu0 %v12114_v31  ;;  %v7837_v3 = vor.u32 %v9377_v41, %v7836_v55  ;;  %v8116_v13 = vld [vmem:[%s15116_s4 + $0x2f8] sm:$0xf] }
 0x230   :  { %3227 = vmatmul.bf16.gmra.mxu1 %v12122_v4  ;;  %4203 = vmatpush.bf16.msrb.mxu0 %v7857_v51  ;;  %v8296_v51 = vld [vmem:[%s15116_s4 + $0x460] sm:$0xf]  ;;  %v8276_v41 = vld [vmem:[%s15116_s4 + $0x438] sm:$0xf] }
 0x231   :  { %v2977_v33 = vpop.f32.mrf.mxu2  ;;  %4250 = vmatpush.bf16.msrb.mxu2 %v8157_v21  ;;  %4273 = vmatpush.bf16.msrb.mxu3 %v8317_v7  ;;  %v8297_v58 = vor.u32 %v9492_v45, %v8296_v51  ;;  %v7977_v21 = vor.u32 %v9412_v29, %v7976_v56  ;;  %v9447_v7 = vld [vmem:[%s15116_s4 + $0x308] sm:$0xf0]  ;;  %v8277_v8 = vor.u32 %v9487_v57, %v8276_v41  ;;  %v7916_v57 = vld [vmem:[%s15116_s4 + $0x168] sm:$0xf] }
 0x232   :  { %v8117_v55 = vor.u32 %v9447_v7, %v8116_v13  ;;  %v8256_v13 = vld [vmem:[%s15116_s4 + $0x410] sm:$0xf]  ;;  %v9482_v7 = vld [vmem:[%s15116_s4 + $0x420] sm:$0xf0] }
 0x233   :  { %4228 = vmatpush.bf16.msrb.mxu1 %v7977_v21 }
 0x234   :  { %v3000_v46 = vpop.f32.mrf.mxu3  ;;  %v3013_v50 = vpop.f32.mrf.mxu0  ;;  %4204 = vmatpush.bf16.msrb.mxu0 %v7837_v3 }
 0x235   :  { %v3036_v1 = vpop.f32.mrf.mxu1  ;;  %4251 = vmatpush.bf16.msrb.mxu2 %v8137_v61  ;;  %v7816_v46 = vld [vmem:[%s15116_s4 + $0xa0] sm:$0xf]  ;;  %4274 = vmatpush.bf16.msrb.mxu3 %v8297_v58  ;;  %v9407_v61 = vld [vmem:[%s15116_s4 + $0x1c8] sm:$0xf0]  ;;  %v9362_v58 = vld [vmem:[%s15116_s4 + $0x60] sm:$0xf0] }
 0x236   :  { %v3037_v16 = vadd.f32 %v3036_v1, %v3013_v50  ;;  %3250 = vmatmul.bf16.gmra.mxu2 %v12163_v30  ;;  %v9372_v50 = vld [vmem:[%s15116_s4 + $0xb0] sm:$0xf0] }
 0x237   :  { %v7817_v1 = vor.u32 %v9372_v50, %v7816_v46  ;;  %v7936_v50 = vld [vmem:[%s15116_s4 + $0x190] sm:$0xf] }
 0x239   :  { %3273 = vmatmul.bf16.gmra.mxu3 %v12165_v36  ;;  %v3057_v48 = vpop.f32.mrf.mxu2  ;;  %4205 = vmatpush.bf16.msrb.mxu0 %v7817_v1  ;;  %v9402_v1 = vld [vmem:[%s15116_s4 + $0x1a0] sm:$0xf0] }
 0x23a   :  { %v3058_v6 = vadd.f32 %v3057_v48, %v3035_v37  ;;  %4252 = vmatpush.bf16.msrb.mxu2 %v8117_v55  ;;  %4275 = vmatpush.bf16.msrb.mxu3 %v8277_v8  ;;  %v7937_v21 = vor.u32 %v9402_v1, %v7936_v50  ;;  %v8257_v55 = vor.u32 %v9482_v7, %v8256_v13  ;;  %v7896_v50 = vld [vmem:[%s15116_s4 + $0x140] sm:$0xf]  ;;  %v9432_v13 = vld [vmem:[%s15116_s4 + $0x290] sm:$0xf0] }
 0x23c   :  { %v3080_v25 = vpop.f32.mrf.mxu3  ;;  %v3016_v33 = vpop.f32.mrf.mxu0 }
 0x23d   :  { %v12809_v40 = vadd.f32 %v3080_v25, %v3058_v6  ;;  %v3039_v37 = vpop.f32.mrf.mxu1  ;;  %v8096_v6 = vld [vmem:[%s15116_s4 + $0x2d0] sm:$0xf]  ;;  %v9442_v25 = vld [vmem:[%s15116_s4 + $0x2e0] sm:$0xf0] }
 0x23e   :  { %v3040_v27 = vadd.f32 %v3039_v37, %v3016_v33  ;;  %v7957_v33 = vor.u32 %v9407_v61, %v7956_v35  ;;  %v8097_v51 = vor.u32 %v9442_v25, %v8096_v6  ;;  %v7776_v37 = vld [vmem:[%s15116_s4 + $0x50] sm:$0xf]  ;;  %4276 = vmatpush.bf16.msrb.mxu3 %v8257_v55  ;;  %v8236_v61 = vld [vmem:[%s15116_s4 + $0x3e8] sm:$0xf] }
 0x23f   :  { %3286 = vmatmul.bf16.vlgmr.msra.gmra.mxu0 %v11769_v34  ;;  %v7796_v34 = vld [vmem:[%s15116_s4 + $0x78] sm:$0xf]  ;;  %v7777_v29 = vor.u32 %v9362_v58, %v7776_v37 }
 0x240   :  { %3309 = vmatmul.bf16.vlgmr.msra.gmra.mxu1 %v11783_v59  ;;  %v9367_v59 = vld [vmem:[%s15116_s4 + $0x88] sm:$0xf0]  ;;  %4253 = vmatpush.bf16.msrb.mxu2 %v8097_v51  ;;  %v7736_v51 = vld [vmem:[%s15116_s4] sm:$0xf] }
 0x241   :  { %v3059_v3 = vpop.f32.mrf.mxu2  ;;  %v7797_v12 = vor.u32 %v9367_v59, %v7796_v34  ;;  %4229 = vmatpush.bf16.msrb.mxu1 %v7957_v33  ;;  %v9397_v59 = vld [vmem:[%s15116_s4 + $0x178] sm:$0xf0] }
 0x242   :  { %v3060_v20 = vadd.f32 %v3059_v3, %v3037_v16  ;;  %v7917_v35 = vor.u32 %v9397_v59, %v7916_v57  ;;  %v9477_v33 = vld [vmem:[%s15116_s4 + $0x3f8] sm:$0xf0] }
 0x243   :  { %4206 = vmatpush.bf16.msrb.mxu0 %v7797_v12  ;;  %v8076_v12 = vld [vmem:[%s15116_s4 + $0x2a8] sm:$0xf]  ;;  %v8237_v37 = vor.u32 %v9477_v33, %v8236_v61  ;;  %v9505_v59 = vld [vmem:[%s15116_s4 + $0x4dc] sm:$0xf]  ;;  %v7878_v33 = vld [vmem:[%s15116_s4 + $0x12c] sm:$0xf0] }
 0x244   :  { %v3082_v48 = vpop.f32.mrf.mxu3  ;;  %v3018_v16 = vpop.f32.mrf.mxu0 }
 0x245   :  { %v12861_v45 = vadd.f32 %v3082_v48, %v3060_v20  ;;  %v3041_v46 = vpop.f32.mrf.mxu1  ;;  %4230 = vmatpush.bf16.msrb.mxu1 %v7937_v21  ;;  %4277 = vmatpush.bf16.msrb.mxu3 %v8237_v37  ;;  %v8056_v21 = vld [vmem:[%s15116_s4 + $0x280] sm:$0xf]  ;;  %v8038_v37 = vld [vmem:[%s15116_s4 + $0x26c] sm:$0xf0] }
 0x246   :  { %v3042_v56 = vadd.f32 %v3041_v46, %v3018_v16  ;;  %3332 = vmatmul.bf16.vlgmr.msra.gmra.mxu2 %v11844_v18  ;;  %v7756_v18 = vld [vmem:[%s15116_s4 + $0x28] sm:$0xf]  ;;  %v9352_v16 = vld [vmem:[%s15116_s4 + $0x10] sm:$0xf0]  ;;  %v8057_v55 = vor.u32 %v9432_v13, %v8056_v21 }
 0x247   :  { %4207 = vmatpush.bf16.msrb.mxu0 %v7777_v29  ;;  %v7737_v58 = vor.u32 %v9352_v16, %v7736_v51  ;;  %v9392_v29 = vld [vmem:[%s15116_s4 + $0x150] sm:$0xf0]  ;;  %v9425_v51 = vld [vmem:[%s15116_s4 + $0x25c] sm:$0xf] }
 0x248   :  { %v7897_v1 = vor.u32 %v9392_v29, %v7896_v50  ;;  %v8178_v50 = vld [vmem:[%s15116_s4 + $0x384] sm:$0xf0]  ;;  %v9500_v13 = vld [vmem:[%s15116_s4 + $0x4b4] sm:$0xf] }
 0x249   :  { %3355 = vmatmul.bf16.vlgmr.msra.gmra.mxu3 %v11862_v24  ;;  %v3062_v41 = vpop.f32.mrf.mxu2  ;;  %v9357_v24 = vld [vmem:[%s15116_s4 + $0x38] sm:$0xf0]  ;;  %4231 = vmatpush.bf16.msrb.mxu1 %v7917_v35 }
 0x24a   :  { %v3063_v3 = vadd.f32 %v3062_v41, %v3040_v27  ;;  %v7757_v34 = vor.u32 %v9357_v24, %v7756_v18  ;;  %v9437_v27 = vld [vmem:[%s15116_s4 + $0x2b8] sm:$0xf0] }
 0x24b   :  { %v8077_v25 = vor.u32 %v9437_v27, %v8076_v12 }
 0x24c   :  { %v3085_v8 = vpop.f32.mrf.mxu3  ;;  %v3021_v48 = vpop.f32.mrf.mxu0  ;;  %4208 = vmatpush.bf16.msrb.mxu0 %v7757_v34  ;;  %v8198_v34 = vld [vmem:[%s15116_s4 + $0x3ac] sm:$0xf0] }
 0x24d   :  { %v12895_v20 = vadd.f32 %v3085_v8, %v3063_v3  ;;  %v3044_v6 = vpop.f32.mrf.mxu1  ;;  %4254 = vmatpush.bf16.msrb.mxu2 %v8077_v25  ;;  %4232 = vmatpush.bf16.msrb.mxu1 %v7897_v1  ;;  %v9385_v25 = vld [vmem:[%s15116_s4 + $0x11c] sm:$0xf]  ;;  %v8041_v1 = vor.u32 %v9425_v51, %v8038_v37  ;;  %v8138_v51 = vld [vmem:[%s15116_s4 + $0x334] sm:$0xf0] }
 0x24e   :  { %v3045_v46 = vadd.f32 %v3044_v6, %v3021_v48 }
 0x24f   :  { %3291 = vmatmul.bf16.gmra.mxu0 %v11964_v17  ;;  %v8216_v17 = vld [vmem:[%s15116_s4 + $0x3c0] sm:$0xf] }
 0x250   :  { %3314 = vmatmul.bf16.gmra.mxu1 %v11979_v11  ;;  %4209 = vmatpush.bf16.msrb.mxu0 %v7737_v58  ;;  %v9472_v11 = vld [vmem:[%s15116_s4 + $0x3d0] sm:$0xf0] }
 0x251   :  { %v3064_v7 = vpop.f32.mrf.mxu2  ;;  %4255 = vmatpush.bf16.msrb.mxu2 %v8057_v55  ;;  %v8217_v3 = vor.u32 %v9472_v11, %v8216_v17  ;;  %v9460_v58 = vld [vmem:[%s15116_s4 + $0x374] sm:$0xf]  ;;  %4317 = vmatpush.bf16.msra.mxu1 %v8041_v1 }
 0x252   :  { %v3065_v41 = vadd.f32 %v3064_v7, %v3042_v56  ;;  %v9465_v56 = vld [vmem:[%s15116_s4 + $0x39c] sm:$0xf]  ;;  %v8181_v21 = vor.u32 %v9460_v58, %v8178_v50  ;;  %v8338_v7 = vld [vmem:[%s15116_s4 + $0x4c4] sm:$0xf0]  ;;  %v9420_v17 = vld [vmem:[%s15116_s4 + $0x234] sm:$0xf] }
 0x253   :  { %4278 = vmatpush.bf16.msrb.mxu3 %v8217_v3  ;;  %v8201_v35 = vor.u32 %v9465_v56, %v8198_v34  ;;  %v8341_v55 = vor.u32 %v9500_v13, %v8338_v7  ;;  %v9455_v56 = vld [vmem:[%s15116_s4 + $0x34c] sm:$0xf]  ;;  %v8158_v34 = vld [vmem:[%s15116_s4 + $0x35c] sm:$0xf0]  ;;  %v9490_v13 = vld [vmem:[%s15116_s4 + $0x464] sm:$0xf] }
 0x254   :  { %v3087_v18 = vpop.f32.mrf.mxu3  ;;  %v3023_v57 = vpop.f32.mrf.mxu0  ;;  %v8298_v7 = vld [vmem:[%s15116_s4 + $0x474] sm:$0xf0] }
 0x255   :  { %v12935_v24 = vadd.f32 %v3087_v18, %v3065_v41  ;;  %v3046_v8 = vpop.f32.mrf.mxu1  ;;  %4340 = vmatpush.bf16.msra.mxu2 %v8201_v35  ;;  %v9380_v41 = vld [vmem:[%s15116_s4 + $0xf4] sm:$0xf]  ;;  %v7858_v18 = vld [vmem:[%s15116_s4 + $0x104] sm:$0xf0] }
 0x256   :  { %3337 = vmatmul.bf16.gmra.mxu2 %v12017_v53  ;;  %v8358_v53 = vld [vmem:[%s15116_s4 + $0x4ec] sm:$0xf0] }
 0x257   :  { %v8361_v12 = vor.u32 %v9505_v59, %v8358_v53  ;;  %v9495_v59 = vld [vmem:[%s15116_s4 + $0x48c] sm:$0xf]  ;;  %v8161_v53 = vor.u32 %v9455_v56, %v8158_v34  ;;  %v9485_v34 = vld [vmem:[%s15116_s4 + $0x43c] sm:$0xf] }
 0x259   :  { %3360 = vmatmul.bf16.gmra.mxu3 %v12030_v63  ;;  %v3067_v48 = vpop.f32.mrf.mxu2  ;;  %4341 = vmatpush.bf16.msra.mxu2 %v8181_v21 }
 0x25a   :  { %v3068_v63 = vadd.f32 %v3067_v48, %v3045_v46  ;;  %4363 = vmatpush.bf16.msra.mxu3 %v8361_v12  ;;  %v7881_v46 = vor.u32 %v9385_v25, %v7878_v33  ;;  %v8318_v48 = vld [vmem:[%s15116_s4 + $0x49c] sm:$0xf0]  ;;  %v9415_v25 = vld [vmem:[%s15116_s4 + $0x20c] sm:$0xf] }
 0x25c   :  { %v3090_v27 = vpop.f32.mrf.mxu3  ;;  %v3103_v6 = vpop.f32.mrf.mxu0  ;;  %4294 = vmatpush.bf16.msra.mxu0 %v7881_v46 }
 0x25d   :  { %v12951_v61 = vadd.f32 %v3090_v27, %v3068_v63  ;;  %v3126_v16 = vpop.f32.mrf.mxu1  ;;  %v8321_v63 = vor.u32 %v9495_v59, %v8318_v48  ;;  %4342 = vmatpush.bf16.msra.mxu2 %v8161_v53  ;;  %v9375_v27 = vld [vmem:[%s15116_s4 + $0xcc] sm:$0xf]  ;;  %v8278_v59 = vld [vmem:[%s15116_s4 + $0x44c] sm:$0xf0]  ;;  %v9365_v48 = vld [vmem:[%s15116_s4 + $0x7c] sm:$0xf] }
 0x25e   :  { %v3127_v29 = vadd.f32 %v3126_v16, %v3103_v6  ;;  %4364 = vmatpush.bf16.msra.mxu3 %v8341_v55  ;;  %v7838_v6 = vld [vmem:[%s15116_s4 + $0xdc] sm:$0xf0]  ;;  %v9370_v55 = vld [vmem:[%s15116_s4 + $0xa4] sm:$0xf]  ;;  %v8281_v53 = vor.u32 %v9485_v34, %v8278_v59 }
 0x25f   :  { %3296 = vmatmul.bf16.gmra.mxu0 %v12114_v31  ;;  %v7861_v31 = vor.u32 %v9380_v41, %v7858_v18  ;;  %v7841_v33 = vor.u32 %v9375_v27, %v7838_v6  ;;  %v8301_v41 = vor.u32 %v9490_v13, %v8298_v7  ;;  %v7818_v18 = vld [vmem:[%s15116_s4 + $0xb4] sm:$0xf0]  ;;  %v9405_v27 = vld [vmem:[%s15116_s4 + $0x1bc] sm:$0xf]  ;;  %v9400_v13 = vld [vmem:[%s15116_s4 + $0x194] sm:$0xf] }
 0x260   :  { %3319 = vmatmul.bf16.gmra.mxu1 %v12122_v4  ;;  %v8018_v4 = vld [vmem:[%s15116_s4 + $0x244] sm:$0xf0] }
 0x261   :  { %v3069_v11 = vpop.f32.mrf.mxu2  ;;  %v8021_v3 = vor.u32 %v9420_v17, %v8018_v4  ;;  %4295 = vmatpush.bf16.msra.mxu0 %v7861_v31  ;;  %v9410_v17 = vld [vmem:[%s15116_s4 + $0x1e4] sm:$0xf]  ;;  %v7821_v4 = vor.u32 %v9370_v55, %v7818_v18  ;;  %v9480_v18 = vld [vmem:[%s15116_s4 + $0x414] sm:$0xf] }
 0x262   :  { %4365 = vmatpush.bf16.msra.mxu3 %v8321_v63  ;;  %v7978_v11 = vld [vmem:[%s15116_s4 + $0x1f4] sm:$0xf0]  ;;  %v7798_v63 = vld [vmem:[%s15116_s4 + $0x8c] sm:$0xf0] }
 0x263   :  { %4318 = vmatpush.bf16.msra.mxu1 %v8021_v3  ;;  %v9445_v3 = vld [vmem:[%s15116_s4 + $0x2fc] sm:$0xf] }
 0x264   :  { %v3092_v57 = vpop.f32.mrf.mxu3  ;;  %v3105_v8 = vpop.f32.mrf.mxu0 }
 0x265   :  { %v3128_v35 = vpop.f32.mrf.mxu1  ;;  %4296 = vmatpush.bf16.msra.mxu0 %v7841_v33  ;;  %v7981_v57 = vor.u32 %v9410_v17, %v7978_v11  ;;  %v7801_v33 = vor.u32 %v9365_v48, %v7798_v63  ;;  %v8258_v17 = vld [vmem:[%s15116_s4 + $0x424] sm:$0xf0] }
 0x266   :  { %v3129_v12 = vadd.f32 %v3128_v35, %v3105_v8  ;;  %3342 = vmatmul.bf16.gmra.mxu2 %v12163_v30  ;;  %v7998_v30 = vld [vmem:[%s15116_s4 + $0x21c] sm:$0xf0]  ;;  %v8118_v8 = vld [vmem:[%s15116_s4 + $0x30c] sm:$0xf0]  ;;  %4366 = vmatpush.bf16.msra.mxu3 %v8301_v41  ;;  %v8261_v11 = vor.u32 %v9480_v18, %v8258_v17 }
 0x267   :  { %v8001_v46 = vor.u32 %v9415_v25, %v7998_v30  ;;  %v8121_v56 = vor.u32 %v9445_v3, %v8118_v8  ;;  %v7958_v30 = vld [vmem:[%s15116_s4 + $0x1cc] sm:$0xf0]  ;;  %v7758_v3 = vld [vmem:[%s15116_s4 + $0x3c] sm:$0xf0]  ;;  %v9395_v8 = vld [vmem:[%s15116_s4 + $0x16c] sm:$0xf] }
 0x269   :  { %3365 = vmatmul.bf16.gmra.mxu3 %v12165_v36  ;;  %v9450_v36 = vld [vmem:[%s15116_s4 + $0x324] sm:$0xf]  ;;  %v3149_v16 = vpop.f32.mrf.mxu2  ;;  %4319 = vmatpush.bf16.msra.mxu1 %v8001_v46 }
 0x26a   :  { %v8141_v37 = vor.u32 %v9450_v36, %v8138_v51  ;;  %v3150_v58 = vadd.f32 %v3149_v16, %v3127_v29  ;;  %4297 = vmatpush.bf16.msra.mxu0 %v7821_v4  ;;  %v9440_v36 = vld [vmem:[%s15116_s4 + $0x2d4] sm:$0xf]  ;;  %v8098_v51 = vld [vmem:[%s15116_s4 + $0x2e4] sm:$0xf0]  ;;  %4367 = vmatpush.bf16.msra.mxu3 %v8281_v53  ;;  %v7961_v16 = vor.u32 %v9405_v27, %v7958_v30  ;;  %v9435_v27 = vld [vmem:[%s15116_s4 + $0x2ac] sm:$0xf] }
 0x26b   :  { %v8101_v46 = vor.u32 %v9440_v36, %v8098_v51  ;;  %v8238_v30 = vld [vmem:[%s15116_s4 + $0x3fc] sm:$0xf0]  ;;  %v9350_v36 = vld [vmem:[%s15116_s4 + $0x4] sm:$0xf]  ;;  %v7738_v51 = vld [vmem:[%s15116_s4 + $0x14] sm:$0xf0] }
 0x26c   :  { %v3172_v50 = vpop.f32.mrf.mxu3  ;;  %4343 = vmatpush.bf16.msra.mxu2 %v8141_v37  ;;  %v3108_v21 = vpop.f32.mrf.mxu0 }
 0x26d   :  { %v13023_v1 = vadd.f32 %v3172_v50, %v3150_v58  ;;  %v3131_v29 = vpop.f32.mrf.mxu1  ;;  %4320 = vmatpush.bf16.msra.mxu1 %v7981_v57  ;;  %v9360_v50 = vld [vmem:[%s15116_s4 + $0x54] sm:$0xf]  ;;  %v9355_v57 = vld [vmem:[%s15116_s4 + $0x2c] sm:$0xf] }
 0x26e   :  { %v3132_v31 = vadd.f32 %v3131_v29, %v3108_v21  ;;  %4298 = vmatpush.bf16.msra.mxu0 %v7801_v33  ;;  %v7778_v21 = vld [vmem:[%s15116_s4 + $0x64] sm:$0xf0]  ;;  %4368 = vmatpush.bf16.msra.mxu3 %v8261_v11  ;;  %v7761_v59 = vor.u32 %v9355_v57, %v7758_v3  ;;  %v9470_v11 = vld [vmem:[%s15116_s4 + $0x3c4] sm:$0xf] }
 0x26f   :  { %4210 = vmatmul.bf16.vlgmr.msrb.gmra.mxu0 %v11681_v19  ;;  %v7781_v55 = vor.u32 %v9360_v50, %v7778_v21  ;;  %v7938_v29 = vld [vmem:[%s15116_s4 + $0x1a4] sm:$0xf0]  ;;  %v7898_v50 = vld [vmem:[%s15116_s4 + $0x154] sm:$0xf0] }
 0x270   :  { %4233 = vmatmul.bf16.vlgmr.msrb.gmra.mxu1 %v11686_v44  ;;  %4344 = vmatpush.bf16.msra.mxu2 %v8121_v56  ;;  %v7941_v41 = vor.u32 %v9400_v13, %v7938_v29  ;;  %v9430_v13 = vld [vmem:[%s15116_s4 + $0x284] sm:$0xf] }
 0x271   :  { %v3151_v35 = vpop.f32.mrf.mxu2  ;;  %4321 = vmatpush.bf16.msra.mxu1 %v7961_v16 }
 0x272   :  { %v3152_v6 = vadd.f32 %v3151_v35, %v3129_v12  ;;  %4299 = vmatpush.bf16.msra.mxu0 %v7781_v55  ;;  %v7918_v35 = vld [vmem:[%s15116_s4 + $0x17c] sm:$0xf0]  ;;  %v8058_v55 = vld [vmem:[%s15116_s4 + $0x294] sm:$0xf0] }
 0x273   :  { %v7921_v53 = vor.u32 %v9395_v8, %v7918_v35  ;;  %v8364_v35 = vld [vmem:[%s15116_s4 + $0x4e0] sm:$0xf] }
 0x274   :  { %v3174_v25 = vpop.f32.mrf.mxu3  ;;  %v3110_v12 = vpop.f32.mrf.mxu0  ;;  %4345 = vmatpush.bf16.msra.mxu2 %v8101_v46 }
 0x275   :  { %v13075_v37 = vadd.f32 %v3174_v25, %v3152_v6  ;;  %v3133_v58 = vpop.f32.mrf.mxu1  ;;  %4322 = vmatpush.bf16.msra.mxu1 %v7941_v41  ;;  %v9475_v6 = vld [vmem:[%s15116_s4 + $0x3ec] sm:$0xf]  ;;  %v8061_v41 = vor.u32 %v9430_v13, %v8058_v55  ;;  %v13191_v55 = vpack.c.bf16 %v11939_v10, %v11939_v10  ;;  %v7864_v10 = vld [vmem:[%s15116_s4 + $0xf8] sm:$0xf] }
 0x276   :  { %v3134_v7 = vadd.f32 %v3133_v58, %v3110_v12  ;;  %4256 = vmatmul.bf16.vlgmr.msrb.gmra.mxu2 %v11748_v14  ;;  %4300 = vmatpush.bf16.msra.mxu0 %v7761_v59  ;;  %v8241_v46 = vor.u32 %v9475_v6, %v8238_v30  ;;  %v7741_v12 = vor.u32 %v9350_v36, %v7738_v51  ;;  %v9390_v58 = vld [vmem:[%s15116_s4 + $0x144] sm:$0xf]  ;;  %v9468_v59 = vld [vmem:[%s15116_s4 + $0x3b0] sm:$0xf0]  ;;  %v7884_v36 = vld [vmem:[%s15116_s4 + $0x120] sm:$0xf] }
 0x277   :  { %v7901_v21 = vor.u32 %v9390_v58, %v7898_v50  ;;  %v9388_v51 = vld [vmem:[%s15116_s4 + $0x130] sm:$0xf0]  ;;  %v9463_v13 = vld [vmem:[%s15116_s4 + $0x388] sm:$0xf0] }
 0x278   :  { %4369 = vmatpush.bf16.msra.mxu3 %v8241_v46  ;;  %v8044_v46 = vld [vmem:[%s15116_s4 + $0x260] sm:$0xf]  ;;  %v7885_v58 = vor.u32 %v9388_v51, %v7884_v36  ;;  %v9428_v50 = vld [vmem:[%s15116_s4 + $0x270] sm:$0xf0]  ;;  %v9498_v36 = vld [vmem:[%s15116_s4 + $0x4a0] sm:$0xf0] }
 0x279   :  { %4279 = vmatmul.bf16.vlgmr.msrb.gmra.mxu3 %v11765_v49  ;;  %v3154_v4 = vpop.f32.mrf.mxu2  ;;  %4323 = vmatpush.bf16.msra.mxu1 %v7921_v53 }
 0x27a   :  { %v3155_v56 = vadd.f32 %v3154_v4, %v3132_v31  ;;  %v8078_v31 = vld [vmem:[%s15116_s4 + $0x2bc] sm:$0xf0]  ;;  %4301 = vmatpush.bf16.msra.mxu0 %v7741_v12  ;;  %v8218_v4 = vld [vmem:[%s15116_s4 + $0x3d4] sm:$0xf0] }
 0x27b   :  { %v8081_v33 = vor.u32 %v9435_v27, %v8078_v31  ;;  %v8221_v8 = vor.u32 %v9470_v11, %v8218_v4  ;;  %v9383_v4 = vld [vmem:[%s15116_s4 + $0x108] sm:$0xf0] }
 0x27c   :  { %v3177_v34 = vpop.f32.mrf.mxu3  ;;  %v3113_v63 = vpop.f32.mrf.mxu0 }
 0x27d   :  { %v13109_v48 = vadd.f32 %v3177_v34, %v3155_v56  ;;  %v3136_v25 = vpop.f32.mrf.mxu1  ;;  %4346 = vmatpush.bf16.msra.mxu2 %v8081_v33  ;;  %4324 = vmatpush.bf16.msra.mxu1 %v7901_v21  ;;  %v15274_v34 = vld [vmem:[#allocation22_spill] sm:$0xff]  ;;  %v8184_v21 = vld [vmem:[%s15116_s4 + $0x378] sm:$0xf] }
 0x27e   :  { %v3137_v16 = vadd.f32 %v3136_v25, %v3113_v63  ;;  %4370 = vmatpush.bf16.msra.mxu3 %v8221_v8  ;;  %v9508_v63 = vld [vmem:[%s15116_s4 + $0x4f0] sm:$0xf0]  ;;  %4386 = vmatpush.bf16.msrb.mxu0 %v7885_v58  ;;  %v8004_v58 = vld [vmem:[%s15116_s4 + $0x210] sm:$0xf] }
 0x27f   :  { %4215 = vmatmul.bf16.gmra.mxu0 %v11866_v47  ;;  %v8365_v31 = vor.u32 %v9508_v63, %v8364_v35 }
 0x280   :  { %4238 = vmatmul.bf16.gmra.mxu1 %v11881_v39 }
 0x281   :  { %v3156_v29 = vpop.f32.mrf.mxu2  ;;  %4347 = vmatpush.bf16.msra.mxu2 %v8061_v41  ;;  %v8185_v41 = vor.u32 %v9463_v13, %v8184_v21  ;;  %v9418_v21 = vld [vmem:[%s15116_s4 + $0x220] sm:$0xf0]  ;;  %v8144_v13 = vld [vmem:[%s15116_s4 + $0x328] sm:$0xf] }
 0x282   :  { %v3157_v18 = vadd.f32 %v3156_v29, %v3134_v7  ;;  %v8204_v7 = vld [vmem:[%s15116_s4 + $0x3a0] sm:$0xf]  ;;  %4455 = vmatpush.bf16.msrb.mxu3 %v8365_v31  ;;  %v8045_v29 = vor.u32 %v9428_v50, %v8044_v46  ;;  %v9458_v31 = vld [vmem:[%s15116_s4 + $0x360] sm:$0xf0] }
 0x283   :  { %v8205_v53 = vor.u32 %v9468_v59, %v8204_v7  ;;  %v9423_v7 = vld [vmem:[%s15116_s4 + $0x248] sm:$0xf0] }
 0x284   :  { %v3179_v17 = vpop.f32.mrf.mxu3  ;;  %v3115_v3 = vpop.f32.mrf.mxu0  ;;  %4409 = vmatpush.bf16.msrb.mxu1 %v8045_v29  ;;  %v9453_v29 = vld [vmem:[%s15116_s4 + $0x338] sm:$0xf0] }
 0x285   :  { %v13149_v57 = vadd.f32 %v3179_v17, %v3157_v18  ;;  %v3138_v56 = vpop.f32.mrf.mxu1  ;;  %4432 = vmatpush.bf16.msrb.mxu2 %v8205_v53  ;;  %v8344_v18 = vld [vmem:[%s15116_s4 + $0x4b8] sm:$0xf]  ;;  %v9503_v17 = vld [vmem:[%s15116_s4 + $0x4c8] sm:$0xf0]  ;;  %v13215_v53 = vpack.c.bf16 %v12002_v22, %v12002_v22 }
 0x286   :  { %4261 = vmatmul.bf16.gmra.mxu2 %v11936_v15  ;;  %v8345_v11 = vor.u32 %v9503_v17, %v8344_v18  ;;  %v8024_v3 = vld [vmem:[%s15116_s4 + $0x238] sm:$0xf]  ;;  %v7865_v56 = vor.u32 %v9383_v4, %v7864_v10  ;;  %v8005_v18 = vor.u32 %v9418_v21, %v8004_v58  ;;  %v8145_v17 = vor.u32 %v9453_v29, %v8144_v13  ;;  %v7804_v21 = vld [vmem:[%s15116_s4 + $0x80] sm:$0xf]  ;;  %v9368_v13 = vld [vmem:[%s15116_s4 + $0x90] sm:$0xf0] }
 0x287   :  { %v8025_v35 = vor.u32 %v9423_v7, %v8024_v3  ;;  %v7824_v7 = vld [vmem:[%s15116_s4 + $0xa8] sm:$0xf]  ;;  %v7964_v29 = vld [vmem:[%s15116_s4 + $0x1c0] sm:$0xf] }
 0x288   :  { %4456 = vmatpush.bf16.msrb.mxu3 %v8345_v11  ;;  %4387 = vmatpush.bf16.msrb.mxu0 %v7865_v56  ;;  %v9493_v56 = vld [vmem:[%s15116_s4 + $0x478] sm:$0xf0] }
 0x289   :  { %4284 = vmatmul.bf16.gmra.mxu3 %v15274_v34  ;;  %v3159_v27 = vpop.f32.mrf.mxu2  ;;  %4433 = vmatpush.bf16.msrb.mxu2 %v8185_v41 }
 0x28a   :  { %v3160_v6 = vadd.f32 %v3159_v27, %v3137_v16  ;;  %v13178_v16 = vpack.c.bf16 %v11921_v54, %v11921_v54  ;;  %v8164_v27 = vld [vmem:[%s15116_s4 + $0x350] sm:$0xf]  ;;  %4410 = vmatpush.bf16.msrb.mxu1 %v8025_v35  ;;  %v9373_v35 = vld [vmem:[%s15116_s4 + $0xb8] sm:$0xf0] }
 0x28c   :  { %v3182_v25 = vpop.f32.mrf.mxu3  ;;  %v3195_v30 = vpop.f32.mrf.mxu0 }
 0x28d   :  { %v13165_v33 = vadd.f32 %v3182_v25, %v3160_v6  ;;  %v3218_v12 = vpop.f32.mrf.mxu1  ;;  %v8324_v6 = vld [vmem:[%s15116_s4 + $0x490] sm:$0xf]  ;;  %v13228_v25 = vpack.c.bf16 %v12008_v60, %v12008_v60  ;;  %v9378_v60 = vld [vmem:[%s15116_s4 + $0xe0] sm:$0xf0] }
 0x28e   :  { %v3219_v54 = vadd.f32 %v3218_v12, %v3195_v30  ;;  %v8165_v30 = vor.u32 %v9458_v31, %v8164_v27  ;;  %v8325_v46 = vor.u32 %v9498_v36, %v8324_v6  ;;  %v7844_v12 = vld [vmem:[%s15116_s4 + $0xd0] sm:$0xf]  ;;  %4411 = vmatpush.bf16.msrb.mxu1 %v8005_v18  ;;  %v9413_v27 = vld [vmem:[%s15116_s4 + $0x1f8] sm:$0xf0]  ;;  %v7825_v6 = vor.u32 %v9373_v35, %v7824_v7  ;;  %v9448_v36 = vld [vmem:[%s15116_s4 + $0x310] sm:$0xf0] }
 0x28f   :  { %4220 = vmatmul.bf16.gmra.mxu0 %v13178_v16  ;;  %v7845_v50 = vor.u32 %v9378_v60, %v7844_v12  ;;  %v8284_v12 = vld [vmem:[%s15116_s4 + $0x440] sm:$0xf]  ;;  %v9488_v60 = vld [vmem:[%s15116_s4 + $0x450] sm:$0xf0]  ;;  %v9363_v35 = vld [vmem:[%s15116_s4 + $0x68] sm:$0xf0] }
 0x290   :  { %4243 = vmatmul.bf16.gmra.mxu1 %v13191_v55  ;;  %4434 = vmatpush.bf16.msrb.mxu2 %v8165_v30  ;;  %v8124_v30 = vld [vmem:[%s15116_s4 + $0x300] sm:$0xf] }
 0x291   :  { %v3161_v8 = vpop.f32.mrf.mxu2  ;;  %4457 = vmatpush.bf16.msrb.mxu3 %v8325_v46  ;;  %4388 = vmatpush.bf16.msrb.mxu0 %v7845_v50  ;;  %v8125_v46 = vor.u32 %v9448_v36, %v8124_v30  ;;  %v8285_v50 = vor.u32 %v9488_v60, %v8284_v12  ;;  %v8264_v36 = vld [vmem:[%s15116_s4 + $0x418] sm:$0xf] }
 0x292   :  { %v8304_v8 = vld [vmem:[%s15116_s4 + $0x468] sm:$0xf] }
 0x294   :  { %v3184_v59 = vpop.f32.mrf.mxu3  ;;  %v3197_v63 = vpop.f32.mrf.mxu0  ;;  %4435 = vmatpush.bf16.msrb.mxu2 %v8145_v17  ;;  %v7805_v17 = vor.u32 %v9368_v13, %v7804_v21  ;;  %v7924_v21 = vld [vmem:[%s15116_s4 + $0x170] sm:$0xf] }
 0x295   :  { %v3220_v22 = vpop.f32.mrf.mxu1  ;;  %v8305_v59 = vor.u32 %v9493_v56, %v8304_v8  ;;  %4389 = vmatpush.bf16.msrb.mxu0 %v7825_v6 }
 0x296   :  { %v3221_v51 = vadd.f32 %v3220_v22, %v3197_v63  ;;  %4266 = vmatmul.bf16.gmra.mxu2 %v13215_v53  ;;  %v7984_v63 = vld [vmem:[%s15116_s4 + $0x1e8] sm:$0xf] }
 0x297   :  { %v7985_v22 = vor.u32 %v9413_v27, %v7984_v63  ;;  %4458 = vmatpush.bf16.msrb.mxu3 %v8305_v59  ;;  %v7784_v59 = vld [vmem:[%s15116_s4 + $0x58] sm:$0xf] }
 0x298   :  { %4436 = vmatpush.bf16.msrb.mxu2 %v8125_v46  ;;  %v7944_v63 = vld [vmem:[%s15116_s4 + $0x198] sm:$0xf]  ;;  %v7785_v6 = vor.u32 %v9363_v35, %v7784_v59  ;;  %v9483_v46 = vld [vmem:[%s15116_s4 + $0x428] sm:$0xf0]  ;;  %v7744_v59 = vld [vmem:[%s15116_s4 + $0x8] sm:$0xf] }
 0x299   :  { %4289 = vmatmul.bf16.gmra.mxu3 %v13228_v25  ;;  %v3241_v41 = vpop.f32.mrf.mxu2  ;;  %4412 = vmatpush.bf16.msrb.mxu1 %v7985_v22  ;;  %v9403_v22 = vld [vmem:[%s15116_s4 + $0x1a8] sm:$0xf0]  ;;  %v8265_v12 = vor.u32 %v9483_v46, %v8264_v36  ;;  %v9353_v35 = vld [vmem:[%s15116_s4 + $0x18] sm:$0xf0] }
 0x29a   :  { %v3242_v11 = vadd.f32 %v3241_v41, %v3219_v54  ;;  %4390 = vmatpush.bf16.msrb.mxu0 %v7805_v17  ;;  %v7945_v30 = vor.u32 %v9403_v22, %v7944_v63  ;;  %v7745_v22 = vor.u32 %v9353_v35, %v7744_v59  ;;  %v9393_v36 = vld [vmem:[%s15116_s4 + $0x158] sm:$0xf0] }
 0x29b   :  { %4459 = vmatpush.bf16.msrb.mxu3 %v8285_v50  ;;  %v9358_v50 = vld [vmem:[%s15116_s4 + $0x40] sm:$0xf0] }
 0x29c   :  { %v3264_v10 = vpop.f32.mrf.mxu3  ;;  %v3200_v3 = vpop.f32.mrf.mxu0 }
 0x29d   :  { %v13253_v4 = vadd.f32 %v3264_v10, %v3242_v11  ;;  %v3223_v54 = vpop.f32.mrf.mxu1  ;;  %v9408_v11 = vld [vmem:[%s15116_s4 + $0x1d0] sm:$0xf0]  ;;  %v8104_v10 = vld [vmem:[%s15116_s4 + $0x2d8] sm:$0xf] }
 0x29e   :  { %v3224_v31 = vadd.f32 %v3223_v54, %v3200_v3  ;;  %v9443_v3 = vld [vmem:[%s15116_s4 + $0x2e8] sm:$0xf0]  ;;  %v7965_v8 = vor.u32 %v9408_v11, %v7964_v29  ;;  %4391 = vmatpush.bf16.msrb.mxu0 %v7785_v6 }
 0x29f   :  { %4302 = vmatmul.bf16.vlgmr.msra.gmra.mxu0 %v11681_v19  ;;  %v8105_v56 = vor.u32 %v9443_v3, %v8104_v10  ;;  %4460 = vmatpush.bf16.msrb.mxu3 %v8265_v12  ;;  %v8084_v3 = vld [vmem:[%s15116_s4 + $0x2b0] sm:$0xf]  ;;  %v8064_v12 = vld [vmem:[%s15116_s4 + $0x288] sm:$0xf] }
 0x2a0   :  { %4325 = vmatmul.bf16.vlgmr.msra.gmra.mxu1 %v11686_v44 }
 0x2a1   :  { %v3243_v58 = vpop.f32.mrf.mxu2  ;;  %4413 = vmatpush.bf16.msrb.mxu1 %v7965_v8  ;;  %4437 = vmatpush.bf16.msrb.mxu2 %v8105_v56  ;;  %v8244_v8 = vld [vmem:[%s15116_s4 + $0x3f0] sm:$0xf] }
 0x2a2   :  { %v3244_v41 = vadd.f32 %v3243_v58, %v3221_v51  ;;  %v7764_v58 = vld [vmem:[%s15116_s4 + $0x30] sm:$0xf] }
 0x2a4   :  { %v3266_v18 = vpop.f32.mrf.mxu3  ;;  %v3202_v51 = vpop.f32.mrf.mxu0 }
 0x2a5   :  { %v13305_v7 = vadd.f32 %v3266_v18, %v3244_v41  ;;  %v3225_v54 = vpop.f32.mrf.mxu1  ;;  %4414 = vmatpush.bf16.msrb.mxu1 %v7945_v30  ;;  %v7765_v41 = vor.u32 %v9358_v50, %v7764_v58  ;;  %v9398_v18 = vld [vmem:[%s15116_s4 + $0x180] sm:$0xf0]  ;;  %v7904_v30 = vld [vmem:[%s15116_s4 + $0x148] sm:$0xf] }
 0x2a6   :  { %v3226_v27 = vadd.f32 %v3225_v54, %v3202_v51  ;;  %4348 = vmatmul.bf16.vlgmr.msra.gmra.mxu2 %v11748_v14  ;;  %v7925_v17 = vor.u32 %v9398_v18, %v7924_v21  ;;  %v9478_v54 = vld [vmem:[%s15116_s4 + $0x400] sm:$0xf0]  ;;  %v7905_v46 = vor.u32 %v9393_v36, %v7904_v30 }
 0x2a7   :  { %4392 = vmatpush.bf16.msrb.mxu0 %v7765_v41  ;;  %v8245_v6 = vor.u32 %v9478_v54, %v8244_v8  ;;  %v9473_v41 = vld [vmem:[%s15116_s4 + $0x3d8] sm:$0xf0]  ;;  %v9506_v8 = vld [vmem:[%s15116_s4 + $0x4e4] sm:$0xf] }
 0x2a8   :  { %v9386_v36 = vld [vmem:[%s15116_s4 + $0x124] sm:$0xf] }
 0x2a9   :  { %4371 = vmatmul.bf16.vlgmr.msra.gmra.mxu3 %v11765_v49  ;;  %v3246_v60 = vpop.f32.mrf.mxu2  ;;  %4415 = vmatpush.bf16.msrb.mxu1 %v7925_v17 }
 0x2aa   :  { %v3247_v13 = vadd.f32 %v3246_v60, %v3224_v31  ;;  %v9438_v31 = vld [vmem:[%s15116_s4 + $0x2c0] sm:$0xf0]  ;;  %4461 = vmatpush.bf16.msrb.mxu3 %v8245_v6  ;;  %v9433_v60 = vld [vmem:[%s15116_s4 + $0x298] sm:$0xf0] }
 0x2ab   :  { %v8085_v51 = vor.u32 %v9438_v31, %v8084_v3  ;;  %4393 = vmatpush.bf16.msrb.mxu0 %v7745_v22  ;;  %v8065_v50 = vor.u32 %v9433_v60, %v8064_v12  ;;  %v8206_v31 = vld [vmem:[%s15116_s4 + $0x3b4] sm:$0xf0]  ;;  %v9426_v12 = vld [vmem:[%s15116_s4 + $0x264] sm:$0xf] }
 0x2ac   :  { %v3269_v29 = vpop.f32.mrf.mxu3  ;;  %v3205_v10 = vpop.f32.mrf.mxu0 }
 0x2ad   :  { %v13339_v11 = vadd.f32 %v3269_v29, %v3247_v13  ;;  %v3228_v56 = vpop.f32.mrf.mxu1  ;;  %4438 = vmatpush.bf16.msrb.mxu2 %v8085_v51  ;;  %4416 = vmatpush.bf16.msrb.mxu1 %v7905_v46  ;;  %v8224_v29 = vld [vmem:[%s15116_s4 + $0x3c8] sm:$0xf]  ;;  %v8366_v51 = vld [vmem:[%s15116_s4 + $0x4f4] sm:$0xf0] }
 0x2ae   :  { %v3229_v63 = vadd.f32 %v3228_v56, %v3205_v10  ;;  %v8225_v10 = vor.u32 %v9473_v41, %v8224_v29  ;;  %v8369_v59 = vor.u32 %v9506_v8, %v8366_v51  ;;  %v7886_v46 = vld [vmem:[%s15116_s4 + $0x134] sm:$0xf0]  ;;  %v9421_v8 = vld [vmem:[%s15116_s4 + $0x23c] sm:$0xf] }
 0x2af   :  { %4307 = vmatmul.bf16.gmra.mxu0 %v11866_v47 }
 0x2b0   :  { %4330 = vmatmul.bf16.gmra.mxu1 %v11881_v39  ;;  %4462 = vmatpush.bf16.msrb.mxu3 %v8225_v10  ;;  %v8346_v10 = vld [vmem:[%s15116_s4 + $0x4cc] sm:$0xf0] }
 0x2b1   :  { %v3248_v58 = vpop.f32.mrf.mxu2  ;;  %4439 = vmatpush.bf16.msrb.mxu2 %v8065_v50  ;;  %v9461_v50 = vld [vmem:[%s15116_s4 + $0x37c] sm:$0xf] }
 0x2b2   :  { %v3249_v21 = vadd.f32 %v3248_v58, %v3226_v27  ;;  %v9466_v27 = vld [vmem:[%s15116_s4 + $0x3a4] sm:$0xf]  ;;  %v8046_v58 = vld [vmem:[%s15116_s4 + $0x274] sm:$0xf0] }
 0x2b3   :  { %v8209_v56 = vor.u32 %v9466_v27, %v8206_v31  ;;  %v8049_v29 = vor.u32 %v9426_v12, %v8046_v58  ;;  %v9381_v27 = vld [vmem:[%s15116_s4 + $0xfc] sm:$0xf]  ;;  %v7866_v31 = vld [vmem:[%s15116_s4 + $0x10c] sm:$0xf0] }
 0x2b4   :  { %v3271_v13 = vpop.f32.mrf.mxu3  ;;  %v3207_v17 = vpop.f32.mrf.mxu0  ;;  %4547 = vmatpush.bf16.msra.mxu3 %v8369_v59  ;;  %v7869_v51 = vor.u32 %v9381_v27, %v7866_v31  ;;  %v8146_v27 = vld [vmem:[%s15116_s4 + $0x33c] sm:$0xf0] }
 0x2b5   :  { %v13379_v18 = vadd.f32 %v3271_v13, %v3249_v21  ;;  %v3230_v3 = vpop.f32.mrf.mxu1  ;;  %4524 = vmatpush.bf16.msra.mxu2 %v8209_v56  ;;  %v8186_v21 = vld [vmem:[%s15116_s4 + $0x38c] sm:$0xf0]  ;;  %v9501_v17 = vld [vmem:[%s15116_s4 + $0x4bc] sm:$0xf]  ;;  %4501 = vmatpush.bf16.msra.mxu1 %v8049_v29  ;;  %v7846_v29 = vld [vmem:[%s15116_s4 + $0xe4] sm:$0xf0] }
 0x2b6   :  { %4353 = vmatmul.bf16.gmra.mxu2 %v11936_v15  ;;  %v8189_v41 = vor.u32 %v9461_v50, %v8186_v21  ;;  %v8349_v3 = vor.u32 %v9501_v17, %v8346_v10  ;;  %v9376_v21 = vld [vmem:[%s15116_s4 + $0xd4] sm:$0xf]  ;;  %v8006_v10 = vld [vmem:[%s15116_s4 + $0x224] sm:$0xf0] }
 0x2b7   :  { %v7849_v17 = vor.u32 %v9376_v21, %v7846_v29 }
 0x2b8   :  { %4548 = vmatpush.bf16.msra.mxu3 %v8349_v3  ;;  %v9451_v3 = vld [vmem:[%s15116_s4 + $0x32c] sm:$0xf] }
 0x2b9   :  { %4376 = vmatmul.bf16.gmra.mxu3 %v15274_v34  ;;  %v3251_v54 = vpop.f32.mrf.mxu2  ;;  %4525 = vmatpush.bf16.msra.mxu2 %v8189_v41  ;;  %v9416_v41 = vld [vmem:[%s15116_s4 + $0x214] sm:$0xf] }
 0x2ba   :  { %v3252_v35 = vadd.f32 %v3251_v54, %v3229_v63  ;;  %v7889_v63 = vor.u32 %v9386_v36, %v7886_v46  ;;  %v8026_v54 = vld [vmem:[%s15116_s4 + $0x24c] sm:$0xf0]  ;;  %v8166_v36 = vld [vmem:[%s15116_s4 + $0x364] sm:$0xf0]  ;;  %v9496_v46 = vld [vmem:[%s15116_s4 + $0x494] sm:$0xf] }
 0x2bc   :  { %v3274_v6 = vpop.f32.mrf.mxu3  ;;  %v3287_v30 = vpop.f32.mrf.mxu0  ;;  %4478 = vmatpush.bf16.msra.mxu0 %v7889_v63  ;;  %v8326_v63 = vld [vmem:[%s15116_s4 + $0x4a4] sm:$0xf0] }
 0x2bd   :  { %v13395_v22 = vadd.f32 %v3274_v6, %v3252_v35  ;;  %v3310_v60 = vpop.f32.mrf.mxu1  ;;  %v8029_v35 = vor.u32 %v9421_v8, %v8026_v54  ;;  %v8329_v50 = vor.u32 %v9496_v46, %v8326_v63  ;;  %v8009_v8 = vor.u32 %v9416_v41, %v8006_v10  ;;  %v7986_v63 = vld [vmem:[%s15116_s4 + $0x1fc] sm:$0xf0]  ;;  %v9446_v41 = vld [vmem:[%s15116_s4 + $0x304] sm:$0xf] }
 0x2be   :  { %v3311_v13 = vadd.f32 %v3310_v60, %v3287_v30  ;;  %v9456_v30 = vld [vmem:[%s15116_s4 + $0x354] sm:$0xf] }
 0x2bf   :  { %4312 = vmatmul.bf16.gmra.mxu0 %v13178_v16  ;;  %4502 = vmatpush.bf16.msra.mxu1 %v8029_v35  ;;  %v8169_v60 = vor.u32 %v9456_v30, %v8166_v36  ;;  %v8306_v30 = vld [vmem:[%s15116_s4 + $0x47c] sm:$0xf0]  ;;  %v9371_v36 = vld [vmem:[%s15116_s4 + $0xac] sm:$0xf] }
 0x2c0   :  { %4335 = vmatmul.bf16.gmra.mxu1 %v13191_v55  ;;  %4479 = vmatpush.bf16.msra.mxu0 %v7869_v51 }
 0x2c1   :  { %v3253_v56 = vpop.f32.mrf.mxu2  ;;  %4526 = vmatpush.bf16.msra.mxu2 %v8169_v60  ;;  %4549 = vmatpush.bf16.msra.mxu3 %v8329_v50  ;;  %v9411_v60 = vld [vmem:[%s15116_s4 + $0x1ec] sm:$0xf] }
 0x2c2   :  { %v8149_v56 = vor.u32 %v9451_v3, %v8146_v27  ;;  %v7989_v29 = vor.u32 %v9411_v60, %v7986_v63  ;;  %v9486_v3 = vld [vmem:[%s15116_s4 + $0x444] sm:$0xf]  ;;  %v8286_v27 = vld [vmem:[%s15116_s4 + $0x454] sm:$0xf0] }
 0x2c3   :  { %4503 = vmatpush.bf16.msra.mxu1 %v8009_v8  ;;  %v8289_v8 = vor.u32 %v9486_v3, %v8286_v27  ;;  %v7946_v27 = vld [vmem:[%s15116_s4 + $0x1ac] sm:$0xf0] }
 0x2c4   :  { %v3276_v59 = vpop.f32.mrf.mxu3  ;;  %v3289_v6 = vpop.f32.mrf.mxu0  ;;  %4480 = vmatpush.bf16.msra.mxu0 %v7849_v17  ;;  %v8126_v17 = vld [vmem:[%s15116_s4 + $0x314] sm:$0xf0] }
 0x2c5   :  { %v3312_v12 = vpop.f32.mrf.mxu1  ;;  %4527 = vmatpush.bf16.msra.mxu2 %v8149_v56  ;;  %v8129_v10 = vor.u32 %v9446_v41, %v8126_v17  ;;  %v9366_v56 = vld [vmem:[%s15116_s4 + $0x84] sm:$0xf]  ;;  %v7786_v41 = vld [vmem:[%s15116_s4 + $0x6c] sm:$0xf0]  ;;  %v9401_v17 = vld [vmem:[%s15116_s4 + $0x19c] sm:$0xf] }
 0x2c6   :  { %v3313_v58 = vadd.f32 %v3312_v12, %v3289_v6  ;;  %4358 = vmatmul.bf16.gmra.mxu2 %v13215_v53  ;;  %v9491_v6 = vld [vmem:[%s15116_s4 + $0x46c] sm:$0xf]  ;;  %v7826_v12 = vld [vmem:[%s15116_s4 + $0xbc] sm:$0xf0] }
 0x2c7   :  { %v8309_v46 = vor.u32 %v9491_v6, %v8306_v30  ;;  %v7829_v21 = vor.u32 %v9371_v36, %v7826_v12  ;;  %4504 = vmatpush.bf16.msra.mxu1 %v7989_v29  ;;  %v7966_v36 = vld [vmem:[%s15116_s4 + $0x1d4] sm:$0xf0]  ;;  %v9361_v29 = vld [vmem:[%s15116_s4 + $0x5c] sm:$0xf] }
 0x2c8   :  { %v7789_v3 = vor.u32 %v9361_v29, %v7786_v41  ;;  %v9436_v29 = vld [vmem:[%s15116_s4 + $0x2b4] sm:$0xf] }
 0x2c9   :  { %4381 = vmatmul.bf16.gmra.mxu3 %v13228_v25  ;;  %v3333_v31 = vpop.f32.mrf.mxu2  ;;  %4481 = vmatpush.bf16.msra.mxu0 %v7829_v21  ;;  %v9476_v41 = vld [vmem:[%s15116_s4 + $0x3f4] sm:$0xf] }
 0x2ca   :  { %v3334_v51 = vadd.f32 %v3333_v31, %v3311_v13  ;;  %4550 = vmatpush.bf16.msra.mxu3 %v8309_v46  ;;  %4528 = vmatpush.bf16.msra.mxu2 %v8129_v10  ;;  %v8106_v46 = vld [vmem:[%s15116_s4 + $0x2ec] sm:$0xf0] }
 0x2cc   :  { %v3356_v54 = vpop.f32.mrf.mxu3  ;;  %v3292_v35 = vpop.f32.mrf.mxu0 }
 0x2cd   :  { %v13467_v59 = vadd.f32 %v3356_v54, %v3334_v51  ;;  %v3315_v13 = vpop.f32.mrf.mxu1  ;;  %v7806_v51 = vld [vmem:[%s15116_s4 + $0x94] sm:$0xf0]  ;;  %v9406_v54 = vld [vmem:[%s15116_s4 + $0x1c4] sm:$0xf] }
 0x2ce   :  { %v3316_v50 = vadd.f32 %v3315_v13, %v3292_v35  ;;  %v7809_v30 = vor.u32 %v9366_v56, %v7806_v51  ;;  %v9441_v13 = vld [vmem:[%s15116_s4 + $0x2dc] sm:$0xf]  ;;  %4551 = vmatpush.bf16.msra.mxu3 %v8289_v8  ;;  %v7969_v12 = vor.u32 %v9406_v54, %v7966_v36  ;;  %v8266_v56 = vld [vmem:[%s15116_s4 + $0x42c] sm:$0xf0] }
 0x2cf   :  { %4394 = vmatmul.bf16.vlgmr.msrb.gmra.mxu0 %v11681_v19  ;;  %v8109_v60 = vor.u32 %v9441_v13, %v8106_v46  ;;  %v9481_v8 = vld [vmem:[%s15116_s4 + $0x41c] sm:$0xf] }
 0x2d0   :  { %4417 = vmatmul.bf16.vlgmr.msrb.gmra.mxu1 %v11686_v44  ;;  %4482 = vmatpush.bf16.msra.mxu0 %v7809_v30  ;;  %v8269_v51 = vor.u32 %v9481_v8, %v8266_v56  ;;  %v9396_v30 = vld [vmem:[%s15116_s4 + $0x174] sm:$0xf]  ;;  %v7746_v8 = vld [vmem:[%s15116_s4 + $0x1c] sm:$0xf0] }
 0x2d1   :  { %v3335_v31 = vpop.f32.mrf.mxu2  ;;  %4505 = vmatpush.bf16.msra.mxu1 %v7969_v12  ;;  %4529 = vmatpush.bf16.msra.mxu2 %v8109_v60  ;;  %v7926_v12 = vld [vmem:[%s15116_s4 + $0x184] sm:$0xf0] }
 0x2d2   :  { %v3336_v35 = vadd.f32 %v3335_v31, %v3313_v58  ;;  %v7949_v31 = vor.u32 %v9401_v17, %v7946_v27  ;;  %4552 = vmatpush.bf16.msra.mxu3 %v8269_v51  ;;  %v7929_v60 = vor.u32 %v9396_v30, %v7926_v12  ;;  %v8246_v27 = vld [vmem:[%s15116_s4 + $0x404] sm:$0xf0] }
 0x2d3   :  { %v8249_v51 = vor.u32 %v9476_v41, %v8246_v27 }
 0x2d4   :  { %v3358_v6 = vpop.f32.mrf.mxu3  ;;  %v3294_v58 = vpop.f32.mrf.mxu0  ;;  %4483 = vmatpush.bf16.msra.mxu0 %v7789_v3 }
 0x2d5   :  { %v13519_v63 = vadd.f32 %v3358_v6, %v3336_v35  ;;  %v3317_v21 = vpop.f32.mrf.mxu1  ;;  %4506 = vmatpush.bf16.msra.mxu1 %v7949_v31  ;;  %v9356_v35 = vld [vmem:[%s15116_s4 + $0x34] sm:$0xf]  ;;  %v7766_v6 = vld [vmem:[%s15116_s4 + $0x44] sm:$0xf0]  ;;  %v9351_v31 = vld [vmem:[%s15116_s4 + $0xc] sm:$0xf] }
 0x2d6   :  { %v3318_v10 = vadd.f32 %v3317_v21, %v3294_v58  ;;  %4440 = vmatmul.bf16.vlgmr.msrb.gmra.mxu2 %v11748_v14  ;;  %v7769_v46 = vor.u32 %v9356_v35, %v7766_v6  ;;  %v9391_v35 = vld [vmem:[%s15116_s4 + $0x14c] sm:$0xf]  ;;  %v7906_v6 = vld [vmem:[%s15116_s4 + $0x15c] sm:$0xf0]  ;;  %4553 = vmatpush.bf16.msra.mxu3 %v8249_v51 }
 0x2d7   :  { %v7909_v30 = vor.u32 %v9391_v35, %v7906_v6 }
 0x2d8   :  { %4484 = vmatpush.bf16.msra.mxu0 %v7769_v46 }
 0x2d9   :  { %4463 = vmatmul.bf16.vlgmr.msrb.gmra.mxu3 %v11765_v49  ;;  %v3338_v54 = vpop.f32.mrf.mxu2  ;;  %4507 = vmatpush.bf16.msra.mxu1 %v7929_v60 }
 0x2da   :  { %v3339_v36 = vadd.f32 %v3338_v54, %v3316_v50  ;;  %v8086_v50 = vld [vmem:[%s15116_s4 + $0x2c4] sm:$0xf0]  ;;  %v7749_v54 = vor.u32 %v9351_v31, %v7746_v8  ;;  %v9469_v31 = vld [vmem:[%s15116_s4 + $0x3b8] sm:$0xf0] }
 0x2db   :  { %v8089_v3 = vor.u32 %v9436_v29, %v8086_v50  ;;  %v9471_v29 = vld [vmem:[%s15116_s4 + $0x3cc] sm:$0xf]  ;;  %v8226_v50 = vld [vmem:[%s15116_s4 + $0x3dc] sm:$0xf0]  ;;  %v8372_v8 = vld [vmem:[%s15116_s4 + $0x4e8] sm:$0xf] }
 0x2dc   :  { %v3361_v13 = vpop.f32.mrf.mxu3  ;;  %v3297_v21 = vpop.f32.mrf.mxu0  ;;  %4485 = vmatpush.bf16.msra.mxu0 %v7749_v54  ;;  %v9509_v54 = vld [vmem:[%s15116_s4 + $0x4f8] sm:$0xf0] }
 0x2dd   :  { %v13553_v58 = vadd.f32 %v3361_v13, %v3339_v36  ;;  %v3320_v17 = vpop.f32.mrf.mxu1  ;;  %4530 = vmatpush.bf16.msra.mxu2 %v8089_v3  ;;  %v9431_v36 = vld [vmem:[%s15116_s4 + $0x28c] sm:$0xf]  ;;  %v8066_v13 = vld [vmem:[%s15116_s4 + $0x29c] sm:$0xf0]  ;;  %4508 = vmatpush.bf16.msra.mxu1 %v7909_v30  ;;  %v8229_v3 = vor.u32 %v9471_v29, %v8226_v50  ;;  %v8373_v6 = vor.u32 %v9509_v54, %v8372_v8 }
 0x2de   :  { %v3321_v56 = vadd.f32 %v3320_v17, %v3297_v21  ;;  %v8069_v12 = vor.u32 %v9431_v36, %v8066_v13 }
 0x2df   :  { %4399 = vmatmul.bf16.gmra.mxu0 %v11866_v47  ;;  %4554 = vmatpush.bf16.msra.mxu3 %v8229_v3  ;;  %v8192_v3 = vld [vmem:[%s15116_s4 + $0x380] sm:$0xf] }
 0x2e0   :  { %4422 = vmatmul.bf16.gmra.mxu1 %v11881_v39 }
 0x2e1   :  { %v3340_v46 = vpop.f32.mrf.mxu2  ;;  %4531 = vmatpush.bf16.msra.mxu2 %v8069_v12  ;;  %v7892_v12 = vld [vmem:[%s15116_s4 + $0x128] sm:$0xf] }
 0x2e2   :  { %v3341_v60 = vadd.f32 %v3340_v46, %v3318_v10  ;;  %v8212_v10 = vld [vmem:[%s15116_s4 + $0x3a8] sm:$0xf] }
 0x2e3   :  { %v8213_v51 = vor.u32 %v9469_v31, %v8212_v10  ;;  %4639 = vmatpush.bf16.msrb.mxu3 %v8373_v6  ;;  %v9384_v6 = vld [vmem:[%s15116_s4 + $0x110] sm:$0xf0] }
 0x2e4   :  { %v3363_v21 = vpop.f32.mrf.mxu3  ;;  %v3299_v17 = vpop.f32.mrf.mxu0 }
 0x2e5   :  { %v13593_v41 = vadd.f32 %v3363_v21, %v3341_v60  ;;  %v3322_v27 = vpop.f32.mrf.mxu1  ;;  %4616 = vmatpush.bf16.msrb.mxu2 %v8213_v51  ;;  %v9389_v60 = vld [vmem:[%s15116_s4 + $0x138] sm:$0xf0]  ;;  %v8052_v21 = vld [vmem:[%s15116_s4 + $0x268] sm:$0xf]  ;;  %v9504_v51 = vld [vmem:[%s15116_s4 + $0x4d0] sm:$0xf0] }
 0x2e6   :  { %4445 = vmatmul.bf16.gmra.mxu2 %v11936_v15  ;;  %v7893_v50 = vor.u32 %v9389_v60, %v7892_v12  ;;  %v9429_v17 = vld [vmem:[%s15116_s4 + $0x278] sm:$0xf0]  ;;  %v9464_v27 = vld [vmem:[%s15116_s4 + $0x390] sm:$0xf0] }
 0x2e7   :  { %v8053_v10 = vor.u32 %v9429_v17, %v8052_v21  ;;  %v8193_v31 = vor.u32 %v9464_v27, %v8192_v3  ;;  %v9424_v12 = vld [vmem:[%s15116_s4 + $0x250] sm:$0xf0]  ;;  %v8332_v17 = vld [vmem:[%s15116_s4 + $0x498] sm:$0xf] }
 0x2e8   :  { %4570 = vmatpush.bf16.msrb.mxu0 %v7893_v50  ;;  %v9459_v50 = vld [vmem:[%s15116_s4 + $0x368] sm:$0xf0] }
 0x2e9   :  { %4468 = vmatmul.bf16.gmra.mxu3 %v15274_v34  ;;  %v3343_v35 = vpop.f32.mrf.mxu2  ;;  %4593 = vmatpush.bf16.msrb.mxu1 %v8053_v10 }
 0x2ea   :  { %v3344_v30 = vadd.f32 %v3343_v35, %v3321_v56  ;;  %v7872_v35 = vld [vmem:[%s15116_s4 + $0x100] sm:$0xf]  ;;  %4617 = vmatpush.bf16.msrb.mxu2 %v8193_v31  ;;  %v9499_v31 = vld [vmem:[%s15116_s4 + $0x4a8] sm:$0xf0] }
 0x2ec   :  { %v3366_v36 = vpop.f32.mrf.mxu3  ;;  %v4211_v46 = vpop.f32.mrf.mxu0 }
 0x2ed   :  { %v13609_v13 = vadd.f32 %v3366_v36, %v3344_v30  ;;  %v4212_v56 = vadd.f32 %v4211_v46, %v12595_v0  ;;  %v4234_v29 = vpop.f32.mrf.mxu1  ;;  %v8352_v0 = vld [vmem:[%s15116_s4 + $0x4c0] sm:$0xf]  ;;  %v7873_v46 = vor.u32 %v9384_v6, %v7872_v35  ;;  %v8012_v35 = vld [vmem:[%s15116_s4 + $0x218] sm:$0xf] }
 0x2ee   :  { %v8353_v54 = vor.u32 %v9504_v51, %v8352_v0  ;;  %v8032_v30 = vld [vmem:[%s15116_s4 + $0x240] sm:$0xf]  ;;  %v8333_v0 = vor.u32 %v9499_v31, %v8332_v17 }
 0x2ef   :  { %v4235_v8 = vadd.f32 %v4234_v29, %v4212_v56  ;;  %4404 = vmatmul.bf16.gmra.mxu0 %v13178_v16  ;;  %v8033_v21 = vor.u32 %v9424_v12, %v8032_v30  ;;  %v8172_v29 = vld [vmem:[%s15116_s4 + $0x358] sm:$0xf]  ;;  %v9419_v30 = vld [vmem:[%s15116_s4 + $0x228] sm:$0xf0] }
 0x2f0   :  { %4427 = vmatmul.bf16.gmra.mxu1 %v13191_v55  ;;  %4640 = vmatpush.bf16.msrb.mxu3 %v8353_v54  ;;  %v8173_v10 = vor.u32 %v9459_v50, %v8172_v29  ;;  %v7852_v54 = vld [vmem:[%s15116_s4 + $0xd8] sm:$0xf] }
 0x2f1   :  { %v3345_v36 = vpop.f32.mrf.mxu2  ;;  %4571 = vmatpush.bf16.msrb.mxu0 %v7873_v46  ;;  %4594 = vmatpush.bf16.msrb.mxu1 %v8033_v21  ;;  %v9454_v46 = vld [vmem:[%s15116_s4 + $0x340] sm:$0xf0] }
 0x2f2   :  { %4618 = vmatpush.bf16.msrb.mxu2 %v8173_v10  ;;  %v8152_v36 = vld [vmem:[%s15116_s4 + $0x330] sm:$0xf] }
 0x2f3   :  { %v8153_v21 = vor.u32 %v9454_v46, %v8152_v36  ;;  %v7832_v10 = vld [vmem:[%s15116_s4 + $0xb0] sm:$0xf]  ;;  %v9449_v46 = vld [vmem:[%s15116_s4 + $0x318] sm:$0xf0] }
 0x2f4   :  { %v3368_v60 = vpop.f32.mrf.mxu3  ;;  %v4213_v56 = vpop.f32.mrf.mxu0  ;;  %4641 = vmatpush.bf16.msrb.mxu3 %v8333_v0 }
 0x2f5   :  { %v4214_v3 = vadd.f32 %v4213_v56, %v12647_v42  ;;  %v4236_v27 = vpop.f32.mrf.mxu1  ;;  %v9379_v42 = vld [vmem:[%s15116_s4 + $0xe8] sm:$0xf0]  ;;  %v8013_v60 = vor.u32 %v9419_v30, %v8012_v35  ;;  %v9414_v35 = vld [vmem:[%s15116_s4 + $0x200] sm:$0xf0] }
 0x2f6   :  { %4450 = vmatmul.bf16.gmra.mxu2 %v13215_v53  ;;  %v7853_v6 = vor.u32 %v9379_v42, %v7852_v54  ;;  %v9374_v54 = vld [vmem:[%s15116_s4 + $0xc0] sm:$0xf0]  ;;  %v7992_v42 = vld [vmem:[%s15116_s4 + $0x1f0] sm:$0xf] }
 0x2f7   :  { %v4237_v51 = vadd.f32 %v4236_v27, %v4214_v3  ;;  %4595 = vmatpush.bf16.msrb.mxu1 %v8013_v60  ;;  %4619 = vmatpush.bf16.msrb.mxu2 %v8153_v21  ;;  %v8312_v3 = vld [vmem:[%s15116_s4 + $0x470] sm:$0xf]  ;;  %v9494_v27 = vld [vmem:[%s15116_s4 + $0x480] sm:$0xf0]  ;;  %v7993_v30 = vor.u32 %v9414_v35, %v7992_v42  ;;  %v8292_v60 = vld [vmem:[%s15116_s4 + $0x448] sm:$0xf] }
 0x2f8   :  { %4572 = vmatpush.bf16.msrb.mxu0 %v7853_v6  ;;  %v8313_v0 = vor.u32 %v9494_v27, %v8312_v3  ;;  %v7833_v6 = vor.u32 %v9374_v54, %v7832_v10  ;;  %v9489_v21 = vld [vmem:[%s15116_s4 + $0x458] sm:$0xf0]  ;;  %v7972_v27 = vld [vmem:[%s15116_s4 + $0x1c8] sm:$0xf]  ;;  %v8112_v54 = vld [vmem:[%s15116_s4 + $0x2e0] sm:$0xf] }
 0x2f9   :  { %4473 = vmatmul.bf16.gmra.mxu3 %v13228_v25  ;;  %v4257_v12 = vpop.f32.mrf.mxu2  ;;  %v9369_v3 = vld [vmem:[%s15116_s4 + $0x98] sm:$0xf0]  ;;  %v9444_v42 = vld [vmem:[%s15116_s4 + $0x2f0] sm:$0xf0] }
 0x2fa   :  { %v4258_v56 = vadd.f32 %v4257_v12, %v4235_v8  ;;  %4642 = vmatpush.bf16.msrb.mxu3 %v8313_v0  ;;  %v9409_v0 = vld [vmem:[%s15116_s4 + $0x1d8] sm:$0xf0] }
 0x2fb   :  { %4596 = vmatpush.bf16.msrb.mxu1 %v7993_v30  ;;  %v7973_v35 = vor.u32 %v9409_v0, %v7972_v27  ;;  %v9484_v27 = vld [vmem:[%s15116_s4 + $0x430] sm:$0xf0]  ;;  %v9359_v0 = vld [vmem:[%s15116_s4 + $0x48] sm:$0xf0] }
 0x2fc   :  { %v4280_v29 = vpop.f32.mrf.mxu3  ;;  %v4216_v17 = vpop.f32.mrf.mxu0  ;;  %4573 = vmatpush.bf16.msrb.mxu0 %v7833_v6  ;;  %v8113_v6 = vor.u32 %v9444_v42, %v8112_v54  ;;  %v7932_v54 = vld [vmem:[%s15116_s4 + $0x178] sm:$0xf] }
 0x2fd   :  { %v13683_v50 = vadd.f32 %v4280_v29, %v4258_v56  ;;  %v4217_v8 = vadd.f32 %v4216_v17, %v12681_v2  ;;  %v4239_v31 = vpop.f32.mrf.mxu1  ;;  %v8132_v2 = vld [vmem:[%s15116_s4 + $0x308] sm:$0xf]  ;;  %v8293_v29 = vor.u32 %v9489_v21, %v8292_v60  ;;  %v9364_v60 = vld [vmem:[%s15116_s4 + $0x70] sm:$0xf0]  ;;  %v7952_v21 = vld [vmem:[%s15116_s4 + $0x1a0] sm:$0xf] }
 0x2fe   :  { %v8133_v12 = vor.u32 %v9449_v46, %v8132_v2  ;;  %v7812_v17 = vld [vmem:[%s15116_s4 + $0x88] sm:$0xf] }
 0x2ff   :  { %v4240_v36 = vadd.f32 %v4239_v31, %v4217_v8  ;;  %4486 = vmatmul.bf16.vlgmr.msra.gmra.mxu0 %v11681_v19  ;;  %v7813_v31 = vor.u32 %v9369_v3, %v7812_v17  ;;  %4643 = vmatpush.bf16.msrb.mxu3 %v8293_v29  ;;  %v8272_v3 = vld [vmem:[%s15116_s4 + $0x420] sm:$0xf] }
 0x300   :  { %4509 = vmatmul.bf16.vlgmr.msra.gmra.mxu1 %v11686_v44  ;;  %4620 = vmatpush.bf16.msrb.mxu2 %v8133_v12  ;;  %v7792_v12 = vld [vmem:[%s15116_s4 + $0x60] sm:$0xf] }
 0x301   :  { %v4259_v56 = vpop.f32.mrf.mxu2  ;;  %4574 = vmatpush.bf16.msrb.mxu0 %v7813_v31  ;;  %4597 = vmatpush.bf16.msrb.mxu1 %v7973_v35  ;;  %v7772_v31 = vld [vmem:[%s15116_s4 + $0x38] sm:$0xf] }
 0x302   :  { %v4260_v10 = vadd.f32 %v4259_v56, %v4237_v51  ;;  %v7793_v56 = vor.u32 %v9364_v60, %v7792_v12  ;;  %v8092_v60 = vld [vmem:[%s15116_s4 + $0x2b8] sm:$0xf] }
 0x304   :  { %v4282_v8 = vpop.f32.mrf.mxu3  ;;  %v4218_v51 = vpop.f32.mrf.mxu0  ;;  %4621 = vmatpush.bf16.msrb.mxu2 %v8113_v6  ;;  %v7773_v6 = vor.u32 %v9359_v0, %v7772_v31  ;;  %v9394_v0 = vld [vmem:[%s15116_s4 + $0x160] sm:$0xf0] }
 0x305   :  { %v13736_v30 = vadd.f32 %v4282_v8, %v4260_v10  ;;  %v4219_v2 = vadd.f32 %v4218_v51, %v12721_v5  ;;  %v4241_v46 = vpop.f32.mrf.mxu1  ;;  %v9404_v5 = vld [vmem:[%s15116_s4 + $0x1b0] sm:$0xf0]  ;;  %4575 = vmatpush.bf16.msrb.mxu0 %v7793_v56  ;;  %v8273_v10 = vor.u32 %v9484_v27, %v8272_v3  ;;  %v9399_v51 = vld [vmem:[%s15116_s4 + $0x188] sm:$0xf0]  ;;  %v7752_v27 = vld [vmem:[%s15116_s4 + $0x10] sm:$0xf] }
 0x306   :  { %4532 = vmatmul.bf16.vlgmr.msra.gmra.mxu2 %v11748_v14  ;;  %v7953_v17 = vor.u32 %v9404_v5, %v7952_v21  ;;  %v8252_v21 = vld [vmem:[%s15116_s4 + $0x3f8] sm:$0xf]  ;;  %v9479_v3 = vld [vmem:[%s15116_s4 + $0x408] sm:$0xf0] }
 0x307   :  { %v4242_v29 = vadd.f32 %v4241_v46, %v4219_v2  ;;  %4644 = vmatpush.bf16.msrb.mxu3 %v8273_v10  ;;  %v7933_v2 = vor.u32 %v9399_v51, %v7932_v54  ;;  %v9354_v10 = vld [vmem:[%s15116_s4 + $0x20] sm:$0xf0] }
 0x308   :  { %4598 = vmatpush.bf16.msrb.mxu1 %v7953_v17  ;;  %v7753_v31 = vor.u32 %v9354_v10, %v7752_v27  ;;  %v9787_v27 = vld [vmem:[%s15116_s4 + $0xda8] sm:$0xf0]  ;;  %v9188_v10 = vld [vmem:[%s15116_s4 + $0xed8] sm:$0xf] }
 0x309   :  { %4555 = vmatmul.bf16.vlgmr.msra.gmra.mxu3 %v11765_v49  ;;  %v4262_v8 = vpop.f32.mrf.mxu2  ;;  %4576 = vmatpush.bf16.msrb.mxu0 %v7773_v6  ;;  %v9434_v6 = vld [vmem:[%s15116_s4 + $0x2a0] sm:$0xf0] }
 0x30a   :  { %v4263_v42 = vadd.f32 %v4262_v8, %v4240_v36  ;;  %v9439_v36 = vld [vmem:[%s15116_s4 + $0x2c8] sm:$0xf0]  ;;  %v8253_v8 = vor.u32 %v9479_v3, %v8252_v21  ;;  %v9474_v21 = vld [vmem:[%s15116_s4 + $0x3e0] sm:$0xf0] }
 0x30b   :  { %v8093_v17 = vor.u32 %v9439_v36, %v8092_v60  ;;  %v8232_v36 = vld [vmem:[%s15116_s4 + $0x3d0] sm:$0xf] }
 0x30c   :  { %v4285_v35 = vpop.f32.mrf.mxu3  ;;  %v4221_v12 = vpop.f32.mrf.mxu0  ;;  %4599 = vmatpush.bf16.msrb.mxu1 %v7933_v2  ;;  %4645 = vmatpush.bf16.msrb.mxu3 %v8253_v8 }
 0x30d   :  { %v13771_v46 = vadd.f32 %v4285_v35, %v4263_v42  ;;  %v4222_v56 = vadd.f32 %v4221_v12, %v12737_v9  ;;  %v4244_v5 = vpop.f32.mrf.mxu1  ;;  %v7912_v9 = vld [vmem:[%s15116_s4 + $0x150] sm:$0xf]  ;;  %4622 = vmatpush.bf16.msrb.mxu2 %v8093_v17  ;;  %4577 = vmatpush.bf16.msrb.mxu0 %v7753_v31  ;;  %v8233_v17 = vor.u32 %v9474_v21, %v8232_v36  ;;  %v9827_v31 = vld [vmem:[%s15116_s4 + $0xee8] sm:$0xf0] }
 0x30e   :  { %v7913_v42 = vor.u32 %v9394_v0, %v7912_v9  ;;  %v8072_v35 = vld [vmem:[%s15116_s4 + $0x290] sm:$0xf]  ;;  %v9189_v0 = vor.u32 %v9827_v31, %v9188_v10 }
 0x30f   :  { %v4245_v54 = vadd.f32 %v4244_v5, %v4222_v56  ;;  %4491 = vmatmul.bf16.gmra.mxu0 %v11866_v47  ;;  %v8073_v2 = vor.u32 %v9434_v6, %v8072_v35 }
 0x310   :  { %4514 = vmatmul.bf16.gmra.mxu1 %v11881_v39  ;;  %4646 = vmatpush.bf16.msrb.mxu3 %v8233_v17  ;;  %v9008_v17 = vld [vmem:[%s15116_s4 + $0xd70] sm:$0xf] }
 0x311   :  { %v4264_v51 = vpop.f32.mrf.mxu2  ;;  %4600 = vmatpush.bf16.msrb.mxu1 %v7913_v42  ;;  %4623 = vmatpush.bf16.msrb.mxu2 %v8073_v2  ;;  %v8708_v2 = vld [vmem:[%s15116_s4 + $0xb18] sm:$0xf] }
 0x312   :  { %v4265_v12 = vadd.f32 %v4264_v51, %v4242_v29  ;;  %v9028_v29 = vld [vmem:[%s15116_s4 + $0xd98] sm:$0xf] }
 0x313   :  { %v9029_v8 = vor.u32 %v9787_v27, %v9028_v29 }
 0x314   :  { %v4287_v60 = vpop.f32.mrf.mxu3  ;;  %v4223_v5 = vpop.f32.mrf.mxu0  ;;  %5764 = vmatpush.bf16.msra.mxu3 %v9189_v0  ;;  %v9702_v0 = vld [vmem:[%s15116_s4 + $0xb00] sm:$0xf0] }
 0x315   :  { %v13812_v56 = vadd.f32 %v4287_v60, %v4265_v12  ;;  %v4246_v3 = vpop.f32.mrf.mxu1  ;;  %5741 = vmatpush.bf16.msra.mxu2 %v9029_v8  ;;  %v9707_v12 = vld [vmem:[%s15116_s4 + $0xb28] sm:$0xf0]  ;;  %v8868_v60 = vld [vmem:[%s15116_s4 + $0xc58] sm:$0xf]  ;;  %v9822_v8 = vld [vmem:[%s15116_s4 + $0xec0] sm:$0xf0] }
 0x316   :  { %4537 = vmatmul.bf16.gmra.mxu2 %v11936_v15  ;;  %v8709_v21 = vor.u32 %v9707_v12, %v8708_v2  ;;  %v9747_v5 = vld [vmem:[%s15116_s4 + $0xc68] sm:$0xf0]  ;;  %v9782_v3 = vld [vmem:[%s15116_s4 + $0xd80] sm:$0xf0] }
 0x317   :  { %v8869_v29 = vor.u32 %v9747_v5, %v8868_v60  ;;  %v9009_v27 = vor.u32 %v9782_v3, %v9008_v17  ;;  %v9742_v2 = vld [vmem:[%s15116_s4 + $0xc40] sm:$0xf0]  ;;  %v9148_v5 = vld [vmem:[%s15116_s4 + $0xe88] sm:$0xf] }
 0x318   :  { %5695 = vmatpush.bf16.msra.mxu0 %v8709_v21  ;;  %v9777_v21 = vld [vmem:[%s15116_s4 + $0xd58] sm:$0xf0] }
 0x319   :  { %4560 = vmatmul.bf16.gmra.mxu3 %v15274_v34  ;;  %v4267_v9 = vpop.f32.mrf.mxu2  ;;  %5718 = vmatpush.bf16.msra.mxu1 %v8869_v29 }
 0x31a   :  { %v4268_v42 = vadd.f32 %v4267_v9, %v4245_v54  ;;  %v8688_v9 = vld [vmem:[%s15116_s4 + $0xaf0] sm:$0xf]  ;;  %5742 = vmatpush.bf16.msra.mxu2 %v9009_v27  ;;  %v9817_v27 = vld [vmem:[%s15116_s4 + $0xe98] sm:$0xf0] }
 0x31c   :  { %v4290_v35 = vpop.f32.mrf.mxu3  ;;  %v4303_v51 = vpop.f32.mrf.mxu0 }
 0x31d   :  { %v13828_v6 = vadd.f32 %v4290_v35, %v4268_v42  ;;  %v4304_v54 = vadd.f32 %v4303_v51, %v12809_v40  ;;  %v4326_v36 = vpop.f32.mrf.mxu1  ;;  %v9168_v40 = vld [vmem:[%s15116_s4 + $0xeb0] sm:$0xf]  ;;  %v8689_v51 = vor.u32 %v9702_v0, %v8688_v9  ;;  %v8828_v9 = vld [vmem:[%s15116_s4 + $0xc08] sm:$0xf] }
 0x31e   :  { %v9169_v31 = vor.u32 %v9822_v8, %v9168_v40  ;;  %v8848_v42 = vld [vmem:[%s15116_s4 + $0xc30] sm:$0xf]  ;;  %v9149_v40 = vor.u32 %v9817_v27, %v9148_v5 }
 0x31f   :  { %v4327_v10 = vadd.f32 %v4326_v36, %v4304_v54  ;;  %4496 = vmatmul.bf16.gmra.mxu0 %v13178_v16  ;;  %v8849_v60 = vor.u32 %v9742_v2, %v8848_v42  ;;  %v8988_v36 = vld [vmem:[%s15116_s4 + $0xd48] sm:$0xf]  ;;  %v9737_v42 = vld [vmem:[%s15116_s4 + $0xc18] sm:$0xf0] }
 0x320   :  { %4519 = vmatmul.bf16.gmra.mxu1 %v13191_v55  ;;  %5765 = vmatpush.bf16.msra.mxu3 %v9169_v31  ;;  %v8989_v29 = vor.u32 %v9777_v21, %v8988_v36  ;;  %v8668_v31 = vld [vmem:[%s15116_s4 + $0xac8] sm:$0xf] }
 0x321   :  { %v4269_v35 = vpop.f32.mrf.mxu2  ;;  %5696 = vmatpush.bf16.msra.mxu0 %v8689_v51  ;;  %5719 = vmatpush.bf16.msra.mxu1 %v8849_v60  ;;  %v9772_v51 = vld [vmem:[%s15116_s4 + $0xd30] sm:$0xf0] }
 0x322   :  { %5743 = vmatpush.bf16.msra.mxu2 %v8989_v29  ;;  %v8968_v35 = vld [vmem:[%s15116_s4 + $0xd20] sm:$0xf] }
 0x323   :  { %v8969_v60 = vor.u32 %v9772_v51, %v8968_v35  ;;  %v8648_v29 = vld [vmem:[%s15116_s4 + $0xaa0] sm:$0xf]  ;;  %v9767_v51 = vld [vmem:[%s15116_s4 + $0xd08] sm:$0xf0] }
 0x324   :  { %v4292_v12 = vpop.f32.mrf.mxu3  ;;  %v4305_v54 = vpop.f32.mrf.mxu0  ;;  %5766 = vmatpush.bf16.msra.mxu3 %v9149_v40 }
 0x325   :  { %v4306_v17 = vadd.f32 %v4305_v54, %v12861_v45  ;;  %v4328_v3 = vpop.f32.mrf.mxu1  ;;  %v9697_v45 = vld [vmem:[%s15116_s4 + $0xad8] sm:$0xf0]  ;;  %v8829_v12 = vor.u32 %v9737_v42, %v8828_v9  ;;  %v9732_v9 = vld [vmem:[%s15116_s4 + $0xbf0] sm:$0xf0] }
 0x326   :  { %4542 = vmatmul.bf16.gmra.mxu2 %v13215_v53  ;;  %v8669_v0 = vor.u32 %v9697_v45, %v8668_v31  ;;  %v9692_v31 = vld [vmem:[%s15116_s4 + $0xab0] sm:$0xf0]  ;;  %v8808_v45 = vld [vmem:[%s15116_s4 + $0xbe0] sm:$0xf] }
 0x327   :  { %v4329_v8 = vadd.f32 %v4328_v3, %v4306_v17  ;;  %5720 = vmatpush.bf16.msra.mxu1 %v8829_v12  ;;  %5744 = vmatpush.bf16.msra.mxu2 %v8969_v60  ;;  %v9128_v17 = vld [vmem:[%s15116_s4 + $0xe60] sm:$0xf]  ;;  %v9812_v3 = vld [vmem:[%s15116_s4 + $0xe70] sm:$0xf0]  ;;  %v8809_v42 = vor.u32 %v9732_v9, %v8808_v45  ;;  %v9108_v12 = vld [vmem:[%s15116_s4 + $0xe38] sm:$0xf] }
 0x328   :  { %5697 = vmatpush.bf16.msra.mxu0 %v8669_v0  ;;  %v9129_v40 = vor.u32 %v9812_v3, %v9128_v17  ;;  %v8649_v0 = vor.u32 %v9692_v31, %v8648_v29 }
 0x329   :  { %4565 = vmatmul.bf16.gmra.mxu3 %v13228_v25  ;;  %v4349_v2 = vpop.f32.mrf.mxu2 }
 0x32a   :  { %v4350_v54 = vadd.f32 %v4349_v2, %v4327_v10  ;;  %5767 = vmatpush.bf16.msra.mxu3 %v9129_v40  ;;  %v9762_v40 = vld [vmem:[%s15116_s4 + $0xce0] sm:$0xf0] }
 0x32b   :  { %5721 = vmatpush.bf16.msra.mxu1 %v8809_v42 }
 0x32c   :  { %v4372_v36 = vpop.f32.mrf.mxu3  ;;  %v4308_v5 = vpop.f32.mrf.mxu0  ;;  %5698 = vmatpush.bf16.msra.mxu0 %v8649_v0 }
 0x32d   :  { %v13902_v21 = vadd.f32 %v4372_v36, %v4350_v54  ;;  %v4309_v10 = vadd.f32 %v4308_v5, %v12895_v20  ;;  %v4331_v27 = vpop.f32.mrf.mxu1  ;;  %v8948_v20 = vld [vmem:[%s15116_s4 + $0xcf8] sm:$0xf] }
 0x32e   :  { %v8949_v2 = vor.u32 %v9767_v51, %v8948_v20  ;;  %v8628_v36 = vld [vmem:[%s15116_s4 + $0xa78] sm:$0xf]  ;;  %v8608_v20 = vld [vmem:[%s15116_s4 + $0xa50] sm:$0xf]  ;;  %v9682_v51 = vld [vmem:[%s15116_s4 + $0xa60] sm:$0xf0] }
 0x32f   :  { %v4332_v35 = vadd.f32 %v4331_v27, %v4309_v10  ;;  %4578 = vmatmul.bf16.vlgmr.msrb.gmra.mxu0 %v11681_v19  ;;  %v9807_v19 = vld [vmem:[%s15116_s4 + $0xe48] sm:$0xf0]  ;;  %v8788_v5 = vld [vmem:[%s15116_s4 + $0xbb8] sm:$0xf]  ;;  %v8928_v27 = vld [vmem:[%s15116_s4 + $0xcd0] sm:$0xf] }
 0x330   :  { %4601 = vmatmul.bf16.vlgmr.msrb.gmra.mxu1 %v11686_v44  ;;  %v9109_v54 = vor.u32 %v9807_v19, %v9108_v12  ;;  %v9687_v44 = vld [vmem:[%s15116_s4 + $0xa88] sm:$0xf0]  ;;  %5745 = vmatpush.bf16.msra.mxu2 %v8949_v2  ;;  %v8929_v45 = vor.u32 %v9762_v40, %v8928_v27  ;;  %v8768_v2 = vld [vmem:[%s15116_s4 + $0xb90] sm:$0xf]  ;;  %v8609_v12 = vor.u32 %v9682_v51, %v8608_v20  ;;  %v9717_v27 = vld [vmem:[%s15116_s4 + $0xb78] sm:$0xf0] }
 0x331   :  { %v4351_v60 = vpop.f32.mrf.mxu2  ;;  %v8629_v29 = vor.u32 %v9687_v44, %v8628_v36  ;;  %v9727_v10 = vld [vmem:[%s15116_s4 + $0xbc8] sm:$0xf0]  ;;  %v9802_v36 = vld [vmem:[%s15116_s4 + $0xe20] sm:$0xf0] }
 0x332   :  { %v4352_v17 = vadd.f32 %v4351_v60, %v4329_v8  ;;  %5768 = vmatpush.bf16.msra.mxu3 %v9109_v54  ;;  %v8789_v31 = vor.u32 %v9727_v10, %v8788_v5  ;;  %v9088_v54 = vld [vmem:[%s15116_s4 + $0xe10] sm:$0xf]  ;;  %v8588_v5 = vld [vmem:[%s15116_s4 + $0xa28] sm:$0xf] }
 0x333   :  { %5699 = vmatpush.bf16.msra.mxu0 %v8629_v29 }
 0x334   :  { %v4374_v3 = vpop.f32.mrf.mxu3  ;;  %v4310_v8 = vpop.f32.mrf.mxu0  ;;  %5722 = vmatpush.bf16.msra.mxu1 %v8789_v31  ;;  %5746 = vmatpush.bf16.msra.mxu2 %v8929_v45 }
 0x335   :  { %v13955_v9 = vadd.f32 %v4374_v3, %v4352_v17  ;;  %v4311_v0 = vadd.f32 %v4310_v8, %v12935_v24  ;;  %v4333_v42 = vpop.f32.mrf.mxu1  ;;  %v9722_v24 = vld [vmem:[%s15116_s4 + $0xba0] sm:$0xf0]  ;;  %v8748_v17 = vld [vmem:[%s15116_s4 + $0xb68] sm:$0xf] }
 0x336   :  { %4624 = vmatmul.bf16.vlgmr.msrb.gmra.mxu2 %v11748_v14  ;;  %v8769_v60 = vor.u32 %v9722_v24, %v8768_v2  ;;  %v9089_v14 = vor.u32 %v9802_v36, %v9088_v54  ;;  %v8749_v40 = vor.u32 %v9717_v27, %v8748_v17  ;;  %v8908_v8 = vld [vmem:[%s15116_s4 + $0xca8] sm:$0xf]  ;;  %v9797_v2 = vld [vmem:[%s15116_s4 + $0xdf8] sm:$0xf0]  ;;  %v9672_v24 = vld [vmem:[%s15116_s4 + $0xa10] sm:$0xf0] }
 0x337   :  { %v4334_v19 = vadd.f32 %v4333_v42, %v4311_v0  ;;  %5700 = vmatpush.bf16.msra.mxu0 %v8609_v12  ;;  %v9068_v0 = vld [vmem:[%s15116_s4 + $0xde8] sm:$0xf]  ;;  %v8568_v12 = vld [vmem:[%s15116_s4 + $0xa00] sm:$0xf]  ;;  %v9712_v36 = vld [vmem:[%s15116_s4 + $0xb50] sm:$0xf0] }
 0x338   :  { %5723 = vmatpush.bf16.msra.mxu1 %v8769_v60  ;;  %5769 = vmatpush.bf16.msra.mxu3 %v9089_v14  ;;  %v9069_v60 = vor.u32 %v9797_v2, %v9068_v0  ;;  %v8569_v54 = vor.u32 %v9672_v24, %v8568_v12  ;;  %v9048_v27 = vld [vmem:[%s15116_s4 + $0xdc0] sm:$0xf]  ;;  %v9190_v2 = vld [vmem:[%s15116_s4 + $0xeec] sm:$0xf0] }
 0x339   :  { %4647 = vmatmul.bf16.vlgmr.msrb.gmra.mxu3 %v11765_v49  ;;  %v4354_v44 = vpop.f32.mrf.mxu2  ;;  %v9677_v49 = vld [vmem:[%s15116_s4 + $0xa38] sm:$0xf0] }
 0x33a   :  { %v4355_v3 = vadd.f32 %v4354_v44, %v4332_v35  ;;  %v8589_v10 = vor.u32 %v9677_v49, %v8588_v5  ;;  %v9757_v35 = vld [vmem:[%s15116_s4 + $0xcb8] sm:$0xf0]  ;;  %v8888_v5 = vld [vmem:[%s15116_s4 + $0xc80] sm:$0xf]  ;;  %v9752_v49 = vld [vmem:[%s15116_s4 + $0xc90] sm:$0xf0] }
 0x33b   :  { %v8909_v51 = vor.u32 %v9757_v35, %v8908_v8 }
 0x33c   :  { %v4377_v29 = vpop.f32.mrf.mxu3  ;;  %v4313_v45 = vpop.f32.mrf.mxu0  ;;  %5701 = vmatpush.bf16.msra.mxu0 %v8589_v10  ;;  %5724 = vmatpush.bf16.msra.mxu1 %v8749_v40  ;;  %v9792_v40 = vld [vmem:[%s15116_s4 + $0xdd0] sm:$0xf0] }
 0x33d   :  { %v13990_v31 = vadd.f32 %v4377_v29, %v4355_v3  ;;  %v4314_v42 = vadd.f32 %v4313_v45, %v12951_v61  ;;  %v4336_v20 = vpop.f32.mrf.mxu1  ;;  %v8728_v61 = vld [vmem:[%s15116_s4 + $0xb40] sm:$0xf]  ;;  %5747 = vmatpush.bf16.msra.mxu2 %v8909_v51  ;;  %5770 = vmatpush.bf16.msra.mxu3 %v9069_v60  ;;  %v8889_v3 = vor.u32 %v9752_v49, %v8888_v5  ;;  %v8710_v5 = vld [vmem:[%s15116_s4 + $0xb2c] sm:$0xf0]  ;;  %v9745_v49 = vld [vmem:[%s15116_s4 + $0xc5c] sm:$0xf] }
 0x33e   :  { %v8729_v44 = vor.u32 %v9712_v36, %v8728_v61  ;;  %v9049_v35 = vor.u32 %v9792_v40, %v9048_v27  ;;  %v9010_v27 = vld [vmem:[%s15116_s4 + $0xd84] sm:$0xf0] }
 0x33f   :  { %v4337_v14 = vadd.f32 %v4336_v20, %v4314_v42  ;;  %4583 = vmatmul.bf16.gmra.mxu0 %v11866_v47  ;;  %v9030_v42 = vld [vmem:[%s15116_s4 + $0xdac] sm:$0xf0]  ;;  %v9825_v20 = vld [vmem:[%s15116_s4 + $0xedc] sm:$0xf] }
 0x340   :  { %4606 = vmatmul.bf16.gmra.mxu1 %v11881_v39  ;;  %5702 = vmatpush.bf16.msra.mxu0 %v8569_v54  ;;  %v9193_v24 = vor.u32 %v9825_v20, %v9190_v2  ;;  %v9740_v20 = vld [vmem:[%s15116_s4 + $0xc34] sm:$0xf] }
 0x341   :  { %v4356_v17 = vpop.f32.mrf.mxu2  ;;  %5725 = vmatpush.bf16.msra.mxu1 %v8729_v44  ;;  %5748 = vmatpush.bf16.msra.mxu2 %v8889_v3  ;;  %v9705_v44 = vld [vmem:[%s15116_s4 + $0xb1c] sm:$0xf] }
 0x342   :  { %v4357_v29 = vadd.f32 %v4356_v17, %v4334_v19  ;;  %5771 = vmatpush.bf16.msra.mxu3 %v9049_v35  ;;  %v9785_v19 = vld [vmem:[%s15116_s4 + $0xd9c] sm:$0xf]  ;;  %v8713_v3 = vor.u32 %v9705_v44, %v8710_v5  ;;  %v9815_v44 = vld [vmem:[%s15116_s4 + $0xe8c] sm:$0xf] }
 0x343   :  { %v9033_v51 = vor.u32 %v9785_v19, %v9030_v42  ;;  %v9700_v42 = vld [vmem:[%s15116_s4 + $0xaf4] sm:$0xf] }
 0x344   :  { %v4379_v10 = vpop.f32.mrf.mxu3  ;;  %v4315_v8 = vpop.f32.mrf.mxu0  ;;  %5787 = vmatpush.bf16.msrb.mxu0 %v8713_v3 }
 0x345   :  { %v14031_v45 = vadd.f32 %v4379_v10, %v4357_v29  ;;  %v4338_v0 = vpop.f32.mrf.mxu1  ;;  %5833 = vmatpush.bf16.msrb.mxu2 %v9033_v51  ;;  %v8870_v29 = vld [vmem:[%s15116_s4 + $0xc6c] sm:$0xf0]  ;;  %v9780_v10 = vld [vmem:[%s15116_s4 + $0xd74] sm:$0xf] }
 0x346   :  { %4629 = vmatmul.bf16.gmra.mxu2 %v11936_v15  ;;  %5856 = vmatpush.bf16.msrb.mxu3 %v9193_v24  ;;  %v8873_v40 = vor.u32 %v9745_v49, %v8870_v29  ;;  %v9013_v8 = vor.u32 %v9780_v10, %v9010_v27  ;;  %v9170_v0 = vld [vmem:[%s15116_s4 + $0xec4] sm:$0xf0]  ;;  %v9695_v10 = vld [vmem:[%s15116_s4 + $0xacc] sm:$0xf] }
 0x347   :  { %v9735_v27 = vld [vmem:[%s15116_s4 + $0xc0c] sm:$0xf] }
 0x348   :  { %5810 = vmatpush.bf16.msrb.mxu1 %v8873_v40 }
 0x349   :  { %4652 = vmatmul.bf16.gmra.mxu3 %v15274_v34  ;;  %v4359_v12 = vpop.f32.mrf.mxu2  ;;  %5834 = vmatpush.bf16.msrb.mxu2 %v9013_v8  ;;  %v8970_v8 = vld [vmem:[%s15116_s4 + $0xd34] sm:$0xf0] }
 0x34a   :  { %v4360_v60 = vadd.f32 %v4359_v12, %v4337_v14 }
 0x34c   :  { %v4382_v54 = vpop.f32.mrf.mxu3  ;;  %v4395_v36 = vpop.f32.mrf.mxu0 }
 0x34d   :  { %v14047_v61 = vadd.f32 %v4382_v54, %v4360_v60  ;;  %v4396_v14 = vadd.f32 %v4395_v36, %v13023_v1  ;;  %v4418_v17 = vpop.f32.mrf.mxu1  ;;  %v9820_v1 = vld [vmem:[%s15116_s4 + $0xeb4] sm:$0xf]  ;;  %v9775_v54 = vld [vmem:[%s15116_s4 + $0xd4c] sm:$0xf]  ;;  %v8990_v36 = vld [vmem:[%s15116_s4 + $0xd5c] sm:$0xf0] }
 0x34e   :  { %v9173_v19 = vor.u32 %v9820_v1, %v9170_v0 }
 0x34f   :  { %v4419_v35 = vadd.f32 %v4418_v17, %v4396_v14  ;;  %4588 = vmatmul.bf16.gmra.mxu0 %v13178_v16  ;;  %v8690_v16 = vld [vmem:[%s15116_s4 + $0xb04] sm:$0xf0]  ;;  %v8993_v14 = vor.u32 %v9775_v54, %v8990_v36  ;;  %v9150_v17 = vld [vmem:[%s15116_s4 + $0xe9c] sm:$0xf0]  ;;  %v8650_v54 = vld [vmem:[%s15116_s4 + $0xab4] sm:$0xf0] }
 0x350   :  { %4611 = vmatmul.bf16.gmra.mxu1 %v13191_v55  ;;  %v8693_v2 = vor.u32 %v9700_v42, %v8690_v16  ;;  %v8850_v55 = vld [vmem:[%s15116_s4 + $0xc44] sm:$0xf0]  ;;  %5857 = vmatpush.bf16.msrb.mxu3 %v9173_v19  ;;  %v9153_v3 = vor.u32 %v9815_v44, %v9150_v17  ;;  %v9730_v36 = vld [vmem:[%s15116_s4 + $0xbe4] sm:$0xf]  ;;  %v8810_v44 = vld [vmem:[%s15116_s4 + $0xbf4] sm:$0xf0] }
 0x351   :  { %v4361_v51 = vpop.f32.mrf.mxu2  ;;  %v8853_v24 = vor.u32 %v9740_v20, %v8850_v55  ;;  %5835 = vmatpush.bf16.msrb.mxu2 %v8993_v14  ;;  %v9130_v55 = vld [vmem:[%s15116_s4 + $0xe74] sm:$0xf0]  ;;  %v8950_v17 = vld [vmem:[%s15116_s4 + $0xd0c] sm:$0xf0] }
 0x352   :  { %5788 = vmatpush.bf16.msrb.mxu0 %v8693_v2  ;;  %v9810_v2 = vld [vmem:[%s15116_s4 + $0xe64] sm:$0xf] }
 0x353   :  { %5811 = vmatpush.bf16.msrb.mxu1 %v8853_v24 }
 0x354   :  { %v4384_v12 = vpop.f32.mrf.mxu3  ;;  %v4397_v60 = vpop.f32.mrf.mxu0  ;;  %5858 = vmatpush.bf16.msrb.mxu3 %v9153_v3 }
 0x355   :  { %v4398_v5 = vadd.f32 %v4397_v60, %v13075_v37  ;;  %v4420_v49 = vpop.f32.mrf.mxu1  ;;  %v8670_v37 = vld [vmem:[%s15116_s4 + $0xadc] sm:$0xf0]  ;;  %v9690_v12 = vld [vmem:[%s15116_s4 + $0xaa4] sm:$0xf]  ;;  %v9133_v60 = vor.u32 %v9810_v2, %v9130_v55 }
 0x356   :  { %4634 = vmatmul.bf16.gmra.mxu2 %v13215_v53  ;;  %v8673_v40 = vor.u32 %v9695_v10, %v8670_v37  ;;  %v8830_v53 = vld [vmem:[%s15116_s4 + $0xc1c] sm:$0xf0]  ;;  %v9805_v10 = vld [vmem:[%s15116_s4 + $0xe3c] sm:$0xf]  ;;  %v9110_v37 = vld [vmem:[%s15116_s4 + $0xe4c] sm:$0xf0] }
 0x357   :  { %v4421_v29 = vadd.f32 %v4420_v49, %v4398_v5  ;;  %v8833_v0 = vor.u32 %v9735_v27, %v8830_v53  ;;  %v8653_v5 = vor.u32 %v9690_v12, %v8650_v54  ;;  %v8813_v49 = vor.u32 %v9730_v36, %v8810_v44  ;;  %v9685_v53 = vld [vmem:[%s15116_s4 + $0xa7c] sm:$0xf]  ;;  %v8610_v54 = vld [vmem:[%s15116_s4 + $0xa64] sm:$0xf0]  ;;  %v9720_v36 = vld [vmem:[%s15116_s4 + $0xb94] sm:$0xf] }
 0x358   :  { %5789 = vmatpush.bf16.msrb.mxu0 %v8673_v40  ;;  %5859 = vmatpush.bf16.msrb.mxu3 %v9133_v60  ;;  %v9113_v40 = vor.u32 %v9805_v10, %v9110_v37  ;;  %v9680_v60 = vld [vmem:[%s15116_s4 + $0xa54] sm:$0xf]  ;;  %v9675_v37 = vld [vmem:[%s15116_s4 + $0xa2c] sm:$0xf] }
 0x359   :  { %4657 = vmatmul.bf16.gmra.mxu3 %v13228_v25  ;;  %v9770_v25 = vld [vmem:[%s15116_s4 + $0xd24] sm:$0xf]  ;;  %v4441_v1 = vpop.f32.mrf.mxu2  ;;  %5812 = vmatpush.bf16.msrb.mxu1 %v8833_v0  ;;  %v8613_v44 = vor.u32 %v9680_v60, %v8610_v54  ;;  %v8570_v60 = vld [vmem:[%s15116_s4 + $0xa14] sm:$0xf0] }
 0x35a   :  { %v8973_v19 = vor.u32 %v9770_v25, %v8970_v8  ;;  %v4442_v42 = vadd.f32 %v4441_v1, %v4419_v35  ;;  %v8630_v25 = vld [vmem:[%s15116_s4 + $0xa8c] sm:$0xf0]  ;;  %v9725_v8 = vld [vmem:[%s15116_s4 + $0xbbc] sm:$0xf] }
 0x35c   :  { %v4464_v16 = vpop.f32.mrf.mxu3  ;;  %5836 = vmatpush.bf16.msrb.mxu2 %v8973_v19  ;;  %v4400_v51 = vpop.f32.mrf.mxu0  ;;  %5790 = vmatpush.bf16.msrb.mxu0 %v8653_v5  ;;  %v8633_v19 = vor.u32 %v9685_v53, %v8630_v25 }
 0x35d   :  { %v14121_v20 = vadd.f32 %v4464_v16, %v4442_v42  ;;  %v4401_v35 = vadd.f32 %v4400_v51, %v13109_v48  ;;  %v4423_v24 = vpop.f32.mrf.mxu1  ;;  %v9765_v48 = vld [vmem:[%s15116_s4 + $0xcfc] sm:$0xf]  ;;  %5813 = vmatpush.bf16.msrb.mxu1 %v8813_v49  ;;  %v8790_v42 = vld [vmem:[%s15116_s4 + $0xbcc] sm:$0xf0]  ;;  %v9760_v16 = vld [vmem:[%s15116_s4 + $0xcd4] sm:$0xf]  ;;  %5860 = vmatpush.bf16.msrb.mxu3 %v9113_v40 }
 0x35e   :  { %v8953_v3 = vor.u32 %v9765_v48, %v8950_v17  ;;  %v8930_v51 = vld [vmem:[%s15116_s4 + $0xce4] sm:$0xf0]  ;;  %v8793_v2 = vor.u32 %v9725_v8, %v8790_v42  ;;  %v9800_v48 = vld [vmem:[%s15116_s4 + $0xe14] sm:$0xf]  ;;  %v9715_v40 = vld [vmem:[%s15116_s4 + $0xb6c] sm:$0xf] }
 0x35f   :  { %v4424_v14 = vadd.f32 %v4423_v24, %v4401_v35  ;;  %5703 = vmatmul.bf16.vlgmr.msra.gmra.mxu0 %v11866_v47  ;;  %v8933_v55 = vor.u32 %v9760_v16, %v8930_v51  ;;  %v9090_v17 = vld [vmem:[%s15116_s4 + $0xe24] sm:$0xf0]  ;;  %v9755_v16 = vld [vmem:[%s15116_s4 + $0xcac] sm:$0xf] }
 0x360   :  { %5726 = vmatmul.bf16.vlgmr.msra.gmra.mxu1 %v11881_v39  ;;  %5837 = vmatpush.bf16.msrb.mxu2 %v8953_v3  ;;  %v9093_v3 = vor.u32 %v9800_v48, %v9090_v17  ;;  %v9795_v51 = vld [vmem:[%s15116_s4 + $0xdec] sm:$0xf]  ;;  %v9750_v48 = vld [vmem:[%s15116_s4 + $0xc84] sm:$0xf]  ;;  %v8890_v17 = vld [vmem:[%s15116_s4 + $0xc94] sm:$0xf0] }
 0x361   :  { %v4443_v27 = vpop.f32.mrf.mxu2  ;;  %5791 = vmatpush.bf16.msrb.mxu0 %v8633_v19  ;;  %5814 = vmatpush.bf16.msrb.mxu1 %v8793_v2 }
 0x362   :  { %v4444_v1 = vadd.f32 %v4443_v27, %v4421_v29  ;;  %v8590_v27 = vld [vmem:[%s15116_s4 + $0xa3c] sm:$0xf0]  ;;  %5861 = vmatpush.bf16.msrb.mxu3 %v9093_v3 }
 0x363   :  { %v8593_v8 = vor.u32 %v9675_v37, %v8590_v27 }
 0x364   :  { %v4466_v0 = vpop.f32.mrf.mxu3  ;;  %v4402_v29 = vpop.f32.mrf.mxu0  ;;  %5838 = vmatpush.bf16.msrb.mxu2 %v8933_v55 }
 0x365   :  { %v14174_v12 = vadd.f32 %v4466_v0, %v4444_v1  ;;  %v4403_v35 = vadd.f32 %v4402_v29, %v13149_v57  ;;  %v4425_v24 = vpop.f32.mrf.mxu1  ;;  %v8770_v57 = vld [vmem:[%s15116_s4 + $0xba4] sm:$0xf0]  ;;  %5792 = vmatpush.bf16.msrb.mxu0 %v8613_v44  ;;  %v8750_v1 = vld [vmem:[%s15116_s4 + $0xb7c] sm:$0xf0]  ;;  %v8730_v44 = vld [vmem:[%s15116_s4 + $0xb54] sm:$0xf0] }
 0x366   :  { %5749 = vmatmul.bf16.vlgmr.msra.gmra.mxu2 %v11936_v15  ;;  %v8773_v49 = vor.u32 %v9720_v36, %v8770_v57  ;;  %v8753_v0 = vor.u32 %v9715_v40, %v8750_v1  ;;  %v9790_v40 = vld [vmem:[%s15116_s4 + $0xdc4] sm:$0xf] }
 0x367   :  { %v4426_v5 = vadd.f32 %v4425_v24, %v4403_v35  ;;  %v9070_v35 = vld [vmem:[%s15116_s4 + $0xdfc] sm:$0xf0]  ;;  %v9670_v24 = vld [vmem:[%s15116_s4 + $0xa04] sm:$0xf] }
 0x368   :  { %5815 = vmatpush.bf16.msrb.mxu1 %v8773_v49  ;;  %v9073_v54 = vor.u32 %v9795_v51, %v9070_v35  ;;  %v8573_v36 = vor.u32 %v9670_v24, %v8570_v60  ;;  %v9828_v51 = vld [vmem:[%s15116_s4 + $0xef0] sm:$0xf0] }
 0x369   :  { %5772 = vmatmul.bf16.vlgmr.msra.gmra.mxu3 %v15274_v34  ;;  %v4446_v10 = vpop.f32.mrf.mxu2  ;;  %5793 = vmatpush.bf16.msrb.mxu0 %v8593_v8 }
 0x36a   :  { %v4447_v53 = vadd.f32 %v4446_v10, %v4424_v14  ;;  %v8910_v14 = vld [vmem:[%s15116_s4 + $0xcbc] sm:$0xf0]  ;;  %5862 = vmatpush.bf16.msrb.mxu3 %v9073_v54  ;;  %v8893_v10 = vor.u32 %v9750_v48, %v8890_v17  ;;  %v9748_v17 = vld [vmem:[%s15116_s4 + $0xc70] sm:$0xf0] }
 0x36b   :  { %v8913_v29 = vor.u32 %v9755_v16, %v8910_v14  ;;  %v9196_v16 = vld [vmem:[%s15116_s4 + $0xee0] sm:$0xf] }
 0x36c   :  { %v4469_v25 = vpop.f32.mrf.mxu3  ;;  %v4405_v42 = vpop.f32.mrf.mxu0  ;;  %5816 = vmatpush.bf16.msrb.mxu1 %v8753_v0  ;;  %v8716_v54 = vld [vmem:[%s15116_s4 + $0xb20] sm:$0xf] }
 0x36d   :  { %v14209_v19 = vadd.f32 %v4469_v25, %v4447_v53  ;;  %v4406_v2 = vadd.f32 %v4405_v42, %v13165_v33  ;;  %v4428_v55 = vpop.f32.mrf.mxu1  ;;  %v9710_v33 = vld [vmem:[%s15116_s4 + $0xb44] sm:$0xf]  ;;  %5839 = vmatpush.bf16.msrb.mxu2 %v8913_v29  ;;  %5794 = vmatpush.bf16.msrb.mxu0 %v8573_v36  ;;  %v9050_v53 = vld [vmem:[%s15116_s4 + $0xdd4] sm:$0xf0]  ;;  %v9788_v42 = vld [vmem:[%s15116_s4 + $0xdb0] sm:$0xf0] }
 0x36e   :  { %v8733_v49 = vor.u32 %v9710_v33, %v8730_v44  ;;  %v9053_v1 = vor.u32 %v9790_v40, %v9050_v53  ;;  %v9708_v36 = vld [vmem:[%s15116_s4 + $0xb30] sm:$0xf0]  ;;  %v8876_v33 = vld [vmem:[%s15116_s4 + $0xc60] sm:$0xf]  ;;  %v14279_v44 = vpack.c.bf16 %v12102_v52, %v12102_v52  ;;  %v14293_v52 = vpack.c.bf16 %v12125_v28, %v12125_v28  ;;  %v9176_v40 = vld [vmem:[%s15116_s4 + $0xeb8] sm:$0xf] }
 0x36f   :  { %v4429_v57 = vadd.f32 %v4428_v55, %v4406_v2  ;;  %5708 = vmatmul.bf16.gmra.mxu0 %v12045_v23  ;;  %v9197_v55 = vor.u32 %v9828_v51, %v9196_v16  ;;  %v8717_v48 = vor.u32 %v9708_v36, %v8716_v54  ;;  %v9823_v53 = vld [vmem:[%s15116_s4 + $0xec8] sm:$0xf0]  ;;  %v8696_v28 = vld [vmem:[%s15116_s4 + $0xaf8] sm:$0xf]  ;;  %v14330_v54 = vpack.c.bf16 %v12161_v32, %v12161_v32  ;;  %v8676_v32 = vld [vmem:[%s15116_s4 + $0xad0] sm:$0xf] }
 0x370   :  { %5731 = vmatmul.bf16.gmra.mxu1 %v12057_v26  ;;  %5863 = vmatpush.bf16.msrb.mxu3 %v9053_v1  ;;  %v9703_v1 = vld [vmem:[%s15116_s4 + $0xb08] sm:$0xf0] }
 0x371   :  { %v4448_v3 = vpop.f32.mrf.mxu2  ;;  %5817 = vmatpush.bf16.msrb.mxu1 %v8733_v49  ;;  %5840 = vmatpush.bf16.msrb.mxu2 %v8893_v10  ;;  %v9783_v10 = vld [vmem:[%s15116_s4 + $0xd88] sm:$0xf0] }
 0x372   :  { %v4449_v37 = vadd.f32 %v4448_v3, %v4426_v5  ;;  %v9036_v5 = vld [vmem:[%s15116_s4 + $0xda0] sm:$0xf]  ;;  %v9016_v3 = vld [vmem:[%s15116_s4 + $0xd78] sm:$0xf]  ;;  %5879 = vmatpush.bf16.msra.mxu0 %v8717_v48  ;;  %v9743_v16 = vld [vmem:[%s15116_s4 + $0xc48] sm:$0xf0] }
 0x373   :  { %v9037_v14 = vor.u32 %v9788_v42, %v9036_v5  ;;  %v8697_v42 = vor.u32 %v9703_v1, %v8696_v28 }
 0x374   :  { %v4471_v27 = vpop.f32.mrf.mxu3  ;;  %v4407_v8 = vpop.f32.mrf.mxu0  ;;  %5948 = vmatpush.bf16.msra.mxu3 %v9197_v55 }
 0x375   :  { %v14250_v25 = vadd.f32 %v4471_v27, %v4449_v37  ;;  %v4430_v0 = vpop.f32.mrf.mxu1  ;;  %5925 = vmatpush.bf16.msra.mxu2 %v9037_v14  ;;  %v8877_v37 = vor.u32 %v9748_v17, %v8876_v33  ;;  %v9177_v8 = vor.u32 %v9823_v53, %v9176_v40  ;;  %v8836_v17 = vld [vmem:[%s15116_s4 + $0xc10] sm:$0xf] }
 0x376   :  { %5754 = vmatmul.bf16.gmra.mxu2 %v12099_v43  ;;  %v8856_v0 = vld [vmem:[%s15116_s4 + $0xc38] sm:$0xf]  ;;  %5880 = vmatpush.bf16.msra.mxu0 %v8697_v42  ;;  %v9136_v42 = vld [vmem:[%s15116_s4 + $0xe68] sm:$0xf] }
 0x377   :  { %5902 = vmatpush.bf16.msra.mxu1 %v8877_v37  ;;  %v8857_v51 = vor.u32 %v9743_v16, %v8856_v0  ;;  %v8976_v37 = vld [vmem:[%s15116_s4 + $0xd28] sm:$0xf]  ;;  %v9813_v16 = vld [vmem:[%s15116_s4 + $0xe78] sm:$0xf0] }
 0x378   :  { %5949 = vmatpush.bf16.msra.mxu3 %v9177_v8 }
 0x379   :  { %5777 = vmatmul.bf16.gmra.mxu3 %v12117_v62  ;;  %v4451_v2 = vpop.f32.mrf.mxu2 }
 0x37a   :  { %v4452_v29 = vadd.f32 %v4451_v2, %v4429_v57  ;;  %v14317_v2 = vpack.c.bf16 %v12152_v38, %v12152_v38 }
 0x37b   :  { %5903 = vmatpush.bf16.msra.mxu1 %v8857_v51 }
 0x37c   :  { %v4474_v35 = vpop.f32.mrf.mxu3  ;;  %v4487_v60 = vpop.f32.mrf.mxu0 }
 0x37d   :  { %v14266_v24 = vadd.f32 %v4474_v35, %v4452_v29  ;;  %v4488_v57 = vadd.f32 %v4487_v60, %v13253_v4  ;;  %v4510_v49 = vpop.f32.mrf.mxu1  ;;  %v9017_v4 = vor.u32 %v9783_v10, %v9016_v3  ;;  %v8996_v29 = vld [vmem:[%s15116_s4 + $0xd50] sm:$0xf]  ;;  %v9778_v35 = vld [vmem:[%s15116_s4 + $0xd60] sm:$0xf0] }
 0x37e   :  { %v9156_v60 = vld [vmem:[%s15116_s4 + $0xe90] sm:$0xf]  ;;  %v8997_v33 = vor.u32 %v9778_v35, %v8996_v29  ;;  %v9738_v10 = vld [vmem:[%s15116_s4 + $0xc20] sm:$0xf0]  ;;  %v9693_v29 = vld [vmem:[%s15116_s4 + $0xab8] sm:$0xf0] }
 0x37f   :  { %v4511_v27 = vadd.f32 %v4510_v49, %v4488_v57  ;;  %5713 = vmatmul.bf16.gmra.mxu0 %v14279_v44  ;;  %5926 = vmatpush.bf16.msra.mxu2 %v9017_v4  ;;  %v9818_v57 = vld [vmem:[%s15116_s4 + $0xea0] sm:$0xf0]  ;;  %v9773_v4 = vld [vmem:[%s15116_s4 + $0xd38] sm:$0xf0]  ;;  %v8837_v53 = vor.u32 %v9738_v10, %v8836_v17  ;;  %v8816_v35 = vld [vmem:[%s15116_s4 + $0xbe8] sm:$0xf] }
 0x380   :  { %5736 = vmatmul.bf16.gmra.mxu1 %v14293_v52  ;;  %v9157_v49 = vor.u32 %v9818_v57, %v9156_v60  ;;  %v8977_v8 = vor.u32 %v9773_v4, %v8976_v37  ;;  %v9733_v60 = vld [vmem:[%s15116_s4 + $0xbf8] sm:$0xf0]  ;;  %v9768_v57 = vld [vmem:[%s15116_s4 + $0xd10] sm:$0xf0]  ;;  %v8636_v10 = vld [vmem:[%s15116_s4 + $0xa80] sm:$0xf] }
 0x381   :  { %v4453_v5 = vpop.f32.mrf.mxu2  ;;  %5904 = vmatpush.bf16.msra.mxu1 %v8837_v53  ;;  %v9688_v37 = vld [vmem:[%s15116_s4 + $0xa90] sm:$0xf0]  ;;  %v8796_v4 = vld [vmem:[%s15116_s4 + $0xbc0] sm:$0xf] }
 0x382   :  { %5950 = vmatpush.bf16.msra.mxu3 %v9157_v49 }
 0x383   :  { %5927 = vmatpush.bf16.msra.mxu2 %v8997_v33 }
 0x384   :  { %v4476_v14 = vpop.f32.mrf.mxu3  ;;  %v4489_v55 = vpop.f32.mrf.mxu0 }
 0x385   :  { %v4490_v38 = vadd.f32 %v4489_v55, %v13305_v7  ;;  %v4512_v36 = vpop.f32.mrf.mxu1  ;;  %v9698_v7 = vld [vmem:[%s15116_s4 + $0xae0] sm:$0xf0]  ;;  %v8656_v14 = vld [vmem:[%s15116_s4 + $0xaa8] sm:$0xf]  ;;  %v9137_v55 = vor.u32 %v9813_v16, %v9136_v42 }
 0x386   :  { %5759 = vmatmul.bf16.gmra.mxu2 %v14317_v2  ;;  %v8677_v3 = vor.u32 %v9698_v7, %v8676_v32  ;;  %v9116_v32 = vld [vmem:[%s15116_s4 + $0xe40] sm:$0xf]  ;;  %v9808_v7 = vld [vmem:[%s15116_s4 + $0xe50] sm:$0xf0] }
 0x387   :  { %v4513_v48 = vadd.f32 %v4512_v36, %v4490_v38  ;;  %5928 = vmatpush.bf16.msra.mxu2 %v8977_v8  ;;  %v8657_v38 = vor.u32 %v9693_v29, %v8656_v14  ;;  %v8817_v36 = vor.u32 %v9733_v60, %v8816_v35  ;;  %5951 = vmatpush.bf16.msra.mxu3 %v9137_v55  ;;  %v8616_v55 = vld [vmem:[%s15116_s4 + $0xa58] sm:$0xf]  ;;  %v9683_v29 = vld [vmem:[%s15116_s4 + $0xa68] sm:$0xf0] }
 0x388   :  { %5881 = vmatpush.bf16.msra.mxu0 %v8677_v3  ;;  %v9117_v3 = vor.u32 %v9808_v7, %v9116_v32  ;;  %v8637_v8 = vor.u32 %v9688_v37, %v8636_v10  ;;  %v8776_v35 = vld [vmem:[%s15116_s4 + $0xb98] sm:$0xf]  ;;  %v8617_v60 = vor.u32 %v9683_v29, %v8616_v55  ;;  %v8596_v7 = vld [vmem:[%s15116_s4 + $0xa30] sm:$0xf]  ;;  %v9673_v55 = vld [vmem:[%s15116_s4 + $0xa18] sm:$0xf0] }
 0x389   :  { %5782 = vmatmul.bf16.gmra.mxu3 %v14330_v54  ;;  %v4533_v40 = vpop.f32.mrf.mxu2  ;;  %5905 = vmatpush.bf16.msra.mxu1 %v8817_v36 }
 0x38a   :  { %v4534_v28 = vadd.f32 %v4533_v40, %v4511_v27 }
 0x38b   :  { %5952 = vmatpush.bf16.msra.mxu3 %v9117_v3  ;;  %v8756_v3 = vld [vmem:[%s15116_s4 + $0xb70] sm:$0xf] }
 0x38c   :  { %v4556_v1 = vpop.f32.mrf.mxu3  ;;  %v4492_v5 = vpop.f32.mrf.mxu0  ;;  %5882 = vmatpush.bf16.msra.mxu0 %v8657_v38 }
 0x38d   :  { %v14356_v0 = vadd.f32 %v4556_v1, %v4534_v28  ;;  %v4493_v27 = vadd.f32 %v4492_v5, %v13339_v11  ;;  %v4515_v51 = vpop.f32.mrf.mxu1  ;;  %v8956_v11 = vld [vmem:[%s15116_s4 + $0xd00] sm:$0xf]  ;;  %v9728_v28 = vld [vmem:[%s15116_s4 + $0xbd0] sm:$0xf0]  ;;  %v8936_v1 = vld [vmem:[%s15116_s4 + $0xcd8] sm:$0xf] }
 0x38e   :  { %v8957_v49 = vor.u32 %v9768_v57, %v8956_v11  ;;  %v9763_v5 = vld [vmem:[%s15116_s4 + $0xce8] sm:$0xf0]  ;;  %v8797_v42 = vor.u32 %v9728_v28, %v8796_v4  ;;  %v9096_v11 = vld [vmem:[%s15116_s4 + $0xe18] sm:$0xf] }
 0x38f   :  { %v4516_v33 = vadd.f32 %v4515_v51, %v4493_v27  ;;  %5795 = vmatmul.bf16.vlgmr.msrb.gmra.mxu0 %v11866_v47  ;;  %v8937_v16 = vor.u32 %v9763_v5, %v8936_v1  ;;  %v9803_v57 = vld [vmem:[%s15116_s4 + $0xe28] sm:$0xf0]  ;;  %v8916_v1 = vld [vmem:[%s15116_s4 + $0xcb0] sm:$0xf] }
 0x390   :  { %5818 = vmatmul.bf16.vlgmr.msrb.gmra.mxu1 %v11881_v39  ;;  %5929 = vmatpush.bf16.msra.mxu2 %v8957_v49  ;;  %v9097_v49 = vor.u32 %v9803_v57, %v9096_v11  ;;  %v9076_v5 = vld [vmem:[%s15116_s4 + $0xdf0] sm:$0xf]  ;;  %v8896_v11 = vld [vmem:[%s15116_s4 + $0xc88] sm:$0xf]  ;;  %v9753_v57 = vld [vmem:[%s15116_s4 + $0xc98] sm:$0xf0] }
 0x391   :  { %v4535_v17 = vpop.f32.mrf.mxu2  ;;  %5883 = vmatpush.bf16.msra.mxu0 %v8637_v8  ;;  %5906 = vmatpush.bf16.msra.mxu1 %v8797_v42 }
 0x392   :  { %v4536_v40 = vadd.f32 %v4535_v17, %v4513_v48  ;;  %v9678_v17 = vld [vmem:[%s15116_s4 + $0xa40] sm:$0xf0]  ;;  %5953 = vmatpush.bf16.msra.mxu3 %v9097_v49 }
 0x393   :  { %v8597_v4 = vor.u32 %v9678_v17, %v8596_v7 }
 0x394   :  { %v4558_v53 = vpop.f32.mrf.mxu3  ;;  %v4494_v48 = vpop.f32.mrf.mxu0  ;;  %5930 = vmatpush.bf16.msra.mxu2 %v8937_v16 }
 0x395   :  { %v14409_v14 = vadd.f32 %v4558_v53, %v4536_v40  ;;  %v4495_v27 = vadd.f32 %v4494_v48, %v13379_v18  ;;  %v4517_v51 = vpop.f32.mrf.mxu1  ;;  %v9723_v18 = vld [vmem:[%s15116_s4 + $0xba8] sm:$0xf0]  ;;  %5884 = vmatpush.bf16.msra.mxu0 %v8617_v60  ;;  %v9718_v40 = vld [vmem:[%s15116_s4 + $0xb80] sm:$0xf0]  ;;  %v9713_v60 = vld [vmem:[%s15116_s4 + $0xb58] sm:$0xf0] }
 0x396   :  { %5841 = vmatmul.bf16.vlgmr.msrb.gmra.mxu2 %v11936_v15  ;;  %v8777_v36 = vor.u32 %v9723_v18, %v8776_v35  ;;  %v8757_v53 = vor.u32 %v9718_v40, %v8756_v3  ;;  %v9056_v3 = vld [vmem:[%s15116_s4 + $0xdc8] sm:$0xf] }
 0x397   :  { %v4518_v38 = vadd.f32 %v4517_v51, %v4495_v27  ;;  %v9798_v27 = vld [vmem:[%s15116_s4 + $0xe00] sm:$0xf0]  ;;  %v8576_v51 = vld [vmem:[%s15116_s4 + $0xa08] sm:$0xf] }
 0x398   :  { %5907 = vmatpush.bf16.msra.mxu1 %v8777_v36  ;;  %v9077_v29 = vor.u32 %v9798_v27, %v9076_v5  ;;  %v8577_v35 = vor.u32 %v9673_v55, %v8576_v51  ;;  %v9198_v5 = vld [vmem:[%s15116_s4 + $0xef4] sm:$0xf0] }
 0x399   :  { %5864 = vmatmul.bf16.vlgmr.msrb.gmra.mxu3 %v15274_v34  ;;  %v4538_v32 = vpop.f32.mrf.mxu2  ;;  %5885 = vmatpush.bf16.msra.mxu0 %v8597_v4 }
 0x39a   :  { %v4539_v10 = vadd.f32 %v4538_v32, %v4516_v33  ;;  %v9758_v33 = vld [vmem:[%s15116_s4 + $0xcc0] sm:$0xf0]  ;;  %5954 = vmatpush.bf16.msra.mxu3 %v9077_v29  ;;  %v8897_v32 = vor.u32 %v9753_v57, %v8896_v11  ;;  %v8878_v11 = vld [vmem:[%s15116_s4 + $0xc74] sm:$0xf0]  ;;  %v9781_v57 = vld [vmem:[%s15116_s4 + $0xd7c] sm:$0xf] }
 0x39b   :  { %v8917_v48 = vor.u32 %v9758_v33, %v8916_v1  ;;  %v9826_v1 = vld [vmem:[%s15116_s4 + $0xee4] sm:$0xf] }
 0x39c   :  { %v4561_v37 = vpop.f32.mrf.mxu3  ;;  %v4497_v28 = vpop.f32.mrf.mxu0  ;;  %5908 = vmatpush.bf16.msra.mxu1 %v8757_v53  ;;  %v9706_v29 = vld [vmem:[%s15116_s4 + $0xb24] sm:$0xf] }
 0x39d   :  { %v14444_v8 = vadd.f32 %v4561_v37, %v4539_v10  ;;  %v4498_v42 = vadd.f32 %v4497_v28, %v13395_v22  ;;  %v4520_v16 = vpop.f32.mrf.mxu1  ;;  %v8736_v22 = vld [vmem:[%s15116_s4 + $0xb48] sm:$0xf]  ;;  %5931 = vmatpush.bf16.msra.mxu2 %v8917_v48  ;;  %5886 = vmatpush.bf16.msra.mxu0 %v8577_v35  ;;  %v9793_v10 = vld [vmem:[%s15116_s4 + $0xdd8] sm:$0xf0]  ;;  %v9038_v28 = vld [vmem:[%s15116_s4 + $0xdb4] sm:$0xf0] }
 0x39e   :  { %v8737_v36 = vor.u32 %v9713_v60, %v8736_v22  ;;  %v9057_v40 = vor.u32 %v9793_v10, %v9056_v3  ;;  %v8718_v35 = vld [vmem:[%s15116_s4 + $0xb34] sm:$0xf0]  ;;  %v9746_v22 = vld [vmem:[%s15116_s4 + $0xc64] sm:$0xf]  ;;  %v9178_v3 = vld [vmem:[%s15116_s4 + $0xecc] sm:$0xf0] }
 0x39f   :  { %v4521_v18 = vadd.f32 %v4520_v16, %v4498_v42  ;;  %5800 = vmatmul.bf16.gmra.mxu0 %v12045_v23  ;;  %v9201_v16 = vor.u32 %v9826_v1, %v9198_v5  ;;  %v8858_v1 = vld [vmem:[%s15116_s4 + $0xc4c] sm:$0xf0] }
 0x3a0   :  { %5823 = vmatmul.bf16.gmra.mxu1 %v12057_v26  ;;  %5955 = vmatpush.bf16.msra.mxu3 %v9057_v40  ;;  %v8698_v40 = vld [vmem:[%s15116_s4 + $0xb0c] sm:$0xf0] }
 0x3a1   :  { %v4540_v49 = vpop.f32.mrf.mxu2  ;;  %5909 = vmatpush.bf16.msra.mxu1 %v8737_v36  ;;  %5932 = vmatpush.bf16.msra.mxu2 %v8897_v32  ;;  %v8721_v36 = vor.u32 %v9706_v29, %v8718_v35  ;;  %v8881_v32 = vor.u32 %v9746_v22, %v8878_v11  ;;  %v9158_v22 = vld [vmem:[%s15116_s4 + $0xea4] sm:$0xf0]  ;;  %v9736_v11 = vld [vmem:[%s15116_s4 + $0xc14] sm:$0xf] }
 0x3a2   :  { %v4541_v7 = vadd.f32 %v4540_v49, %v4518_v38  ;;  %v9786_v38 = vld [vmem:[%s15116_s4 + $0xda4] sm:$0xf]  ;;  %v9018_v49 = vld [vmem:[%s15116_s4 + $0xd8c] sm:$0xf0] }
 0x3a3   :  { %v9041_v33 = vor.u32 %v9786_v38, %v9038_v28  ;;  %5971 = vmatpush.bf16.msrb.mxu0 %v8721_v36  ;;  %v9696_v36 = vld [vmem:[%s15116_s4 + $0xad4] sm:$0xf] }
 0x3a4   :  { %v4563_v17 = vpop.f32.mrf.mxu3  ;;  %v4499_v4 = vpop.f32.mrf.mxu0  ;;  %6040 = vmatpush.bf16.msrb.mxu3 %v9201_v16  ;;  %v9776_v16 = vld [vmem:[%s15116_s4 + $0xd54] sm:$0xf] }
 0x3a5   :  { %v14485_v37 = vadd.f32 %v4563_v17, %v4541_v7  ;;  %v4522_v53 = vpop.f32.mrf.mxu1  ;;  %6017 = vmatpush.bf16.msrb.mxu2 %v9041_v33  ;;  %v9021_v7 = vor.u32 %v9781_v57, %v9018_v49  ;;  %v9701_v4 = vld [vmem:[%s15116_s4 + $0xafc] sm:$0xf]  ;;  %5994 = vmatpush.bf16.msrb.mxu1 %v8881_v32  ;;  %v8838_v49 = vld [vmem:[%s15116_s4 + $0xc24] sm:$0xf0]  ;;  %v9771_v32 = vld [vmem:[%s15116_s4 + $0xd2c] sm:$0xf] }
 0x3a6   :  { %5846 = vmatmul.bf16.gmra.mxu2 %v12099_v43  ;;  %v9741_v53 = vld [vmem:[%s15116_s4 + $0xc3c] sm:$0xf]  ;;  %v8701_v28 = vor.u32 %v9701_v4, %v8698_v40 }
 0x3a7   :  { %v8861_v5 = vor.u32 %v9741_v53, %v8858_v1  ;;  %v9138_v1 = vld [vmem:[%s15116_s4 + $0xe7c] sm:$0xf0] }
 0x3a8   :  { %5972 = vmatpush.bf16.msrb.mxu0 %v8701_v28  ;;  %v9811_v28 = vld [vmem:[%s15116_s4 + $0xe6c] sm:$0xf] }
 0x3a9   :  { %5869 = vmatmul.bf16.gmra.mxu3 %v12117_v62  ;;  %v4543_v42 = vpop.f32.mrf.mxu2  ;;  %6018 = vmatpush.bf16.msrb.mxu2 %v9021_v7  ;;  %v8978_v7 = vld [vmem:[%s15116_s4 + $0xd3c] sm:$0xf0] }
 0x3aa   :  { %v4544_v48 = vadd.f32 %v4543_v42, %v4521_v18  ;;  %5995 = vmatpush.bf16.msrb.mxu1 %v8861_v5 }
 0x3ac   :  { %v4566_v27 = vpop.f32.mrf.mxu3  ;;  %v4579_v55 = vpop.f32.mrf.mxu0 }
 0x3ad   :  { %v14501_v51 = vadd.f32 %v4566_v27, %v4544_v48  ;;  %v4580_v60 = vadd.f32 %v4579_v55, %v13467_v59  ;;  %v4602_v18 = vpop.f32.mrf.mxu1  ;;  %v9821_v59 = vld [vmem:[%s15116_s4 + $0xebc] sm:$0xf]  ;;  %v8998_v48 = vld [vmem:[%s15116_s4 + $0xd64] sm:$0xf0]  ;;  %v9816_v27 = vld [vmem:[%s15116_s4 + $0xe94] sm:$0xf] }
 0x3ae   :  { %v9181_v10 = vor.u32 %v9821_v59, %v9178_v3  ;;  %v9001_v35 = vor.u32 %v9776_v16, %v8998_v48  ;;  %v8841_v3 = vor.u32 %v9736_v11, %v8838_v49  ;;  %v8658_v16 = vld [vmem:[%s15116_s4 + $0xabc] sm:$0xf0]  ;;  %v9731_v48 = vld [vmem:[%s15116_s4 + $0xbec] sm:$0xf]  ;;  %v9686_v49 = vld [vmem:[%s15116_s4 + $0xa84] sm:$0xf] }
 0x3af   :  { %v4603_v17 = vadd.f32 %v4602_v18, %v4580_v60  ;;  %5805 = vmatmul.bf16.gmra.mxu0 %v14279_v44  ;;  %v9161_v60 = vor.u32 %v9816_v27, %v9158_v22  ;;  %v8818_v27 = vld [vmem:[%s15116_s4 + $0xbfc] sm:$0xf0] }
 0x3b0   :  { %5828 = vmatmul.bf16.gmra.mxu1 %v14293_v52  ;;  %6041 = vmatpush.bf16.msrb.mxu3 %v9181_v10  ;;  %v8981_v10 = vor.u32 %v9771_v32, %v8978_v7  ;;  %v8638_v32 = vld [vmem:[%s15116_s4 + $0xa94] sm:$0xf0]  ;;  %v9726_v7 = vld [vmem:[%s15116_s4 + $0xbc4] sm:$0xf] }
 0x3b1   :  { %v4545_v38 = vpop.f32.mrf.mxu2  ;;  %6019 = vmatpush.bf16.msrb.mxu2 %v9001_v35  ;;  %5996 = vmatpush.bf16.msrb.mxu1 %v8841_v3  ;;  %v8958_v35 = vld [vmem:[%s15116_s4 + $0xd14] sm:$0xf0] }
 0x3b4   :  { %v4568_v33 = vpop.f32.mrf.mxu3  ;;  %v4581_v42 = vpop.f32.mrf.mxu0  ;;  %6042 = vmatpush.bf16.msrb.mxu3 %v9161_v60 }
 0x3b5   :  { %v4582_v55 = vadd.f32 %v4581_v42, %v13519_v63  ;;  %v4604_v29 = vpop.f32.mrf.mxu1  ;;  %v8678_v63 = vld [vmem:[%s15116_s4 + $0xae4] sm:$0xf0]  ;;  %6020 = vmatpush.bf16.msrb.mxu2 %v8981_v10  ;;  %v9691_v33 = vld [vmem:[%s15116_s4 + $0xaac] sm:$0xf]  ;;  %v9141_v42 = vor.u32 %v9811_v28, %v9138_v1  ;;  %v8641_v10 = vor.u32 %v9686_v49, %v8638_v32 }
 0x3b6   :  { %5851 = vmatmul.bf16.gmra.mxu2 %v14317_v2  ;;  %v8681_v57 = vor.u32 %v9696_v36, %v8678_v63  ;;  %v9806_v36 = vld [vmem:[%s15116_s4 + $0xe44] sm:$0xf]  ;;  %v9118_v63 = vld [vmem:[%s15116_s4 + $0xe54] sm:$0xf0] }
 0x3b7   :  { %v4605_v18 = vadd.f32 %v4604_v29, %v4582_v55  ;;  %v8661_v55 = vor.u32 %v9691_v33, %v8658_v16  ;;  %v8821_v29 = vor.u32 %v9731_v48, %v8818_v27  ;;  %v8618_v16 = vld [vmem:[%s15116_s4 + $0xa6c] sm:$0xf0]  ;;  %v9721_v48 = vld [vmem:[%s15116_s4 + $0xb9c] sm:$0xf] }
 0x3b8   :  { %5973 = vmatpush.bf16.msrb.mxu0 %v8681_v57  ;;  %6043 = vmatpush.bf16.msrb.mxu3 %v9141_v42  ;;  %v9121_v57 = vor.u32 %v9806_v36, %v9118_v63  ;;  %v9681_v42 = vld [vmem:[%s15116_s4 + $0xa5c] sm:$0xf]  ;;  %v9676_v63 = vld [vmem:[%s15116_s4 + $0xa34] sm:$0xf] }
 0x3b9   :  { %5874 = vmatmul.bf16.gmra.mxu3 %v14330_v54  ;;  %v4625_v59 = vpop.f32.mrf.mxu2  ;;  %5997 = vmatpush.bf16.msrb.mxu1 %v8821_v29  ;;  %v8621_v27 = vor.u32 %v9681_v42, %v8618_v16  ;;  %v8918_v42 = vld [vmem:[%s15116_s4 + $0xcc4] sm:$0xf0] }
 0x3ba   :  { %v4626_v4 = vadd.f32 %v4625_v59, %v4603_v17 }
 0x3bc   :  { %v4648_v40 = vpop.f32.mrf.mxu3  ;;  %v4584_v38 = vpop.f32.mrf.mxu0  ;;  %5974 = vmatpush.bf16.msrb.mxu0 %v8661_v55  ;;  %6044 = vmatpush.bf16.msrb.mxu3 %v9121_v57  ;;  %v9716_v57 = vld [vmem:[%s15116_s4 + $0xb74] sm:$0xf] }
 0x3bd   :  { %v14575_v53 = vadd.f32 %v4648_v40, %v4626_v4  ;;  %v4585_v17 = vadd.f32 %v4584_v38, %v13553_v58  ;;  %v4607_v5 = vpop.f32.mrf.mxu1  ;;  %v9766_v58 = vld [vmem:[%s15116_s4 + $0xd04] sm:$0xf]  ;;  %v8798_v4 = vld [vmem:[%s15116_s4 + $0xbd4] sm:$0xf0]  ;;  %v9761_v40 = vld [vmem:[%s15116_s4 + $0xcdc] sm:$0xf] }
 0x3be   :  { %v8961_v60 = vor.u32 %v9766_v58, %v8958_v35  ;;  %v8938_v38 = vld [vmem:[%s15116_s4 + $0xcec] sm:$0xf0]  ;;  %v8801_v28 = vor.u32 %v9726_v7, %v8798_v4  ;;  %v9801_v58 = vld [vmem:[%s15116_s4 + $0xe1c] sm:$0xf] }
 0x3bf   :  { %v4608_v22 = vadd.f32 %v4607_v5, %v4585_v17  ;;  %5887 = vmatmul.bf16.vlgmr.msra.gmra.mxu0 %v11866_v47  ;;  %v8941_v1 = vor.u32 %v9761_v40, %v8938_v38  ;;  %v9098_v35 = vld [vmem:[%s15116_s4 + $0xe2c] sm:$0xf0] }
 0x3c0   :  { %5910 = vmatmul.bf16.vlgmr.msra.gmra.mxu1 %v11881_v39  ;;  %6021 = vmatpush.bf16.msrb.mxu2 %v8961_v60  ;;  %v9101_v60 = vor.u32 %v9801_v58, %v9098_v35 }
 0x3c1   :  { %v4627_v11 = vpop.f32.mrf.mxu2  ;;  %5975 = vmatpush.bf16.msrb.mxu0 %v8641_v10  ;;  %5998 = vmatpush.bf16.msrb.mxu1 %v8801_v28  ;;  %v8578_v28 = vld [vmem:[%s15116_s4 + $0xa1c] sm:$0xf0] }
 0x3c2   :  { %v4628_v59 = vadd.f32 %v4627_v11, %v4605_v18  ;;  %v8598_v11 = vld [vmem:[%s15116_s4 + $0xa44] sm:$0xf0]  ;;  %6045 = vmatpush.bf16.msrb.mxu3 %v9101_v60 }
 0x3c3   :  { %v8601_v7 = vor.u32 %v9676_v63, %v8598_v11  ;;  %v8898_v63 = vld [vmem:[%s15116_s4 + $0xc9c] sm:$0xf0]  ;;  %v9791_v11 = vld [vmem:[%s15116_s4 + $0xdcc] sm:$0xf] }
 0x3c4   :  { %v4650_v3 = vpop.f32.mrf.mxu3  ;;  %v4586_v18 = vpop.f32.mrf.mxu0  ;;  %6022 = vmatpush.bf16.msrb.mxu2 %v8941_v1  ;;  %v9711_v1 = vld [vmem:[%s15116_s4 + $0xb4c] sm:$0xf] }
 0x3c5   :  { %v14628_v33 = vadd.f32 %v4650_v3, %v4628_v59  ;;  %v4587_v17 = vadd.f32 %v4586_v18, %v13593_v41  ;;  %v4609_v5 = vpop.f32.mrf.mxu1  ;;  %v8778_v41 = vld [vmem:[%s15116_s4 + $0xbac] sm:$0xf0]  ;;  %5976 = vmatpush.bf16.msrb.mxu0 %v8621_v27  ;;  %v8758_v59 = vld [vmem:[%s15116_s4 + $0xb84] sm:$0xf0]  ;;  %v9796_v27 = vld [vmem:[%s15116_s4 + $0xdf4] sm:$0xf] }
 0x3c6   :  { %5933 = vmatmul.bf16.vlgmr.msra.gmra.mxu2 %v11936_v15  ;;  %v8781_v29 = vor.u32 %v9721_v48, %v8778_v41  ;;  %v8761_v3 = vor.u32 %v9716_v57, %v8758_v59  ;;  %v9078_v41 = vld [vmem:[%s15116_s4 + $0xe04] sm:$0xf0] }
 0x3c7   :  { %v4610_v55 = vadd.f32 %v4609_v5, %v4587_v17  ;;  %v8738_v17 = vld [vmem:[%s15116_s4 + $0xb5c] sm:$0xf0]  ;;  %v9756_v5 = vld [vmem:[%s15116_s4 + $0xcb4] sm:$0xf]  ;;  %v9081_v58 = vor.u32 %v9796_v27, %v9078_v41  ;;  %v8724_v27 = vld [vmem:[%s15116_s4 + $0xb28] sm:$0xf] }
 0x3c8   :  { %5999 = vmatpush.bf16.msrb.mxu1 %v8781_v29  ;;  %v8741_v16 = vor.u32 %v9711_v1, %v8738_v17  ;;  %v8921_v48 = vor.u32 %v9756_v5, %v8918_v42  ;;  %v9789_v1 = vld [vmem:[%s15116_s4 + $0xdb8] sm:$0xf0] }
 0x3c9   :  { %5956 = vmatmul.bf16.vlgmr.msra.gmra.mxu3 %v15274_v34  ;;  %v4630_v36 = vpop.f32.mrf.mxu2  ;;  %5977 = vmatpush.bf16.msrb.mxu0 %v8601_v7  ;;  %v9709_v41 = vld [vmem:[%s15116_s4 + $0xb38] sm:$0xf0] }
 0x3ca   :  { %v4631_v49 = vadd.f32 %v4630_v36, %v4608_v22  ;;  %v9671_v22 = vld [vmem:[%s15116_s4 + $0xa0c] sm:$0xf]  ;;  %6023 = vmatpush.bf16.msrb.mxu2 %v8921_v48  ;;  %6046 = vmatpush.bf16.msrb.mxu3 %v9081_v58 }
 0x3cb   :  { %v8581_v18 = vor.u32 %v9671_v22, %v8578_v28  ;;  %v9751_v36 = vld [vmem:[%s15116_s4 + $0xc8c] sm:$0xf]  ;;  %v9044_v28 = vld [vmem:[%s15116_s4 + $0xda8] sm:$0xf] }
 0x3cc   :  { %v4653_v32 = vpop.f32.mrf.mxu3  ;;  %v4589_v4 = vpop.f32.mrf.mxu0  ;;  %6000 = vmatpush.bf16.msrb.mxu1 %v8761_v3  ;;  %v9045_v5 = vor.u32 %v9789_v1, %v9044_v28  ;;  %v8864_v1 = vld [vmem:[%s15116_s4 + $0xc40] sm:$0xf] }
 0x3cd   :  { %v14663_v10 = vadd.f32 %v4653_v32, %v4631_v49  ;;  %v4590_v40 = vadd.f32 %v4589_v4, %v13609_v13  ;;  %v4612_v38 = vpop.f32.mrf.mxu1  ;;  %5978 = vmatpush.bf16.msrb.mxu0 %v8581_v18  ;;  %v8901_v32 = vor.u32 %v9751_v36, %v8898_v63  ;;  %v9204_v18 = vld [vmem:[%s15116_s4 + $0xee8] sm:$0xf] }
 0x3cf   :  { %v4613_v13 = vadd.f32 %v4612_v38, %v4590_v40  ;;  %5892 = vmatmul.bf16.gmra.mxu0 %v12045_v23  ;;  %6024 = vmatpush.bf16.msrb.mxu2 %v8901_v32  ;;  %v9184_v32 = vld [vmem:[%s15116_s4 + $0xec0] sm:$0xf] }
 0x3d0   :  { %5915 = vmatmul.bf16.gmra.mxu1 %v12057_v26 }
 0x3d1   :  { %v4632_v29 = vpop.f32.mrf.mxu2  ;;  %6001 = vmatpush.bf16.msrb.mxu1 %v8741_v16 }
 0x3d2   :  { %v4633_v35 = vadd.f32 %v4632_v29, %v4610_v55  ;;  %v9058_v55 = vld [vmem:[%s15116_s4 + $0xddc] sm:$0xf0]  ;;  %v8884_v29 = vld [vmem:[%s15116_s4 + $0xc68] sm:$0xf] }
 0x3d3   :  { %v9061_v59 = vor.u32 %v9791_v11, %v9058_v55  ;;  %6109 = vmatpush.bf16.msra.mxu2 %v9045_v5  ;;  %v9024_v11 = vld [vmem:[%s15116_s4 + $0xd80] sm:$0xf] }
 0x3d4   :  { %v4655_v60 = vpop.f32.mrf.mxu3  ;;  %v4591_v49 = vpop.f32.mrf.mxu0 }
 0x3d5   :  { %v14701_v57 = vadd.f32 %v4655_v60, %v4633_v35  ;;  %v4614_v7 = vpop.f32.mrf.mxu1  ;;  %6047 = vmatpush.bf16.msrb.mxu3 %v9061_v59  ;;  %v8725_v35 = vor.u32 %v9709_v41, %v8724_v27  ;;  %v9749_v60 = vld [vmem:[%s15116_s4 + $0xc78] sm:$0xf0]  ;;  %v9784_v49 = vld [vmem:[%s15116_s4 + $0xd90] sm:$0xf0] }
 0x3d6   :  { %5938 = vmatmul.bf16.gmra.mxu2 %v12099_v43  ;;  %v8885_v36 = vor.u32 %v9749_v60, %v8884_v29  ;;  %v9025_v7 = vor.u32 %v9784_v49, %v9024_v11  ;;  %v9824_v59 = vld [vmem:[%s15116_s4 + $0xed0] sm:$0xf0]  ;;  %v9779_v11 = vld [vmem:[%s15116_s4 + $0xd68] sm:$0xf0] }
 0x3d7   :  { %6063 = vmatpush.bf16.msra.mxu0 %v8725_v35 }
 0x3d8   :  { %6086 = vmatpush.bf16.msra.mxu1 %v8885_v36  ;;  %6110 = vmatpush.bf16.msra.mxu2 %v9025_v7  ;;  %v8984_v7 = vld [vmem:[%s15116_s4 + $0xd30] sm:$0xf] }
 0x3d9   :  { %5961 = vmatmul.bf16.gmra.mxu3 %v12117_v62  ;;  %v4635_v3 = vpop.f32.mrf.mxu2 }
 0x3da   :  { %v4636_v4 = vadd.f32 %v4635_v3, %v4613_v13  ;;  %v9829_v13 = vld [vmem:[%s15116_s4 + $0xef8] sm:$0xf0]  ;;  %v8704_v3 = vld [vmem:[%s15116_s4 + $0xb00] sm:$0xf] }
 0x3db   :  { %v9205_v16 = vor.u32 %v9829_v13, %v9204_v18  ;;  %v9744_v18 = vld [vmem:[%s15116_s4 + $0xc50] sm:$0xf0]  ;;  %v8684_v13 = vld [vmem:[%s15116_s4 + $0xad8] sm:$0xf] }
 0x3dc   :  { %v4658_v40 = vpop.f32.mrf.mxu3  ;;  %v5704_v22 = vpop.f32.mrf.mxu0 }
 0x3dd   :  { %v14708_v38 = vadd.f32 %v4658_v40, %v4636_v4  ;;  %v5727_v17 = vpop.f32.mrf.mxu1  ;;  %6132 = vmatpush.bf16.msra.mxu3 %v9205_v16  ;;  %v9704_v4 = vld [vmem:[%s15116_s4 + $0xb10] sm:$0xf0]  ;;  %v9699_v16 = vld [vmem:[%s15116_s4 + $0xae8] sm:$0xf0] }
 0x3de   :  { %v5728_v42 = vadd.f32 %v5727_v17, %v5704_v22  ;;  %v9185_v22 = vor.u32 %v9824_v59, %v9184_v32  ;;  %v8705_v28 = vor.u32 %v9704_v4, %v8704_v3  ;;  %v8865_v17 = vor.u32 %v9744_v18, %v8864_v1  ;;  %v9774_v59 = vld [vmem:[%s15116_s4 + $0xd40] sm:$0xf0]  ;;  %v8824_v18 = vld [vmem:[%s15116_s4 + $0xbf0] sm:$0xf] }
 0x3df   :  { %5897 = vmatmul.bf16.gmra.mxu0 %v14279_v44  ;;  %v8685_v29 = vor.u32 %v9699_v16, %v8684_v13  ;;  %v9694_v1 = vld [vmem:[%s15116_s4 + $0xac0] sm:$0xf0] }
 0x3e0   :  { %5920 = vmatmul.bf16.gmra.mxu1 %v14293_v52  ;;  %6064 = vmatpush.bf16.msra.mxu0 %v8705_v28  ;;  %v8664_v28 = vld [vmem:[%s15116_s4 + $0xab0] sm:$0xf] }
 0x3e1   :  { %v4637_v48 = vpop.f32.mrf.mxu2  ;;  %6133 = vmatpush.bf16.msra.mxu3 %v9185_v22  ;;  %6087 = vmatpush.bf16.msra.mxu1 %v8865_v17  ;;  %v8985_v17 = vor.u32 %v9774_v59, %v8984_v7 }
 0x3e2   :  { %v8844_v48 = vld [vmem:[%s15116_s4 + $0xc18] sm:$0xf] }
 0x3e4   :  { %v4660_v58 = vpop.f32.mrf.mxu3  ;;  %v5706_v63 = vpop.f32.mrf.mxu0  ;;  %6065 = vmatpush.bf16.msra.mxu0 %v8685_v29 }
 0x3e5   :  { %v5729_v55 = vpop.f32.mrf.mxu1  ;;  %v9739_v58 = vld [vmem:[%s15116_s4 + $0xc28] sm:$0xf0] }
 0x3e6   :  { %v5730_v40 = vadd.f32 %v5729_v55, %v5706_v63  ;;  %5943 = vmatmul.bf16.gmra.mxu2 %v14317_v2  ;;  %v8845_v35 = vor.u32 %v9739_v58, %v8844_v48  ;;  %v9004_v63 = vld [vmem:[%s15116_s4 + $0xd58] sm:$0xf]  ;;  %v9819_v55 = vld [vmem:[%s15116_s4 + $0xea8] sm:$0xf0]  ;;  %v8644_v48 = vld [vmem:[%s15116_s4 + $0xa88] sm:$0xf] }
 0x3e7   :  { %v9005_v32 = vor.u32 %v9779_v11, %v9004_v63  ;;  %v9814_v63 = vld [vmem:[%s15116_s4 + $0xe80] sm:$0xf0] }
 0x3e8   :  { %6088 = vmatpush.bf16.msra.mxu1 %v8845_v35 }
 0x3e9   :  { %5966 = vmatmul.bf16.gmra.mxu3 %v14330_v54  ;;  %v5750_v5 = vpop.f32.mrf.mxu2  ;;  %6111 = vmatpush.bf16.msra.mxu2 %v9005_v32  ;;  %v9769_v32 = vld [vmem:[%s15116_s4 + $0xd18] sm:$0xf0] }
 0x3ea   :  { %v5751_v27 = vadd.f32 %v5750_v5, %v5728_v42  ;;  %v9164_v42 = vld [vmem:[%s15116_s4 + $0xe98] sm:$0xf]  ;;  %v9734_v5 = vld [vmem:[%s15116_s4 + $0xc00] sm:$0xf0] }
 0x3eb   :  { %v9165_v22 = vor.u32 %v9819_v55, %v9164_v42  ;;  %v8825_v13 = vor.u32 %v9734_v5, %v8824_v18  ;;  %v9764_v5 = vld [vmem:[%s15116_s4 + $0xcf0] sm:$0xf0] }
 0x3ec   :  { %v5773_v41 = vpop.f32.mrf.mxu3  ;;  %v5709_v36 = vpop.f32.mrf.mxu0 }
 0x3ed   :  { %v5774_v60 = vadd.f32 %v5773_v41, %v5751_v27  ;;  %v5732_v49 = vpop.f32.mrf.mxu1  ;;  %6134 = vmatpush.bf16.msra.mxu3 %v9165_v22  ;;  %v9689_v27 = vld [vmem:[%s15116_s4 + $0xa98] sm:$0xf0]  ;;  %v8804_v41 = vld [vmem:[%s15116_s4 + $0xbc8] sm:$0xf]  ;;  %6089 = vmatpush.bf16.msra.mxu1 %v8825_v13  ;;  %v8624_v13 = vld [vmem:[%s15116_s4 + $0xa60] sm:$0xf] }
 0x3ee   :  { %v5733_v4 = vadd.f32 %v5732_v49, %v5709_v36  ;;  %v8645_v35 = vor.u32 %v9689_v27, %v8644_v48  ;;  %6112 = vmatpush.bf16.msra.mxu2 %v8985_v17  ;;  %v9144_v36 = vld [vmem:[%s15116_s4 + $0xe70] sm:$0xf]  ;;  %v9124_v22 = vld [vmem:[%s15116_s4 + $0xe48] sm:$0xf]  ;;  %v8784_v27 = vld [vmem:[%s15116_s4 + $0xba0] sm:$0xf] }
 0x3ef   :  { %v14793_v3 = vadd.f32 %v5774_v60, %v13683_v50  ;;  %5979 = vmatmul.bf16.vlgmr.msrb.gmra.mxu0 %v11866_v47  ;;  %v8665_v50 = vor.u32 %v9694_v1, %v8664_v28  ;;  %v9729_v60 = vld [vmem:[%s15116_s4 + $0xbd8] sm:$0xf0]  ;;  %v9145_v49 = vor.u32 %v9814_v63, %v9144_v36  ;;  %v8944_v1 = vld [vmem:[%s15116_s4 + $0xce0] sm:$0xf]  ;;  %v8604_v36 = vld [vmem:[%s15116_s4 + $0xa38] sm:$0xf] }
 0x3f0   :  { %6002 = vmatmul.bf16.vlgmr.msrb.gmra.mxu1 %v11881_v39  ;;  %v8805_v55 = vor.u32 %v9729_v60, %v8804_v41  ;;  %v9809_v28 = vld [vmem:[%s15116_s4 + $0xe58] sm:$0xf0]  ;;  %v9724_v41 = vld [vmem:[%s15116_s4 + $0xbb0] sm:$0xf0]  ;;  %v9679_v63 = vld [vmem:[%s15116_s4 + $0xa48] sm:$0xf0] }
 0x3f1   :  { %v5752_v16 = vpop.f32.mrf.mxu2  ;;  %6066 = vmatpush.bf16.msra.mxu0 %v8665_v50  ;;  %6135 = vmatpush.bf16.msra.mxu3 %v9145_v49  ;;  %v9125_v50 = vor.u32 %v9809_v28, %v9124_v22 }
 0x3f2   :  { %v5753_v29 = vadd.f32 %v5752_v16, %v5730_v40  ;;  %v8964_v40 = vld [vmem:[%s15116_s4 + $0xd08] sm:$0xf]  ;;  %v9684_v16 = vld [vmem:[%s15116_s4 + $0xa70] sm:$0xf0]  ;;  %6090 = vmatpush.bf16.msra.mxu1 %v8805_v55  ;;  %v9719_v55 = vld [vmem:[%s15116_s4 + $0xb88] sm:$0xf0] }
 0x3f3   :  { %v8965_v59 = vor.u32 %v9769_v32, %v8964_v40  ;;  %v8625_v48 = vor.u32 %v9684_v16, %v8624_v13  ;;  %v8605_v40 = vor.u32 %v9679_v63, %v8604_v36  ;;  %v8764_v32 = vld [vmem:[%s15116_s4 + $0xb78] sm:$0xf]  ;;  %v8744_v16 = vld [vmem:[%s15116_s4 + $0xb50] sm:$0xf] }
 0x3f4   :  { %v5775_v58 = vpop.f32.mrf.mxu3  ;;  %v5711_v42 = vpop.f32.mrf.mxu0  ;;  %v8765_v28 = vor.u32 %v9719_v55, %v8764_v32 }
 0x3f5   :  { %v5776_v11 = vadd.f32 %v5775_v58, %v5753_v29  ;;  %v5734_v7 = vpop.f32.mrf.mxu1  ;;  %6067 = vmatpush.bf16.msra.mxu0 %v8645_v35  ;;  %6113 = vmatpush.bf16.msra.mxu2 %v8965_v59  ;;  %v9104_v29 = vld [vmem:[%s15116_s4 + $0xe20] sm:$0xf]  ;;  %v8785_v58 = vor.u32 %v9724_v41, %v8784_v27  ;;  %v9804_v35 = vld [vmem:[%s15116_s4 + $0xe30] sm:$0xf0]  ;;  %v9084_v27 = vld [vmem:[%s15116_s4 + $0xdf8] sm:$0xf] }
 0x3f6   :  { %v5735_v17 = vadd.f32 %v5734_v7, %v5711_v42  ;;  %6025 = vmatmul.bf16.vlgmr.msrb.gmra.mxu2 %v11936_v15  ;;  %6136 = vmatpush.bf16.msra.mxu3 %v9125_v50  ;;  %v9105_v49 = vor.u32 %v9804_v35, %v9104_v29  ;;  %v9799_v29 = vld [vmem:[%s15116_s4 + $0xe08] sm:$0xf0] }
 0x3f7   :  { %v14843_v18 = vadd.f32 %v5776_v11, %v13736_v30  ;;  %v8945_v30 = vor.u32 %v9764_v5, %v8944_v1  ;;  %6091 = vmatpush.bf16.msra.mxu1 %v8785_v58  ;;  %v9674_v1 = vld [vmem:[%s15116_s4 + $0xa20] sm:$0xf0]  ;;  %v9085_v35 = vor.u32 %v9799_v29, %v9084_v27 }
 0x3f8   :  { %v14934_v29 = vld [vmem:[%s15117_s5] sm:$0x1f] }
 0x3f9   :  { %6048 = vmatmul.bf16.vlgmr.msrb.gmra.mxu3 %v15274_v34  ;;  %v5755_v60 = vpop.f32.mrf.mxu2  ;;  %6068 = vmatpush.bf16.msra.mxu0 %v8625_v48  ;;  %v8924_v48 = vld [vmem:[%s15116_s4 + $0xcb8] sm:$0xf] }
 0x3fa   :  { %v5756_v11 = vadd.f32 %v5755_v60, %v5733_v4  ;;  %6114 = vmatpush.bf16.msra.mxu2 %v8945_v30  ;;  %v8584_v4 = vld [vmem:[%s15116_s4 + $0xa10] sm:$0xf]  ;;  %6137 = vmatpush.bf16.msra.mxu3 %v9105_v49  ;;  %v9714_v30 = vld [vmem:[%s15116_s4 + $0xb60] sm:$0xf0] }
 0x3fb   :  { %v8585_v13 = vor.u32 %v9674_v1, %v8584_v4  ;;  %6092 = vmatpush.bf16.msra.mxu1 %v8765_v28  ;;  %v8745_v60 = vor.u32 %v9714_v30, %v8744_v16  ;;  %v9064_v49 = vld [vmem:[%s15116_s4 + $0xdd0] sm:$0xf] }
 0x3fc   :  { %v5778_v42 = vpop.f32.mrf.mxu3  ;;  %v5714_v59 = vpop.f32.mrf.mxu0 }
 0x3fd   :  { %v5779_v7 = vadd.f32 %v5778_v42, %v5756_v11  ;;  %v5737_v22 = vpop.f32.mrf.mxu1  ;;  %6069 = vmatpush.bf16.msra.mxu0 %v8605_v40  ;;  %v8904_v11 = vld [vmem:[%s15116_s4 + $0xc90] sm:$0xf]  ;;  %v9754_v42 = vld [vmem:[%s15116_s4 + $0xca0] sm:$0xf0] }
 0x3fe   :  { %v5738_v5 = vadd.f32 %v5737_v22, %v5714_v59  ;;  %6138 = vmatpush.bf16.msra.mxu3 %v9085_v35  ;;  %v8905_v55 = vor.u32 %v9754_v42, %v8904_v11 }
 0x3ff   :  { %v14887_v50 = vadd.f32 %v5779_v7, %v13771_v46  ;;  %5984 = vmatmul.bf16.gmra.mxu0 %v12045_v23  ;;  %v9759_v46 = vld [vmem:[%s15116_s4 + $0xcc8] sm:$0xf0]  ;;  %6093 = vmatpush.bf16.msra.mxu1 %v8745_v60 }
 0x400   :  { %6007 = vmatmul.bf16.gmra.mxu1 %v12057_v26  ;;  %v8925_v41 = vor.u32 %v9759_v46, %v8924_v48 }
 0x401   :  { %v5757_v58 = vpop.f32.mrf.mxu2  ;;  %6070 = vmatpush.bf16.msra.mxu0 %v8585_v13 }
 0x402   :  { %v5758_v36 = vadd.f32 %v5757_v58, %v5735_v17  ;;  %6115 = vmatpush.bf16.msra.mxu2 %v8925_v41  ;;  %v9794_v17 = vld [vmem:[%s15116_s4 + $0xde0] sm:$0xf0] }
 0x403   :  { %v9065_v59 = vor.u32 %v9794_v17, %v9064_v49  ;;  %v14944_v58 = vld [vmem:[%s15118_s6] sm:$0x1f]  ;;  %v14952_v49 = vperm.slane %v14934_v29, 1 }
 0x404   :  { %v5780_v63 = vpop.f32.mrf.mxu3  ;;  %v5716_v32 = vpop.f32.mrf.mxu0  ;;  %v14949_v11 = vperm.slane %v14944_v58, 0  ;;  %v14956_v17 = vperm.slane %v14944_v58, 1 }
 0x405   :  { %v5781_v40 = vadd.f32 %v5780_v63, %v5758_v36  ;;  %v5739_v7 = vpop.f32.mrf.mxu1  ;;  %6139 = vmatpush.bf16.msra.mxu3 %v9065_v59 }
 0x406   :  { %6030 = vmatmul.bf16.gmra.mxu2 %v12099_v43 }
 0x407   :  { %v14922_v22 = vadd.f32 %v5781_v40, %v13812_v56  ;;  %6116 = vmatpush.bf16.msra.mxu2 %v8905_v55 }
 0x409   :  { %6053 = vmatmul.bf16.gmra.mxu3 %v12117_v62  ;;  %v5760_v28 = vpop.f32.mrf.mxu2 }
 0x40a   :  { %v5761_v4 = vadd.f32 %v5760_v28, %v5738_v5 }
 0x40c   :  { %v5783_v1 = vpop.f32.mrf.mxu3  ;;  %v5796_v16 = vpop.f32.mrf.mxu0 }
 0x40d   :  { %v5784_v13 = vadd.f32 %v5783_v1, %v5761_v4  ;;  %v5819_v30 = vpop.f32.mrf.mxu1 }
 0x40e   :  { %v5820_v46 = vadd.f32 %v5819_v30, %v5796_v16 }
 0x40f   :  { %v14927_v48 = vadd.f32 %v5784_v13, %v13828_v6  ;;  %5989 = vmatmul.bf16.gmra.mxu0 %v14279_v44  ;;  %v14939_v6 = vperm.slane %v14934_v29, 0 }
 0x410   :  { %6012 = vmatmul.bf16.gmra.mxu1 %v14293_v52 }
 0x411   :  { %v5762_v56 = vpop.f32.mrf.mxu2  ;;  %v6192_v63 = vmul.f32 %v14939_v6, %v14793_v3 }
 0x413   :  { %v6229_v59 = vadd.f32 %v14949_v11, %v6192_v63 }
 0x414   :  { %v5785_v27 = vpop.f32.mrf.mxu3  ;;  %v5798_v41 = vpop.f32.mrf.mxu0 }
 0x415   :  { %v5821_v5 = vpop.f32.mrf.mxu1  ;;  %v6254_v30 = vmax.f32 %v6229_v59, 0.0 }
 0x416   :  { %6035 = vmatmul.bf16.gmra.mxu2 %v14317_v2  ;;  %v5822_v3 = vadd.f32 %v5821_v5, %v5798_v41 }
 0x419   :  { %6058 = vmatmul.bf16.gmra.mxu3 %v14330_v54  ;;  %v5842_v35 = vpop.f32.mrf.mxu2 }
 0x41a   :  { %v5843_v60 = vadd.f32 %v5842_v35, %v5820_v46 }
 0x41c   :  { %v5865_v36 = vpop.f32.mrf.mxu3  ;;  %v5801_v40 = vpop.f32.mrf.mxu0 }
 0x41d   :  { %v5866_v42 = vadd.f32 %v5865_v36, %v5843_v60  ;;  %v5824_v32 = vpop.f32.mrf.mxu1 }
 0x41e   :  { %v5825_v7 = vadd.f32 %v5824_v32, %v5801_v40  ;;  %v6202_v32 = vmul.f32 %v14939_v6, %v14887_v50 }
 0x41f   :  { %v6156_v55 = vadd.f32 %v5866_v42, %v13902_v21  ;;  %6071 = vmatmul.bf16.vlgmr.msra.gmra.mxu0 %v11866_v47  ;;  %v6197_v21 = vmul.f32 %v14939_v6, %v14843_v18 }
 0x420   :  { %6094 = vmatmul.bf16.vlgmr.msra.gmra.mxu1 %v11881_v39 }
 0x421   :  { %v6193_v28 = vmul.f32 %v14952_v49, %v6156_v55  ;;  %v5844_v4 = vpop.f32.mrf.mxu2  ;;  %v6234_v39 = vadd.f32 %v14949_v11, %v6197_v21  ;;  %v6207_v21 = vmul.f32 %v14939_v6, %v14922_v22 }
 0x422   :  { %v5845_v13 = vadd.f32 %v5844_v4, %v5822_v3  ;;  %v6239_v4 = vadd.f32 %v14949_v11, %v6202_v32 }
 0x423   :  { %v6230_v1 = vadd.f32 %v14956_v17, %v6193_v28  ;;  %v6259_v40 = vmax.f32 %v6234_v39, 0.0 }
 0x424   :  { %v5867_v16 = vpop.f32.mrf.mxu3  ;;  %v5803_v27 = vpop.f32.mrf.mxu0 }
 0x425   :  { %v6255_v46 = vmax.f32 %v6230_v1, 0.0  ;;  %v5868_v56 = vadd.f32 %v5867_v16, %v5845_v13  ;;  %v5826_v47 = vpop.f32.mrf.mxu1 }
 0x426   :  { %v5827_v5 = vadd.f32 %v5826_v47, %v5803_v27  ;;  %6117 = vmatmul.bf16.vlgmr.msra.gmra.mxu2 %v11936_v15 }
 0x427   :  { %v14965_v35 = vadd.f32 %v6255_v46, %v6254_v30  ;;  %v6161_v41 = vadd.f32 %v5868_v56, %v13955_v9  ;;  %v6264_v30 = vmax.f32 %v6239_v4, 0.0 }
 0x429   :  { %6140 = vmatmul.bf16.vlgmr.msra.gmra.mxu3 %v15274_v34  ;;  %v6198_v60 = vmul.f32 %v14952_v49, %v6161_v41  ;;  %v5847_v36 = vpop.f32.mrf.mxu2 }
 0x42a   :  { %v5848_v63 = vadd.f32 %v5847_v36, %v5825_v7 }
 0x42b   :  { %v6235_v18 = vadd.f32 %v14956_v17, %v6198_v60 }
 0x42c   :  { %v5870_v42 = vpop.f32.mrf.mxu3  ;;  %v5806_v59 = vpop.f32.mrf.mxu0 }
 0x42d   :  { %v6260_v55 = vmax.f32 %v6235_v18, 0.0  ;;  %v5871_v9 = vadd.f32 %v5870_v42, %v5848_v63  ;;  %v5829_v3 = vpop.f32.mrf.mxu1  ;;  %v6212_v18 = vmul.f32 %v14939_v6, %v14927_v48 }
 0x42e   :  { %v5830_v28 = vadd.f32 %v5829_v3, %v5806_v59 }
 0x42f   :  { %v14975_v15 = vadd.f32 %v6260_v55, %v6259_v40  ;;  %v6166_v34 = vadd.f32 %v5871_v9, %v13990_v31  ;;  %6076 = vmatmul.bf16.gmra.mxu0 %v12045_v23  ;;  %v6249_v55 = vadd.f32 %v14949_v11, %v6212_v18 }
 0x430   :  { %6099 = vmatmul.bf16.gmra.mxu1 %v12057_v26  ;;  %v6244_v26 = vadd.f32 %v14949_v11, %v6207_v21 }
 0x431   :  { %v6203_v7 = vmul.f32 %v14952_v49, %v6166_v34  ;;  %v5849_v1 = vpop.f32.mrf.mxu2  ;;  %v6274_v3 = vmax.f32 %v6249_v55, 0.0 }
 0x432   :  { %v5850_v13 = vadd.f32 %v5849_v1, %v5827_v5  ;;  %v6269_v36 = vmax.f32 %v6244_v26, 0.0 }
 0x433   :  { %v6240_v50 = vadd.f32 %v14956_v17, %v6203_v7 }
 0x434   :  { %v5872_v16 = vpop.f32.mrf.mxu3  ;;  %v5808_v56 = vpop.f32.mrf.mxu0 }
 0x435   :  { %v6265_v46 = vmax.f32 %v6240_v50, 0.0  ;;  %v5873_v31 = vadd.f32 %v5872_v16, %v5850_v13  ;;  %v5831_v27 = vpop.f32.mrf.mxu1 }
 0x436   :  { %6122 = vmatmul.bf16.gmra.mxu2 %v12099_v43 }
 0x437   :  { %v14985_v23 = vadd.f32 %v6265_v46, %v6264_v30  ;;  %v6171_v47 = vadd.f32 %v5873_v31, %v14031_v45 }
 0x439   :  { %6145 = vmatmul.bf16.gmra.mxu3 %v12117_v62  ;;  %v6208_v41 = vmul.f32 %v14952_v49, %v6171_v47  ;;  %v5852_v5 = vpop.f32.mrf.mxu2 }
 0x43a   :  { %v5853_v22 = vadd.f32 %v5852_v5, %v5830_v28 }
 0x43b   :  { %v6245_v39 = vadd.f32 %v14956_v17, %v6208_v41 }
 0x43c   :  { %v5875_v60 = vpop.f32.mrf.mxu3  ;;  %v5888_v45 = vpop.f32.mrf.mxu0 }
 0x43d   :  { %v6270_v63 = vmax.f32 %v6245_v39, 0.0  ;;  %v5876_v42 = vadd.f32 %v5875_v60, %v5853_v22  ;;  %v5911_v40 = vpop.f32.mrf.mxu1 }
 0x43e   :  { %v5912_v32 = vadd.f32 %v5911_v40, %v5888_v45 }
 0x43f   :  { %v14995_v43 = vadd.f32 %v6270_v63, %v6269_v36  ;;  %v6176_v62 = vadd.f32 %v5876_v42, %v14047_v61  ;;  %6081 = vmatmul.bf16.gmra.mxu0 %v14279_v44 }
 0x440   :  { %6104 = vmatmul.bf16.gmra.mxu1 %v14293_v52 }
 0x441   :  { %v6213_v9 = vmul.f32 %v14952_v49, %v6176_v62  ;;  %v5854_v59 = vpop.f32.mrf.mxu2 }
 0x443   :  { %v6250_v48 = vadd.f32 %v14956_v17, %v6213_v9 }
 0x444   :  { %v5877_v6 = vpop.f32.mrf.mxu3  ;;  %v5890_v28 = vpop.f32.mrf.mxu0 }
 0x445   :  { %v6275_v34 = vmax.f32 %v6250_v48, 0.0  ;;  %v5913_v4 = vpop.f32.mrf.mxu1 }
 0x446   :  { %v5914_v61 = vadd.f32 %v5913_v4, %v5890_v28  ;;  %6127 = vmatmul.bf16.gmra.mxu2 %v14317_v2 }
 0x447   :  { %v15003_v7 = vadd.f32 %v6275_v34, %v6274_v3 }
 0x449   :  { %6150 = vmatmul.bf16.gmra.mxu3 %v14330_v54  ;;  %v5934_v44 = vpop.f32.mrf.mxu2 }
 0x44a   :  { %v5935_v11 = vadd.f32 %v5934_v44, %v5912_v32 }
 0x44c   :  { %v5957_v49 = vpop.f32.mrf.mxu3  ;;  %v5893_v52 = vpop.f32.mrf.mxu0 }
 0x44d   :  { %v5958_v1 = vadd.f32 %v5957_v49, %v5935_v11  ;;  %v5916_v50 = vpop.f32.mrf.mxu1 }
 0x44e   :  { %v5917_v13 = vadd.f32 %v5916_v50, %v5893_v52 }
 0x44f   :  { %v6157_v17 = vadd.f32 %v5958_v1, %v14121_v20  ;;  %v15021_v1 = vperm.slane %v14944_v58, 2 }
 0x451   :  { %v5936_v16 = vpop.f32.mrf.mxu2 }
 0x452   :  { %v5937_v30 = vadd.f32 %v5936_v16, %v5914_v61  ;;  %v15017_v61 = vperm.slane %v14934_v29, 2 }
 0x454   :  { %v5959_v21 = vpop.f32.mrf.mxu3  ;;  %v5895_v31 = vpop.f32.mrf.mxu0  ;;  %v6194_v49 = vmul.f32 %v15017_v61, %v6157_v17 }
 0x455   :  { %v5960_v46 = vadd.f32 %v5959_v21, %v5937_v30  ;;  %v5918_v56 = vpop.f32.mrf.mxu1  ;;  %v15028_v30 = vperm.slane %v14944_v58, 3 }
 0x456   :  { %v5919_v2 = vadd.f32 %v5918_v56, %v5895_v31 }
 0x457   :  { %v6162_v27 = vadd.f32 %v5960_v46, %v14174_v12  ;;  %v6231_v46 = vadd.f32 %v15021_v1, %v6194_v49 }
 0x459   :  { %v5939_v47 = vpop.f32.mrf.mxu2 }
 0x45a   :  { %v5940_v54 = vadd.f32 %v5939_v47, %v5917_v13 }
 0x45c   :  { %v5962_v26 = vpop.f32.mrf.mxu3  ;;  %v5898_v5 = vpop.f32.mrf.mxu0 }
 0x45d   :  { %v5963_v41 = vadd.f32 %v5962_v26, %v5940_v54  ;;  %v5921_v39 = vpop.f32.mrf.mxu1  ;;  %v6256_v54 = vmax.f32 %v6231_v46, 0.0  ;;  %v6199_v26 = vmul.f32 %v15017_v61, %v6162_v27 }
 0x45e   :  { %v5922_v60 = vadd.f32 %v5921_v39, %v5898_v5 }
 0x45f   :  { %v6167_v22 = vadd.f32 %v5963_v41, %v14209_v19 }
 0x461   :  { %v5941_v20 = vpop.f32.mrf.mxu2 }
 0x462   :  { %v5942_v36 = vadd.f32 %v5941_v20, %v5919_v2 }
 0x464   :  { %v5964_v18 = vpop.f32.mrf.mxu3  ;;  %v5900_v42 = vpop.f32.mrf.mxu0 }
 0x465   :  { %v5965_v63 = vadd.f32 %v5964_v18, %v5942_v36  ;;  %v5923_v45 = vpop.f32.mrf.mxu1  ;;  %v6236_v36 = vadd.f32 %v15021_v1, %v6199_v26 }
 0x467   :  { %v15011_v40 = vadd.f32 %v5965_v63, %v14250_v25  ;;  %v6261_v27 = vmax.f32 %v6236_v36, 0.0 }
 0x469   :  { %v5944_v12 = vpop.f32.mrf.mxu2  ;;  %v6209_v49 = vmul.f32 %v15017_v61, %v15011_v40 }
 0x46a   :  { %v5945_v62 = vadd.f32 %v5944_v12, %v5922_v60 }
 0x46b   :  { %v6246_v46 = vadd.f32 %v15021_v1, %v6209_v49 }
 0x46c   :  { %v5967_v32 = vpop.f32.mrf.mxu3  ;;  %v5980_v9 = vpop.f32.mrf.mxu0 }
 0x46d   :  { %v5968_v55 = vadd.f32 %v5967_v32, %v5945_v62  ;;  %v6003_v59 = vpop.f32.mrf.mxu1  ;;  %v6204_v32 = vmul.f32 %v15017_v61, %v6167_v22  ;;  %v6271_v26 = vmax.f32 %v6246_v46, 0.0 }
 0x46e   :  { %v6004_v19 = vadd.f32 %v6003_v59, %v5980_v9 }
 0x46f   :  { %v15014_v48 = vadd.f32 %v5968_v55, %v14266_v24  ;;  %v15024_v24 = vperm.slane %v14934_v29, 3 }
 0x471   :  { %v5946_v6 = vpop.f32.mrf.mxu2 }
 0x474   :  { %v5969_v3 = vpop.f32.mrf.mxu3  ;;  %v5982_v34 = vpop.f32.mrf.mxu0 }
 0x475   :  { %v6005_v28 = vpop.f32.mrf.mxu1  ;;  %v6241_v3 = vadd.f32 %v15021_v1, %v6204_v32 }
 0x476   :  { %v6006_v4 = vadd.f32 %v6005_v28, %v5982_v34 }
 0x479   :  { %v6026_v25 = vpop.f32.mrf.mxu2 }
 0x47a   :  { %v6027_v44 = vadd.f32 %v6026_v25, %v6004_v19 }
 0x47c   :  { %v6049_v11 = vpop.f32.mrf.mxu3  ;;  %v5985_v50 = vpop.f32.mrf.mxu0 }
 0x47d   :  { %v6050_v52 = vadd.f32 %v6049_v11, %v6027_v44  ;;  %v6008_v13 = vpop.f32.mrf.mxu1  ;;  %v6266_v11 = vmax.f32 %v6241_v3, 0.0 }
 0x47e   :  { %v6009_v21 = vadd.f32 %v6008_v13, %v5985_v50 }
 0x47f   :  { %v6158_v16 = vadd.f32 %v6050_v52, %v14356_v0 }
 0x481   :  { %v6195_v31 = vmul.f32 %v15024_v24, %v6158_v16  ;;  %v6028_v17 = vpop.f32.mrf.mxu2 }
 0x482   :  { %v6029_v2 = vadd.f32 %v6028_v17, %v6006_v4 }
 0x483   :  { %v6232_v56 = vadd.f32 %v15028_v30, %v6195_v31 }
 0x484   :  { %v6051_v47 = vpop.f32.mrf.mxu3  ;;  %v5987_v39 = vpop.f32.mrf.mxu0 }
 0x485   :  { %v6257_v41 = vmax.f32 %v6232_v56, 0.0  ;;  %v6052_v5 = vadd.f32 %v6051_v47, %v6029_v2  ;;  %v6010_v0 = vpop.f32.mrf.mxu1 }
 0x486   :  { %v6011_v34 = vadd.f32 %v6010_v0, %v5987_v39 }
 0x487   :  { %v6284_v60 = vadd.f32 %v6257_v41, %v6256_v54  ;;  %v6163_v20 = vadd.f32 %v6052_v5, %v14409_v14 }
 0x489   :  { %v6200_v18 = vmul.f32 %v15024_v24, %v6163_v20  ;;  %v15038_v63 = vadd.f32 %v6284_v60, %v14965_v35  ;;  %v6031_v42 = vpop.f32.mrf.mxu2 }
 0x48a   :  { %v6032_v12 = vadd.f32 %v6031_v42, %v6009_v21 }
 0x48b   :  { %v6237_v45 = vadd.f32 %v15028_v30, %v6200_v18  ;;  %v9836_v18 = vld [vmem:[%s15120_s7 + $0x30] sm:$0xff] }
 0x48c   :  { %v6054_v62 = vpop.f32.mrf.mxu3  ;;  %v5990_v59 = vpop.f32.mrf.mxu0 }
 0x48d   :  { %v6262_v55 = vmax.f32 %v6237_v45, 0.0  ;;  %v6055_v9 = vadd.f32 %v6054_v62, %v6032_v12  ;;  %v6013_v19 = vpop.f32.mrf.mxu1 }
 0x48e   :  { %v6014_v31 = vadd.f32 %v6013_v19, %v5990_v59 }
 0x48f   :  { %v6285_v14 = vadd.f32 %v6262_v55, %v6261_v27  ;;  %v6168_v6 = vadd.f32 %v6055_v9, %v14444_v8 }
 0x491   :  { %v6205_v35 = vmul.f32 %v15024_v24, %v6168_v6  ;;  %v15046_v28 = vadd.f32 %v6285_v14, %v14975_v15  ;;  %v6033_v4 = vpop.f32.mrf.mxu2  ;;  %v9837_v15 = vld [vmem:[%s15120_s7 + $0x38] sm:$0xff]  ;;  %v6186_v14 = vperm.slane %v14934_v29, 4  ;;  %v9832_v29 = vld [vmem:[%s15120_s7 + $0x10] sm:$0xff] }
 0x492   :  { %v6034_v44 = vadd.f32 %v6033_v4, %v6011_v34  ;;  %6372 = vmatpush.bf16.msrb.mxu0 %v9837_v15  ;;  %v9833_v4 = vld [vmem:[%s15120_s7 + $0x18] sm:$0xff] }
 0x493   :  { %v6242_v25 = vadd.f32 %v15028_v30, %v6205_v35  ;;  %v6223_v35 = vperm.slane %v14944_v58, 4 }
 0x494   :  { %v6056_v22 = vpop.f32.mrf.mxu3  ;;  %v5992_v8 = vpop.f32.mrf.mxu0 }
 0x495   :  { %v6267_v52 = vmax.f32 %v6242_v25, 0.0  ;;  %v6057_v50 = vadd.f32 %v6056_v22, %v6034_v44  ;;  %v6015_v13 = vpop.f32.mrf.mxu1 }
 0x496   :  { %6373 = vmatpush.bf16.msrb.mxu0 %v9836_v18 }
 0x497   :  { %v6286_v16 = vadd.f32 %v6267_v52, %v6266_v11  ;;  %v6173_v21 = vadd.f32 %v6057_v50, %v14485_v37  ;;  %v6214_v37 = vmul.f32 %v15017_v61, %v15014_v48 }
 0x499   :  { %v6210_v17 = vmul.f32 %v15024_v24, %v6173_v21  ;;  %v15058_v56 = vadd.f32 %v6286_v16, %v14985_v23  ;;  %v6036_v40 = vpop.f32.mrf.mxu2  ;;  %v6251_v36 = vadd.f32 %v15021_v1, %v6214_v37  ;;  %v9831_v16 = vld [vmem:[%s15120_s7 + $0x8] sm:$0xff] }
 0x49a   :  { %v6037_v47 = vadd.f32 %v6036_v40, %v6014_v31 }
 0x49b   :  { %v6247_v2 = vadd.f32 %v15028_v30, %v6210_v17  ;;  %v6276_v12 = vmax.f32 %v6251_v36, 0.0 }
 0x49c   :  { %v6059_v54 = vpop.f32.mrf.mxu3  ;;  %v6072_v39 = vpop.f32.mrf.mxu0 }
 0x49d   :  { %v6272_v41 = vmax.f32 %v6247_v2, 0.0  ;;  %v6060_v5 = vadd.f32 %v6059_v54, %v6037_v47  ;;  %v6095_v0 = vpop.f32.mrf.mxu1  ;;  %v9830_v2 = vld [vmem:[%s15120_s7] sm:$0xff] }
 0x49e   :  { %v6096_v32 = vadd.f32 %v6095_v0, %v6072_v39 }
 0x49f   :  { %v6287_v60 = vadd.f32 %v6272_v41, %v6271_v26  ;;  %v6178_v20 = vadd.f32 %v6060_v5, %v14501_v51  ;;  %v9835_v51 = vld [vmem:[%s15120_s7 + $0x28] sm:$0xff] }
 0x4a0   :  { %6374 = vmatpush.bf16.msrb.mxu0 %v9835_v51 }
 0x4a1   :  { %v6215_v23 = vmul.f32 %v15024_v24, %v6178_v20  ;;  %v15070_v42 = vadd.f32 %v6287_v60, %v14995_v43  ;;  %v6038_v45 = vpop.f32.mrf.mxu2  ;;  %v9834_v43 = vld [vmem:[%s15120_s7 + $0x20] sm:$0xff] }
 0x4a3   :  { %v6252_v48 = vadd.f32 %v15028_v30, %v6215_v23 }
 0x4a4   :  { %v6061_v61 = vpop.f32.mrf.mxu3  ;;  %v6074_v62 = vpop.f32.mrf.mxu0  ;;  %6375 = vmatpush.bf16.msrb.mxu0 %v9834_v43 }
 0x4a5   :  { %v6277_v1 = vmax.f32 %v6252_v48, 0.0  ;;  %v6097_v24 = vpop.f32.mrf.mxu1 }
 0x4a6   :  { %v6098_v25 = vadd.f32 %v6097_v24, %v6074_v62 }
 0x4a7   :  { %v6288_v27 = vadd.f32 %v6277_v1, %v6276_v12 }
 0x4a8   :  { %6376 = vmatpush.bf16.msrb.mxu0 %v9833_v4 }
 0x4a9   :  { %v15080_v55 = vadd.f32 %v6288_v27, %v15003_v7  ;;  %v6118_v30 = vpop.f32.mrf.mxu2 }
 0x4aa   :  { %v6119_v9 = vadd.f32 %v6118_v30, %v6096_v32 }
 0x4ac   :  { %v6141_v59 = vpop.f32.mrf.mxu3  ;;  %v6077_v6 = vpop.f32.mrf.mxu0  ;;  %6377 = vmatpush.bf16.msrb.mxu0 %v9832_v29 }
 0x4ad   :  { %v6142_v19 = vadd.f32 %v6141_v59, %v6119_v9  ;;  %v6100_v3 = vpop.f32.mrf.mxu1 }
 0x4ae   :  { %v6101_v21 = vadd.f32 %v6100_v3, %v6077_v6 }
 0x4af   :  { %v6159_v34 = vadd.f32 %v6142_v19, %v14575_v53 }
 0x4b0   :  { %6378 = vmatpush.bf16.msrb.mxu0 %v9831_v16 }
 0x4b1   :  { %v6196_v7 = vmul.f32 %v6186_v14, %v6159_v34  ;;  %v6120_v44 = vpop.f32.mrf.mxu2 }
 0x4b2   :  { %v6121_v11 = vadd.f32 %v6120_v44, %v6098_v25 }
 0x4b3   :  { %v6233_v22 = vadd.f32 %v6223_v35, %v6196_v7  ;;  %v9838_v7 = vld [vmem:[%s15119_s8] ss:$0 sm:$0xff] }
 0x4b4   :  { %v6143_v49 = vpop.f32.mrf.mxu3  ;;  %v6079_v53 = vpop.f32.mrf.mxu0  ;;  %6379 = vmatpush.bf16.msrb.mxu0 %v9830_v2 }
 0x4b5   :  { %v6258_v52 = vmax.f32 %v6233_v22, 0.0  ;;  %v6144_v50 = vadd.f32 %v6143_v49, %v6121_v11  ;;  %v6102_v58 = vpop.f32.mrf.mxu1 }
 0x4b6   :  { %v6103_v5 = vadd.f32 %v6102_v58, %v6079_v53 }
 0x4b7   :  { %v6294_v8 = vadd.f32 %v15038_v63, %v6258_v52  ;;  %v6164_v13 = vadd.f32 %v6144_v50, %v14628_v33 }
 0x4b9   :  { %v6201_v15 = vmul.f32 %v6186_v14, %v6164_v13  ;;  %v6123_v46 = vpop.f32.mrf.mxu2 }
 0x4ba   :  { %v6124_v17 = vadd.f32 %v6123_v46, %v6101_v21 }
 0x4bb   :  { %v6238_v31 = vadd.f32 %v6223_v35, %v6201_v15 }
 0x4bc   :  { %v6146_v40 = vpop.f32.mrf.mxu3  ;;  %v6082_v63 = vpop.f32.mrf.mxu0 }
 0x4bd   :  { %v6263_v47 = vmax.f32 %v6238_v31, 0.0  ;;  %v6147_v54 = vadd.f32 %v6146_v40, %v6124_v17  ;;  %v6105_v33 = vpop.f32.mrf.mxu1 }
 0x4be   :  { %v6106_v12 = vadd.f32 %v6105_v33, %v6082_v63 }
 0x4bf   :  { %v6295_v26 = vadd.f32 %v15046_v28, %v6263_v47  ;;  %v6169_v37 = vadd.f32 %v6147_v54, %v14663_v10 }
 0x4c1   :  { %v6299_v41 = vadd.f32 %v6295_v26, %v6294_v8  ;;  %v6206_v39 = vmul.f32 %v6186_v14, %v6169_v37  ;;  %v6125_v0 = vpop.f32.mrf.mxu2 }
 0x4c2   :  { %v6126_v20 = vadd.f32 %v6125_v0, %v6103_v5 }
 0x4c3   :  { %v6243_v60 = vadd.f32 %v6223_v35, %v6206_v39 }
 0x4c4   :  { %v6148_v36 = vpop.f32.mrf.mxu3  ;;  %v6084_v45 = vpop.f32.mrf.mxu0 }
 0x4c5   :  { %v6268_v23 = vmax.f32 %v6243_v60, 0.0  ;;  %v6149_v18 = vadd.f32 %v6148_v36, %v6126_v20  ;;  %v6107_v48 = vpop.f32.mrf.mxu1 }
 0x4c7   :  { %v6296_v61 = vadd.f32 %v15058_v56, %v6268_v23  ;;  %v6174_v51 = vadd.f32 %v6149_v18, %v14701_v57 }
 0x4c9   :  { %v6211_v1 = vmul.f32 %v6186_v14, %v6174_v51  ;;  %v6128_v28 = vpop.f32.mrf.mxu2 }
 0x4ca   :  { %v6129_v10 = vadd.f32 %v6128_v28, %v6106_v12 }
 0x4cb   :  { %v6248_v62 = vadd.f32 %v6223_v35, %v6211_v1 }
 0x4cc   :  { %v6151_v24 = vpop.f32.mrf.mxu3 }
 0x4cd   :  { %v6273_v27 = vmax.f32 %v6248_v62, 0.0  ;;  %v6152_v43 = vadd.f32 %v6151_v24, %v6129_v10 }
 0x4cf   :  { %v6297_v32 = vadd.f32 %v15070_v42, %v6273_v27  ;;  %v6179_v30 = vadd.f32 %v6152_v43, %v14708_v38 }
 0x4d1   :  { %v6300_v9 = vadd.f32 %v6297_v32, %v6296_v61  ;;  %v6216_v59 = vmul.f32 %v6186_v14, %v6179_v30  ;;  %v6130_v19 = vpop.f32.mrf.mxu2 }
 0x4d3   :  { %v6253_v6 = vadd.f32 %v6223_v35, %v6216_v59  ;;  %v6301_v3 = vadd.f32 %v6300_v9, %v6299_v41 }
 0x4d4   :  { %v6153_v56 = vpop.f32.mrf.mxu3 }
 0x4d5   :  { %v6278_v34 = vmax.f32 %v6253_v6, 0.0 }
 0x4d7   :  { %v6298_v57 = vadd.f32 %v15080_v55, %v6278_v34 }
 0x4d9   :  { %v6302_v4 = vadd.f32 %v6301_v3, %v6298_v57 }
 0x4db   :  { %v6303_v25 = vpack.c.bf16 %v6302_v4, %v6302_v4 }
 0x4dd   :  { %6380 = vmatmul.bf16.vlgmr.msrb.gmra.mxu0 %v6303_v25 }
 0x55a   :  { %v6381_v44 = vpop.f32.mrf.mxu0 }
 0x55b   :  { %v6382_v42 = vadd.f32 %v9838_v7, %v6381_v44 }
 0x55d   :  { %6385 = vst [vmem:[%s15121_s9] sm:$0xff] %v6382_v42 }
 0x562   :  { %v6383_v38 = vpop.f32.mrf.mxu0 }

</bundles_post_ra>
